<compile_context>
chip_gen: v5e
topology: v5e:2x2
jax: 0.10.0
libtpu: 0.0.40
codegen_flags: <defaults>
</compile_context>

<pallas_src>
import math

import numpy as np
import jax
import jax.numpy as jnp
from jax.experimental import pallas as pl
from jax.experimental.pallas import tpu as pltpu

EPS = 1e-5
# eval-mode BatchNorm with fresh stats (mean=0, var=1, gamma=1, beta=0)
BN_SCALE = 1.0 / math.sqrt(1.0 + EPS)
_SEL_MATMUL_MIN_SRC = 16     # use MXU selection-matmuls when #source positions >= this


def _ceil_to(x, m):
    return -(-x // m) * m


# ---------------------------------------------------------------------------
# static spatial-selection helpers (built host-side, consumed by the kernels)
# ---------------------------------------------------------------------------

def _tap_pairs(H, W, stride):
    """3x3 window, pad=1: per tap k -> [(out_flat, in_flat), ...] (valid taps only)."""
    Ho, Wo = H // stride, W // stride
    taps = []
    for ky in range(3):
        for kx in range(3):
            pairs = []
            for yo in range(Ho):
                for xo in range(Wo):
                    yi = yo * stride + ky - 1
                    xi = xo * stride + kx - 1
                    if 0 <= yi < H and 0 <= xi < W:
                        pairs.append((yo * Wo + xo, yi * W + xi))
            taps.append(pairs)
    return taps


def _per_out_taps(H, W, stride):
    Ho, Wo = H // stride, W // stride
    per_out = [[] for _ in range(Ho * Wo)]
    for k, pairs in enumerate(_tap_pairs(H, W, stride)):
        for o, i in pairs:
            per_out[o].append((k, i))
    return per_out


def _dw_sel(H, W, stride):
    """0/1 selection matrices (9, Ho*Wo, H*W); OOB taps select nothing (zero pad)."""
    Ho, Wo = H // stride, W // stride
    sel = np.zeros((9, Ho * Wo, H * W), np.float32)
    for k, pairs in enumerate(_tap_pairs(H, W, stride)):
        for o, i in pairs:
            sel[k, o, i] = 1.0
    return jnp.asarray(sel)


def _avgpool_mat(H, W):
    """avg_pool2d(3, s2, p1, count_include_pad=True) as one (Ho*Wo, H*W) matrix."""
    Ho, Wo = H // 2, W // 2
    P = np.zeros((Ho * Wo, H * W), np.float32)
    for pairs in _tap_pairs(H, W, 2):
        for o, i in pairs:
            P[o, i] += 1.0
    return jnp.asarray(P / 9.0)


def _maxpool_sel(H, W):
    """maxpool(3, s2, p1) selection matrices; out-of-bounds taps are redirected to
    the (always valid) window centre so the running max is unaffected."""
    Ho, Wo = H // 2, W // 2
    sel = np.zeros((9, Ho * Wo, H * W), np.float32)
    for k in range(9):
        ky, kx = k // 3, k % 3
        for yo in range(Ho):
            for xo in range(Wo):
                yi, xi = 2 * yo + ky - 1, 2 * xo + kx - 1
                o = yo * Wo + xo
                if 0 <= yi < H and 0 <= xi < W:
                    sel[k, o, yi * W + xi] = 1.0
                else:
                    sel[k, o, (2 * yo) * W + 2 * xo] = 1.0
    return jnp.asarray(sel)


# ---------------------------------------------------------------------------- kernels

def _stem_kernel(p_ref, w_ref, b_ref, sel_ref, o_ref):
    """conv1 3x3 s2 (im2col matmul) + bias, fused with maxpool 3x3 s2 p1."""
    conv = jnp.dot(p_ref[0].astype(jnp.bfloat16), w_ref[...],
                   preferred_element_type=jnp.float32) + b_ref[...]      # (Hc*Wc, Cop)
    m = jnp.dot(sel_ref[0], conv, preferred_element_type=jnp.float32)
    for k in range(1, 9):
        m = jnp.maximum(m, jnp.dot(sel_ref[k], conv,
                                   preferred_element_type=jnp.float32))
    o_ref[0] = m                                                          # lane-dense store


def _depthwise(h, wd, bd, dw_sel_ref, dw_taps):
    """3x3 depthwise conv (+folded BN bias) on (HW, C) activations.
    Either 9 selection matmuls (MXU) or direct row combination for tiny maps."""
    if dw_sel_ref is not None:
        d = bd
        for k in range(9):
            d = d + jnp.dot(dw_sel_ref[k], h,
                            preferred_element_type=jnp.float32) * wd[k:k + 1, :]
        return d
    rows = []
    for taps_o in dw_taps:
        a = bd
        for (k, i) in taps_o:
            a = a + h[i:i + 1, :] * wd[k:k + 1, :]
        rows.append(a)
    return rows[0] if len(rows) == 1 else jnp.concatenate(rows, axis=0)


def _make_concat_kernel(use_sel, dw_taps, pool_taps, Cout_p):
    """First (stride-2, concat) ShuffleUnit of a stage, fully fused, one image/step."""

    def body(x_ref, wc_ref, bc_ref, wd_ref, bd_ref, we_ref, be_ref,
             dw_sel_ref, pool_sel_ref, o_ref):
        x = x_ref[0]                                              # (H*W, Cin_p)
        # grouped 1x1 compress + BN + ReLU (channel shuffle folded into columns)
        h = jnp.maximum(
            jnp.dot(x.astype(jnp.bfloat16), wc_ref[...],
                    preferred_element_type=jnp.float32) + bc_ref[...], 0.0)
        # depthwise 3x3 stride 2 + BN, computed directly at stride 2
        d = _depthwise(h, wd_ref[...], bd_ref[...], dw_sel_ref, dw_taps)
        # grouped 1x1 expand + BN; weights embedded at output-column offset Cin
        out = jnp.dot(d.astype(jnp.bfloat16), we_ref[...],
                      preferred_element_type=jnp.float32) + be_ref[...]
        # avg-pool 3x3 s2 p1 residual (count_include_pad) -> columns [0, Cin)
        if pool_sel_ref is not None:
            res = jnp.dot(pool_sel_ref[...], x, preferred_element_type=jnp.float32)
        else:
            rows = []
            for taps_o in pool_taps:
                a = None
                for (_k, i) in taps_o:
                    a = x[i:i + 1, :] if a is None else a + x[i:i + 1, :]
                rows.append(a * (1.0 / 9.0))
            res = rows[0] if len(rows) == 1 else jnp.concatenate(rows, axis=0)
        # residual's padded columns and out's first-Cin columns are both zero,
        # so the merge is a plain add followed by ONE lane-dense full-width store.
        pad = Cout_p - res.shape[-1]
        if pad:
            res = jnp.concatenate(
                [res, jnp.zeros((res.shape[0], pad), jnp.float32)], axis=-1)
        o_ref[0] = jnp.maximum(out + res, 0.0)

    if use_sel:
        return body

    def kernel(x_ref, wc_ref, bc_ref, wd_ref, bd_ref, we_ref, be_ref, o_ref):
        body(x_ref, wc_ref, bc_ref, wd_ref, bd_ref, we_ref, be_ref,
             None, None, o_ref)
    return kernel


def _make_add_chain_kernel(use_sel, dw_taps):
    """All stride-1 'add' units of one stage fused in a single call.
    grid = (batch, unit); the running activation lives in a VMEM scratch."""

    def body(x_ref, wc_ref, bc_ref, wd_ref, bd_ref, we_ref, be_ref,
             dw_sel_ref, o_ref, act_ref):
        @pl.when(pl.program_id(1) == 0)
        def _():
            act_ref[...] = x_ref[0]

        x = act_ref[...]                                          # (HW, C)
        h = jnp.maximum(
            jnp.dot(x.astype(jnp.bfloat16), wc_ref[0],
                    preferred_element_type=jnp.float32) + bc_ref[0], 0.0)
        d = _depthwise(h, wd_ref[0], bd_ref[0], dw_sel_ref, dw_taps)
        out = jnp.dot(d.astype(jnp.bfloat16), we_ref[0],
                      preferred_element_type=jnp.float32) + be_ref[0]
        y = jnp.maximum(x + out, 0.0)
        act_ref[...] = y
        o_ref[0] = y

    if use_sel:
        return body

    def kernel(x_ref, wc_ref, bc_ref, wd_ref, bd_ref, we_ref, be_ref,
               o_ref, act_ref):
        body(x_ref, wc_ref, bc_ref, wd_ref, bd_ref, we_ref, be_ref,
             None, o_ref, act_ref)
    return kernel


# ---------------------------------------------------------------------------- wrappers

def _const_spec(shape, grid_rank):
    zeros = (0,) * len(shape)
    if grid_rank == 1:
        return pl.BlockSpec(shape, lambda b: zeros)
    return pl.BlockSpec(shape, lambda b, u: zeros)


def stem_forward(x_nchw, w, b, sel):
    x = jnp.transpose(x_nchw, (0, 2, 3, 1)).astype(jnp.float32)      # NHWC
    B, H, W, C = x.shape
    Hc, Wc = H // 2, W // 2
    Ho, Wo = Hc // 2, Wc // 2
    Co = w.shape[-1]

    # im2col for the stride-2 3x3 conv (cheap XLA glue on a tiny tensor)
    xp = jnp.pad(x, ((0, 0), (1, 1), (1, 1), (0, 0)))
    cols = [xp[:, ky:ky + H:2, kx:kx + W:2, :] for ky in range(3) for kx in range(3)]
    patches = jnp.concatenate(cols, axis=-1).reshape(B, Hc * Wc, 9 * C)

    return pl.pallas_call(
        _stem_kernel,
        grid_spec=pltpu.PrefetchScalarGridSpec(
            num_scalar_prefetch=0,
            grid=(B,),
            in_specs=[
                pl.BlockSpec((1, Hc * Wc, 9 * C), lambda bi: (bi, 0, 0)),
                _const_spec(w.shape, 1),
                _const_spec(b.shape, 1),
                _const_spec(sel.shape, 1),
            ],
            out_specs=pl.BlockSpec((1, Ho * Wo, Co), lambda bi: (bi, 0, 0)),
        ),
        out_shape=jax.ShapeDtypeStruct((B, Ho * Wo, Co), jnp.float32),
        compiler_params=pltpu.CompilerParams(dimension_semantics=("parallel",)),
    )(patches, w, b, sel)


def concat_unit_forward(x, p, H, W):
    B, HW, Cin_p = x.shape
    Ho, Wo = H // 2, W // 2
    Cout_p = p["we"].shape[-1]
    use_sel = "dw_sel" in p

    kern = _make_concat_kernel(use_sel, p.get("dw_taps"), p.get("pool_taps"), Cout_p)

    in_specs = [
        pl.BlockSpec((1, HW, Cin_p), lambda bi: (bi, 0, 0)),
        _const_spec(p["wc"].shape, 1),
        _const_spec(p["bc"].shape, 1),
        _const_spec(p["wd"].shape, 1),
        _const_spec(p["bd"].shape, 1),
        _const_spec(p["we"].shape, 1),
        _const_spec(p["be"].shape, 1),
    ]
    args = [x, p["wc"], p["bc"], p["wd"], p["bd"], p["we"], p["be"]]
    if use_sel:
        in_specs += [_const_spec(p["dw_sel"].shape, 1),
                     _const_spec(p["pool_sel"].shape, 1)]
        args += [p["dw_sel"], p["pool_sel"]]

    return pl.pallas_call(
        kern,
        grid_spec=pltpu.PrefetchScalarGridSpec(
            num_scalar_prefetch=0,
            grid=(B,),
            in_specs=in_specs,
            out_specs=pl.BlockSpec((1, Ho * Wo, Cout_p), lambda bi: (bi, 0, 0)),
        ),
        out_shape=jax.ShapeDtypeStruct((B, Ho * Wo, Cout_p), jnp.float32),
        compiler_params=pltpu.CompilerParams(dimension_semantics=("parallel",)),
    )(*args)


def add_chain_forward(x, p, H, W):
    B, HW, C = x.shape
    U = p["wc"].shape[0]
    Cbp = p["wc"].shape[-1]
    use_sel = "dw_sel" in p

    kern = _make_add_chain_kernel(use_sel, p.get("dw_taps"))

    in_specs = [
        pl.BlockSpec((1, HW, C), lambda bi, ui: (bi, 0, 0)),
        pl.BlockSpec((1, C, Cbp), lambda bi, ui: (ui, 0, 0)),
        pl.BlockSpec((1, 1, Cbp), lambda bi, ui: (ui, 0, 0)),
        pl.BlockSpec((1, 9, Cbp), lambda bi, ui: (ui, 0, 0)),
        pl.BlockSpec((1, 1, Cbp), lambda bi, ui: (ui, 0, 0)),
        pl.BlockSpec((1, Cbp, C), lambda bi, ui: (ui, 0, 0)),
        pl.BlockSpec((1, 1, C), lambda bi, ui: (ui, 0, 0)),
    ]
    args = [x, p["wc"], p["bc"], p["wd"], p["bd"], p["we"], p["be"]]
    if use_sel:
        in_specs.append(_const_spec(p["dw_sel"].shape, 2))
        args.append(p["dw_sel"])

    return pl.pallas_call(
        kern,
        grid_spec=pltpu.PrefetchScalarGridSpec(
            num_scalar_prefetch=0,
            grid=(B, U),
            in_specs=in_specs,
            out_specs=pl.BlockSpec((1, HW, C), lambda bi, ui: (bi, 0, 0)),
            scratch_shapes=[pltpu.VMEM((HW, C), jnp.float32)],
        ),
        out_shape=jax.ShapeDtypeStruct((B, HW, C), jnp.float32),
        compiler_params=pltpu.CompilerParams(
            dimension_semantics=("parallel", "arbitrary")),
    )(*args)


# ---------------------------------------------------------------------------- parameters

class KeyGen:
    def __init__(self, key):
        self.key = key
        self.i = 0

    def __call__(self):
        self.i += 1
        return jax.random.fold_in(self.key, self.i)


def _normal(kg, shape, scale=0.1):
    return jax.random.normal(kg(), shape, jnp.float32) * scale


def _block_diag(wg):
    # wg: (g, kin, kout) -> dense block-diagonal (g*kin, g*kout)
    g, kin, kout = wg.shape
    out = jnp.zeros((g * kin, g * kout), jnp.float32)
    for i in range(g):
        out = out.at[i * kin:(i + 1) * kin, i * kout:(i + 1) * kout].set(wg[i])
    return out


def init_unit(kg, in_ch, out_ch, groups, grouped_conv, combine, in_pad, out_pad):
    bottleneck = out_ch // 4
    g1 = groups if grouped_conv else 1
    conv_out = out_ch - in_ch if combine == "concat" else out_ch
    cbp = _ceil_to(bottleneck, 128)

    # compress 1x1 (+BN fold) with the channel shuffle folded into output columns
    wc = _block_diag(_normal(kg, (g1, in_ch // g1, bottleneck // g1))) * BN_SCALE
    bc = _normal(kg, (bottleneck,)) * BN_SCALE
    cpg = bottleneck // groups
    perm = np.array([(j % groups) * cpg + j // groups for j in range(bottleneck)])
    wc = wc[:, perm]
    bc = bc[perm]
    wc = jnp.pad(wc, ((0, in_pad - in_ch), (0, cbp - bottleneck)))
    bc = jnp.pad(bc, (0, cbp - bottleneck))

    # depthwise 3x3 (+BN-after-depthwise fold)
    wd = jnp.pad(_normal(kg, (9, bottleneck)) * BN_SCALE,
                 ((0, 0), (0, cbp - bottleneck)))
    bd = jnp.pad(_normal(kg, (bottleneck,)) * BN_SCALE, (0, cbp - bottleneck))

    # expand 1x1 (+BN fold); for concat, embed at output-column offset in_ch so the
    # kernel can merge the avg-pool residual with a single lane-dense add+store.
    we = _block_diag(_normal(kg, (groups, bottleneck // groups,
                                  conv_out // groups))) * BN_SCALE
    be = _normal(kg, (conv_out,)) * BN_SCALE
    we = jnp.pad(we, ((0, cbp - bottleneck), (0, 0)))
    if combine == "concat":
        we = jnp.pad(we, ((0, 0), (in_ch, out_pad - in_ch - conv_out)))
        be = jnp.pad(be, (in_ch, out_pad - in_ch - conv_out))
    else:
        we = jnp.pad(we, ((0, 0), (0, out_pad - conv_out)))
        be = jnp.pad(be, (0, out_pad - conv_out))

    return dict(
        wc=wc.astype(jnp.bfloat16), bc=bc.reshape(1, -1),
        wd=wd, bd=bd.reshape(1, -1),
        we=we.astype(jnp.bfloat16), be=be.reshape(1, -1),
    )


def init_model(key, in_hw=32):
    kg = KeyGen(key)
    groups = 3
    stage_out = [-1, 24, 240, 480, 960]
    stage_repeats = [3, 7, 3]
    stem_ch, stem_pad = 24, 128

    params = {
        "stem_channels": stem_ch,
        "conv1_w": jnp.pad(_normal(kg, (27, stem_ch)),
                           ((0, 0), (0, stem_pad - stem_ch))).astype(jnp.bfloat16),
        "conv1_b": jnp.pad(_normal(kg, (stem_ch,)),
                           (0, stem_pad - stem_ch)).reshape(1, -1),
        "stem_sel": _maxpool_sel(in_hw // 2, in_hw // 2),
    }

    H = in_hw // 4
    in_ch, in_pad = stem_ch, stem_pad
    for stage in (2, 3, 4):
        grouped = stage > 2
        out_ch = stage_out[stage]
        out_pad = _ceil_to(out_ch, 128)

        first = init_unit(kg, in_ch, out_ch, groups, grouped, "concat", in_pad, out_pad)
        if H * H >= _SEL_MATMUL_MIN_SRC:
            first["dw_sel"] = _dw_sel(H, H, 2)
            first["pool_sel"] = _avgpool_mat(H, H)
        else:
            first["dw_taps"] = _per_out_taps(H, H, 2)
            first["pool_taps"] = _per_out_taps(H, H, 2)
        H //= 2

        units = [init_unit(kg, out_ch, out_ch, groups, True, "add", out_pad, out_pad)
                 for _ in range(stage_repeats[stage - 2])]
        rest = {k: jnp.stack([u[k] for u in units])
                for k in ("wc", "bc", "wd", "bd", "we", "be")}
        if H * H >= _SEL_MATMUL_MIN_SRC:
            rest["dw_sel"] = _dw_sel(H, H, 1)
        else:
            rest["dw_taps"] = _per_out_taps(H, H, 1)

        params[f"stage{stage}"] = {"first": first, "rest": rest, "out_ch": out_ch}
        in_ch, in_pad = out_ch, out_pad
    return params


# ---------------------------------------------------------------------------- forward

def shufflenet_forward(x_nchw, params):
    B, _, Hin, Win = x_nchw.shape
    out1 = stem_forward(x_nchw, params["conv1_w"], params["conv1_b"],
                        params["stem_sel"])                       # (B, (Hin//4)^2, 128)
    H, W = Hin // 4, Win // 4
    H1, W1 = H, W

    feats = []
    x = out1
    for s in (2, 3, 4):
        st = params[f"stage{s}"]
        x = concat_unit_forward(x, st["first"], H, W)
        H, W = H // 2, W // 2
        x = add_chain_forward(x, st["rest"], H, W)
        feats.append((x, H, W, st["out_ch"]))

    def to_nchw(flat, h, w, c):
        return jnp.transpose(flat[..., :c].reshape(B, h, w, c), (0, 3, 1, 2))

    return (to_nchw(out1, H1, W1, params["stem_channels"]),
            to_nchw(*feats[0]),
            to_nchw(*feats[1]),
            to_nchw(*feats[2]))


# ---------------------------------------------------------------------------- main

if __name__ == "__main__":
    params = init_model(jax.random.PRNGKey(0), in_hw=32)
    x = jax.random.normal(jax.random.PRNGKey(0), (2, 3, 32, 32), jnp.float32)

    fwd = jax.jit(lambda inp: shufflenet_forward(inp, params))
    out1, out2, out3, out4 = fwd(x)
    for o in (out1, out2, out3, out4):
        jax.block_until_ready(o)

    assert out1.shape == (2, 24, 8, 8)
    assert out2.shape == (2, 240, 4, 4)
    assert out3.shape == (2, 480, 2, 2)
    assert out4.shape == (2, 960, 1, 1)
    assert all(bool(jnp.all(jnp.isfinite(o))) for o in (out1, out2, out3, out4))

    print("KERNEL_OK")
</pallas_src>

<mosaic_0001>
module attributes {stable_mosaic.version = 11 : i64} {
  func.func @_stem_kernel(%arg0: i32, %arg1: memref<1x256x27xf32, #tpu.memory_space<vmem>>, %arg2: memref<27x128xbf16, #tpu.memory_space<vmem>>, %arg3: memref<1x128xf32, #tpu.memory_space<vmem>>, %arg4: memref<9x64x256xf32, #tpu.memory_space<vmem>>, %arg5: memref<1x64x128xf32, #tpu.memory_space<vmem>>) attributes {dimension_semantics = [#tpu.dimension_semantics<parallel>], iteration_bounds = array<i64: 2>, scalar_prefetch = 0 : i64, scratch_operands = 0 : i64, tpu.core_type = #tpu.core_type<tc>, window_params = [{transform_indices = @transform_0, window_bounds = array<i64: 1, 256, 27>}, {pipeline_mode = #tpu.pipeline_mode<synchronous>, transform_indices = @transform_1, window_bounds = array<i64: 27, 128>}, {pipeline_mode = #tpu.pipeline_mode<synchronous>, transform_indices = @transform_2, window_bounds = array<i64: 1, 128>}, {pipeline_mode = #tpu.pipeline_mode<synchronous>, transform_indices = @transform_3, window_bounds = array<i64: 9, 64, 256>}, {transform_indices = @transform_4, window_bounds = array<i64: 1, 64, 128>}]} {
    %c0 = arith.constant 0 : index
    %c0_0 = arith.constant 0 : index
    %c0_1 = arith.constant 0 : index
    %0 = vector.load %arg1[%c0, %c0_0, %c0_1] : memref<1x256x27xf32, #tpu.memory_space<vmem>>, vector<1x256x27xf32>
    %1 = vector.shape_cast %0 : vector<1x256x27xf32> to vector<256x27xf32>
    %2 = arith.truncf %1 : vector<256x27xf32> to vector<256x27xbf16>
    %c0_2 = arith.constant 0 : index
    %c0_3 = arith.constant 0 : index
    %3 = vector.load %arg2[%c0_2, %c0_3] : memref<27x128xbf16, #tpu.memory_space<vmem>>, vector<27x128xbf16>
    %cst = arith.constant dense<0.000000e+00> : vector<256x128xf32>
    %4 = tpu.matmul %2, %3, %cst {dimension_numbers = #tpu.dot_dimension_numbers<[1], [0], [0], [1], [0, 0, 1, 1], [], []>} : vector<256x27xbf16>, vector<27x128xbf16>, vector<256x128xf32> -> vector<256x128xf32>
    %c0_4 = arith.constant 0 : index
    %c0_5 = arith.constant 0 : index
    %5 = vector.load %arg3[%c0_4, %c0_5] : memref<1x128xf32, #tpu.memory_space<vmem>>, vector<1x128xf32>
    %6 = vector.broadcast %5 : vector<1x128xf32> to vector<256x128xf32>
    %7 = arith.addf %4, %6 : vector<256x128xf32>
    %c0_6 = arith.constant 0 : index
    %c0_7 = arith.constant 0 : index
    %c0_8 = arith.constant 0 : index
    %8 = vector.load %arg4[%c0_6, %c0_7, %c0_8] : memref<9x64x256xf32, #tpu.memory_space<vmem>>, vector<1x64x256xf32>
    %9 = vector.shape_cast %8 : vector<1x64x256xf32> to vector<64x256xf32>
    %cst_9 = arith.constant dense<0.000000e+00> : vector<64x128xf32>
    %10 = tpu.matmul %9, %7, %cst_9 {dimension_numbers = #tpu.dot_dimension_numbers<[1], [0], [0], [1], [0, 0, 1, 1], [], []>} : vector<64x256xf32>, vector<256x128xf32>, vector<64x128xf32> -> vector<64x128xf32>
    %c1 = arith.constant 1 : index
    %c0_10 = arith.constant 0 : index
    %c0_11 = arith.constant 0 : index
    %11 = vector.load %arg4[%c1, %c0_10, %c0_11] : memref<9x64x256xf32, #tpu.memory_space<vmem>>, vector<1x64x256xf32>
    %12 = vector.shape_cast %11 : vector<1x64x256xf32> to vector<64x256xf32>
    %cst_12 = arith.constant dense<0.000000e+00> : vector<64x128xf32>
    %13 = tpu.matmul %12, %7, %cst_12 {dimension_numbers = #tpu.dot_dimension_numbers<[1], [0], [0], [1], [0, 0, 1, 1], [], []>} : vector<64x256xf32>, vector<256x128xf32>, vector<64x128xf32> -> vector<64x128xf32>
    %14 = arith.maximumf %10, %13 : vector<64x128xf32>
    %c2 = arith.constant 2 : index
    %c0_13 = arith.constant 0 : index
    %c0_14 = arith.constant 0 : index
    %15 = vector.load %arg4[%c2, %c0_13, %c0_14] : memref<9x64x256xf32, #tpu.memory_space<vmem>>, vector<1x64x256xf32>
    %16 = vector.shape_cast %15 : vector<1x64x256xf32> to vector<64x256xf32>
    %cst_15 = arith.constant dense<0.000000e+00> : vector<64x128xf32>
    %17 = tpu.matmul %16, %7, %cst_15 {dimension_numbers = #tpu.dot_dimension_numbers<[1], [0], [0], [1], [0, 0, 1, 1], [], []>} : vector<64x256xf32>, vector<256x128xf32>, vector<64x128xf32> -> vector<64x128xf32>
    %18 = arith.maximumf %14, %17 : vector<64x128xf32>
    %c3 = arith.constant 3 : index
    %c0_16 = arith.constant 0 : index
    %c0_17 = arith.constant 0 : index
    %19 = vector.load %arg4[%c3, %c0_16, %c0_17] : memref<9x64x256xf32, #tpu.memory_space<vmem>>, vector<1x64x256xf32>
    %20 = vector.shape_cast %19 : vector<1x64x256xf32> to vector<64x256xf32>
    %cst_18 = arith.constant dense<0.000000e+00> : vector<64x128xf32>
    %21 = tpu.matmul %20, %7, %cst_18 {dimension_numbers = #tpu.dot_dimension_numbers<[1], [0], [0], [1], [0, 0, 1, 1], [], []>} : vector<64x256xf32>, vector<256x128xf32>, vector<64x128xf32> -> vector<64x128xf32>
    %22 = arith.maximumf %18, %21 : vector<64x128xf32>
    %c4 = arith.constant 4 : index
    %c0_19 = arith.constant 0 : index
    %c0_20 = arith.constant 0 : index
    %23 = vector.load %arg4[%c4, %c0_19, %c0_20] : memref<9x64x256xf32, #tpu.memory_space<vmem>>, vector<1x64x256xf32>
    %24 = vector.shape_cast %23 : vector<1x64x256xf32> to vector<64x256xf32>
    %cst_21 = arith.constant dense<0.000000e+00> : vector<64x128xf32>
    %25 = tpu.matmul %24, %7, %cst_21 {dimension_numbers = #tpu.dot_dimension_numbers<[1], [0], [0], [1], [0, 0, 1, 1], [], []>} : vector<64x256xf32>, vector<256x128xf32>, vector<64x128xf32> -> vector<64x128xf32>
    %26 = arith.maximumf %22, %25 : vector<64x128xf32>
    %c5 = arith.constant 5 : index
    %c0_22 = arith.constant 0 : index
    %c0_23 = arith.constant 0 : index
    %27 = vector.load %arg4[%c5, %c0_22, %c0_23] : memref<9x64x256xf32, #tpu.memory_space<vmem>>, vector<1x64x256xf32>
    %28 = vector.shape_cast %27 : vector<1x64x256xf32> to vector<64x256xf32>
    %cst_24 = arith.constant dense<0.000000e+00> : vector<64x128xf32>
    %29 = tpu.matmul %28, %7, %cst_24 {dimension_numbers = #tpu.dot_dimension_numbers<[1], [0], [0], [1], [0, 0, 1, 1], [], []>} : vector<64x256xf32>, vector<256x128xf32>, vector<64x128xf32> -> vector<64x128xf32>
    %30 = arith.maximumf %26, %29 : vector<64x128xf32>
    %c6 = arith.constant 6 : index
    %c0_25 = arith.constant 0 : index
    %c0_26 = arith.constant 0 : index
    %31 = vector.load %arg4[%c6, %c0_25, %c0_26] : memref<9x64x256xf32, #tpu.memory_space<vmem>>, vector<1x64x256xf32>
    %32 = vector.shape_cast %31 : vector<1x64x256xf32> to vector<64x256xf32>
    %cst_27 = arith.constant dense<0.000000e+00> : vector<64x128xf32>
    %33 = tpu.matmul %32, %7, %cst_27 {dimension_numbers = #tpu.dot_dimension_numbers<[1], [0], [0], [1], [0, 0, 1, 1], [], []>} : vector<64x256xf32>, vector<256x128xf32>, vector<64x128xf32> -> vector<64x128xf32>
    %34 = arith.maximumf %30, %33 : vector<64x128xf32>
    %c7 = arith.constant 7 : index
    %c0_28 = arith.constant 0 : index
    %c0_29 = arith.constant 0 : index
    %35 = vector.load %arg4[%c7, %c0_28, %c0_29] : memref<9x64x256xf32, #tpu.memory_space<vmem>>, vector<1x64x256xf32>
    %36 = vector.shape_cast %35 : vector<1x64x256xf32> to vector<64x256xf32>
    %cst_30 = arith.constant dense<0.000000e+00> : vector<64x128xf32>
    %37 = tpu.matmul %36, %7, %cst_30 {dimension_numbers = #tpu.dot_dimension_numbers<[1], [0], [0], [1], [0, 0, 1, 1], [], []>} : vector<64x256xf32>, vector<256x128xf32>, vector<64x128xf32> -> vector<64x128xf32>
    %38 = arith.maximumf %34, %37 : vector<64x128xf32>
    %c8 = arith.constant 8 : index
    %c0_31 = arith.constant 0 : index
    %c0_32 = arith.constant 0 : index
    %39 = vector.load %arg4[%c8, %c0_31, %c0_32] : memref<9x64x256xf32, #tpu.memory_space<vmem>>, vector<1x64x256xf32>
    %40 = vector.shape_cast %39 : vector<1x64x256xf32> to vector<64x256xf32>
    %cst_33 = arith.constant dense<0.000000e+00> : vector<64x128xf32>
    %41 = tpu.matmul %40, %7, %cst_33 {dimension_numbers = #tpu.dot_dimension_numbers<[1], [0], [0], [1], [0, 0, 1, 1], [], []>} : vector<64x256xf32>, vector<256x128xf32>, vector<64x128xf32> -> vector<64x128xf32>
    %42 = arith.maximumf %38, %41 : vector<64x128xf32>
    %c0_34 = arith.constant 0 : index
    %c0_35 = arith.constant 0 : index
    %c0_36 = arith.constant 0 : index
    %43 = vector.load %arg5[%c0_34, %c0_35, %c0_36] : memref<1x64x128xf32, #tpu.memory_space<vmem>>, vector<1x64x128xf32>
    %44 = vector.shape_cast %43 : vector<1x64x128xf32> to vector<64x128xf32>
    %45 = vector.shape_cast %42 : vector<64x128xf32> to vector<1x64x128xf32>
    tpu.vector_store %arg5[%c0_34, %c0_35, %c0_36], %45 {strides = array<i32>} : memref<1x64x128xf32, #tpu.memory_space<vmem>>, vector<1x64x128xf32>,
    return
  }
  func.func @transform_0(%arg0: i32) -> (i32, i32, i32) {
    %c0_i32 = arith.constant 0 : i32
    %c0_i32_0 = arith.constant 0 : i32
    %c0_i32_1 = arith.constant 0 : i32
    return %arg0, %c0_i32, %c0_i32_0 : i32, i32, i32
  }
  func.func @transform_1(%arg0: i32) -> (i32, i32) {
    %c0_i32 = arith.constant 0 : i32
    %c0_i32_0 = arith.constant 0 : i32
    %c0_i32_1 = arith.constant 0 : i32
    return %c0_i32, %c0_i32_0 : i32, i32
  }
  func.func @transform_2(%arg0: i32) -> (i32, i32) {
    %c0_i32 = arith.constant 0 : i32
    %c0_i32_0 = arith.constant 0 : i32
    %c0_i32_1 = arith.constant 0 : i32
    return %c0_i32, %c0_i32_0 : i32, i32
  }
  func.func @transform_3(%arg0: i32) -> (i32, i32, i32) {
    %c0_i32 = arith.constant 0 : i32
    %c0_i32_0 = arith.constant 0 : i32
    %c0_i32_1 = arith.constant 0 : i32
    %c0_i32_2 = arith.constant 0 : i32
    return %c0_i32, %c0_i32_0, %c0_i32_1 : i32, i32, i32
  }
  func.func @transform_4(%arg0: i32) -> (i32, i32, i32) {
    %c0_i32 = arith.constant 0 : i32
    %c0_i32_0 = arith.constant 0 : i32
    %c0_i32_1 = arith.constant 0 : i32
    return %arg0, %c0_i32, %c0_i32_0 : i32, i32, i32
  }
}

module attributes {stable_mosaic.version = 11 : i64} {
  func.func @body(%arg0: i32, %arg1: memref<1x64x128xf32, #tpu.memory_space<vmem>>, %arg2: memref<128x128xbf16, #tpu.memory_space<vmem>>, %arg3: memref<1x128xf32, #tpu.memory_space<vmem>>, %arg4: memref<9x128xf32, #tpu.memory_space<vmem>>, %arg5: memref<1x128xf32, #tpu.memory_space<vmem>>, %arg6: memref<128x256xbf16, #tpu.memory_space<vmem>>, %arg7: memref<1x256xf32, #tpu.memory_space<vmem>>, %arg8: memref<9x16x64xf32, #tpu.memory_space<vmem>>, %arg9: memref<16x64xf32, #tpu.memory_space<vmem>>, %arg10: memref<1x16x256xf32, #tpu.memory_space<vmem>>) attributes {dimension_semantics = [#tpu.dimension_semantics<parallel>], iteration_bounds = array<i64: 2>, scalar_prefetch = 0 : i64, scratch_operands = 0 : i64, tpu.core_type = #tpu.core_type<tc>, window_params = [{transform_indices = @transform_0, window_bounds = array<i64: 1, 64, 128>}, {pipeline_mode = #tpu.pipeline_mode<synchronous>, transform_indices = @transform_1, window_bounds = array<i64: 128, 128>}, {pipeline_mode = #tpu.pipeline_mode<synchronous>, transform_indices = @transform_2, window_bounds = array<i64: 1, 128>}, {pipeline_mode = #tpu.pipeline_mode<synchronous>, transform_indices = @transform_3, window_bounds = array<i64: 9, 128>}, {pipeline_mode = #tpu.pipeline_mode<synchronous>, transform_indices = @transform_4, window_bounds = array<i64: 1, 128>}, {pipeline_mode = #tpu.pipeline_mode<synchronous>, transform_indices = @transform_5, window_bounds = array<i64: 128, 256>}, {pipeline_mode = #tpu.pipeline_mode<synchronous>, transform_indices = @transform_6, window_bounds = array<i64: 1, 256>}, {pipeline_mode = #tpu.pipeline_mode<synchronous>, transform_indices = @transform_7, window_bounds = array<i64: 9, 16, 64>}, {pipeline_mode = #tpu.pipeline_mode<synchronous>, transform_indices = @transform_8, window_bounds = array<i64: 16, 64>}, {transform_indices = @transform_9, window_bounds = array<i64: 1, 16, 256>}]} {
    %c0 = arith.constant 0 : index
    %c0_0 = arith.constant 0 : index
    %c0_1 = arith.constant 0 : index
    %0 = vector.load %arg1[%c0, %c0_0, %c0_1] : memref<1x64x128xf32, #tpu.memory_space<vmem>>, vector<1x64x128xf32>
    %1 = vector.shape_cast %0 : vector<1x64x128xf32> to vector<64x128xf32>
    %2 = arith.truncf %1 : vector<64x128xf32> to vector<64x128xbf16>
    %c0_2 = arith.constant 0 : index
    %c0_3 = arith.constant 0 : index
    %3 = vector.load %arg2[%c0_2, %c0_3] : memref<128x128xbf16, #tpu.memory_space<vmem>>, vector<128x128xbf16>
    %cst = arith.constant dense<0.000000e+00> : vector<64x128xf32>
    %4 = tpu.matmul %2, %3, %cst {dimension_numbers = #tpu.dot_dimension_numbers<[1], [0], [0], [1], [0, 0, 1, 1], [], []>} : vector<64x128xbf16>, vector<128x128xbf16>, vector<64x128xf32> -> vector<64x128xf32>
    %c0_4 = arith.constant 0 : index
    %c0_5 = arith.constant 0 : index
    %5 = vector.load %arg3[%c0_4, %c0_5] : memref<1x128xf32, #tpu.memory_space<vmem>>, vector<1x128xf32>
    %6 = vector.broadcast %5 : vector<1x128xf32> to vector<64x128xf32>
    %7 = arith.addf %4, %6 : vector<64x128xf32>
    %cst_6 = arith.constant 0.000000e+00 : f32
    %8 = vector.broadcast %cst_6 : f32 to vector<64x128xf32>
    %9 = arith.maximumf %7, %8 : vector<64x128xf32>
    %c0_7 = arith.constant 0 : index
    %c0_8 = arith.constant 0 : index
    %10 = vector.load %arg4[%c0_7, %c0_8] : memref<9x128xf32, #tpu.memory_space<vmem>>, vector<9x128xf32>
    %c0_9 = arith.constant 0 : index
    %c0_10 = arith.constant 0 : index
    %11 = vector.load %arg5[%c0_9, %c0_10] : memref<1x128xf32, #tpu.memory_space<vmem>>, vector<1x128xf32>
    %c0_11 = arith.constant 0 : index
    %c0_12 = arith.constant 0 : index
    %c0_13 = arith.constant 0 : index
    %12 = vector.load %arg8[%c0_11, %c0_12, %c0_13] : memref<9x16x64xf32, #tpu.memory_space<vmem>>, vector<1x16x64xf32>
    %13 = vector.shape_cast %12 : vector<1x16x64xf32> to vector<16x64xf32>
    %cst_14 = arith.constant dense<0.000000e+00> : vector<16x128xf32>
    %14 = tpu.matmul %13, %9, %cst_14 {dimension_numbers = #tpu.dot_dimension_numbers<[1], [0], [0], [1], [0, 0, 1, 1], [], []>} : vector<16x64xf32>, vector<64x128xf32>, vector<16x128xf32> -> vector<16x128xf32>
    %15 = vector.extract_strided_slice %10 {offsets = [0, 0], sizes = [1, 128], strides = [1, 1]} : vector<9x128xf32> to vector<1x128xf32>
    %16 = vector.broadcast %15 : vector<1x128xf32> to vector<16x128xf32>
    %17 = arith.mulf %14, %16 : vector<16x128xf32>
    %18 = vector.broadcast %11 : vector<1x128xf32> to vector<16x128xf32>
    %19 = arith.addf %18, %17 : vector<16x128xf32>
    %c1 = arith.constant 1 : index
    %c0_15 = arith.constant 0 : index
    %c0_16 = arith.constant 0 : index
    %20 = vector.load %arg8[%c1, %c0_15, %c0_16] : memref<9x16x64xf32, #tpu.memory_space<vmem>>, vector<1x16x64xf32>
    %21 = vector.shape_cast %20 : vector<1x16x64xf32> to vector<16x64xf32>
    %cst_17 = arith.constant dense<0.000000e+00> : vector<16x128xf32>
    %22 = tpu.matmul %21, %9, %cst_17 {dimension_numbers = #tpu.dot_dimension_numbers<[1], [0], [0], [1], [0, 0, 1, 1], [], []>} : vector<16x64xf32>, vector<64x128xf32>, vector<16x128xf32> -> vector<16x128xf32>
    %23 = vector.extract_strided_slice %10 {offsets = [1, 0], sizes = [1, 128], strides = [1, 1]} : vector<9x128xf32> to vector<1x128xf32>
    %24 = vector.broadcast %23 : vector<1x128xf32> to vector<16x128xf32>
    %25 = arith.mulf %22, %24 : vector<16x128xf32>
    %26 = arith.addf %19, %25 : vector<16x128xf32>
    %c2 = arith.constant 2 : index
    %c0_18 = arith.constant 0 : index
    %c0_19 = arith.constant 0 : index
    %27 = vector.load %arg8[%c2, %c0_18, %c0_19] : memref<9x16x64xf32, #tpu.memory_space<vmem>>, vector<1x16x64xf32>
    %28 = vector.shape_cast %27 : vector<1x16x64xf32> to vector<16x64xf32>
    %cst_20 = arith.constant dense<0.000000e+00> : vector<16x128xf32>
    %29 = tpu.matmul %28, %9, %cst_20 {dimension_numbers = #tpu.dot_dimension_numbers<[1], [0], [0], [1], [0, 0, 1, 1], [], []>} : vector<16x64xf32>, vector<64x128xf32>, vector<16x128xf32> -> vector<16x128xf32>
    %30 = vector.extract_strided_slice %10 {offsets = [2, 0], sizes = [1, 128], strides = [1, 1]} : vector<9x128xf32> to vector<1x128xf32>
    %31 = vector.broadcast %30 : vector<1x128xf32> to vector<16x128xf32>
    %32 = arith.mulf %29, %31 : vector<16x128xf32>
    %33 = arith.addf %26, %32 : vector<16x128xf32>
    %c3 = arith.constant 3 : index
    %c0_21 = arith.constant 0 : index
    %c0_22 = arith.constant 0 : index
    %34 = vector.load %arg8[%c3, %c0_21, %c0_22] : memref<9x16x64xf32, #tpu.memory_space<vmem>>, vector<1x16x64xf32>
    %35 = vector.shape_cast %34 : vector<1x16x64xf32> to vector<16x64xf32>
    %cst_23 = arith.constant dense<0.000000e+00> : vector<16x128xf32>
    %36 = tpu.matmul %35, %9, %cst_23 {dimension_numbers = #tpu.dot_dimension_numbers<[1], [0], [0], [1], [0, 0, 1, 1], [], []>} : vector<16x64xf32>, vector<64x128xf32>, vector<16x128xf32> -> vector<16x128xf32>
    %37 = vector.extract_strided_slice %10 {offsets = [3, 0], sizes = [1, 128], strides = [1, 1]} : vector<9x128xf32> to vector<1x128xf32>
    %38 = vector.broadcast %37 : vector<1x128xf32> to vector<16x128xf32>
    %39 = arith.mulf %36, %38 : vector<16x128xf32>
    %40 = arith.addf %33, %39 : vector<16x128xf32>
    %c4 = arith.constant 4 : index
    %c0_24 = arith.constant 0 : index
    %c0_25 = arith.constant 0 : index
    %41 = vector.load %arg8[%c4, %c0_24, %c0_25] : memref<9x16x64xf32, #tpu.memory_space<vmem>>, vector<1x16x64xf32>
    %42 = vector.shape_cast %41 : vector<1x16x64xf32> to vector<16x64xf32>
    %cst_26 = arith.constant dense<0.000000e+00> : vector<16x128xf32>
    %43 = tpu.matmul %42, %9, %cst_26 {dimension_numbers = #tpu.dot_dimension_numbers<[1], [0], [0], [1], [0, 0, 1, 1], [], []>} : vector<16x64xf32>, vector<64x128xf32>, vector<16x128xf32> -> vector<16x128xf32>
    %44 = vector.extract_strided_slice %10 {offsets = [4, 0], sizes = [1, 128], strides = [1, 1]} : vector<9x128xf32> to vector<1x128xf32>
    %45 = vector.broadcast %44 : vector<1x128xf32> to vector<16x128xf32>
    %46 = arith.mulf %43, %45 : vector<16x128xf32>
    %47 = arith.addf %40, %46 : vector<16x128xf32>
    %c5 = arith.constant 5 : index
    %c0_27 = arith.constant 0 : index
    %c0_28 = arith.constant 0 : index
    %48 = vector.load %arg8[%c5, %c0_27, %c0_28] : memref<9x16x64xf32, #tpu.memory_space<vmem>>, vector<1x16x64xf32>
    %49 = vector.shape_cast %48 : vector<1x16x64xf32> to vector<16x64xf32>
    %cst_29 = arith.constant dense<0.000000e+00> : vector<16x128xf32>
    %50 = tpu.matmul %49, %9, %cst_29 {dimension_numbers = #tpu.dot_dimension_numbers<[1], [0], [0], [1], [0, 0, 1, 1], [], []>} : vector<16x64xf32>, vector<64x128xf32>, vector<16x128xf32> -> vector<16x128xf32>
    %51 = vector.extract_strided_slice %10 {offsets = [5, 0], sizes = [1, 128], strides = [1, 1]} : vector<9x128xf32> to vector<1x128xf32>
    %52 = vector.broadcast %51 : vector<1x128xf32> to vector<16x128xf32>
    %53 = arith.mulf %50, %52 : vector<16x128xf32>
    %54 = arith.addf %47, %53 : vector<16x128xf32>
    %c6 = arith.constant 6 : index
    %c0_30 = arith.constant 0 : index
    %c0_31 = arith.constant 0 : index
    %55 = vector.load %arg8[%c6, %c0_30, %c0_31] : memref<9x16x64xf32, #tpu.memory_space<vmem>>, vector<1x16x64xf32>
    %56 = vector.shape_cast %55 : vector<1x16x64xf32> to vector<16x64xf32>
    %cst_32 = arith.constant dense<0.000000e+00> : vector<16x128xf32>
    %57 = tpu.matmul %56, %9, %cst_32 {dimension_numbers = #tpu.dot_dimension_numbers<[1], [0], [0], [1], [0, 0, 1, 1], [], []>} : vector<16x64xf32>, vector<64x128xf32>, vector<16x128xf32> -> vector<16x128xf32>
    %58 = vector.extract_strided_slice %10 {offsets = [6, 0], sizes = [1, 128], strides = [1, 1]} : vector<9x128xf32> to vector<1x128xf32>
    %59 = vector.broadcast %58 : vector<1x128xf32> to vector<16x128xf32>
    %60 = arith.mulf %57, %59 : vector<16x128xf32>
    %61 = arith.addf %54, %60 : vector<16x128xf32>
    %c7 = arith.constant 7 : index
    %c0_33 = arith.constant 0 : index
    %c0_34 = arith.constant 0 : index
    %62 = vector.load %arg8[%c7, %c0_33, %c0_34] : memref<9x16x64xf32, #tpu.memory_space<vmem>>, vector<1x16x64xf32>
    %63 = vector.shape_cast %62 : vector<1x16x64xf32> to vector<16x64xf32>
    %cst_35 = arith.constant dense<0.000000e+00> : vector<16x128xf32>
    %64 = tpu.matmul %63, %9, %cst_35 {dimension_numbers = #tpu.dot_dimension_numbers<[1], [0], [0], [1], [0, 0, 1, 1], [], []>} : vector<16x64xf32>, vector<64x128xf32>, vector<16x128xf32> -> vector<16x128xf32>
    %65 = vector.extract_strided_slice %10 {offsets = [7, 0], sizes = [1, 128], strides = [1, 1]} : vector<9x128xf32> to vector<1x128xf32>
    %66 = vector.broadcast %65 : vector<1x128xf32> to vector<16x128xf32>
    %67 = arith.mulf %64, %66 : vector<16x128xf32>
    %68 = arith.addf %61, %67 : vector<16x128xf32>
    %c8 = arith.constant 8 : index
    %c0_36 = arith.constant 0 : index
    %c0_37 = arith.constant 0 : index
    %69 = vector.load %arg8[%c8, %c0_36, %c0_37] : memref<9x16x64xf32, #tpu.memory_space<vmem>>, vector<1x16x64xf32>
    %70 = vector.shape_cast %69 : vector<1x16x64xf32> to vector<16x64xf32>
    %cst_38 = arith.constant dense<0.000000e+00> : vector<16x128xf32>
    %71 = tpu.matmul %70, %9, %cst_38 {dimension_numbers = #tpu.dot_dimension_numbers<[1], [0], [0], [1], [0, 0, 1, 1], [], []>} : vector<16x64xf32>, vector<64x128xf32>, vector<16x128xf32> -> vector<16x128xf32>
    %72 = vector.extract_strided_slice %10 {offsets = [8, 0], sizes = [1, 128], strides = [1, 1]} : vector<9x128xf32> to vector<1x128xf32>
    %73 = vector.broadcast %72 : vector<1x128xf32> to vector<16x128xf32>
    %74 = arith.mulf %71, %73 : vector<16x128xf32>
    %75 = arith.addf %68, %74 : vector<16x128xf32>
    %76 = arith.truncf %75 : vector<16x128xf32> to vector<16x128xbf16>
    %c0_39 = arith.constant 0 : index
    %c0_40 = arith.constant 0 : index
    %77 = vector.load %arg6[%c0_39, %c0_40] : memref<128x256xbf16, #tpu.memory_space<vmem>>, vector<128x256xbf16>
    %cst_41 = arith.constant dense<0.000000e+00> : vector<16x256xf32>
    %78 = tpu.matmul %76, %77, %cst_41 {dimension_numbers = #tpu.dot_dimension_numbers<[1], [0], [0], [1], [0, 0, 1, 1], [], []>} : vector<16x128xbf16>, vector<128x256xbf16>, vector<16x256xf32> -> vector<16x256xf32>
    %c0_42 = arith.constant 0 : index
    %c0_43 = arith.constant 0 : index
    %79 = vector.load %arg7[%c0_42, %c0_43] : memref<1x256xf32, #tpu.memory_space<vmem>>, vector<1x256xf32>
    %80 = vector.broadcast %79 : vector<1x256xf32> to vector<16x256xf32>
    %81 = arith.addf %78, %80 : vector<16x256xf32>
    %c0_44 = arith.constant 0 : index
    %c0_45 = arith.constant 0 : index
    %82 = vector.load %arg9[%c0_44, %c0_45] : memref<16x64xf32, #tpu.memory_space<vmem>>, vector<16x64xf32>
    %cst_46 = arith.constant dense<0.000000e+00> : vector<16x128xf32>
    %83 = tpu.matmul %82, %1, %cst_46 {dimension_numbers = #tpu.dot_dimension_numbers<[1], [0], [0], [1], [0, 0, 1, 1], [], []>} : vector<16x64xf32>, vector<64x128xf32>, vector<16x128xf32> -> vector<16x128xf32>
    %cst_47 = arith.constant 0.000000e+00 : f32
    %84 = vector.broadcast %cst_47 : f32 to vector<16x128xf32>
    %85 = tpu.concatenate %83, %84 in 1 : vector<16x128xf32>, vector<16x128xf32> -> vector<16x256xf32>
    %86 = arith.addf %81, %85 : vector<16x256xf32>
    %cst_48 = arith.constant 0.000000e+00 : f32
    %87 = vector.broadcast %cst_48 : f32 to vector<16x256xf32>
    %88 = arith.maximumf %86, %87 : vector<16x256xf32>
    %c0_49 = arith.constant 0 : index
    %c0_50 = arith.constant 0 : index
    %c0_51 = arith.constant 0 : index
    %89 = vector.load %arg10[%c0_49, %c0_50, %c0_51] : memref<1x16x256xf32, #tpu.memory_space<vmem>>, vector<1x16x256xf32>
    %90 = vector.shape_cast %89 : vector<1x16x256xf32> to vector<16x256xf32>
    %91 = vector.shape_cast %88 : vector<16x256xf32> to vector<1x16x256xf32>
    tpu.vector_store %arg10[%c0_49, %c0_50, %c0_51], %91 {strides = array<i32>} : memref<1x16x256xf32, #tpu.memory_space<vmem>>, vector<1x16x256xf32>,
    return
  }
  func.func @transform_0(%arg0: i32) -> (i32, i32, i32) {
    %c0_i32 = arith.constant 0 : i32
    %c0_i32_0 = arith.constant 0 : i32
    %c0_i32_1 = arith.constant 0 : i32
    return %arg0, %c0_i32, %c0_i32_0 : i32, i32, i32
  }
  func.func @transform_1(%arg0: i32) -> (i32, i32) {
    %c0_i32 = arith.constant 0 : i32
    %c0_i32_0 = arith.constant 0 : i32
    %c0_i32_1 = arith.constant 0 : i32
    return %c0_i32, %c0_i32_0 : i32, i32
  }
  func.func @transform_2(%arg0: i32) -> (i32, i32) {
    %c0_i32 = arith.constant 0 : i32
    %c0_i32_0 = arith.constant 0 : i32
    %c0_i32_1 = arith.constant 0 : i32
    return %c0_i32, %c0_i32_0 : i32, i32
  }
  func.func @transform_3(%arg0: i32) -> (i32, i32) {
    %c0_i32 = arith.constant 0 : i32
    %c0_i32_0 = arith.constant 0 : i32
    %c0_i32_1 = arith.constant 0 : i32
    return %c0_i32, %c0_i32_0 : i32, i32
  }
  func.func @transform_4(%arg0: i32) -> (i32, i32) {
    %c0_i32 = arith.constant 0 : i32
    %c0_i32_0 = arith.constant 0 : i32
    %c0_i32_1 = arith.constant 0 : i32
    return %c0_i32, %c0_i32_0 : i32, i32
  }
  func.func @transform_5(%arg0: i32) -> (i32, i32) {
    %c0_i32 = arith.constant 0 : i32
    %c0_i32_0 = arith.constant 0 : i32
    %c0_i32_1 = arith.constant 0 : i32
    return %c0_i32, %c0_i32_0 : i32, i32
  }
  func.func @transform_6(%arg0: i32) -> (i32, i32) {
    %c0_i32 = arith.constant 0 : i32
    %c0_i32_0 = arith.constant 0 : i32
    %c0_i32_1 = arith.constant 0 : i32
    return %c0_i32, %c0_i32_0 : i32, i32
  }
  func.func @transform_7(%arg0: i32) -> (i32, i32, i32) {
    %c0_i32 = arith.constant 0 : i32
    %c0_i32_0 = arith.constant 0 : i32
    %c0_i32_1 = arith.constant 0 : i32
    %c0_i32_2 = arith.constant 0 : i32
    return %c0_i32, %c0_i32_0, %c0_i32_1 : i32, i32, i32
  }
  func.func @transform_8(%arg0: i32) -> (i32, i32) {
    %c0_i32 = arith.constant 0 : i32
    %c0_i32_0 = arith.constant 0 : i32
    %c0_i32_1 = arith.constant 0 : i32
    return %c0_i32, %c0_i32_0 : i32, i32
  }
  func.func @transform_9(%arg0: i32) -> (i32, i32, i32) {
    %c0_i32 = arith.constant 0 : i32
    %c0_i32_0 = arith.constant 0 : i32
    %c0_i32_1 = arith.constant 0 : i32
    return %arg0, %c0_i32, %c0_i32_0 : i32, i32, i32
  }
}

module attributes {stable_mosaic.version = 11 : i64} {
  func.func @body(%arg0: i32, %arg1: i32, %arg2: memref<1x16x256xf32, #tpu.memory_space<vmem>>, %arg3: memref<1x256x128xbf16, #tpu.memory_space<vmem>>, %arg4: memref<1x1x128xf32, #tpu.memory_space<vmem>>, %arg5: memref<1x9x128xf32, #tpu.memory_space<vmem>>, %arg6: memref<1x1x128xf32, #tpu.memory_space<vmem>>, %arg7: memref<1x128x256xbf16, #tpu.memory_space<vmem>>, %arg8: memref<1x1x256xf32, #tpu.memory_space<vmem>>, %arg9: memref<9x16x16xf32, #tpu.memory_space<vmem>>, %arg10: memref<1x16x256xf32, #tpu.memory_space<vmem>>, %arg11: memref<16x256xf32, #tpu.memory_space<vmem>>) attributes {dimension_semantics = [#tpu.dimension_semantics<parallel>, #tpu.dimension_semantics<arbitrary>], iteration_bounds = array<i64: 2, 3>, scalar_prefetch = 0 : i64, scratch_operands = 1 : i64, tpu.core_type = #tpu.core_type<tc>, window_params = [{transform_indices = @transform_0, window_bounds = array<i64: 1, 16, 256>}, {transform_indices = @transform_1, window_bounds = array<i64: 1, 256, 128>}, {transform_indices = @transform_2, window_bounds = array<i64: 1, 1, 128>}, {transform_indices = @transform_3, window_bounds = array<i64: 1, 9, 128>}, {transform_indices = @transform_4, window_bounds = array<i64: 1, 1, 128>}, {transform_indices = @transform_5, window_bounds = array<i64: 1, 128, 256>}, {transform_indices = @transform_6, window_bounds = array<i64: 1, 1, 256>}, {pipeline_mode = #tpu.pipeline_mode<synchronous>, transform_indices = @transform_7, window_bounds = array<i64: 9, 16, 16>}, {transform_indices = @transform_8, window_bounds = array<i64: 1, 16, 256>}]} {
    %c0_i32 = arith.constant 0 : i32
    %0 = arith.cmpi eq, %arg1, %c0_i32 : i32
    %1 = arith.extui %0 : i1 to i32
    %c0_i32_0 = arith.constant 0 : i32
    %2 = arith.cmpi ne, %1, %c0_i32_0 : i32
    scf.if %2 {
      %c0_56 = arith.constant 0 : index
      %c0_57 = arith.constant 0 : index
      %c0_58 = arith.constant 0 : index
      %97 = vector.load %arg2[%c0_56, %c0_57, %c0_58] : memref<1x16x256xf32, #tpu.memory_space<vmem>>, vector<1x16x256xf32>
      %98 = vector.shape_cast %97 : vector<1x16x256xf32> to vector<16x256xf32>
      %c0_59 = arith.constant 0 : index
      %c0_60 = arith.constant 0 : index
      %99 = vector.load %arg11[%c0_59, %c0_60] : memref<16x256xf32, #tpu.memory_space<vmem>>, vector<16x256xf32>
      tpu.vector_store %arg11[%c0_59, %c0_60], %98 {strides = array<i32>} : memref<16x256xf32, #tpu.memory_space<vmem>>, vector<16x256xf32>,
    } else {
    }
    %c0 = arith.constant 0 : index
    %c0_1 = arith.constant 0 : index
    %3 = vector.load %arg11[%c0, %c0_1] : memref<16x256xf32, #tpu.memory_space<vmem>>, vector<16x256xf32>
    %4 = arith.truncf %3 : vector<16x256xf32> to vector<16x256xbf16>
    %c0_2 = arith.constant 0 : index
    %c0_3 = arith.constant 0 : index
    %c0_4 = arith.constant 0 : index
    %5 = vector.load %arg3[%c0_2, %c0_3, %c0_4] : memref<1x256x128xbf16, #tpu.memory_space<vmem>>, vector<1x256x128xbf16>
    %6 = vector.shape_cast %5 : vector<1x256x128xbf16> to vector<256x128xbf16>
    %cst = arith.constant dense<0.000000e+00> : vector<16x128xf32>
    %7 = tpu.matmul %4, %6, %cst {dimension_numbers = #tpu.dot_dimension_numbers<[1], [0], [0], [1], [0, 0, 1, 1], [], []>} : vector<16x256xbf16>, vector<256x128xbf16>, vector<16x128xf32> -> vector<16x128xf32>
    %c0_5 = arith.constant 0 : index
    %c0_6 = arith.constant 0 : index
    %c0_7 = arith.constant 0 : index
    %8 = vector.load %arg4[%c0_5, %c0_6, %c0_7] : memref<1x1x128xf32, #tpu.memory_space<vmem>>, vector<1x1x128xf32>
    %9 = vector.shape_cast %8 : vector<1x1x128xf32> to vector<1x128xf32>
    %10 = vector.broadcast %9 : vector<1x128xf32> to vector<16x128xf32>
    %11 = arith.addf %7, %10 : vector<16x128xf32>
    %cst_8 = arith.constant 0.000000e+00 : f32
    %12 = vector.broadcast %cst_8 : f32 to vector<16x128xf32>
    %13 = arith.maximumf %11, %12 : vector<16x128xf32>
    %c0_9 = arith.constant 0 : index
    %c0_10 = arith.constant 0 : index
    %c0_11 = arith.constant 0 : index
    %14 = vector.load %arg5[%c0_9, %c0_10, %c0_11] : memref<1x9x128xf32, #tpu.memory_space<vmem>>, vector<1x9x128xf32>
    %15 = vector.shape_cast %14 : vector<1x9x128xf32> to vector<9x128xf32>
    %c0_12 = arith.constant 0 : index
    %c0_13 = arith.constant 0 : index
    %c0_14 = arith.constant 0 : index
    %16 = vector.load %arg6[%c0_12, %c0_13, %c0_14] : memref<1x1x128xf32, #tpu.memory_space<vmem>>, vector<1x1x128xf32>
    %17 = vector.shape_cast %16 : vector<1x1x128xf32> to vector<1x128xf32>
    %c0_15 = arith.constant 0 : index
    %c0_16 = arith.constant 0 : index
    %c0_17 = arith.constant 0 : index
    %18 = vector.load %arg9[%c0_15, %c0_16, %c0_17] : memref<9x16x16xf32, #tpu.memory_space<vmem>>, vector<1x16x16xf32>
    %19 = vector.shape_cast %18 : vector<1x16x16xf32> to vector<16x16xf32>
    %cst_18 = arith.constant dense<0.000000e+00> : vector<16x128xf32>
    %20 = tpu.matmul %19, %13, %cst_18 {dimension_numbers = #tpu.dot_dimension_numbers<[1], [0], [0], [1], [0, 0, 1, 1], [], []>} : vector<16x16xf32>, vector<16x128xf32>, vector<16x128xf32> -> vector<16x128xf32>
    %21 = vector.extract_strided_slice %15 {offsets = [0, 0], sizes = [1, 128], strides = [1, 1]} : vector<9x128xf32> to vector<1x128xf32>
    %22 = vector.broadcast %21 : vector<1x128xf32> to vector<16x128xf32>
    %23 = arith.mulf %20, %22 : vector<16x128xf32>
    %24 = vector.broadcast %17 : vector<1x128xf32> to vector<16x128xf32>
    %25 = arith.addf %24, %23 : vector<16x128xf32>
    %c1 = arith.constant 1 : index
    %c0_19 = arith.constant 0 : index
    %c0_20 = arith.constant 0 : index
    %26 = vector.load %arg9[%c1, %c0_19, %c0_20] : memref<9x16x16xf32, #tpu.memory_space<vmem>>, vector<1x16x16xf32>
    %27 = vector.shape_cast %26 : vector<1x16x16xf32> to vector<16x16xf32>
    %cst_21 = arith.constant dense<0.000000e+00> : vector<16x128xf32>
    %28 = tpu.matmul %27, %13, %cst_21 {dimension_numbers = #tpu.dot_dimension_numbers<[1], [0], [0], [1], [0, 0, 1, 1], [], []>} : vector<16x16xf32>, vector<16x128xf32>, vector<16x128xf32> -> vector<16x128xf32>
    %29 = vector.extract_strided_slice %15 {offsets = [1, 0], sizes = [1, 128], strides = [1, 1]} : vector<9x128xf32> to vector<1x128xf32>
    %30 = vector.broadcast %29 : vector<1x128xf32> to vector<16x128xf32>
    %31 = arith.mulf %28, %30 : vector<16x128xf32>
    %32 = arith.addf %25, %31 : vector<16x128xf32>
    %c2 = arith.constant 2 : index
    %c0_22 = arith.constant 0 : index
    %c0_23 = arith.constant 0 : index
    %33 = vector.load %arg9[%c2, %c0_22, %c0_23] : memref<9x16x16xf32, #tpu.memory_space<vmem>>, vector<1x16x16xf32>
    %34 = vector.shape_cast %33 : vector<1x16x16xf32> to vector<16x16xf32>
    %cst_24 = arith.constant dense<0.000000e+00> : vector<16x128xf32>
    %35 = tpu.matmul %34, %13, %cst_24 {dimension_numbers = #tpu.dot_dimension_numbers<[1], [0], [0], [1], [0, 0, 1, 1], [], []>} : vector<16x16xf32>, vector<16x128xf32>, vector<16x128xf32> -> vector<16x128xf32>
    %36 = vector.extract_strided_slice %15 {offsets = [2, 0], sizes = [1, 128], strides = [1, 1]} : vector<9x128xf32> to vector<1x128xf32>
    %37 = vector.broadcast %36 : vector<1x128xf32> to vector<16x128xf32>
    %38 = arith.mulf %35, %37 : vector<16x128xf32>
    %39 = arith.addf %32, %38 : vector<16x128xf32>
    %c3 = arith.constant 3 : index
    %c0_25 = arith.constant 0 : index
    %c0_26 = arith.constant 0 : index
    %40 = vector.load %arg9[%c3, %c0_25, %c0_26] : memref<9x16x16xf32, #tpu.memory_space<vmem>>, vector<1x16x16xf32>
    %41 = vector.shape_cast %40 : vector<1x16x16xf32> to vector<16x16xf32>
    %cst_27 = arith.constant dense<0.000000e+00> : vector<16x128xf32>
    %42 = tpu.matmul %41, %13, %cst_27 {dimension_numbers = #tpu.dot_dimension_numbers<[1], [0], [0], [1], [0, 0, 1, 1], [], []>} : vector<16x16xf32>, vector<16x128xf32>, vector<16x128xf32> -> vector<16x128xf32>
    %43 = vector.extract_strided_slice %15 {offsets = [3, 0], sizes = [1, 128], strides = [1, 1]} : vector<9x128xf32> to vector<1x128xf32>
    %44 = vector.broadcast %43 : vector<1x128xf32> to vector<16x128xf32>
    %45 = arith.mulf %42, %44 : vector<16x128xf32>
    %46 = arith.addf %39, %45 : vector<16x128xf32>
    %c4 = arith.constant 4 : index
    %c0_28 = arith.constant 0 : index
    %c0_29 = arith.constant 0 : index
    %47 = vector.load %arg9[%c4, %c0_28, %c0_29] : memref<9x16x16xf32, #tpu.memory_space<vmem>>, vector<1x16x16xf32>
    %48 = vector.shape_cast %47 : vector<1x16x16xf32> to vector<16x16xf32>
    %cst_30 = arith.constant dense<0.000000e+00> : vector<16x128xf32>
    %49 = tpu.matmul %48, %13, %cst_30 {dimension_numbers = #tpu.dot_dimension_numbers<[1], [0], [0], [1], [0, 0, 1, 1], [], []>} : vector<16x16xf32>, vector<16x128xf32>, vector<16x128xf32> -> vector<16x128xf32>
    %50 = vector.extract_strided_slice %15 {offsets = [4, 0], sizes = [1, 128], strides = [1, 1]} : vector<9x128xf32> to vector<1x128xf32>
    %51 = vector.broadcast %50 : vector<1x128xf32> to vector<16x128xf32>
    %52 = arith.mulf %49, %51 : vector<16x128xf32>
    %53 = arith.addf %46, %52 : vector<16x128xf32>
    %c5 = arith.constant 5 : index
    %c0_31 = arith.constant 0 : index
    %c0_32 = arith.constant 0 : index
    %54 = vector.load %arg9[%c5, %c0_31, %c0_32] : memref<9x16x16xf32, #tpu.memory_space<vmem>>, vector<1x16x16xf32>
    %55 = vector.shape_cast %54 : vector<1x16x16xf32> to vector<16x16xf32>
    %cst_33 = arith.constant dense<0.000000e+00> : vector<16x128xf32>
    %56 = tpu.matmul %55, %13, %cst_33 {dimension_numbers = #tpu.dot_dimension_numbers<[1], [0], [0], [1], [0, 0, 1, 1], [], []>} : vector<16x16xf32>, vector<16x128xf32>, vector<16x128xf32> -> vector<16x128xf32>
    %57 = vector.extract_strided_slice %15 {offsets = [5, 0], sizes = [1, 128], strides = [1, 1]} : vector<9x128xf32> to vector<1x128xf32>
    %58 = vector.broadcast %57 : vector<1x128xf32> to vector<16x128xf32>
    %59 = arith.mulf %56, %58 : vector<16x128xf32>
    %60 = arith.addf %53, %59 : vector<16x128xf32>
    %c6 = arith.constant 6 : index
    %c0_34 = arith.constant 0 : index
    %c0_35 = arith.constant 0 : index
    %61 = vector.load %arg9[%c6, %c0_34, %c0_35] : memref<9x16x16xf32, #tpu.memory_space<vmem>>, vector<1x16x16xf32>
    %62 = vector.shape_cast %61 : vector<1x16x16xf32> to vector<16x16xf32>
    %cst_36 = arith.constant dense<0.000000e+00> : vector<16x128xf32>
    %63 = tpu.matmul %62, %13, %cst_36 {dimension_numbers = #tpu.dot_dimension_numbers<[1], [0], [0], [1], [0, 0, 1, 1], [], []>} : vector<16x16xf32>, vector<16x128xf32>, vector<16x128xf32> -> vector<16x128xf32>
    %64 = vector.extract_strided_slice %15 {offsets = [6, 0], sizes = [1, 128], strides = [1, 1]} : vector<9x128xf32> to vector<1x128xf32>
    %65 = vector.broadcast %64 : vector<1x128xf32> to vector<16x128xf32>
    %66 = arith.mulf %63, %65 : vector<16x128xf32>
    %67 = arith.addf %60, %66 : vector<16x128xf32>
    %c7 = arith.constant 7 : index
    %c0_37 = arith.constant 0 : index
    %c0_38 = arith.constant 0 : index
    %68 = vector.load %arg9[%c7, %c0_37, %c0_38] : memref<9x16x16xf32, #tpu.memory_space<vmem>>, vector<1x16x16xf32>
    %69 = vector.shape_cast %68 : vector<1x16x16xf32> to vector<16x16xf32>
    %cst_39 = arith.constant dense<0.000000e+00> : vector<16x128xf32>
    %70 = tpu.matmul %69, %13, %cst_39 {dimension_numbers = #tpu.dot_dimension_numbers<[1], [0], [0], [1], [0, 0, 1, 1], [], []>} : vector<16x16xf32>, vector<16x128xf32>, vector<16x128xf32> -> vector<16x128xf32>
    %71 = vector.extract_strided_slice %15 {offsets = [7, 0], sizes = [1, 128], strides = [1, 1]} : vector<9x128xf32> to vector<1x128xf32>
    %72 = vector.broadcast %71 : vector<1x128xf32> to vector<16x128xf32>
    %73 = arith.mulf %70, %72 : vector<16x128xf32>
    %74 = arith.addf %67, %73 : vector<16x128xf32>
    %c8 = arith.constant 8 : index
    %c0_40 = arith.constant 0 : index
    %c0_41 = arith.constant 0 : index
    %75 = vector.load %arg9[%c8, %c0_40, %c0_41] : memref<9x16x16xf32, #tpu.memory_space<vmem>>, vector<1x16x16xf32>
    %76 = vector.shape_cast %75 : vector<1x16x16xf32> to vector<16x16xf32>
    %cst_42 = arith.constant dense<0.000000e+00> : vector<16x128xf32>
    %77 = tpu.matmul %76, %13, %cst_42 {dimension_numbers = #tpu.dot_dimension_numbers<[1], [0], [0], [1], [0, 0, 1, 1], [], []>} : vector<16x16xf32>, vector<16x128xf32>, vector<16x128xf32> -> vector<16x128xf32>
    %78 = vector.extract_strided_slice %15 {offsets = [8, 0], sizes = [1, 128], strides = [1, 1]} : vector<9x128xf32> to vector<1x128xf32>
    %79 = vector.broadcast %78 : vector<1x128xf32> to vector<16x128xf32>
    %80 = arith.mulf %77, %79 : vector<16x128xf32>
    %81 = arith.addf %74, %80 : vector<16x128xf32>
    %82 = arith.truncf %81 : vector<16x128xf32> to vector<16x128xbf16>
    %c0_43 = arith.constant 0 : index
    %c0_44 = arith.constant 0 : index
    %c0_45 = arith.constant 0 : index
    %83 = vector.load %arg7[%c0_43, %c0_44, %c0_45] : memref<1x128x256xbf16, #tpu.memory_space<vmem>>, vector<1x128x256xbf16>
    %84 = vector.shape_cast %83 : vector<1x128x256xbf16> to vector<128x256xbf16>
    %cst_46 = arith.constant dense<0.000000e+00> : vector<16x256xf32>
    %85 = tpu.matmul %82, %84, %cst_46 {dimension_numbers = #tpu.dot_dimension_numbers<[1], [0], [0], [1], [0, 0, 1, 1], [], []>} : vector<16x128xbf16>, vector<128x256xbf16>, vector<16x256xf32> -> vector<16x256xf32>
    %c0_47 = arith.constant 0 : index
    %c0_48 = arith.constant 0 : index
    %c0_49 = arith.constant 0 : index
    %86 = vector.load %arg8[%c0_47, %c0_48, %c0_49] : memref<1x1x256xf32, #tpu.memory_space<vmem>>, vector<1x1x256xf32>
    %87 = vector.shape_cast %86 : vector<1x1x256xf32> to vector<1x256xf32>
    %88 = vector.broadcast %87 : vector<1x256xf32> to vector<16x256xf32>
    %89 = arith.addf %85, %88 : vector<16x256xf32>
    %90 = arith.addf %3, %89 : vector<16x256xf32>
    %cst_50 = arith.constant 0.000000e+00 : f32
    %91 = vector.broadcast %cst_50 : f32 to vector<16x256xf32>
    %92 = arith.maximumf %90, %91 : vector<16x256xf32>
    %c0_51 = arith.constant 0 : index
    %c0_52 = arith.constant 0 : index
    %93 = vector.load %arg11[%c0_51, %c0_52] : memref<16x256xf32, #tpu.memory_space<vmem>>, vector<16x256xf32>
    tpu.vector_store %arg11[%c0_51, %c0_52], %92 {strides = array<i32>} : memref<16x256xf32, #tpu.memory_space<vmem>>, vector<16x256xf32>,
    %c0_53 = arith.constant 0 : index
    %c0_54 = arith.constant 0 : index
    %c0_55 = arith.constant 0 : index
    %94 = vector.load %arg10[%c0_53, %c0_54, %c0_55] : memref<1x16x256xf32, #tpu.memory_space<vmem>>, vector<1x16x256xf32>
    %95 = vector.shape_cast %94 : vector<1x16x256xf32> to vector<16x256xf32>
    %96 = vector.shape_cast %92 : vector<16x256xf32> to vector<1x16x256xf32>
    tpu.vector_store %arg10[%c0_53, %c0_54, %c0_55], %96 {strides = array<i32>} : memref<1x16x256xf32, #tpu.memory_space<vmem>>, vector<1x16x256xf32>,
    return
  }
  func.func @transform_0(%arg0: i32, %arg1: i32) -> (i32, i32, i32) {
    %c0_i32 = arith.constant 0 : i32
    %c0_i32_0 = arith.constant 0 : i32
    %c0_i32_1 = arith.constant 0 : i32
    return %arg0, %c0_i32, %c0_i32_0 : i32, i32, i32
  }
  func.func @transform_1(%arg0: i32, %arg1: i32) -> (i32, i32, i32) {
    %c0_i32 = arith.constant 0 : i32
    %c0_i32_0 = arith.constant 0 : i32
    %c0_i32_1 = arith.constant 0 : i32
    return %arg1, %c0_i32, %c0_i32_0 : i32, i32, i32
  }
  func.func @transform_2(%arg0: i32, %arg1: i32) -> (i32, i32, i32) {
    %c0_i32 = arith.constant 0 : i32
    %c0_i32_0 = arith.constant 0 : i32
    %c0_i32_1 = arith.constant 0 : i32
    return %arg1, %c0_i32, %c0_i32_0 : i32, i32, i32
  }
  func.func @transform_3(%arg0: i32, %arg1: i32) -> (i32, i32, i32) {
    %c0_i32 = arith.constant 0 : i32
    %c0_i32_0 = arith.constant 0 : i32
    %c0_i32_1 = arith.constant 0 : i32
    return %arg1, %c0_i32, %c0_i32_0 : i32, i32, i32
  }
  func.func @transform_4(%arg0: i32, %arg1: i32) -> (i32, i32, i32) {
    %c0_i32 = arith.constant 0 : i32
    %c0_i32_0 = arith.constant 0 : i32
    %c0_i32_1 = arith.constant 0 : i32
    return %arg1, %c0_i32, %c0_i32_0 : i32, i32, i32
  }
  func.func @transform_5(%arg0: i32, %arg1: i32) -> (i32, i32, i32) {
    %c0_i32 = arith.constant 0 : i32
    %c0_i32_0 = arith.constant 0 : i32
    %c0_i32_1 = arith.constant 0 : i32
    return %arg1, %c0_i32, %c0_i32_0 : i32, i32, i32
  }
  func.func @transform_6(%arg0: i32, %arg1: i32) -> (i32, i32, i32) {
    %c0_i32 = arith.constant 0 : i32
    %c0_i32_0 = arith.constant 0 : i32
    %c0_i32_1 = arith.constant 0 : i32
    return %arg1, %c0_i32, %c0_i32_0 : i32, i32, i32
  }
  func.func @transform_7(%arg0: i32, %arg1: i32) -> (i32, i32, i32) {
    %c0_i32 = arith.constant 0 : i32
    %c0_i32_0 = arith.constant 0 : i32
    %c0_i32_1 = arith.constant 0 : i32
    %c0_i32_2 = arith.constant 0 : i32
    return %c0_i32, %c0_i32_0, %c0_i32_1 : i32, i32, i32
  }
  func.func @transform_8(%arg0: i32, %arg1: i32) -> (i32, i32, i32) {
    %c0_i32 = arith.constant 0 : i32
    %c0_i32_0 = arith.constant 0 : i32
    %c0_i32_1 = arith.constant 0 : i32
    return %arg0, %c0_i32, %c0_i32_0 : i32, i32, i32
  }
}

module attributes {stable_mosaic.version = 11 : i64} {
  func.func @body(%arg0: i32, %arg1: memref<1x16x256xf32, #tpu.memory_space<vmem>>, %arg2: memref<256x128xbf16, #tpu.memory_space<vmem>>, %arg3: memref<1x128xf32, #tpu.memory_space<vmem>>, %arg4: memref<9x128xf32, #tpu.memory_space<vmem>>, %arg5: memref<1x128xf32, #tpu.memory_space<vmem>>, %arg6: memref<128x512xbf16, #tpu.memory_space<vmem>>, %arg7: memref<1x512xf32, #tpu.memory_space<vmem>>, %arg8: memref<9x4x16xf32, #tpu.memory_space<vmem>>, %arg9: memref<4x16xf32, #tpu.memory_space<vmem>>, %arg10: memref<1x4x512xf32, #tpu.memory_space<vmem>>) attributes {dimension_semantics = [#tpu.dimension_semantics<parallel>], iteration_bounds = array<i64: 2>, scalar_prefetch = 0 : i64, scratch_operands = 0 : i64, tpu.core_type = #tpu.core_type<tc>, window_params = [{transform_indices = @transform_0, window_bounds = array<i64: 1, 16, 256>}, {pipeline_mode = #tpu.pipeline_mode<synchronous>, transform_indices = @transform_1, window_bounds = array<i64: 256, 128>}, {pipeline_mode = #tpu.pipeline_mode<synchronous>, transform_indices = @transform_2, window_bounds = array<i64: 1, 128>}, {pipeline_mode = #tpu.pipeline_mode<synchronous>, transform_indices = @transform_3, window_bounds = array<i64: 9, 128>}, {pipeline_mode = #tpu.pipeline_mode<synchronous>, transform_indices = @transform_4, window_bounds = array<i64: 1, 128>}, {pipeline_mode = #tpu.pipeline_mode<synchronous>, transform_indices = @transform_5, window_bounds = array<i64: 128, 512>}, {pipeline_mode = #tpu.pipeline_mode<synchronous>, transform_indices = @transform_6, window_bounds = array<i64: 1, 512>}, {pipeline_mode = #tpu.pipeline_mode<synchronous>, transform_indices = @transform_7, window_bounds = array<i64: 9, 4, 16>}, {pipeline_mode = #tpu.pipeline_mode<synchronous>, transform_indices = @transform_8, window_bounds = array<i64: 4, 16>}, {transform_indices = @transform_9, window_bounds = array<i64: 1, 4, 512>}]} {
    %c0 = arith.constant 0 : index
    %c0_0 = arith.constant 0 : index
    %c0_1 = arith.constant 0 : index
    %0 = vector.load %arg1[%c0, %c0_0, %c0_1] : memref<1x16x256xf32, #tpu.memory_space<vmem>>, vector<1x16x256xf32>
    %1 = vector.shape_cast %0 : vector<1x16x256xf32> to vector<16x256xf32>
    %2 = arith.truncf %1 : vector<16x256xf32> to vector<16x256xbf16>
    %c0_2 = arith.constant 0 : index
    %c0_3 = arith.constant 0 : index
    %3 = vector.load %arg2[%c0_2, %c0_3] : memref<256x128xbf16, #tpu.memory_space<vmem>>, vector<256x128xbf16>
    %cst = arith.constant dense<0.000000e+00> : vector<16x128xf32>
    %4 = tpu.matmul %2, %3, %cst {dimension_numbers = #tpu.dot_dimension_numbers<[1], [0], [0], [1], [0, 0, 1, 1], [], []>} : vector<16x256xbf16>, vector<256x128xbf16>, vector<16x128xf32> -> vector<16x128xf32>
    %c0_4 = arith.constant 0 : index
    %c0_5 = arith.constant 0 : index
    %5 = vector.load %arg3[%c0_4, %c0_5] : memref<1x128xf32, #tpu.memory_space<vmem>>, vector<1x128xf32>
    %6 = vector.broadcast %5 : vector<1x128xf32> to vector<16x128xf32>
    %7 = arith.addf %4, %6 : vector<16x128xf32>
    %cst_6 = arith.constant 0.000000e+00 : f32
    %8 = vector.broadcast %cst_6 : f32 to vector<16x128xf32>
    %9 = arith.maximumf %7, %8 : vector<16x128xf32>
    %c0_7 = arith.constant 0 : index
    %c0_8 = arith.constant 0 : index
    %10 = vector.load %arg4[%c0_7, %c0_8] : memref<9x128xf32, #tpu.memory_space<vmem>>, vector<9x128xf32>
    %c0_9 = arith.constant 0 : index
    %c0_10 = arith.constant 0 : index
    %11 = vector.load %arg5[%c0_9, %c0_10] : memref<1x128xf32, #tpu.memory_space<vmem>>, vector<1x128xf32>
    %c0_11 = arith.constant 0 : index
    %c0_12 = arith.constant 0 : index
    %c0_13 = arith.constant 0 : index
    %12 = vector.load %arg8[%c0_11, %c0_12, %c0_13] : memref<9x4x16xf32, #tpu.memory_space<vmem>>, vector<1x4x16xf32>
    %13 = vector.shape_cast %12 : vector<1x4x16xf32> to vector<4x16xf32>
    %cst_14 = arith.constant dense<0.000000e+00> : vector<4x128xf32>
    %14 = tpu.matmul %13, %9, %cst_14 {dimension_numbers = #tpu.dot_dimension_numbers<[1], [0], [0], [1], [0, 0, 1, 1], [], []>} : vector<4x16xf32>, vector<16x128xf32>, vector<4x128xf32> -> vector<4x128xf32>
    %15 = vector.extract_strided_slice %10 {offsets = [0, 0], sizes = [1, 128], strides = [1, 1]} : vector<9x128xf32> to vector<1x128xf32>
    %16 = vector.broadcast %15 : vector<1x128xf32> to vector<4x128xf32>
    %17 = arith.mulf %14, %16 : vector<4x128xf32>
    %18 = vector.broadcast %11 : vector<1x128xf32> to vector<4x128xf32>
    %19 = arith.addf %18, %17 : vector<4x128xf32>
    %c1 = arith.constant 1 : index
    %c0_15 = arith.constant 0 : index
    %c0_16 = arith.constant 0 : index
    %20 = vector.load %arg8[%c1, %c0_15, %c0_16] : memref<9x4x16xf32, #tpu.memory_space<vmem>>, vector<1x4x16xf32>
    %21 = vector.shape_cast %20 : vector<1x4x16xf32> to vector<4x16xf32>
    %cst_17 = arith.constant dense<0.000000e+00> : vector<4x128xf32>
    %22 = tpu.matmul %21, %9, %cst_17 {dimension_numbers = #tpu.dot_dimension_numbers<[1], [0], [0], [1], [0, 0, 1, 1], [], []>} : vector<4x16xf32>, vector<16x128xf32>, vector<4x128xf32> -> vector<4x128xf32>
    %23 = vector.extract_strided_slice %10 {offsets = [1, 0], sizes = [1, 128], strides = [1, 1]} : vector<9x128xf32> to vector<1x128xf32>
    %24 = vector.broadcast %23 : vector<1x128xf32> to vector<4x128xf32>
    %25 = arith.mulf %22, %24 : vector<4x128xf32>
    %26 = arith.addf %19, %25 : vector<4x128xf32>
    %c2 = arith.constant 2 : index
    %c0_18 = arith.constant 0 : index
    %c0_19 = arith.constant 0 : index
    %27 = vector.load %arg8[%c2, %c0_18, %c0_19] : memref<9x4x16xf32, #tpu.memory_space<vmem>>, vector<1x4x16xf32>
    %28 = vector.shape_cast %27 : vector<1x4x16xf32> to vector<4x16xf32>
    %cst_20 = arith.constant dense<0.000000e+00> : vector<4x128xf32>
    %29 = tpu.matmul %28, %9, %cst_20 {dimension_numbers = #tpu.dot_dimension_numbers<[1], [0], [0], [1], [0, 0, 1, 1], [], []>} : vector<4x16xf32>, vector<16x128xf32>, vector<4x128xf32> -> vector<4x128xf32>
    %30 = vector.extract_strided_slice %10 {offsets = [2, 0], sizes = [1, 128], strides = [1, 1]} : vector<9x128xf32> to vector<1x128xf32>
    %31 = vector.broadcast %30 : vector<1x128xf32> to vector<4x128xf32>
    %32 = arith.mulf %29, %31 : vector<4x128xf32>
    %33 = arith.addf %26, %32 : vector<4x128xf32>
    %c3 = arith.constant 3 : index
    %c0_21 = arith.constant 0 : index
    %c0_22 = arith.constant 0 : index
    %34 = vector.load %arg8[%c3, %c0_21, %c0_22] : memref<9x4x16xf32, #tpu.memory_space<vmem>>, vector<1x4x16xf32>
    %35 = vector.shape_cast %34 : vector<1x4x16xf32> to vector<4x16xf32>
    %cst_23 = arith.constant dense<0.000000e+00> : vector<4x128xf32>
    %36 = tpu.matmul %35, %9, %cst_23 {dimension_numbers = #tpu.dot_dimension_numbers<[1], [0], [0], [1], [0, 0, 1, 1], [], []>} : vector<4x16xf32>, vector<16x128xf32>, vector<4x128xf32> -> vector<4x128xf32>
    %37 = vector.extract_strided_slice %10 {offsets = [3, 0], sizes = [1, 128], strides = [1, 1]} : vector<9x128xf32> to vector<1x128xf32>
    %38 = vector.broadcast %37 : vector<1x128xf32> to vector<4x128xf32>
    %39 = arith.mulf %36, %38 : vector<4x128xf32>
    %40 = arith.addf %33, %39 : vector<4x128xf32>
    %c4 = arith.constant 4 : index
    %c0_24 = arith.constant 0 : index
    %c0_25 = arith.constant 0 : index
    %41 = vector.load %arg8[%c4, %c0_24, %c0_25] : memref<9x4x16xf32, #tpu.memory_space<vmem>>, vector<1x4x16xf32>
    %42 = vector.shape_cast %41 : vector<1x4x16xf32> to vector<4x16xf32>
    %cst_26 = arith.constant dense<0.000000e+00> : vector<4x128xf32>
    %43 = tpu.matmul %42, %9, %cst_26 {dimension_numbers = #tpu.dot_dimension_numbers<[1], [0], [0], [1], [0, 0, 1, 1], [], []>} : vector<4x16xf32>, vector<16x128xf32>, vector<4x128xf32> -> vector<4x128xf32>
    %44 = vector.extract_strided_slice %10 {offsets = [4, 0], sizes = [1, 128], strides = [1, 1]} : vector<9x128xf32> to vector<1x128xf32>
    %45 = vector.broadcast %44 : vector<1x128xf32> to vector<4x128xf32>
    %46 = arith.mulf %43, %45 : vector<4x128xf32>
    %47 = arith.addf %40, %46 : vector<4x128xf32>
    %c5 = arith.constant 5 : index
    %c0_27 = arith.constant 0 : index
    %c0_28 = arith.constant 0 : index
    %48 = vector.load %arg8[%c5, %c0_27, %c0_28] : memref<9x4x16xf32, #tpu.memory_space<vmem>>, vector<1x4x16xf32>
    %49 = vector.shape_cast %48 : vector<1x4x16xf32> to vector<4x16xf32>
    %cst_29 = arith.constant dense<0.000000e+00> : vector<4x128xf32>
    %50 = tpu.matmul %49, %9, %cst_29 {dimension_numbers = #tpu.dot_dimension_numbers<[1], [0], [0], [1], [0, 0, 1, 1], [], []>} : vector<4x16xf32>, vector<16x128xf32>, vector<4x128xf32> -> vector<4x128xf32>
    %51 = vector.extract_strided_slice %10 {offsets = [5, 0], sizes = [1, 128], strides = [1, 1]} : vector<9x128xf32> to vector<1x128xf32>
    %52 = vector.broadcast %51 : vector<1x128xf32> to vector<4x128xf32>
    %53 = arith.mulf %50, %52 : vector<4x128xf32>
    %54 = arith.addf %47, %53 : vector<4x128xf32>
    %c6 = arith.constant 6 : index
    %c0_30 = arith.constant 0 : index
    %c0_31 = arith.constant 0 : index
    %55 = vector.load %arg8[%c6, %c0_30, %c0_31] : memref<9x4x16xf32, #tpu.memory_space<vmem>>, vector<1x4x16xf32>
    %56 = vector.shape_cast %55 : vector<1x4x16xf32> to vector<4x16xf32>
    %cst_32 = arith.constant dense<0.000000e+00> : vector<4x128xf32>
    %57 = tpu.matmul %56, %9, %cst_32 {dimension_numbers = #tpu.dot_dimension_numbers<[1], [0], [0], [1], [0, 0, 1, 1], [], []>} : vector<4x16xf32>, vector<16x128xf32>, vector<4x128xf32> -> vector<4x128xf32>
    %58 = vector.extract_strided_slice %10 {offsets = [6, 0], sizes = [1, 128], strides = [1, 1]} : vector<9x128xf32> to vector<1x128xf32>
    %59 = vector.broadcast %58 : vector<1x128xf32> to vector<4x128xf32>
    %60 = arith.mulf %57, %59 : vector<4x128xf32>
    %61 = arith.addf %54, %60 : vector<4x128xf32>
    %c7 = arith.constant 7 : index
    %c0_33 = arith.constant 0 : index
    %c0_34 = arith.constant 0 : index
    %62 = vector.load %arg8[%c7, %c0_33, %c0_34] : memref<9x4x16xf32, #tpu.memory_space<vmem>>, vector<1x4x16xf32>
    %63 = vector.shape_cast %62 : vector<1x4x16xf32> to vector<4x16xf32>
    %cst_35 = arith.constant dense<0.000000e+00> : vector<4x128xf32>
    %64 = tpu.matmul %63, %9, %cst_35 {dimension_numbers = #tpu.dot_dimension_numbers<[1], [0], [0], [1], [0, 0, 1, 1], [], []>} : vector<4x16xf32>, vector<16x128xf32>, vector<4x128xf32> -> vector<4x128xf32>
    %65 = vector.extract_strided_slice %10 {offsets = [7, 0], sizes = [1, 128], strides = [1, 1]} : vector<9x128xf32> to vector<1x128xf32>
    %66 = vector.broadcast %65 : vector<1x128xf32> to vector<4x128xf32>
    %67 = arith.mulf %64, %66 : vector<4x128xf32>
    %68 = arith.addf %61, %67 : vector<4x128xf32>
    %c8 = arith.constant 8 : index
    %c0_36 = arith.constant 0 : index
    %c0_37 = arith.constant 0 : index
    %69 = vector.load %arg8[%c8, %c0_36, %c0_37] : memref<9x4x16xf32, #tpu.memory_space<vmem>>, vector<1x4x16xf32>
    %70 = vector.shape_cast %69 : vector<1x4x16xf32> to vector<4x16xf32>
    %cst_38 = arith.constant dense<0.000000e+00> : vector<4x128xf32>
    %71 = tpu.matmul %70, %9, %cst_38 {dimension_numbers = #tpu.dot_dimension_numbers<[1], [0], [0], [1], [0, 0, 1, 1], [], []>} : vector<4x16xf32>, vector<16x128xf32>, vector<4x128xf32> -> vector<4x128xf32>
    %72 = vector.extract_strided_slice %10 {offsets = [8, 0], sizes = [1, 128], strides = [1, 1]} : vector<9x128xf32> to vector<1x128xf32>
    %73 = vector.broadcast %72 : vector<1x128xf32> to vector<4x128xf32>
    %74 = arith.mulf %71, %73 : vector<4x128xf32>
    %75 = arith.addf %68, %74 : vector<4x128xf32>
    %76 = arith.truncf %75 : vector<4x128xf32> to vector<4x128xbf16>
    %c0_39 = arith.constant 0 : index
    %c0_40 = arith.constant 0 : index
    %77 = vector.load %arg6[%c0_39, %c0_40] : memref<128x512xbf16, #tpu.memory_space<vmem>>, vector<128x512xbf16>
    %cst_41 = arith.constant dense<0.000000e+00> : vector<4x512xf32>
    %78 = tpu.matmul %76, %77, %cst_41 {dimension_numbers = #tpu.dot_dimension_numbers<[1], [0], [0], [1], [0, 0, 1, 1], [], []>} : vector<4x128xbf16>, vector<128x512xbf16>, vector<4x512xf32> -> vector<4x512xf32>
    %c0_42 = arith.constant 0 : index
    %c0_43 = arith.constant 0 : index
    %79 = vector.load %arg7[%c0_42, %c0_43] : memref<1x512xf32, #tpu.memory_space<vmem>>, vector<1x512xf32>
    %80 = vector.broadcast %79 : vector<1x512xf32> to vector<4x512xf32>
    %81 = arith.addf %78, %80 : vector<4x512xf32>
    %c0_44 = arith.constant 0 : index
    %c0_45 = arith.constant 0 : index
    %82 = vector.load %arg9[%c0_44, %c0_45] : memref<4x16xf32, #tpu.memory_space<vmem>>, vector<4x16xf32>
    %cst_46 = arith.constant dense<0.000000e+00> : vector<4x256xf32>
    %83 = tpu.matmul %82, %1, %cst_46 {dimension_numbers = #tpu.dot_dimension_numbers<[1], [0], [0], [1], [0, 0, 1, 1], [], []>} : vector<4x16xf32>, vector<16x256xf32>, vector<4x256xf32> -> vector<4x256xf32>
    %cst_47 = arith.constant 0.000000e+00 : f32
    %84 = vector.broadcast %cst_47 : f32 to vector<4x256xf32>
    %85 = tpu.concatenate %83, %84 in 1 : vector<4x256xf32>, vector<4x256xf32> -> vector<4x512xf32>
    %86 = arith.addf %81, %85 : vector<4x512xf32>
    %cst_48 = arith.constant 0.000000e+00 : f32
    %87 = vector.broadcast %cst_48 : f32 to vector<4x512xf32>
    %88 = arith.maximumf %86, %87 : vector<4x512xf32>
    %c0_49 = arith.constant 0 : index
    %c0_50 = arith.constant 0 : index
    %c0_51 = arith.constant 0 : index
    %89 = vector.load %arg10[%c0_49, %c0_50, %c0_51] : memref<1x4x512xf32, #tpu.memory_space<vmem>>, vector<1x4x512xf32>
    %90 = vector.shape_cast %89 : vector<1x4x512xf32> to vector<4x512xf32>
    %91 = vector.shape_cast %88 : vector<4x512xf32> to vector<1x4x512xf32>
    tpu.vector_store %arg10[%c0_49, %c0_50, %c0_51], %91 {strides = array<i32>} : memref<1x4x512xf32, #tpu.memory_space<vmem>>, vector<1x4x512xf32>,
    return
  }
  func.func @transform_0(%arg0: i32) -> (i32, i32, i32) {
    %c0_i32 = arith.constant 0 : i32
    %c0_i32_0 = arith.constant 0 : i32
    %c0_i32_1 = arith.constant 0 : i32
    return %arg0, %c0_i32, %c0_i32_0 : i32, i32, i32
  }
  func.func @transform_1(%arg0: i32) -> (i32, i32) {
    %c0_i32 = arith.constant 0 : i32
    %c0_i32_0 = arith.constant 0 : i32
    %c0_i32_1 = arith.constant 0 : i32
    return %c0_i32, %c0_i32_0 : i32, i32
  }
  func.func @transform_2(%arg0: i32) -> (i32, i32) {
    %c0_i32 = arith.constant 0 : i32
    %c0_i32_0 = arith.constant 0 : i32
    %c0_i32_1 = arith.constant 0 : i32
    return %c0_i32, %c0_i32_0 : i32, i32
  }
  func.func @transform_3(%arg0: i32) -> (i32, i32) {
    %c0_i32 = arith.constant 0 : i32
    %c0_i32_0 = arith.constant 0 : i32
    %c0_i32_1 = arith.constant 0 : i32
    return %c0_i32, %c0_i32_0 : i32, i32
  }
  func.func @transform_4(%arg0: i32) -> (i32, i32) {
    %c0_i32 = arith.constant 0 : i32
    %c0_i32_0 = arith.constant 0 : i32
    %c0_i32_1 = arith.constant 0 : i32
    return %c0_i32, %c0_i32_0 : i32, i32
  }
  func.func @transform_5(%arg0: i32) -> (i32, i32) {
    %c0_i32 = arith.constant 0 : i32
    %c0_i32_0 = arith.constant 0 : i32
    %c0_i32_1 = arith.constant 0 : i32
    return %c0_i32, %c0_i32_0 : i32, i32
  }
  func.func @transform_6(%arg0: i32) -> (i32, i32) {
    %c0_i32 = arith.constant 0 : i32
    %c0_i32_0 = arith.constant 0 : i32
    %c0_i32_1 = arith.constant 0 : i32
    return %c0_i32, %c0_i32_0 : i32, i32
  }
  func.func @transform_7(%arg0: i32) -> (i32, i32, i32) {
    %c0_i32 = arith.constant 0 : i32
    %c0_i32_0 = arith.constant 0 : i32
    %c0_i32_1 = arith.constant 0 : i32
    %c0_i32_2 = arith.constant 0 : i32
    return %c0_i32, %c0_i32_0, %c0_i32_1 : i32, i32, i32
  }
  func.func @transform_8(%arg0: i32) -> (i32, i32) {
    %c0_i32 = arith.constant 0 : i32
    %c0_i32_0 = arith.constant 0 : i32
    %c0_i32_1 = arith.constant 0 : i32
    return %c0_i32, %c0_i32_0 : i32, i32
  }
  func.func @transform_9(%arg0: i32) -> (i32, i32, i32) {
    %c0_i32 = arith.constant 0 : i32
    %c0_i32_0 = arith.constant 0 : i32
    %c0_i32_1 = arith.constant 0 : i32
    return %arg0, %c0_i32, %c0_i32_0 : i32, i32, i32
  }
}

module attributes {stable_mosaic.version = 11 : i64} {
  func.func @kernel(%arg0: i32, %arg1: i32, %arg2: memref<1x4x512xf32, #tpu.memory_space<vmem>>, %arg3: memref<1x512x128xbf16, #tpu.memory_space<vmem>>, %arg4: memref<1x1x128xf32, #tpu.memory_space<vmem>>, %arg5: memref<1x9x128xf32, #tpu.memory_space<vmem>>, %arg6: memref<1x1x128xf32, #tpu.memory_space<vmem>>, %arg7: memref<1x128x512xbf16, #tpu.memory_space<vmem>>, %arg8: memref<1x1x512xf32, #tpu.memory_space<vmem>>, %arg9: memref<1x4x512xf32, #tpu.memory_space<vmem>>, %arg10: memref<4x512xf32, #tpu.memory_space<vmem>>) attributes {dimension_semantics = [#tpu.dimension_semantics<parallel>, #tpu.dimension_semantics<arbitrary>], iteration_bounds = array<i64: 2, 7>, scalar_prefetch = 0 : i64, scratch_operands = 1 : i64, tpu.core_type = #tpu.core_type<tc>, window_params = [{transform_indices = @transform_0, window_bounds = array<i64: 1, 4, 512>}, {transform_indices = @transform_1, window_bounds = array<i64: 1, 512, 128>}, {transform_indices = @transform_2, window_bounds = array<i64: 1, 1, 128>}, {transform_indices = @transform_3, window_bounds = array<i64: 1, 9, 128>}, {transform_indices = @transform_4, window_bounds = array<i64: 1, 1, 128>}, {transform_indices = @transform_5, window_bounds = array<i64: 1, 128, 512>}, {transform_indices = @transform_6, window_bounds = array<i64: 1, 1, 512>}, {transform_indices = @transform_7, window_bounds = array<i64: 1, 4, 512>}]} {
    %c0_i32 = arith.constant 0 : i32
    %0 = arith.cmpi eq, %arg1, %c0_i32 : i32
    %1 = arith.extui %0 : i1 to i32
    %c0_i32_0 = arith.constant 0 : i32
    %2 = arith.cmpi ne, %1, %c0_i32_0 : i32
    scf.if %2 {
      %c0_28 = arith.constant 0 : index
      %c0_29 = arith.constant 0 : index
      %c0_30 = arith.constant 0 : index
      %98 = vector.load %arg2[%c0_28, %c0_29, %c0_30] : memref<1x4x512xf32, #tpu.memory_space<vmem>>, vector<1x4x512xf32>
      %99 = vector.shape_cast %98 : vector<1x4x512xf32> to vector<4x512xf32>
      %c0_31 = arith.constant 0 : index
      %c0_32 = arith.constant 0 : index
      %100 = vector.load %arg10[%c0_31, %c0_32] : memref<4x512xf32, #tpu.memory_space<vmem>>, vector<4x512xf32>
      tpu.vector_store %arg10[%c0_31, %c0_32], %99 {strides = array<i32>} : memref<4x512xf32, #tpu.memory_space<vmem>>, vector<4x512xf32>,
    } else {
    }
    %c0 = arith.constant 0 : index
    %c0_1 = arith.constant 0 : index
    %3 = vector.load %arg10[%c0, %c0_1] : memref<4x512xf32, #tpu.memory_space<vmem>>, vector<4x512xf32>
    %4 = arith.truncf %3 : vector<4x512xf32> to vector<4x512xbf16>
    %c0_2 = arith.constant 0 : index
    %c0_3 = arith.constant 0 : index
    %c0_4 = arith.constant 0 : index
    %5 = vector.load %arg3[%c0_2, %c0_3, %c0_4] : memref<1x512x128xbf16, #tpu.memory_space<vmem>>, vector<1x512x128xbf16>
    %6 = vector.shape_cast %5 : vector<1x512x128xbf16> to vector<512x128xbf16>
    %cst = arith.constant dense<0.000000e+00> : vector<4x128xf32>
    %7 = tpu.matmul %4, %6, %cst {dimension_numbers = #tpu.dot_dimension_numbers<[1], [0], [0], [1], [0, 0, 1, 1], [], []>} : vector<4x512xbf16>, vector<512x128xbf16>, vector<4x128xf32> -> vector<4x128xf32>
    %c0_5 = arith.constant 0 : index
    %c0_6 = arith.constant 0 : index
    %c0_7 = arith.constant 0 : index
    %8 = vector.load %arg4[%c0_5, %c0_6, %c0_7] : memref<1x1x128xf32, #tpu.memory_space<vmem>>, vector<1x1x128xf32>
    %9 = vector.shape_cast %8 : vector<1x1x128xf32> to vector<1x128xf32>
    %10 = vector.broadcast %9 : vector<1x128xf32> to vector<4x128xf32>
    %11 = arith.addf %7, %10 : vector<4x128xf32>
    %cst_8 = arith.constant 0.000000e+00 : f32
    %12 = vector.broadcast %cst_8 : f32 to vector<4x128xf32>
    %13 = arith.maximumf %11, %12 : vector<4x128xf32>
    %c0_9 = arith.constant 0 : index
    %c0_10 = arith.constant 0 : index
    %c0_11 = arith.constant 0 : index
    %14 = vector.load %arg5[%c0_9, %c0_10, %c0_11] : memref<1x9x128xf32, #tpu.memory_space<vmem>>, vector<1x9x128xf32>
    %15 = vector.shape_cast %14 : vector<1x9x128xf32> to vector<9x128xf32>
    %c0_12 = arith.constant 0 : index
    %c0_13 = arith.constant 0 : index
    %c0_14 = arith.constant 0 : index
    %16 = vector.load %arg6[%c0_12, %c0_13, %c0_14] : memref<1x1x128xf32, #tpu.memory_space<vmem>>, vector<1x1x128xf32>
    %17 = vector.shape_cast %16 : vector<1x1x128xf32> to vector<1x128xf32>
    %18 = vector.extract_strided_slice %13 {offsets = [0, 0], sizes = [1, 128], strides = [1, 1]} : vector<4x128xf32> to vector<1x128xf32>
    %19 = vector.extract_strided_slice %15 {offsets = [4, 0], sizes = [1, 128], strides = [1, 1]} : vector<9x128xf32> to vector<1x128xf32>
    %20 = arith.mulf %18, %19 : vector<1x128xf32>
    %21 = arith.addf %17, %20 : vector<1x128xf32>
    %22 = vector.extract_strided_slice %13 {offsets = [1, 0], sizes = [1, 128], strides = [1, 1]} : vector<4x128xf32> to vector<1x128xf32>
    %23 = vector.extract_strided_slice %15 {offsets = [5, 0], sizes = [1, 128], strides = [1, 1]} : vector<9x128xf32> to vector<1x128xf32>
    %24 = arith.mulf %22, %23 : vector<1x128xf32>
    %25 = arith.addf %21, %24 : vector<1x128xf32>
    %26 = vector.extract_strided_slice %13 {offsets = [2, 0], sizes = [1, 128], strides = [1, 1]} : vector<4x128xf32> to vector<1x128xf32>
    %27 = vector.extract_strided_slice %15 {offsets = [7, 0], sizes = [1, 128], strides = [1, 1]} : vector<9x128xf32> to vector<1x128xf32>
    %28 = arith.mulf %26, %27 : vector<1x128xf32>
    %29 = arith.addf %25, %28 : vector<1x128xf32>
    %30 = vector.extract_strided_slice %13 {offsets = [3, 0], sizes = [1, 128], strides = [1, 1]} : vector<4x128xf32> to vector<1x128xf32>
    %31 = vector.extract_strided_slice %15 {offsets = [8, 0], sizes = [1, 128], strides = [1, 1]} : vector<9x128xf32> to vector<1x128xf32>
    %32 = arith.mulf %30, %31 : vector<1x128xf32>
    %33 = arith.addf %29, %32 : vector<1x128xf32>
    %34 = vector.extract_strided_slice %13 {offsets = [0, 0], sizes = [1, 128], strides = [1, 1]} : vector<4x128xf32> to vector<1x128xf32>
    %35 = vector.extract_strided_slice %15 {offsets = [3, 0], sizes = [1, 128], strides = [1, 1]} : vector<9x128xf32> to vector<1x128xf32>
    %36 = arith.mulf %34, %35 : vector<1x128xf32>
    %37 = arith.addf %17, %36 : vector<1x128xf32>
    %38 = vector.extract_strided_slice %13 {offsets = [1, 0], sizes = [1, 128], strides = [1, 1]} : vector<4x128xf32> to vector<1x128xf32>
    %39 = vector.extract_strided_slice %15 {offsets = [4, 0], sizes = [1, 128], strides = [1, 1]} : vector<9x128xf32> to vector<1x128xf32>
    %40 = arith.mulf %38, %39 : vector<1x128xf32>
    %41 = arith.addf %37, %40 : vector<1x128xf32>
    %42 = vector.extract_strided_slice %13 {offsets = [2, 0], sizes = [1, 128], strides = [1, 1]} : vector<4x128xf32> to vector<1x128xf32>
    %43 = vector.extract_strided_slice %15 {offsets = [6, 0], sizes = [1, 128], strides = [1, 1]} : vector<9x128xf32> to vector<1x128xf32>
    %44 = arith.mulf %42, %43 : vector<1x128xf32>
    %45 = arith.addf %41, %44 : vector<1x128xf32>
    %46 = vector.extract_strided_slice %13 {offsets = [3, 0], sizes = [1, 128], strides = [1, 1]} : vector<4x128xf32> to vector<1x128xf32>
    %47 = vector.extract_strided_slice %15 {offsets = [7, 0], sizes = [1, 128], strides = [1, 1]} : vector<9x128xf32> to vector<1x128xf32>
    %48 = arith.mulf %46, %47 : vector<1x128xf32>
    %49 = arith.addf %45, %48 : vector<1x128xf32>
    %50 = vector.extract_strided_slice %13 {offsets = [0, 0], sizes = [1, 128], strides = [1, 1]} : vector<4x128xf32> to vector<1x128xf32>
    %51 = vector.extract_strided_slice %15 {offsets = [1, 0], sizes = [1, 128], strides = [1, 1]} : vector<9x128xf32> to vector<1x128xf32>
    %52 = arith.mulf %50, %51 : vector<1x128xf32>
    %53 = arith.addf %17, %52 : vector<1x128xf32>
    %54 = vector.extract_strided_slice %13 {offsets = [1, 0], sizes = [1, 128], strides = [1, 1]} : vector<4x128xf32> to vector<1x128xf32>
    %55 = vector.extract_strided_slice %15 {offsets = [2, 0], sizes = [1, 128], strides = [1, 1]} : vector<9x128xf32> to vector<1x128xf32>
    %56 = arith.mulf %54, %55 : vector<1x128xf32>
    %57 = arith.addf %53, %56 : vector<1x128xf32>
    %58 = vector.extract_strided_slice %13 {offsets = [2, 0], sizes = [1, 128], strides = [1, 1]} : vector<4x128xf32> to vector<1x128xf32>
    %59 = vector.extract_strided_slice %15 {offsets = [4, 0], sizes = [1, 128], strides = [1, 1]} : vector<9x128xf32> to vector<1x128xf32>
    %60 = arith.mulf %58, %59 : vector<1x128xf32>
    %61 = arith.addf %57, %60 : vector<1x128xf32>
    %62 = vector.extract_strided_slice %13 {offsets = [3, 0], sizes = [1, 128], strides = [1, 1]} : vector<4x128xf32> to vector<1x128xf32>
    %63 = vector.extract_strided_slice %15 {offsets = [5, 0], sizes = [1, 128], strides = [1, 1]} : vector<9x128xf32> to vector<1x128xf32>
    %64 = arith.mulf %62, %63 : vector<1x128xf32>
    %65 = arith.addf %61, %64 : vector<1x128xf32>
    %66 = vector.extract_strided_slice %13 {offsets = [0, 0], sizes = [1, 128], strides = [1, 1]} : vector<4x128xf32> to vector<1x128xf32>
    %67 = vector.extract_strided_slice %15 {offsets = [0, 0], sizes = [1, 128], strides = [1, 1]} : vector<9x128xf32> to vector<1x128xf32>
    %68 = arith.mulf %66, %67 : vector<1x128xf32>
    %69 = arith.addf %17, %68 : vector<1x128xf32>
    %70 = vector.extract_strided_slice %13 {offsets = [1, 0], sizes = [1, 128], strides = [1, 1]} : vector<4x128xf32> to vector<1x128xf32>
    %71 = vector.extract_strided_slice %15 {offsets = [1, 0], sizes = [1, 128], strides = [1, 1]} : vector<9x128xf32> to vector<1x128xf32>
    %72 = arith.mulf %70, %71 : vector<1x128xf32>
    %73 = arith.addf %69, %72 : vector<1x128xf32>
    %74 = vector.extract_strided_slice %13 {offsets = [2, 0], sizes = [1, 128], strides = [1, 1]} : vector<4x128xf32> to vector<1x128xf32>
    %75 = vector.extract_strided_slice %15 {offsets = [3, 0], sizes = [1, 128], strides = [1, 1]} : vector<9x128xf32> to vector<1x128xf32>
    %76 = arith.mulf %74, %75 : vector<1x128xf32>
    %77 = arith.addf %73, %76 : vector<1x128xf32>
    %78 = vector.extract_strided_slice %13 {offsets = [3, 0], sizes = [1, 128], strides = [1, 1]} : vector<4x128xf32> to vector<1x128xf32>
    %79 = vector.extract_strided_slice %15 {offsets = [4, 0], sizes = [1, 128], strides = [1, 1]} : vector<9x128xf32> to vector<1x128xf32>
    %80 = arith.mulf %78, %79 : vector<1x128xf32>
    %81 = arith.addf %77, %80 : vector<1x128xf32>
    %82 = tpu.concatenate %33, %49, %65, %81 in 0 : vector<1x128xf32>, vector<1x128xf32>, vector<1x128xf32>, vector<1x128xf32> -> vector<4x128xf32>
    %83 = arith.truncf %82 : vector<4x128xf32> to vector<4x128xbf16>
    %c0_15 = arith.constant 0 : index
    %c0_16 = arith.constant 0 : index
    %c0_17 = arith.constant 0 : index
    %84 = vector.load %arg7[%c0_15, %c0_16, %c0_17] : memref<1x128x512xbf16, #tpu.memory_space<vmem>>, vector<1x128x512xbf16>
    %85 = vector.shape_cast %84 : vector<1x128x512xbf16> to vector<128x512xbf16>
    %cst_18 = arith.constant dense<0.000000e+00> : vector<4x512xf32>
    %86 = tpu.matmul %83, %85, %cst_18 {dimension_numbers = #tpu.dot_dimension_numbers<[1], [0], [0], [1], [0, 0, 1, 1], [], []>} : vector<4x128xbf16>, vector<128x512xbf16>, vector<4x512xf32> -> vector<4x512xf32>
    %c0_19 = arith.constant 0 : index
    %c0_20 = arith.constant 0 : index
    %c0_21 = arith.constant 0 : index
    %87 = vector.load %arg8[%c0_19, %c0_20, %c0_21] : memref<1x1x512xf32, #tpu.memory_space<vmem>>, vector<1x1x512xf32>
    %88 = vector.shape_cast %87 : vector<1x1x512xf32> to vector<1x512xf32>
    %89 = vector.broadcast %88 : vector<1x512xf32> to vector<4x512xf32>
    %90 = arith.addf %86, %89 : vector<4x512xf32>
    %91 = arith.addf %3, %90 : vector<4x512xf32>
    %cst_22 = arith.constant 0.000000e+00 : f32
    %92 = vector.broadcast %cst_22 : f32 to vector<4x512xf32>
    %93 = arith.maximumf %91, %92 : vector<4x512xf32>
    %c0_23 = arith.constant 0 : index
    %c0_24 = arith.constant 0 : index
    %94 = vector.load %arg10[%c0_23, %c0_24] : memref<4x512xf32, #tpu.memory_space<vmem>>, vector<4x512xf32>
    tpu.vector_store %arg10[%c0_23, %c0_24], %93 {strides = array<i32>} : memref<4x512xf32, #tpu.memory_space<vmem>>, vector<4x512xf32>,
    %c0_25 = arith.constant 0 : index
    %c0_26 = arith.constant 0 : index
    %c0_27 = arith.constant 0 : index
    %95 = vector.load %arg9[%c0_25, %c0_26, %c0_27] : memref<1x4x512xf32, #tpu.memory_space<vmem>>, vector<1x4x512xf32>
    %96 = vector.shape_cast %95 : vector<1x4x512xf32> to vector<4x512xf32>
    %97 = vector.shape_cast %93 : vector<4x512xf32> to vector<1x4x512xf32>
    tpu.vector_store %arg9[%c0_25, %c0_26, %c0_27], %97 {strides = array<i32>} : memref<1x4x512xf32, #tpu.memory_space<vmem>>, vector<1x4x512xf32>,
    return
  }
  func.func @transform_0(%arg0: i32, %arg1: i32) -> (i32, i32, i32) {
    %c0_i32 = arith.constant 0 : i32
    %c0_i32_0 = arith.constant 0 : i32
    %c0_i32_1 = arith.constant 0 : i32
    return %arg0, %c0_i32, %c0_i32_0 : i32, i32, i32
  }
  func.func @transform_1(%arg0: i32, %arg1: i32) -> (i32, i32, i32) {
    %c0_i32 = arith.constant 0 : i32
    %c0_i32_0 = arith.constant 0 : i32
    %c0_i32_1 = arith.constant 0 : i32
    return %arg1, %c0_i32, %c0_i32_0 : i32, i32, i32
  }
  func.func @transform_2(%arg0: i32, %arg1: i32) -> (i32, i32, i32) {
    %c0_i32 = arith.constant 0 : i32
    %c0_i32_0 = arith.constant 0 : i32
    %c0_i32_1 = arith.constant 0 : i32
    return %arg1, %c0_i32, %c0_i32_0 : i32, i32, i32
  }
  func.func @transform_3(%arg0: i32, %arg1: i32) -> (i32, i32, i32) {
    %c0_i32 = arith.constant 0 : i32
    %c0_i32_0 = arith.constant 0 : i32
    %c0_i32_1 = arith.constant 0 : i32
    return %arg1, %c0_i32, %c0_i32_0 : i32, i32, i32
  }
  func.func @transform_4(%arg0: i32, %arg1: i32) -> (i32, i32, i32) {
    %c0_i32 = arith.constant 0 : i32
    %c0_i32_0 = arith.constant 0 : i32
    %c0_i32_1 = arith.constant 0 : i32
    return %arg1, %c0_i32, %c0_i32_0 : i32, i32, i32
  }
  func.func @transform_5(%arg0: i32, %arg1: i32) -> (i32, i32, i32) {
    %c0_i32 = arith.constant 0 : i32
    %c0_i32_0 = arith.constant 0 : i32
    %c0_i32_1 = arith.constant 0 : i32
    return %arg1, %c0_i32, %c0_i32_0 : i32, i32, i32
  }
  func.func @transform_6(%arg0: i32, %arg1: i32) -> (i32, i32, i32) {
    %c0_i32 = arith.constant 0 : i32
    %c0_i32_0 = arith.constant 0 : i32
    %c0_i32_1 = arith.constant 0 : i32
    return %arg1, %c0_i32, %c0_i32_0 : i32, i32, i32
  }
  func.func @transform_7(%arg0: i32, %arg1: i32) -> (i32, i32, i32) {
    %c0_i32 = arith.constant 0 : i32
    %c0_i32_0 = arith.constant 0 : i32
    %c0_i32_1 = arith.constant 0 : i32
    return %arg0, %c0_i32, %c0_i32_0 : i32, i32, i32
  }
}

module attributes {stable_mosaic.version = 11 : i64} {
  func.func @kernel(%arg0: i32, %arg1: memref<1x4x512xf32, #tpu.memory_space<vmem>>, %arg2: memref<512x256xbf16, #tpu.memory_space<vmem>>, %arg3: memref<1x256xf32, #tpu.memory_space<vmem>>, %arg4: memref<9x256xf32, #tpu.memory_space<vmem>>, %arg5: memref<1x256xf32, #tpu.memory_space<vmem>>, %arg6: memref<256x1024xbf16, #tpu.memory_space<vmem>>, %arg7: memref<1x1024xf32, #tpu.memory_space<vmem>>, %arg8: memref<1x1x1024xf32, #tpu.memory_space<vmem>>) attributes {dimension_semantics = [#tpu.dimension_semantics<parallel>], iteration_bounds = array<i64: 2>, scalar_prefetch = 0 : i64, scratch_operands = 0 : i64, tpu.core_type = #tpu.core_type<tc>, window_params = [{transform_indices = @transform_0, window_bounds = array<i64: 1, 4, 512>}, {pipeline_mode = #tpu.pipeline_mode<synchronous>, transform_indices = @transform_1, window_bounds = array<i64: 512, 256>}, {pipeline_mode = #tpu.pipeline_mode<synchronous>, transform_indices = @transform_2, window_bounds = array<i64: 1, 256>}, {pipeline_mode = #tpu.pipeline_mode<synchronous>, transform_indices = @transform_3, window_bounds = array<i64: 9, 256>}, {pipeline_mode = #tpu.pipeline_mode<synchronous>, transform_indices = @transform_4, window_bounds = array<i64: 1, 256>}, {pipeline_mode = #tpu.pipeline_mode<synchronous>, transform_indices = @transform_5, window_bounds = array<i64: 256, 1024>}, {pipeline_mode = #tpu.pipeline_mode<synchronous>, transform_indices = @transform_6, window_bounds = array<i64: 1, 1024>}, {transform_indices = @transform_7, window_bounds = array<i64: 1, 1, 1024>}]} {
    %c0 = arith.constant 0 : index
    %c0_0 = arith.constant 0 : index
    %c0_1 = arith.constant 0 : index
    %0 = vector.load %arg1[%c0, %c0_0, %c0_1] : memref<1x4x512xf32, #tpu.memory_space<vmem>>, vector<1x4x512xf32>
    %1 = vector.shape_cast %0 : vector<1x4x512xf32> to vector<4x512xf32>
    %2 = arith.truncf %1 : vector<4x512xf32> to vector<4x512xbf16>
    %c0_2 = arith.constant 0 : index
    %c0_3 = arith.constant 0 : index
    %3 = vector.load %arg2[%c0_2, %c0_3] : memref<512x256xbf16, #tpu.memory_space<vmem>>, vector<512x256xbf16>
    %cst = arith.constant dense<0.000000e+00> : vector<4x256xf32>
    %4 = tpu.matmul %2, %3, %cst {dimension_numbers = #tpu.dot_dimension_numbers<[1], [0], [0], [1], [0, 0, 1, 1], [], []>} : vector<4x512xbf16>, vector<512x256xbf16>, vector<4x256xf32> -> vector<4x256xf32>
    %c0_4 = arith.constant 0 : index
    %c0_5 = arith.constant 0 : index
    %5 = vector.load %arg3[%c0_4, %c0_5] : memref<1x256xf32, #tpu.memory_space<vmem>>, vector<1x256xf32>
    %6 = vector.broadcast %5 : vector<1x256xf32> to vector<4x256xf32>
    %7 = arith.addf %4, %6 : vector<4x256xf32>
    %cst_6 = arith.constant 0.000000e+00 : f32
    %8 = vector.broadcast %cst_6 : f32 to vector<4x256xf32>
    %9 = arith.maximumf %7, %8 : vector<4x256xf32>
    %c0_7 = arith.constant 0 : index
    %c0_8 = arith.constant 0 : index
    %10 = vector.load %arg4[%c0_7, %c0_8] : memref<9x256xf32, #tpu.memory_space<vmem>>, vector<9x256xf32>
    %c0_9 = arith.constant 0 : index
    %c0_10 = arith.constant 0 : index
    %11 = vector.load %arg5[%c0_9, %c0_10] : memref<1x256xf32, #tpu.memory_space<vmem>>, vector<1x256xf32>
    %12 = vector.extract_strided_slice %9 {offsets = [0, 0], sizes = [1, 256], strides = [1, 1]} : vector<4x256xf32> to vector<1x256xf32>
    %13 = vector.extract_strided_slice %10 {offsets = [4, 0], sizes = [1, 256], strides = [1, 1]} : vector<9x256xf32> to vector<1x256xf32>
    %14 = arith.mulf %12, %13 : vector<1x256xf32>
    %15 = arith.addf %11, %14 : vector<1x256xf32>
    %16 = vector.extract_strided_slice %9 {offsets = [1, 0], sizes = [1, 256], strides = [1, 1]} : vector<4x256xf32> to vector<1x256xf32>
    %17 = vector.extract_strided_slice %10 {offsets = [5, 0], sizes = [1, 256], strides = [1, 1]} : vector<9x256xf32> to vector<1x256xf32>
    %18 = arith.mulf %16, %17 : vector<1x256xf32>
    %19 = arith.addf %15, %18 : vector<1x256xf32>
    %20 = vector.extract_strided_slice %9 {offsets = [2, 0], sizes = [1, 256], strides = [1, 1]} : vector<4x256xf32> to vector<1x256xf32>
    %21 = vector.extract_strided_slice %10 {offsets = [7, 0], sizes = [1, 256], strides = [1, 1]} : vector<9x256xf32> to vector<1x256xf32>
    %22 = arith.mulf %20, %21 : vector<1x256xf32>
    %23 = arith.addf %19, %22 : vector<1x256xf32>
    %24 = vector.extract_strided_slice %9 {offsets = [3, 0], sizes = [1, 256], strides = [1, 1]} : vector<4x256xf32> to vector<1x256xf32>
    %25 = vector.extract_strided_slice %10 {offsets = [8, 0], sizes = [1, 256], strides = [1, 1]} : vector<9x256xf32> to vector<1x256xf32>
    %26 = arith.mulf %24, %25 : vector<1x256xf32>
    %27 = arith.addf %23, %26 : vector<1x256xf32>
    %28 = arith.truncf %27 : vector<1x256xf32> to vector<1x256xbf16>
    %c0_11 = arith.constant 0 : index
    %c0_12 = arith.constant 0 : index
    %29 = vector.load %arg6[%c0_11, %c0_12] : memref<256x1024xbf16, #tpu.memory_space<vmem>>, vector<256x1024xbf16>
    %cst_13 = arith.constant dense<0.000000e+00> : vector<1x1024xf32>
    %30 = tpu.matmul %28, %29, %cst_13 {dimension_numbers = #tpu.dot_dimension_numbers<[1], [0], [0], [1], [0, 0, 1, 1], [], []>} : vector<1x256xbf16>, vector<256x1024xbf16>, vector<1x1024xf32> -> vector<1x1024xf32>
    %c0_14 = arith.constant 0 : index
    %c0_15 = arith.constant 0 : index
    %31 = vector.load %arg7[%c0_14, %c0_15] : memref<1x1024xf32, #tpu.memory_space<vmem>>, vector<1x1024xf32>
    %32 = arith.addf %30, %31 : vector<1x1024xf32>
    %33 = vector.extract_strided_slice %1 {offsets = [0, 0], sizes = [1, 512], strides = [1, 1]} : vector<4x512xf32> to vector<1x512xf32>
    %34 = vector.extract_strided_slice %1 {offsets = [1, 0], sizes = [1, 512], strides = [1, 1]} : vector<4x512xf32> to vector<1x512xf32>
    %35 = arith.addf %33, %34 : vector<1x512xf32>
    %36 = vector.extract_strided_slice %1 {offsets = [2, 0], sizes = [1, 512], strides = [1, 1]} : vector<4x512xf32> to vector<1x512xf32>
    %37 = arith.addf %35, %36 : vector<1x512xf32>
    %38 = vector.extract_strided_slice %1 {offsets = [3, 0], sizes = [1, 512], strides = [1, 1]} : vector<4x512xf32> to vector<1x512xf32>
    %39 = arith.addf %37, %38 : vector<1x512xf32>
    %cst_16 = arith.constant 0.111111112 : f32
    %40 = vector.broadcast %cst_16 : f32 to vector<1x512xf32>
    %41 = arith.mulf %39, %40 : vector<1x512xf32>
    %cst_17 = arith.constant 0.000000e+00 : f32
    %42 = vector.broadcast %cst_17 : f32 to vector<1x512xf32>
    %43 = tpu.concatenate %41, %42 in 1 : vector<1x512xf32>, vector<1x512xf32> -> vector<1x1024xf32>
    %44 = arith.addf %32, %43 : vector<1x1024xf32>
    %cst_18 = arith.constant 0.000000e+00 : f32
    %45 = vector.broadcast %cst_18 : f32 to vector<1x1024xf32>
    %46 = arith.maximumf %44, %45 : vector<1x1024xf32>
    %c0_19 = arith.constant 0 : index
    %c0_20 = arith.constant 0 : index
    %c0_21 = arith.constant 0 : index
    %47 = vector.load %arg8[%c0_19, %c0_20, %c0_21] : memref<1x1x1024xf32, #tpu.memory_space<vmem>>, vector<1x1x1024xf32>
    %48 = vector.shape_cast %47 : vector<1x1x1024xf32> to vector<1x1024xf32>
    %49 = vector.shape_cast %46 : vector<1x1024xf32> to vector<1x1x1024xf32>
    tpu.vector_store %arg8[%c0_19, %c0_20, %c0_21], %49 {strides = array<i32>} : memref<1x1x1024xf32, #tpu.memory_space<vmem>>, vector<1x1x1024xf32>,
    return
  }
  func.func @transform_0(%arg0: i32) -> (i32, i32, i32) {
    %c0_i32 = arith.constant 0 : i32
    %c0_i32_0 = arith.constant 0 : i32
    %c0_i32_1 = arith.constant 0 : i32
    return %arg0, %c0_i32, %c0_i32_0 : i32, i32, i32
  }
  func.func @transform_1(%arg0: i32) -> (i32, i32) {
    %c0_i32 = arith.constant 0 : i32
    %c0_i32_0 = arith.constant 0 : i32
    %c0_i32_1 = arith.constant 0 : i32
    return %c0_i32, %c0_i32_0 : i32, i32
  }
  func.func @transform_2(%arg0: i32) -> (i32, i32) {
    %c0_i32 = arith.constant 0 : i32
    %c0_i32_0 = arith.constant 0 : i32
    %c0_i32_1 = arith.constant 0 : i32
    return %c0_i32, %c0_i32_0 : i32, i32
  }
  func.func @transform_3(%arg0: i32) -> (i32, i32) {
    %c0_i32 = arith.constant 0 : i32
    %c0_i32_0 = arith.constant 0 : i32
    %c0_i32_1 = arith.constant 0 : i32
    return %c0_i32, %c0_i32_0 : i32, i32
  }
  func.func @transform_4(%arg0: i32) -> (i32, i32) {
    %c0_i32 = arith.constant 0 : i32
    %c0_i32_0 = arith.constant 0 : i32
    %c0_i32_1 = arith.constant 0 : i32
    return %c0_i32, %c0_i32_0 : i32, i32
  }
  func.func @transform_5(%arg0: i32) -> (i32, i32) {
    %c0_i32 = arith.constant 0 : i32
    %c0_i32_0 = arith.constant 0 : i32
    %c0_i32_1 = arith.constant 0 : i32
    return %c0_i32, %c0_i32_0 : i32, i32
  }
  func.func @transform_6(%arg0: i32) -> (i32, i32) {
    %c0_i32 = arith.constant 0 : i32
    %c0_i32_0 = arith.constant 0 : i32
    %c0_i32_1 = arith.constant 0 : i32
    return %c0_i32, %c0_i32_0 : i32, i32
  }
  func.func @transform_7(%arg0: i32) -> (i32, i32, i32) {
    %c0_i32 = arith.constant 0 : i32
    %c0_i32_0 = arith.constant 0 : i32
    %c0_i32_1 = arith.constant 0 : i32
    return %arg0, %c0_i32, %c0_i32_0 : i32, i32, i32
  }
}

module attributes {stable_mosaic.version = 11 : i64} {
  func.func @kernel(%arg0: i32, %arg1: i32, %arg2: memref<1x1x1024xf32, #tpu.memory_space<vmem>>, %arg3: memref<1x1024x256xbf16, #tpu.memory_space<vmem>>, %arg4: memref<1x1x256xf32, #tpu.memory_space<vmem>>, %arg5: memref<1x9x256xf32, #tpu.memory_space<vmem>>, %arg6: memref<1x1x256xf32, #tpu.memory_space<vmem>>, %arg7: memref<1x256x1024xbf16, #tpu.memory_space<vmem>>, %arg8: memref<1x1x1024xf32, #tpu.memory_space<vmem>>, %arg9: memref<1x1x1024xf32, #tpu.memory_space<vmem>>, %arg10: memref<1x1024xf32, #tpu.memory_space<vmem>>) attributes {dimension_semantics = [#tpu.dimension_semantics<parallel>, #tpu.dimension_semantics<arbitrary>], iteration_bounds = array<i64: 2, 3>, scalar_prefetch = 0 : i64, scratch_operands = 1 : i64, tpu.core_type = #tpu.core_type<tc>, window_params = [{transform_indices = @transform_0, window_bounds = array<i64: 1, 1, 1024>}, {transform_indices = @transform_1, window_bounds = array<i64: 1, 1024, 256>}, {transform_indices = @transform_2, window_bounds = array<i64: 1, 1, 256>}, {transform_indices = @transform_3, window_bounds = array<i64: 1, 9, 256>}, {transform_indices = @transform_4, window_bounds = array<i64: 1, 1, 256>}, {transform_indices = @transform_5, window_bounds = array<i64: 1, 256, 1024>}, {transform_indices = @transform_6, window_bounds = array<i64: 1, 1, 1024>}, {transform_indices = @transform_7, window_bounds = array<i64: 1, 1, 1024>}]} {
    %c0_i32 = arith.constant 0 : i32
    %0 = arith.cmpi eq, %arg1, %c0_i32 : i32
    %1 = arith.extui %0 : i1 to i32
    %c0_i32_0 = arith.constant 0 : i32
    %2 = arith.cmpi ne, %1, %c0_i32_0 : i32
    scf.if %2 {
      %c0_28 = arith.constant 0 : index
      %c0_29 = arith.constant 0 : index
      %c0_30 = arith.constant 0 : index
      %34 = vector.load %arg2[%c0_28, %c0_29, %c0_30] : memref<1x1x1024xf32, #tpu.memory_space<vmem>>, vector<1x1x1024xf32>
      %35 = vector.shape_cast %34 : vector<1x1x1024xf32> to vector<1x1024xf32>
      %c0_31 = arith.constant 0 : index
      %c0_32 = arith.constant 0 : index
      %36 = vector.load %arg10[%c0_31, %c0_32] : memref<1x1024xf32, #tpu.memory_space<vmem>>, vector<1x1024xf32>
      tpu.vector_store %arg10[%c0_31, %c0_32], %35 {strides = array<i32>} : memref<1x1024xf32, #tpu.memory_space<vmem>>, vector<1x1024xf32>,
    } else {
    }
    %c0 = arith.constant 0 : index
    %c0_1 = arith.constant 0 : index
    %3 = vector.load %arg10[%c0, %c0_1] : memref<1x1024xf32, #tpu.memory_space<vmem>>, vector<1x1024xf32>
    %4 = arith.truncf %3 : vector<1x1024xf32> to vector<1x1024xbf16>
    %c0_2 = arith.constant 0 : index
    %c0_3 = arith.constant 0 : index
    %c0_4 = arith.constant 0 : index
    %5 = vector.load %arg3[%c0_2, %c0_3, %c0_4] : memref<1x1024x256xbf16, #tpu.memory_space<vmem>>, vector<1x1024x256xbf16>
    %6 = vector.shape_cast %5 : vector<1x1024x256xbf16> to vector<1024x256xbf16>
    %cst = arith.constant dense<0.000000e+00> : vector<1x256xf32>
    %7 = tpu.matmul %4, %6, %cst {dimension_numbers = #tpu.dot_dimension_numbers<[1], [0], [0], [1], [0, 0, 1, 1], [], []>} : vector<1x1024xbf16>, vector<1024x256xbf16>, vector<1x256xf32> -> vector<1x256xf32>
    %c0_5 = arith.constant 0 : index
    %c0_6 = arith.constant 0 : index
    %c0_7 = arith.constant 0 : index
    %8 = vector.load %arg4[%c0_5, %c0_6, %c0_7] : memref<1x1x256xf32, #tpu.memory_space<vmem>>, vector<1x1x256xf32>
    %9 = vector.shape_cast %8 : vector<1x1x256xf32> to vector<1x256xf32>
    %10 = arith.addf %7, %9 : vector<1x256xf32>
    %cst_8 = arith.constant 0.000000e+00 : f32
    %11 = vector.broadcast %cst_8 : f32 to vector<1x256xf32>
    %12 = arith.maximumf %10, %11 : vector<1x256xf32>
    %c0_9 = arith.constant 0 : index
    %c0_10 = arith.constant 0 : index
    %c0_11 = arith.constant 0 : index
    %13 = vector.load %arg5[%c0_9, %c0_10, %c0_11] : memref<1x9x256xf32, #tpu.memory_space<vmem>>, vector<1x9x256xf32>
    %14 = vector.shape_cast %13 : vector<1x9x256xf32> to vector<9x256xf32>
    %c0_12 = arith.constant 0 : index
    %c0_13 = arith.constant 0 : index
    %c0_14 = arith.constant 0 : index
    %15 = vector.load %arg6[%c0_12, %c0_13, %c0_14] : memref<1x1x256xf32, #tpu.memory_space<vmem>>, vector<1x1x256xf32>
    %16 = vector.shape_cast %15 : vector<1x1x256xf32> to vector<1x256xf32>
    %17 = vector.extract_strided_slice %14 {offsets = [4, 0], sizes = [1, 256], strides = [1, 1]} : vector<9x256xf32> to vector<1x256xf32>
    %18 = arith.mulf %12, %17 : vector<1x256xf32>
    %19 = arith.addf %16, %18 : vector<1x256xf32>
    %20 = arith.truncf %19 : vector<1x256xf32> to vector<1x256xbf16>
    %c0_15 = arith.constant 0 : index
    %c0_16 = arith.constant 0 : index
    %c0_17 = arith.constant 0 : index
    %21 = vector.load %arg7[%c0_15, %c0_16, %c0_17] : memref<1x256x1024xbf16, #tpu.memory_space<vmem>>, vector<1x256x1024xbf16>
    %22 = vector.shape_cast %21 : vector<1x256x1024xbf16> to vector<256x1024xbf16>
    %cst_18 = arith.constant dense<0.000000e+00> : vector<1x1024xf32>
    %23 = tpu.matmul %20, %22, %cst_18 {dimension_numbers = #tpu.dot_dimension_numbers<[1], [0], [0], [1], [0, 0, 1, 1], [], []>} : vector<1x256xbf16>, vector<256x1024xbf16>, vector<1x1024xf32> -> vector<1x1024xf32>
    %c0_19 = arith.constant 0 : index
    %c0_20 = arith.constant 0 : index
    %c0_21 = arith.constant 0 : index
    %24 = vector.load %arg8[%c0_19, %c0_20, %c0_21] : memref<1x1x1024xf32, #tpu.memory_space<vmem>>, vector<1x1x1024xf32>
    %25 = vector.shape_cast %24 : vector<1x1x1024xf32> to vector<1x1024xf32>
    %26 = arith.addf %23, %25 : vector<1x1024xf32>
    %27 = arith.addf %3, %26 : vector<1x1024xf32>
    %cst_22 = arith.constant 0.000000e+00 : f32
    %28 = vector.broadcast %cst_22 : f32 to vector<1x1024xf32>
    %29 = arith.maximumf %27, %28 : vector<1x1024xf32>
    %c0_23 = arith.constant 0 : index
    %c0_24 = arith.constant 0 : index
    %30 = vector.load %arg10[%c0_23, %c0_24] : memref<1x1024xf32, #tpu.memory_space<vmem>>, vector<1x1024xf32>
    tpu.vector_store %arg10[%c0_23, %c0_24], %29 {strides = array<i32>} : memref<1x1024xf32, #tpu.memory_space<vmem>>, vector<1x1024xf32>,
    %c0_25 = arith.constant 0 : index
    %c0_26 = arith.constant 0 : index
    %c0_27 = arith.constant 0 : index
    %31 = vector.load %arg9[%c0_25, %c0_26, %c0_27] : memref<1x1x1024xf32, #tpu.memory_space<vmem>>, vector<1x1x1024xf32>
    %32 = vector.shape_cast %31 : vector<1x1x1024xf32> to vector<1x1024xf32>
    %33 = vector.shape_cast %29 : vector<1x1024xf32> to vector<1x1x1024xf32>
    tpu.vector_store %arg9[%c0_25, %c0_26, %c0_27], %33 {strides = array<i32>} : memref<1x1x1024xf32, #tpu.memory_space<vmem>>, vector<1x1x1024xf32>,
    return
  }
  func.func @transform_0(%arg0: i32, %arg1: i32) -> (i32, i32, i32) {
    %c0_i32 = arith.constant 0 : i32
    %c0_i32_0 = arith.constant 0 : i32
    %c0_i32_1 = arith.constant 0 : i32
    return %arg0, %c0_i32, %c0_i32_0 : i32, i32, i32
  }
  func.func @transform_1(%arg0: i32, %arg1: i32) -> (i32, i32, i32) {
    %c0_i32 = arith.constant 0 : i32
    %c0_i32_0 = arith.constant 0 : i32
    %c0_i32_1 = arith.constant 0 : i32
    return %arg1, %c0_i32, %c0_i32_0 : i32, i32, i32
  }
  func.func @transform_2(%arg0: i32, %arg1: i32) -> (i32, i32, i32) {
    %c0_i32 = arith.constant 0 : i32
    %c0_i32_0 = arith.constant 0 : i32
    %c0_i32_1 = arith.constant 0 : i32
    return %arg1, %c0_i32, %c0_i32_0 : i32, i32, i32
  }
  func.func @transform_3(%arg0: i32, %arg1: i32) -> (i32, i32, i32) {
    %c0_i32 = arith.constant 0 : i32
    %c0_i32_0 = arith.constant 0 : i32
    %c0_i32_1 = arith.constant 0 : i32
    return %arg1, %c0_i32, %c0_i32_0 : i32, i32, i32
  }
  func.func @transform_4(%arg0: i32, %arg1: i32) -> (i32, i32, i32) {
    %c0_i32 = arith.constant 0 : i32
    %c0_i32_0 = arith.constant 0 : i32
    %c0_i32_1 = arith.constant 0 : i32
    return %arg1, %c0_i32, %c0_i32_0 : i32, i32, i32
  }
  func.func @transform_5(%arg0: i32, %arg1: i32) -> (i32, i32, i32) {
    %c0_i32 = arith.constant 0 : i32
    %c0_i32_0 = arith.constant 0 : i32
    %c0_i32_1 = arith.constant 0 : i32
    return %arg1, %c0_i32, %c0_i32_0 : i32, i32, i32
  }
  func.func @transform_6(%arg0: i32, %arg1: i32) -> (i32, i32, i32) {
    %c0_i32 = arith.constant 0 : i32
    %c0_i32_0 = arith.constant 0 : i32
    %c0_i32_1 = arith.constant 0 : i32
    return %arg1, %c0_i32, %c0_i32_0 : i32, i32, i32
  }
  func.func @transform_7(%arg0: i32, %arg1: i32) -> (i32, i32, i32) {
    %c0_i32 = arith.constant 0 : i32
    %c0_i32_0 = arith.constant 0 : i32
    %c0_i32_1 = arith.constant 0 : i32
    return %arg0, %c0_i32, %c0_i32_0 : i32, i32, i32
  }
}

</mosaic_0001>

<bundles_post_ra>
// kernel: _lambda_.8
= control target key start
LH: loop header
LB: loop body
LE: loop exit
PB: predicated region body
PF: predicated region fallthrough
CT: control target
= control target key end

     0   :  { %14 = vsyncpa [#allocation3], 0  ;;  %s2021_s0 = inlined_call_operand.vmem [shape: f32[2,64,128], index: 0, kind: input, shape index: {}]   ;;  %s2022_s1 = inlined_call_operand.vmem [shape: bf16[128,128], index: 1, kind: input, shape index: {}]   ;;  %s2023_s2 = inlined_call_operand.hbm [shape: f32[1,128], index: 2, kind: input, shape index: {}]   ;;  %s2024_s3 = inlined_call_operand.hbm [shape: f32[9,128], index: 3, kind: input, shape index: {}]   ;;  %s2025_s4 = inlined_call_operand.hbm [shape: f32[1,128], index: 4, kind: input, shape index: {}]   ;;  %s2026_s5 = inlined_call_operand.hbm [shape: bf16[128,256], index: 5, kind: input, shape index: {}]   ;;  %s2027_s6 = inlined_call_operand.hbm [shape: f32[1,256], index: 6, kind: input, shape index: {}]   ;;  %s2028_s7 = inlined_call_operand.hbm [shape: f32[9,16,64], index: 7, kind: input, shape index: {}]   ;;  %s2029_s8 = inlined_call_operand.hbm [shape: f32[16,64], index: 8, kind: input, shape index: {}]   ;;  %s2030_s9 = inlined_call_operand.vmem [shape: f32[2,16,256], index: 9, kind: output, shape index: {}]  }
   0x1   :  { %15 = vsyncpa [#allocation5], 0 }
   0x2   :  { %16 = vsyncpa [#allocation8], 0 }
   0x3   :  { %17 = vsyncpa [#allocation11], 0  ;;  %s1741_s30 = smov 0  }
   0x4 LB: > { %s274_s12 = sshll.u32 %s2024_s3, 4  ;;  %s1750_s13 = sadd.s32 4294967295, %s1680_s30   ;;  %s1680_s30 = sphi %s1741_s30, %s23_s30   ;;  %s275_s12 = int_to_ptr.hbm [resolvable:$true] %s274_s12 }
   0x5   : > { %p1199_p0 = scmp.ge.s32.totalorder %s1680_s30, 1  ;;  %p248_p1 = scmp.lt.s32.totalorder %s1680_s30, 3 }
   0x6   : > { %p1414_p2 = scmp.eq.s32.totalorder %s1750_s13, 0  ;;  %s1682_s15 = smov [#allocation4]  }
   0x7   : > { %p1755_p3 = pnand %p1199_p0, %p248_p1  ;;  %s276_s16 = sshll.u32 %s1682_s15, 4  ;;  %s277_s16 = int_to_ptr.vmem [resolvable:$true] %s276_s16 }
   0x8   : > { %s300_s19 = sshll.u32 %s2026_s5, 4  ;;  %s1683_s21 = smov [#allocation7]   ;;  %s301_s19 = int_to_ptr.hbm [resolvable:$true] %s300_s19 }
   0x9   : > { %p1392_p4 = pneg %p1755_p3  ;;  %s302_s22 = sshll.u32 %s1683_s21, 4  ;;  %s303_s22 = int_to_ptr.vmem [resolvable:$true] %s302_s22 }
   0xa   : > { %s326_s25 = sshll.u32 %s2028_s7, 4  ;;  %s1684_s26 = smov 128   ;;  %s327_s25 = int_to_ptr.hbm [resolvable:$true] %s326_s25 }
   0xb   : > { %p1766_p5 = pnand %p1414_p2, %p1392_p4  ;;  %s1685_s27 = smov 8  }
   0xc   : > { %s1686_s28 = smov [#allocation10]   ;;  %s263_s15 = sshll.u32 %s2023_s2, 4  ;;  %s264_s15 = int_to_ptr.hbm [resolvable:$true] %s263_s15 }
   0xd   : > { %1398 = dma.hbm_to_vmem [thread:$0]  (!%p1766_p5), %s275_s12, 256, %s277_s16, [#allocation5], %s1684_s26, %s1684_s26, %s1685_s27  }
   0xe   : > { %1404 = dma.hbm_to_vmem [thread:$0]  (!%p1766_p5), %s301_s19, 2048, %s303_s22, [#allocation8], %s1684_s26, %s1684_s26, %s1685_s27  }
   0xf   : > { %s328_s29 = sshll.u32 %s1686_s28, 4  ;;  %s289_s17 = sshll.u32 %s2025_s4, 4  ;;  %s329_s29 = int_to_ptr.vmem [resolvable:$true] %s328_s29  ;;  %s290_s17 = int_to_ptr.hbm [resolvable:$true] %s289_s17 }
  0x10   : > { %1410 = dma.hbm_to_vmem [thread:$0]  (!%p1766_p5), %s327_s25, 2304, %s329_s29, [#allocation11], %s1684_s26, %s1684_s26, %s1685_s27  }
  0x11   : > { %s1687_s18 = smov [#allocation2]   ;;  %s1688_s21 = smov [#allocation6]  }
  0x12   : > { %s265_s19 = sshll.u32 %s1687_s18, 4  ;;  %s291_s22 = sshll.u32 %s1688_s21, 4  ;;  %s266_s19 = int_to_ptr.vmem [resolvable:$true] %s265_s19  ;;  %s292_s22 = int_to_ptr.vmem [resolvable:$true] %s291_s22 }
  0x13   : > { %1395 = dma.hbm_to_vmem [thread:$0]  (!%p1766_p5), %s264_s15, 16, %s266_s19, [#allocation3]  }
  0x14   : > { %s315_s28 = sshll.u32 %s2027_s6, 4  ;;  %s340_s10 = sshll.u32 %s2029_s8, 4  ;;  %s316_s28 = int_to_ptr.hbm [resolvable:$true] %s315_s28  ;;  %s341_s10 = int_to_ptr.hbm [resolvable:$true] %s340_s10 }
  0x15   : > { %1401 = dma.hbm_to_vmem [thread:$0]  (!%p1766_p5), %s290_s17, 16, %s292_s22, [#allocation5]  }
  0x16   : > { %s1689_s11 = smov [#allocation9]   ;;  %s1690_s15 = smov [#allocation12]  }
  0x17   : > { %s317_s12 = sshll.u32 %s1689_s11, 4  ;;  %s342_s16 = sshll.u32 %s1690_s15, 4  ;;  %s318_s12 = int_to_ptr.vmem [resolvable:$true] %s317_s12  ;;  %s343_s16 = int_to_ptr.vmem [resolvable:$true] %s342_s16 }
  0x18   : > { %1407 = dma.hbm_to_vmem [thread:$0]  (!%p1766_p5), %s316_s28, 32, %s318_s12, [#allocation8]  }
  0x19   : > { %1413 = dma.hbm_to_vmem [thread:$0]  (!%p1766_p5), %s341_s10, 256, %s343_s16, [#allocation11], %s1684_s26, %s1684_s26, %s1685_s27  }
  0x1a   : > { %366 = sbr.rel (%p1755_p3) target bundleno = 601 (0x259), region = 56 }
  0x1f   : > { %1663 = dma.done.wait (%p1414_p2), [#allocation3], 16  }
  0x20   : > { %1665 = vsyncadd (%p1414_p2), [#allocation3], 4294967280 }
  0x21   : > { %1667 = dma.done.wait (%p1414_p2), [#allocation5], 272  }
  0x22   : > { %1669 = vsyncadd (%p1414_p2), [#allocation5], 4294967024 }
  0x23   : > { %1671 = dma.done.wait (%p1414_p2), [#allocation8], 2080  }
  0x24   : > { %1673 = vsyncadd (%p1414_p2), [#allocation8], 4294965216 }
  0x25   : > { %1675 = dma.done.wait (%p1414_p2), [#allocation11], 2560  }
  0x26   : > { %1677 = vsyncadd (%p1414_p2), [#allocation11], 4294964736  ;;  %v1347_v0 = vld [vmem:[%s2022_s1 + $0x38] sm:$0xff]  ;;  %v1346_v1 = vld [vmem:[%s2022_s1 + $0x30] sm:$0xff]  ;;  %p433_p6 = scmp.lt.s32.totalorder %s1750_s13, 1  ;;  %vm565_vm0 = vcmask 523264  }
  0x27   : > { %523 = vmatpush.bf16.msra.mxu0 %v1347_v0  ;;  %v1345_v2 = vld [vmem:[%s2022_s1 + $0x28] sm:$0xff]  ;;  %v1344_v3 = vld [vmem:[%s2022_s1 + $0x20] sm:$0xff]  ;;  %v1343_v4 = vld [vmem:[%s2022_s1 + $0x18] sm:$0xff] }
  0x28   : > { %s2034_s13 = smov (!%p433_p6, %s1750_s13), 1  ;;  %v1342_v5 = vld [vmem:[%s2022_s1 + $0x10] sm:$0xff]  ;;  %v1341_v6 = vld [vmem:[%s2022_s1 + $0x8] sm:$0xff]  ;;  %v1340_v7 = vld [vmem:[%s2022_s1] sm:$0xff] }
  0x29   : > { %s1338_s25 = sshll.u32 %s2034_s13, 6  ;;  %v1445_v27 = vld [vmem:[#allocation2] ss:$0 sm:$0xff]  ;;  %v563_v45 = vld [vmem:[#allocation10] sm:$0xff]  ;;  %v604_v46 = vld [vmem:[#allocation10 + $0x10] sm:$0xff]  ;;  %s1339_s20 = sshll.u32 %s2034_s13, 5 }
  0x2a   : > { %s437_s15 = scalar_lea.vmem %s2021_s0, %s1338_s25  ;;  %v641_v47 = vld [vmem:[#allocation10 + $0x20] sm:$0xff]  ;;  %v564_v48 = vld [vmem:[#allocation10 + $0x8] sm:$0xff]  ;;  %v605_v49 = vld [vmem:[#allocation10 + $0x18] sm:$0xff]  ;;  %s442_s17 = scalar_lea.vmem %s2030_s9, %s1339_s20 }
  0x2b   : > { %524 = vmatpush.bf16.msra.mxu0 %v1346_v1  ;;  %v1861_v8 = vld [vmem:[%s437_s15] sm:$0xff]  ;;  %v1863_v9 = vld [vmem:[%s437_s15 + $0x8] sm:$0xff]  ;;  %v1867_v11 = vld [vmem:[%s437_s15 + $0x10] sm:$0xff] }
  0x2c   : > { %v451_v10 = vpack.c.bf16 %v1863_v9, %v1861_v8  ;;  %v1869_v12 = vld [vmem:[%s437_s15 + $0x18] sm:$0xff]  ;;  %v1873_v14 = vld [vmem:[%s437_s15 + $0x20] sm:$0xff]  ;;  %v1875_v15 = vld [vmem:[%s437_s15 + $0x28] sm:$0xff] }
  0x2d   : > { %v452_v13 = vpack.c.bf16 %v1869_v12, %v1867_v11  ;;  %v453_v16 = vpack.c.bf16 %v1875_v15, %v1873_v14  ;;  %v1879_v17 = vld [vmem:[%s437_s15 + $0x30] sm:$0xff]  ;;  %v1881_v18 = vld [vmem:[%s437_s15 + $0x38] sm:$0xff]  ;;  %v678_v51 = vld [vmem:[#allocation10 + $0x30] sm:$0xff] }
  0x2e   : > { %v454_v19 = vpack.c.bf16 %v1881_v18, %v1879_v17  ;;  %v642_v50 = vld [vmem:[#allocation10 + $0x28] sm:$0xff]  ;;  %v715_v52 = vld [vmem:[#allocation10 + $0x40] sm:$0xff]  ;;  %v752_v53 = vld [vmem:[#allocation10 + $0x50] sm:$0xff] }
  0x2f   : > { %525 = vmatpush.bf16.msra.mxu0 %v1345_v2  ;;  %v679_v54 = vld [vmem:[#allocation10 + $0x38] sm:$0xff]  ;;  %v716_v55 = vld [vmem:[#allocation10 + $0x48] sm:$0xff]  ;;  %v789_v57 = vld [vmem:[#allocation10 + $0x60] sm:$0xff] }
  0x30   : > { %v753_v56 = vld [vmem:[#allocation10 + $0x58] sm:$0xff]  ;;  %v826_v58 = vld [vmem:[#allocation10 + $0x70] sm:$0xff]  ;;  %v863_v59 = vld [vmem:[#allocation10 + $0x80] sm:$0xff] }
  0x31   : > { %v790_v60 = vld [vmem:[#allocation10 + $0x68] sm:$0xff]  ;;  %v827_v61 = vld [vmem:[#allocation10 + $0x78] sm:$0xff]  ;;  %v1362_v2 = vld [vmem:[#allocation7 + $0x74] sm:$0xf] }
  0x32   : > { %v864_v62 = vld [vmem:[#allocation10 + $0x88] sm:$0xff]  ;;  %v1363_v0 = vld [vmem:[#allocation7 + $0x74] sm:$0xf0] }
  0x33   : > { %526 = vmatpush.bf16.msra.mxu0 %v1344_v3  ;;  %v1328_v63 = vld [vmem:[#allocation7 + $0x70] sm:$0xf]  ;;  %v1330_v3 = vld [vmem:[#allocation7 + $0x78] sm:$0xf0] }
  0x34   : > { %v1329_v1 = vor.u32 %v1363_v0, %v1328_v63  ;;  %v1031_v0 = vld [vmem:[#allocation12 + $0x8] sm:$0xff] }
  0x37   : > { %527 = vmatpush.bf16.msra.mxu0 %v1343_v4  ;;  %v1333_v4 = vor.u32 %v1362_v2, %v1330_v3 }
  0x3b   : > { %528 = vmatpush.bf16.msra.mxu0 %v1342_v5  ;;  %v1320_v5 = vld [vmem:[#allocation7 + $0x60] sm:$0xf] }
  0x3f   : > { %529 = vmatpush.bf16.msra.mxu0 %v1341_v6  ;;  %v1361_v6 = vld [vmem:[#allocation7 + $0x64] sm:$0xf0] }
  0x43   : > { %530 = vmatpush.bf16.msra.mxu0 %v1340_v7  ;;  %v1360_v7 = vld [vmem:[#allocation7 + $0x64] sm:$0xf] }
  0x46   : > { %531 = vmatmul.bf16.vlgmr.msra.gmra.mxu0 %v451_v10  ;;  %v1321_v10 = vor.u32 %v1361_v6, %v1320_v5 }
  0x56   : > { %536 = vmatmul.bf16.gmra.mxu0 %v452_v13 }
  0x66   : > { %541 = vmatmul.bf16.gmra.mxu0 %v453_v16  ;;  %v1314_v16 = vld [vmem:[#allocation7 + $0x58] sm:$0xf0] }
  0x76   : > { %546 = vmatmul.bf16.gmra.mxu0 %v454_v19  ;;  %v1357_v19 = vld [vmem:[#allocation7 + $0x44] sm:$0xf0] }
  0xc3   : > { %v532_v20 = vpop.f32.mrf.mxu0 }
  0xc4   : > { %v533_v41 = vadd.f32 %v1445_v27, %v532_v20  ;;  %v1356_v20 = vld [vmem:[#allocation7 + $0x44] sm:$0xf] }
  0xc6   : > { %v1917_v44 = vmax.f32 %v533_v41, 0.0  ;;  %v1280_v41 = vld [vmem:[#allocation7 + $0x10] sm:$0xf] }
  0xcb   : > { %v534_v21 = vpop.f32.mrf.mxu0 }
  0xcc   : > { %v535_v39 = vadd.f32 %v1445_v27, %v534_v21 }
  0xce   : > { %v1912_v43 = vmax.f32 %v535_v39, 0.0 }
  0xd3   : > { %v537_v22 = vpop.f32.mrf.mxu0 }
  0xd4   : > { %v538_v37 = vadd.f32 %v1445_v27, %v537_v22 }
  0xd6   : > { %v1907_v42 = vmax.f32 %v538_v37, 0.0  ;;  %v1290_v37 = vld [vmem:[#allocation7 + $0x28] sm:$0xf0] }
  0xdb   : > { %v539_v23 = vpop.f32.mrf.mxu0 }
  0xdc   : > { %v540_v35 = vadd.f32 %v1445_v27, %v539_v23  ;;  %v1306_v23 = vld [vmem:[#allocation7 + $0x48] sm:$0xf0] }
  0xde   : > { %v1902_v40 = vmax.f32 %v540_v35, 0.0  ;;  %v1352_v35 = vld [vmem:[#allocation7 + $0x24] sm:$0xf] }
  0xdf   : > { %v1293_v39 = vor.u32 %v1352_v35, %v1290_v37  ;;  %v1447_v37 = vld [vmem:[#allocation4 + $0x8] ss:$0 sm:$0xff] }
  0xe3   : > { %v542_v24 = vpop.f32.mrf.mxu0 }
  0xe4   : > { %v543_v33 = vadd.f32 %v1445_v27, %v542_v24  ;;  %v1309_v24 = vor.u32 %v1356_v20, %v1306_v23 }
  0xe6   : > { %v1897_v38 = vmax.f32 %v543_v33, 0.0  ;;  %v1288_v33 = vld [vmem:[#allocation7 + $0x20] sm:$0xf] }
  0xeb   : > { %v544_v25 = vpop.f32.mrf.mxu0 }
  0xec   : > { %v545_v31 = vadd.f32 %v1445_v27, %v544_v25 }
  0xee   : > { %v1892_v36 = vmax.f32 %v545_v31, 0.0  ;;  %v1298_v31 = vld [vmem:[#allocation7 + $0x38] sm:$0xf0] }
  0xf3   : > { %v547_v26 = vpop.f32.mrf.mxu0 }
  0xf4   : > { %v548_v29 = vadd.f32 %v1445_v27, %v547_v26 }
  0xf6   : > { %v1887_v34 = vmax.f32 %v548_v29, 0.0 }
  0xfb   : > { %v549_v28 = vpop.f32.mrf.mxu0 }
  0xfc   : > { %v550_v30 = vadd.f32 %v1445_v27, %v549_v28  ;;  %v1296_v27 = vld [vmem:[#allocation7 + $0x30] sm:$0xf]  ;;  %v1355_v28 = vld [vmem:[#allocation7 + $0x34] sm:$0xf0] }
  0xfd   : > { %v1297_v29 = vor.u32 %v1355_v28, %v1296_v27 }
  0xfe   : > { %v1885_v32 = vmax.f32 %v550_v30, 0.0  ;;  %v1354_v30 = vld [vmem:[#allocation7 + $0x34] sm:$0xf] }
 0x100   : > { %580 = vmatpush.msra.mxu1 %v1885_v32  ;;  %620 = vmatpush.msra.mxu2 %v1885_v32 }
 0x101   : > { %657 = vmatpush.msra.mxu3 %v1885_v32 }
 0x102   : > { %581 = vmatpush.msra.mxu1 %v1887_v34  ;;  %621 = vmatpush.msra.mxu2 %v1887_v34 }
 0x103   : > { %658 = vmatpush.msra.mxu3 %v1887_v34 }
 0x104   : > { %582 = vmatpush.msra.mxu1 %v1892_v36  ;;  %622 = vmatpush.msra.mxu2 %v1892_v36 }
 0x105   : > { %659 = vmatpush.msra.mxu3 %v1892_v36 }
 0x106   : > { %583 = vmatpush.msra.mxu1 %v1897_v38  ;;  %623 = vmatpush.msra.mxu2 %v1897_v38 }
 0x107   : > { %660 = vmatpush.msra.mxu3 %v1897_v38 }
 0x108   : > { %584 = vmatpush.msra.mxu1 %v1902_v40  ;;  %624 = vmatpush.msra.mxu2 %v1902_v40 }
 0x109   : > { %661 = vmatpush.msra.mxu3 %v1902_v40 }
 0x10a   : > { %585 = vmatpush.msra.mxu1 %v1907_v42  ;;  %625 = vmatpush.msra.mxu2 %v1907_v42 }
 0x10b   : > { %662 = vmatpush.msra.mxu3 %v1907_v42 }
 0x10c   : > { %586 = vmatpush.msra.mxu1 %v1912_v43  ;;  %626 = vmatpush.msra.mxu2 %v1912_v43 }
 0x10d   : > { %663 = vmatpush.msra.mxu3 %v1912_v43 }
 0x10e   : > { %587 = vmatpush.msra.mxu1 %v1917_v44  ;;  %627 = vmatpush.msra.mxu2 %v1917_v44 }
 0x10f   : > { %664 = vmatpush.msra.mxu3 %v1917_v44  ;;  %1252 = vmatmul.msk.f32.vlgmr.msra.gmra.mxu1 %vm565_vm0, %v563_v45 }
 0x110   : > { %1254 = vmatmul.msk.f32.vlgmr.msra.gmra.mxu2 %vm565_vm0, %v604_v46  ;;  %694 = vmatpush.msrb.mxu1 %v1885_v32  ;;  %v1282_v46 = vld [vmem:[#allocation7 + $0x18] sm:$0xf0] }
 0x111   : > { %731 = vmatpush.msrb.mxu2 %v1885_v32  ;;  %768 = vmatpush.msrb.mxu3 %v1885_v32 }
 0x112   : > { %1256 = vmatmul.msk.f32.vlgmr.msra.gmra.mxu3 %vm565_vm0, %v641_v47  ;;  %695 = vmatpush.msrb.mxu1 %v1887_v34 }
 0x113   : > { %732 = vmatpush.msrb.mxu2 %v1887_v34  ;;  %769 = vmatpush.msrb.mxu3 %v1887_v34 }
 0x114   : > { %696 = vmatpush.msrb.mxu1 %v1892_v36 }
 0x115   : > { %733 = vmatpush.msrb.mxu2 %v1892_v36  ;;  %770 = vmatpush.msrb.mxu3 %v1892_v36 }
 0x116   : > { %697 = vmatpush.msrb.mxu1 %v1897_v38 }
 0x117   : > { %734 = vmatpush.msrb.mxu2 %v1897_v38  ;;  %771 = vmatpush.msrb.mxu3 %v1897_v38 }
 0x118   : > { %1253 = vmatmul.msk.f32.gmra.mxu1 %vm565_vm0, %v564_v48  ;;  %1255 = vmatmul.msk.f32.gmra.mxu2 %vm565_vm0, %v605_v49  ;;  %v2001_v48 = vld [vmem:[#allocation4] sm:$0xff]  ;;  %v1272_v49 = vld [vmem:[#allocation7] sm:$0xf] }
 0x119   : > { %698 = vmatpush.msrb.mxu1 %v1902_v40  ;;  %735 = vmatpush.msrb.mxu2 %v1902_v40  ;;  %v672_v3 = vperm.slane %v2001_v48, 2  ;;  %v709_v6 = vperm.slane %v2001_v48, 3  ;;  %v820_v23 = vperm.slane %v2001_v48, 6  ;;  %v857_v28 = vperm.slane %v2001_v48, 7 }
 0x11a   : > { %772 = vmatpush.msrb.mxu3 %v1902_v40 }
 0x11b   : > { %1257 = vmatmul.msk.f32.gmra.mxu3 %vm565_vm0, %v642_v50  ;;  %699 = vmatpush.msrb.mxu1 %v1907_v42  ;;  %v1349_v50 = vld [vmem:[#allocation7 + $0x4] sm:$0xf0] }
 0x11c   : > { %736 = vmatpush.msrb.mxu2 %v1907_v42  ;;  %773 = vmatpush.msrb.mxu3 %v1907_v42 }
 0x11d   : > { %700 = vmatpush.msrb.mxu1 %v1912_v43 }
 0x11e   : > { %737 = vmatpush.msrb.mxu2 %v1912_v43  ;;  %774 = vmatpush.msrb.mxu3 %v1912_v43 }
 0x11f   : > { %701 = vmatpush.msrb.mxu1 %v1917_v44 }
 0x120   : > { %738 = vmatpush.msrb.mxu2 %v1917_v44  ;;  %775 = vmatpush.msrb.mxu3 %v1917_v44 }
 0x121   : > { %805 = vmatpush.msra.mxu1 %v1885_v32  ;;  %1260 = vmatmul.msk.f32.vlgmr.msrb.gmra.mxu2 %vm565_vm0, %v715_v52  ;;  %v1030_v52 = vld [vmem:[#allocation12] sm:$0xff] }
 0x122   : > { %842 = vmatpush.msra.mxu2 %v1885_v32  ;;  %879 = vmatpush.msra.mxu3 %v1885_v32  ;;  %v1301_v32 = vor.u32 %v1354_v30, %v1298_v31 }
 0x123   : > { %1258 = vmatmul.msk.f32.vlgmr.msrb.gmra.mxu1 %vm565_vm0, %v678_v51  ;;  %1262 = vmatmul.msk.f32.vlgmr.msrb.gmra.mxu3 %vm565_vm0, %v752_v53  ;;  %v1348_v51 = vld [vmem:[#allocation7 + $0x4] sm:$0xf]  ;;  %v1273_v53 = vor.u32 %v1349_v50, %v1272_v49 }
 0x124   : > { %806 = vmatpush.msra.mxu1 %v1887_v34  ;;  %843 = vmatpush.msra.mxu2 %v1887_v34 }
 0x125   : > { %880 = vmatpush.msra.mxu3 %v1887_v34  ;;  %v1353_v34 = vld [vmem:[#allocation7 + $0x24] sm:$0xf0] }
 0x126   : > { %807 = vmatpush.msra.mxu1 %v1892_v36  ;;  %844 = vmatpush.msra.mxu2 %v1892_v36 }
 0x127   : > { %881 = vmatpush.msra.mxu3 %v1892_v36  ;;  %v1289_v36 = vor.u32 %v1353_v34, %v1288_v33 }
 0x128   : > { %808 = vmatpush.msra.mxu1 %v1897_v38  ;;  %845 = vmatpush.msra.mxu2 %v1897_v38 }
 0x129   : > { %882 = vmatpush.msra.mxu3 %v1897_v38  ;;  %1261 = vmatmul.msk.f32.gmra.mxu2 %vm565_vm0, %v716_v55  ;;  %v595_v55 = vperm.slane %v2001_v48, 0 }
 0x12a   : > { %809 = vmatpush.msra.mxu1 %v1902_v40  ;;  %846 = vmatpush.msra.mxu2 %v1902_v40 }
 0x12b   : > { %883 = vmatpush.msra.mxu3 %v1902_v40  ;;  %1259 = vmatmul.msk.f32.gmra.mxu1 %vm565_vm0, %v679_v54  ;;  %v1274_v54 = vld [vmem:[#allocation7 + $0x8] sm:$0xf0] }
 0x12c   : > { %810 = vmatpush.msra.mxu1 %v1907_v42  ;;  %847 = vmatpush.msra.mxu2 %v1907_v42 }
 0x12d   : > { %884 = vmatpush.msra.mxu3 %v1907_v42  ;;  %v1351_v42 = vld [vmem:[#allocation7 + $0x14] sm:$0xf0] }
 0x12e   : > { %1263 = vmatmul.msk.f32.gmra.mxu3 %vm565_vm0, %v753_v56  ;;  %811 = vmatpush.msra.mxu1 %v1912_v43  ;;  %v1281_v45 = vor.u32 %v1351_v42, %v1280_v41  ;;  %v1277_v56 = vor.u32 %v1348_v51, %v1274_v54  ;;  %v916_v51 = vld [vmem:[#allocation9] sm:$0x3] }
 0x12f   : > { %848 = vmatpush.msra.mxu2 %v1912_v43  ;;  %885 = vmatpush.msra.mxu3 %v1912_v43  ;;  %v1350_v43 = vld [vmem:[#allocation7 + $0x14] sm:$0xf] }
 0x130   : > { %812 = vmatpush.msra.mxu1 %v1917_v44  ;;  %v1285_v47 = vor.u32 %v1350_v43, %v1282_v46 }
 0x131   : > { %849 = vmatpush.msra.mxu2 %v1917_v44  ;;  %886 = vmatpush.msra.mxu3 %v1917_v44 }
 0x132   : > { %1266 = vmatmul.msk.f32.vlgmr.msra.gmra.mxu2 %vm565_vm0, %v826_v58  ;;  %1002 = vmatpush.bf16.msrb.mxu1 %v1329_v1 }
 0x133   : > { %1046 = vmatpush.msrb.mxu3 %v1881_v18  ;;  %1264 = vmatmul.msk.f32.vlgmr.msra.gmra.mxu1 %vm565_vm0, %v789_v57  ;;  %v1304_v18 = vld [vmem:[#allocation7 + $0x40] sm:$0xf] }
 0x134   : > { %1016 = vmatpush.bf16.msrb.mxu2 %v1333_v4  ;;  %v1305_v22 = vor.u32 %v1357_v19, %v1304_v18  ;;  %v783_v19 = vperm.slane %v2001_v48, 5 }
 0x135   : > { %1047 = vmatpush.msrb.mxu3 %v1879_v17 }
 0x136   : > { %1268 = vmatmul.msk.f32.vlgmr.msra.gmra.mxu3 %vm565_vm0, %v863_v59  ;;  %1003 = vmatpush.bf16.msrb.mxu1 %v1321_v10  ;;  %v1446_v59 = vld [vmem:[#allocation6] ss:$0 sm:$0xff] }
 0x137   : > { %1048 = vmatpush.msrb.mxu3 %v1875_v15 }
 0x139   : > { %1049 = vmatpush.msrb.mxu3 %v1873_v14  ;;  %v1358_v14 = vld [vmem:[#allocation7 + $0x54] sm:$0xf] }
 0x13a   : > { %1267 = vmatmul.msk.f32.gmra.mxu2 %vm565_vm0, %v827_v61  ;;  %v1317_v17 = vor.u32 %v1358_v14, %v1314_v16 }
 0x13b   : > { %1265 = vmatmul.msk.f32.gmra.mxu1 %vm565_vm0, %v790_v60  ;;  %1050 = vmatpush.msrb.mxu3 %v1869_v12  ;;  %v1322_v12 = vld [vmem:[#allocation7 + $0x68] sm:$0xf0]  ;;  %v635_v60 = vperm.slane %v2001_v48, 1 }
 0x13d   : > { %1051 = vmatpush.msrb.mxu3 %v1867_v11  ;;  %v1325_v11 = vor.u32 %v1360_v7, %v1322_v12 }
 0x13e   : > { %1269 = vmatmul.msk.f32.gmra.mxu3 %vm565_vm0, %v864_v62 }
 0x13f   : > { %1052 = vmatpush.msrb.mxu3 %v1863_v9  ;;  %1017 = vmatpush.bf16.msrb.mxu2 %v1325_v11  ;;  %v1312_v9 = vld [vmem:[#allocation7 + $0x50] sm:$0xf] }
 0x141   : > { %1053 = vmatpush.msrb.mxu3 %v1861_v8  ;;  %v1359_v8 = vld [vmem:[#allocation7 + $0x54] sm:$0xf0] }
 0x142   : > { %v1313_v15 = vor.u32 %v1359_v8, %v1312_v9 }
 0x143   : > { %1018 = vmatpush.bf16.msrb.mxu2 %v1317_v17 }
 0x144   : > { %1004 = vmatpush.bf16.msrb.mxu1 %v1313_v15 }
 0x146   : > { %1334 = vmatmul.msk.f32.vlgmr.msrb.gmra.mxu3 %vm565_vm0, %v1030_v52  ;;  %v918_v52 = vperm.slane %v916_v51, 0 }
 0x147   : > { %1019 = vmatpush.bf16.msrb.mxu2 %v1309_v24 }
 0x148   : > { %1005 = vmatpush.bf16.msrb.mxu1 %v1305_v22 }
 0x14b   : > { %1020 = vmatpush.bf16.msrb.mxu2 %v1301_v32 }
 0x14c   : > { %1006 = vmatpush.bf16.msrb.mxu1 %v1297_v29 }
 0x14e   : > { %1335 = vmatmul.msk.f32.gmra.mxu3 %vm565_vm0, %v1031_v0 }
 0x14f   : > { %1021 = vmatpush.bf16.msrb.mxu2 %v1293_v39 }
 0x150   : > { %1007 = vmatpush.bf16.msrb.mxu1 %v1289_v36 }
 0x153   : > { %1022 = vmatpush.bf16.msrb.mxu2 %v1285_v47 }
 0x154   : > { %1008 = vmatpush.bf16.msrb.mxu1 %v1281_v45 }
 0x157   : > { %1023 = vmatpush.bf16.msrb.mxu2 %v1277_v56 }
 0x158   : > { %1009 = vmatpush.bf16.msrb.mxu1 %v1273_v53 }
 0x18c   : > { %v1999_v13 = vpop.f32.mrf.mxu1 }
 0x18d   : > { %v596_v58 = vmul.f32 %v595_v55, %v1999_v13  ;;  %v746_v13 = vperm.slane %v2001_v48, 4 }
 0x18f   : > { %v601_v1 = vadd.f32 %v1446_v59, %v596_v58 }
 0x193   : > { %v629_v21 = vpop.f32.mrf.mxu2 }
 0x194   : > { %v636_v2 = vmul.f32 %v635_v60, %v629_v21 }
 0x195   : > { %v592_v25 = vpop.f32.mrf.mxu1  ;;  %v666_v26 = vpop.f32.mrf.mxu3 }
 0x196   : > { %v597_v63 = vmul.f32 %v595_v55, %v592_v25  ;;  %v638_v10 = vadd.f32 %v636_v2, %v601_v1  ;;  %v673_v12 = vmul.f32 %v672_v3, %v666_v26 }
 0x198   : > { %v602_v4 = vadd.f32 %v1446_v59, %v597_v63  ;;  %v675_v17 = vadd.f32 %v673_v12, %v638_v10 }
 0x19b   : > { %v632_v38 = vpop.f32.mrf.mxu2 }
 0x19c   : > { %v637_v5 = vmul.f32 %v635_v60, %v632_v38 }
 0x19e   : > { %v669_v40 = vpop.f32.mrf.mxu3  ;;  %v639_v9 = vadd.f32 %v637_v5, %v602_v4 }
 0x19f   : > { %v674_v8 = vmul.f32 %v672_v3, %v669_v40 }
 0x1a0   : > { %v703_v44 = vpop.f32.mrf.mxu1 }
 0x1a1   : > { %v710_v15 = vmul.f32 %v709_v6, %v703_v44  ;;  %v676_v20 = vadd.f32 %v674_v8, %v639_v9 }
 0x1a3   : > { %v712_v22 = vadd.f32 %v710_v15, %v675_v17 }
 0x1a4   : > { %v740_v57 = vpop.f32.mrf.mxu2 }
 0x1a5   : > { %v747_v18 = vmul.f32 %v746_v13, %v740_v57  ;;  %v919_v57 = vperm.slane %v916_v51, 1 }
 0x1a6   : > { %v777_v62 = vpop.f32.mrf.mxu3 }
 0x1a7   : > { %v749_v26 = vadd.f32 %v747_v18, %v712_v22  ;;  %v784_v27 = vmul.f32 %v783_v19, %v777_v62 }
 0x1a8   : > { %v706_v61 = vpop.f32.mrf.mxu1 }
 0x1a9   : > { %v711_v16 = vmul.f32 %v709_v6, %v706_v61  ;;  %v786_v35 = vadd.f32 %v784_v27, %v749_v26 }
 0x1ab   : > { %v713_v25 = vadd.f32 %v711_v16, %v676_v20 }
 0x1ac   : > { %v743_v7 = vpop.f32.mrf.mxu2 }
 0x1ad   : > { %v748_v21 = vmul.f32 %v746_v13, %v743_v7 }
 0x1af   : > { %v750_v30 = vadd.f32 %v748_v21, %v713_v25 }
 0x1b0   : > { %v814_v11 = vpop.f32.mrf.mxu1 }
 0x1b1   : > { %v780_v14 = vpop.f32.mrf.mxu3  ;;  %v821_v33 = vmul.f32 %v820_v23, %v814_v11 }
 0x1b2   : > { %v785_v31 = vmul.f32 %v783_v19, %v780_v14 }
 0x1b3   : > { %v823_v39 = vadd.f32 %v821_v33, %v786_v35 }
 0x1b4   : > { %v787_v38 = vadd.f32 %v785_v31, %v750_v30 }
 0x1b5   : > { %v851_v24 = vpop.f32.mrf.mxu2 }
 0x1b6   : > { %v858_v36 = vmul.f32 %v857_v28, %v851_v24 }
 0x1b8   : > { %v817_v29 = vpop.f32.mrf.mxu1  ;;  %v860_v43 = vadd.f32 %v858_v36, %v823_v39 }
 0x1b9   : > { %v888_v32 = vpop.f32.mrf.mxu3  ;;  %v822_v34 = vmul.f32 %v820_v23, %v817_v29 }
 0x1ba   : > { %v895_v44 = vmul.f32 %v1447_v37, %v888_v32 }
 0x1bb   : > { %v824_v41 = vadd.f32 %v822_v34, %v787_v38 }
 0x1bc   : > { %v897_v48 = vadd.f32 %v895_v44, %v860_v43 }
 0x1bd   : > { %v854_v40 = vpop.f32.mrf.mxu2 }
 0x1be   : > { %v859_v42 = vmul.f32 %v857_v28, %v854_v40 }
 0x1c0   : > { %v861_v45 = vadd.f32 %v859_v42, %v824_v41 }
 0x1c1   : > { %v891_v46 = vpop.f32.mrf.mxu3 }
 0x1c2   : > { %v896_v47 = vmul.f32 %v1447_v37, %v891_v46 }
 0x1c4   : > { %v898_v49 = vadd.f32 %v896_v47, %v861_v45 }
 0x1c6   : > { %v899_v50 = vpack.c.bf16 %v898_v49, %v897_v48 }
 0x1c8   : > { %1010 = vmatmul.bf16.vlgmr.msrb.gmra.mxu1 %v899_v50  ;;  %1024 = vmatmul.bf16.vlgmr.msrb.gmra.mxu2 %v899_v50 }
 0x1c9   : > { %v1055_v53 = vpop.f32.mrf.mxu3 }
 0x1d1   : > { %v1058_v62 = vpop.f32.mrf.mxu3 }
 0x245   : > { %v1011_v54 = vpop.f32.mrf.mxu1 }
 0x246   : > { %v1012_v55 = vadd.f32 %v1011_v54, %v918_v52 }
 0x248   : > { %v1061_v56 = vadd.f32 %v1055_v53, %v1012_v55 }
 0x24a   : > { %v1065_v58 = vmax.f32 %v1061_v56, 0.0 }
 0x24b   : > { %v1025_v59 = vpop.f32.mrf.mxu2 }
 0x24c   : > { %1069 = vst [vmem:[%s442_s17] sm:$0xff] %v1065_v58  ;;  %v1026_v60 = vadd.f32 %v1025_v59, %v919_v57 }
 0x24d   : > { %v1013_v61 = vpop.f32.mrf.mxu1 }
 0x24e   : > { %v1066_v63 = vmax.f32 %v1026_v60, 0.0  ;;  %v1014_v0 = vadd.f32 %v1013_v61, %v918_v52 }
 0x250   : > { %1070 = vst [vmem:[%s442_s17 + $0x8] sm:$0xff] %v1066_v63  ;;  %v1063_v1 = vadd.f32 %v1058_v62, %v1014_v0 }
 0x252   : > { %v1067_v2 = vmax.f32 %v1063_v1, 0.0 }
 0x253   : > { %v1027_v3 = vpop.f32.mrf.mxu2 }
 0x254   : > { %1071 = vst [vmem:[%s442_s17 + $0x10] sm:$0xff] %v1067_v2  ;;  %v1028_v4 = vadd.f32 %v1027_v3, %v919_v57 }
 0x256   : > { %v1068_v5 = vmax.f32 %v1028_v4, 0.0 }
 0x258   : > { %1072 = vst [vmem:[%s442_s17 + $0x18] sm:$0xff] %v1068_v5 }
 0x259 PF: > { %s23_s30 = sadd.s32 1, %s1680_s30  }
 0x25a   : > { %p20_p7 = scmp.ge.s32.totalorder %s23_s30, 4  }
 0x25c   :  { %22 = sbr.rel (!%p20_p7) target bundleno = 4 (0x4), region = 123 }
 0x261   :  { %1094 = vsyncpa [#allocation3], 1 }
 0x262   :  { %1096 = vsyncpa [#allocation3 + $0x1], 1 }
 0x263   :  { %1097 = vsyncpa [#allocation5], 1 }
 0x264   :  { %1098 = vsyncpa [#allocation8], 1 }
 0x265   :  { %1099 = vsyncpa [#allocation11], 1 }

// kernel: _lambda_.7
= control target key start
LH: loop header
LB: loop body
LE: loop exit
PB: predicated region body
PF: predicated region fallthrough
CT: control target
= control target key end

     0   :  { %9 = vsyncpa [#allocation3], 0  ;;  %s2553_s0 = inlined_call_operand.vmem [shape: f32[2,256,27], index: 0, kind: input, shape index: {}]   ;;  %s2554_s1 = inlined_call_operand.hbm [shape: bf16[27,128], index: 1, kind: input, shape index: {}]   ;;  %s2555_s2 = inlined_call_operand.vmem [shape: f32[1,128], index: 2, kind: input, shape index: {}]   ;;  %s2556_s3 = inlined_call_operand.hbm [shape: f32[9,64,256], index: 3, kind: input, shape index: {}]   ;;  %s2557_s4 = inlined_call_operand.vmem [shape: f32[2,64,128], index: 4, kind: output, shape index: {}]  }
   0x1   :  { %10 = vsyncpa [#allocation5], 0  ;;  %s1702_s15 = smov 0  }
   0x2 LB: > { %s147_s18 = sshll.u32 %s2554_s1, 4  ;;  %s1484_s19 = sadd.s32 4294967295, %s1668_s15   ;;  %s1668_s15 = sphi %s1702_s15, %s16_s15   ;;  %s148_s18 = int_to_ptr.hbm [resolvable:$true] %s147_s18 }
   0x3   : > { %p1486_p0 = scmp.ge.s32.totalorder %s1668_s15, 1  ;;  %p136_p1 = scmp.lt.s32.totalorder %s1668_s15, 3 }
   0x4   : > { %p1574_p2 = scmp.eq.s32.totalorder %s1484_s19, 0  ;;  %s1670_s21 = smov [#allocation2]  }
   0x5   : > { %p1713_p3 = pnand %p1486_p0, %p136_p1  ;;  %s149_s22 = sshll.u32 %s1670_s21, 4  ;;  %s150_s22 = int_to_ptr.vmem [resolvable:$true] %s149_s22 }
   0x6   : > { %s164_s25 = sshll.u32 %s2556_s3, 4  ;;  %s1671_s26 = smov [#allocation4]   ;;  %s165_s25 = int_to_ptr.hbm [resolvable:$true] %s164_s25 }
   0x7   : > { %p1567_p4 = pneg %p1713_p3  ;;  %s166_s27 = sshll.u32 %s1671_s26, 4  ;;  %s167_s27 = int_to_ptr.vmem [resolvable:$true] %s166_s27 }
   0x8   : > { %s1672_s28 = smov 64   ;;  %s1673_s29 = smov 4  }
   0x9   : > { %p1568_p5 = pnand %p1574_p2, %p1567_p4  ;;  %s1674_s30 = smov 256  }
   0xa   : > { %s1675_s5 = smov 16   ;;  %190 = sbr.rel (%p1713_p3) target bundleno = 901 (0x385), region = 36 }
   0xb   : > { %1570 = dma.hbm_to_vmem [thread:$0]  (!%p1568_p5), %s148_s18, 256, %s150_s22, [#allocation3], %s1672_s28, %s1672_s28, %s1673_s29  }
   0xc   : > { %1573 = dma.hbm_to_vmem [thread:$0]  (!%p1568_p5), %s165_s25, 18432, %s167_s27, [#allocation5], %s1674_s30, %s1674_s30, %s1675_s5  }
   0xf   : > { %1659 = dma.done.wait (%p1574_p2), [#allocation3], 256  }
  0x10   : > { %1661 = vsyncadd (%p1574_p2), [#allocation3], 4294967040 }
  0x11   : > { %1663 = dma.done.wait (%p1574_p2), [#allocation5], 18432  }
  0x12   : > { %1665 = vsyncadd (%p1574_p2), [#allocation5], 4294948864  ;;  %p222_p6 = scmp.lt.s32.totalorder %s1484_s19, 1  ;;  %vm349_vm0 = vcmask 1044480   ;;  %vm350_vm1 = vcmask 1045504   ;;  %v1676_v0 = vmov 65535  }
  0x13   : > { %v351_v1 = vsel %vm349_vm0, 4294967295, %v1676_v0  ;;  %v1503_v2 = vld [vmem:[#allocation2 + $0x8] sm:$0xf]  ;;  %v1526_v3 = vld [vmem:[#allocation2 + $0x8] sm:$0x30]  ;;  %v1525_v7 = vld [vmem:[#allocation2] sm:$0xff] }
  0x14   : > { %s2560_s19 = smov (!%p222_p6, %s1484_s19), 1  ;;  %v352_v4 = vsel %vm350_vm1, %v351_v1, 0  ;;  %v1504_v5 = vor.u32 %v1526_v3, %v1503_v2  ;;  %vm300_vm2 = vcmask 220160  }
  0x15   : > { %s1523_s6 = sshll.u32 %s2560_s19, 8  ;;  %s1524_s12 = sshll.u32 %s2560_s19, 6 }
  0x16   : > { %s1735_s9 = scalar_lea.vmem %s2553_s0, %s1523_s6  ;;  %v354_v6 = vand.u32 %v1504_v5, %v352_v4  ;;  %s2520_s16 = scalar_lea.vmem %s2557_s4, %s1524_s12 }
  0x17   : > { %v233_v8 = vld [vmem:[%s1735_s9] sm:$0xff]  ;;  %v234_v9 = vld [vmem:[%s1735_s9 + $0x8] sm:$0xff]  ;;  %v235_v11 = vld [vmem:[%s1735_s9 + $0x10] sm:$0xff] }
  0x18   : > { %362 = vmatpush.bf16.msra.mxu0 %v354_v6  ;;  %v265_v10 = vpack.c.bf16 %v234_v9, %v233_v8  ;;  %v236_v12 = vld [vmem:[%s1735_s9 + $0x18] sm:$0xff]  ;;  %v237_v14 = vld [vmem:[%s1735_s9 + $0x20] sm:$0xff]  ;;  %v238_v15 = vld [vmem:[%s1735_s9 + $0x28] sm:$0xff] }
  0x19   : > { %v266_v13 = vpack.c.bf16 %v236_v12, %v235_v11  ;;  %v267_v16 = vpack.c.bf16 %v238_v15, %v237_v14  ;;  %v239_v17 = vld [vmem:[%s1735_s9 + $0x30] sm:$0xff]  ;;  %v240_v18 = vld [vmem:[%s1735_s9 + $0x38] sm:$0xff]  ;;  %v241_v20 = vld [vmem:[%s1735_s9 + $0x40] sm:$0xff] }
  0x1a   : > { %v268_v19 = vpack.c.bf16 %v240_v18, %v239_v17  ;;  %v242_v21 = vld [vmem:[%s1735_s9 + $0x48] sm:$0xff]  ;;  %v243_v23 = vld [vmem:[%s1735_s9 + $0x50] sm:$0xff]  ;;  %v244_v24 = vld [vmem:[%s1735_s9 + $0x58] sm:$0xff] }
  0x1b   : > { %v269_v22 = vpack.c.bf16 %v242_v21, %v241_v20  ;;  %v270_v25 = vpack.c.bf16 %v244_v24, %v243_v23  ;;  %v245_v26 = vld [vmem:[%s1735_s9 + $0x60] sm:$0xff]  ;;  %v246_v27 = vld [vmem:[%s1735_s9 + $0x68] sm:$0xff]  ;;  %v247_v29 = vld [vmem:[%s1735_s9 + $0x70] sm:$0xff] }
  0x1c   : > { %363 = vmatpush.bf16.msra.mxu0 %v1525_v7  ;;  %v271_v28 = vpack.c.bf16 %v246_v27, %v245_v26  ;;  %v248_v30 = vld [vmem:[%s1735_s9 + $0x78] sm:$0xff]  ;;  %v249_v32 = vld [vmem:[%s1735_s9 + $0x80] sm:$0xff]  ;;  %v250_v33 = vld [vmem:[%s1735_s9 + $0x88] sm:$0xff] }
  0x1d   : > { %v272_v31 = vpack.c.bf16 %v248_v30, %v247_v29  ;;  %v273_v34 = vpack.c.bf16 %v250_v33, %v249_v32  ;;  %v251_v37 = vld [vmem:[%s1735_s9 + $0x90] sm:$0xff]  ;;  %v252_v38 = vld [vmem:[%s1735_s9 + $0x98] sm:$0xff]  ;;  %v253_v42 = vld [vmem:[%s1735_s9 + $0xa0] sm:$0xff] }
  0x1e   : > { %v274_v39 = vpack.c.bf16 %v252_v38, %v251_v37  ;;  %v254_v43 = vld [vmem:[%s1735_s9 + $0xa8] sm:$0xff]  ;;  %v255_v47 = vld [vmem:[%s1735_s9 + $0xb0] sm:$0xff]  ;;  %v256_v48 = vld [vmem:[%s1735_s9 + $0xb8] sm:$0xff] }
  0x1f   : > { %1505 = vmatmul.msk.bf16.vlgmr.msra.gmra.mxu0 %vm300_vm2, %v265_v10  ;;  %v275_v44 = vpack.c.bf16 %v254_v43, %v253_v42  ;;  %v276_v49 = vpack.c.bf16 %v256_v48, %v255_v47  ;;  %v257_v52 = vld [vmem:[%s1735_s9 + $0xc0] sm:$0xff]  ;;  %v258_v53 = vld [vmem:[%s1735_s9 + $0xc8] sm:$0xff]  ;;  %v259_v57 = vld [vmem:[%s1735_s9 + $0xd0] sm:$0xff] }
  0x20   : > { %v277_v54 = vpack.c.bf16 %v258_v53, %v257_v52  ;;  %v260_v58 = vld [vmem:[%s1735_s9 + $0xd8] sm:$0xff]  ;;  %v261_v62 = vld [vmem:[%s1735_s9 + $0xe0] sm:$0xff]  ;;  %v262_v63 = vld [vmem:[%s1735_s9 + $0xe8] sm:$0xff] }
  0x21   : > { %v278_v59 = vpack.c.bf16 %v260_v58, %v259_v57  ;;  %v279_v0 = vpack.c.bf16 %v262_v63, %v261_v62  ;;  %v263_v3 = vld [vmem:[%s1735_s9 + $0xf0] sm:$0xff]  ;;  %v264_v4 = vld [vmem:[%s1735_s9 + $0xf8] sm:$0xff]  ;;  %v1804_v7 = vld [vmem:[%s2555_s2] ss:$0 sm:$0xff] }
  0x22   : > { %v280_v5 = vpack.c.bf16 %v264_v4, %v263_v3  ;;  %v544_v33 = vld [vmem:[#allocation4 + $0x80] sm:$0xff]  ;;  %v554_v47 = vld [vmem:[#allocation4 + $0xd0] sm:$0xff] }
  0x23   : > { %v548_v37 = vld [vmem:[#allocation4 + $0xa0] sm:$0xff]  ;;  %v451_v53 = vld [vmem:[#allocation4 + $0x30] sm:$0xff] }
  0x24   : > { %v453_v42 = vld [vmem:[#allocation4 + $0x40] sm:$0xff] }
  0x25   : > { %v552_v43 = vld [vmem:[#allocation4 + $0xc0] sm:$0xff] }
  0x2f   : > { %1506 = vmatmul.msk.bf16.gmra.mxu0 %vm300_vm2, %v266_v13 }
  0x3f   : > { %1507 = vmatmul.msk.bf16.gmra.mxu0 %vm300_vm2, %v267_v16 }
  0x4f   : > { %1508 = vmatmul.msk.bf16.gmra.mxu0 %vm300_vm2, %v268_v19 }
  0x5f   : > { %1509 = vmatmul.msk.bf16.gmra.mxu0 %vm300_vm2, %v269_v22 }
  0x6f   : > { %1510 = vmatmul.msk.bf16.gmra.mxu0 %vm300_vm2, %v270_v25 }
  0x7f   : > { %1511 = vmatmul.msk.bf16.gmra.mxu0 %vm300_vm2, %v271_v28 }
  0x8f   : > { %1512 = vmatmul.msk.bf16.gmra.mxu0 %vm300_vm2, %v272_v31 }
  0x9c   : > { %v1763_v35 = vpop.f32.mrf.mxu0 }
  0x9d   : > { %v1922_v27 = vadd.f32 %v1804_v7, %v1763_v35  ;;  %v546_v35 = vld [vmem:[#allocation4 + $0x90] sm:$0xff] }
  0x9f   : > { %1513 = vmatmul.msk.bf16.gmra.mxu0 %vm300_vm2, %v273_v34 }
  0xa4   : > { %v1766_v36 = vpop.f32.mrf.mxu0 }
  0xa5   : > { %v1914_v26 = vadd.f32 %v1804_v7, %v1766_v36 }
  0xac   : > { %v1770_v40 = vpop.f32.mrf.mxu0 }
  0xad   : > { %v1906_v25 = vadd.f32 %v1804_v7, %v1770_v40 }
  0xaf   : > { %1514 = vmatmul.msk.bf16.gmra.mxu0 %vm300_vm2, %v274_v39  ;;  %v550_v39 = vld [vmem:[#allocation4 + $0xb0] sm:$0xff] }
  0xb4   : > { %v1773_v41 = vpop.f32.mrf.mxu0 }
  0xb5   : > { %v1898_v24 = vadd.f32 %v1804_v7, %v1773_v41  ;;  %v445_v41 = vld [vmem:[#allocation4] sm:$0xff] }
  0xbc   : > { %v1777_v45 = vpop.f32.mrf.mxu0 }
  0xbd   : > { %v1888_v22 = vadd.f32 %v1804_v7, %v1777_v45  ;;  %v447_v45 = vld [vmem:[#allocation4 + $0x10] sm:$0xff] }
  0xbf   : > { %1515 = vmatmul.msk.bf16.gmra.mxu0 %vm300_vm2, %v275_v44 }
  0xc4   : > { %v1780_v46 = vpop.f32.mrf.mxu0 }
  0xc5   : > { %v1880_v21 = vadd.f32 %v1804_v7, %v1780_v46  ;;  %v455_v46 = vld [vmem:[#allocation4 + $0x50] sm:$0xff] }
  0xcc   : > { %v1784_v50 = vpop.f32.mrf.mxu0 }
  0xcd   : > { %v1872_v20 = vadd.f32 %v1804_v7, %v1784_v50  ;;  %v457_v50 = vld [vmem:[#allocation4 + $0x60] sm:$0xff] }
  0xcf   : > { %1516 = vmatmul.msk.bf16.gmra.mxu0 %vm300_vm2, %v276_v49  ;;  %v449_v49 = vld [vmem:[#allocation4 + $0x20] sm:$0xff] }
  0xd4   : > { %v1787_v51 = vpop.f32.mrf.mxu0 }
  0xd5   : > { %v1864_v19 = vadd.f32 %v1804_v7, %v1787_v51  ;;  %v556_v51 = vld [vmem:[#allocation4 + $0xe0] sm:$0xff] }
  0xdc   : > { %v385_v55 = vpop.f32.mrf.mxu0 }
  0xdd   : > { %v1854_v17 = vadd.f32 %v1804_v7, %v385_v55  ;;  %v558_v55 = vld [vmem:[#allocation4 + $0xf0] sm:$0xff] }
  0xdf   : > { %1517 = vmatmul.msk.bf16.gmra.mxu0 %vm300_vm2, %v277_v54  ;;  %v459_v54 = vld [vmem:[#allocation4 + $0x70] sm:$0xff] }
  0xe4   : > { %v387_v56 = vpop.f32.mrf.mxu0 }
  0xe5   : > { %v1847_v16 = vadd.f32 %v1804_v7, %v387_v56 }
  0xec   : > { %v390_v60 = vpop.f32.mrf.mxu0 }
  0xed   : > { %v1840_v15 = vadd.f32 %v1804_v7, %v390_v60 }
  0xef   : > { %1518 = vmatmul.msk.bf16.gmra.mxu0 %vm300_vm2, %v278_v59 }
  0xf4   : > { %v392_v61 = vpop.f32.mrf.mxu0 }
  0xf5   : > { %v1833_v14 = vadd.f32 %v1804_v7, %v392_v61 }
  0xfc   : > { %v395_v1 = vpop.f32.mrf.mxu0 }
  0xfd   : > { %v1824_v12 = vadd.f32 %v1804_v7, %v395_v1 }
  0xff   : > { %1519 = vmatmul.msk.bf16.gmra.mxu0 %vm300_vm2, %v279_v0 }
 0x104   : > { %v397_v2 = vpop.f32.mrf.mxu0 }
 0x105   : > { %v1817_v11 = vadd.f32 %v1804_v7, %v397_v2 }
 0x10c   : > { %v400_v6 = vpop.f32.mrf.mxu0 }
 0x10d   : > { %v1810_v10 = vadd.f32 %v1804_v7, %v400_v6 }
 0x10f   : > { %1520 = vmatmul.msk.bf16.gmra.mxu0 %vm300_vm2, %v280_v5 }
 0x114   : > { %v402_v8 = vpop.f32.mrf.mxu0 }
 0x115   : > { %v1807_v9 = vadd.f32 %v1804_v7, %v402_v8 }
 0x117   : > { %461 = vmatpush.msra.mxu1 %v1807_v9  ;;  %1527 = vmatpush.msra.mxu2 %v1807_v9 }
 0x118   : > { %560 = vmatpush.msra.mxu3 %v1807_v9  ;;  %1095 = vmatpush.msrb.mxu0 %v1807_v9 }
 0x119   : > { %462 = vmatpush.msra.mxu1 %v1810_v10  ;;  %1528 = vmatpush.msra.mxu2 %v1810_v10 }
 0x11a   : > { %561 = vmatpush.msra.mxu3 %v1810_v10  ;;  %1096 = vmatpush.msrb.mxu0 %v1810_v10 }
 0x11b   : > { %463 = vmatpush.msra.mxu1 %v1817_v11  ;;  %1529 = vmatpush.msra.mxu2 %v1817_v11 }
 0x11c   : > { %562 = vmatpush.msra.mxu3 %v1817_v11  ;;  %1097 = vmatpush.msrb.mxu0 %v1817_v11  ;;  %v1830_v13 = vpop.f32.mrf.mxu0 }
 0x11d   : > { %464 = vmatpush.msra.mxu1 %v1824_v12  ;;  %1530 = vmatpush.msra.mxu2 %v1824_v12 }
 0x11e   : > { %563 = vmatpush.msra.mxu3 %v1824_v12  ;;  %1098 = vmatpush.msrb.mxu0 %v1824_v12 }
 0x11f   : > { %465 = vmatpush.msra.mxu1 %v1833_v14  ;;  %1531 = vmatpush.msra.mxu2 %v1833_v14 }
 0x120   : > { %564 = vmatpush.msra.mxu3 %v1833_v14  ;;  %1099 = vmatpush.msrb.mxu0 %v1833_v14 }
 0x121   : > { %466 = vmatpush.msra.mxu1 %v1840_v15  ;;  %1532 = vmatpush.msra.mxu2 %v1840_v15 }
 0x122   : > { %565 = vmatpush.msra.mxu3 %v1840_v15  ;;  %1100 = vmatpush.msrb.mxu0 %v1840_v15 }
 0x123   : > { %467 = vmatpush.msra.mxu1 %v1847_v16  ;;  %1533 = vmatpush.msra.mxu2 %v1847_v16 }
 0x124   : > { %566 = vmatpush.msra.mxu3 %v1847_v16  ;;  %1101 = vmatpush.msrb.mxu0 %v1847_v16  ;;  %v1860_v18 = vpop.f32.mrf.mxu0 }
 0x125   : > { %468 = vmatpush.msra.mxu1 %v1854_v17  ;;  %1534 = vmatpush.msra.mxu2 %v1854_v17  ;;  %v2050_v8 = vadd.f32 %v1804_v7, %v1860_v18  ;;  %v652_v18 = vld [vmem:[#allocation4 + $0x108] sm:$0xff] }
 0x126   : > { %567 = vmatpush.msra.mxu3 %v1854_v17  ;;  %1102 = vmatpush.msrb.mxu0 %v1854_v17 }
 0x127   : > { %469 = vmatpush.msra.mxu1 %v1864_v19  ;;  %1535 = vmatpush.msra.mxu2 %v1864_v19 }
 0x128   : > { %568 = vmatpush.msra.mxu3 %v1864_v19  ;;  %1103 = vmatpush.msrb.mxu0 %v1864_v19 }
 0x129   : > { %470 = vmatpush.msra.mxu1 %v1872_v20  ;;  %1536 = vmatpush.msra.mxu2 %v1872_v20 }
 0x12a   : > { %569 = vmatpush.msra.mxu3 %v1872_v20  ;;  %1104 = vmatpush.msrb.mxu0 %v1872_v20 }
 0x12b   : > { %471 = vmatpush.msra.mxu1 %v1880_v21  ;;  %1537 = vmatpush.msra.mxu2 %v1880_v21 }
 0x12c   : > { %570 = vmatpush.msra.mxu3 %v1880_v21  ;;  %1105 = vmatpush.msrb.mxu0 %v1880_v21  ;;  %v1894_v23 = vpop.f32.mrf.mxu0 }
 0x12d   : > { %472 = vmatpush.msra.mxu1 %v1888_v22  ;;  %1538 = vmatpush.msra.mxu2 %v1888_v22  ;;  %v2043_v6 = vadd.f32 %v1804_v7, %v1894_v23  ;;  %v2057_v23 = vadd.f32 %v1804_v7, %v1830_v13  ;;  %v547_v13 = vld [vmem:[#allocation4 + $0x98] sm:$0xff] }
 0x12e   : > { %571 = vmatpush.msra.mxu3 %v1888_v22  ;;  %1106 = vmatpush.msrb.mxu0 %v1888_v22 }
 0x12f   : > { %473 = vmatpush.msra.mxu1 %v1898_v24  ;;  %1539 = vmatpush.msra.mxu2 %v1898_v24 }
 0x130   : > { %572 = vmatpush.msra.mxu3 %v1898_v24  ;;  %1107 = vmatpush.msrb.mxu0 %v1898_v24 }
 0x131   : > { %474 = vmatpush.msra.mxu1 %v1906_v25  ;;  %1540 = vmatpush.msra.mxu2 %v1906_v25 }
 0x132   : > { %573 = vmatpush.msra.mxu3 %v1906_v25  ;;  %1108 = vmatpush.msrb.mxu0 %v1906_v25 }
 0x133   : > { %475 = vmatpush.msra.mxu1 %v1914_v26  ;;  %1541 = vmatpush.msra.mxu2 %v1914_v26 }
 0x134   : > { %574 = vmatpush.msra.mxu3 %v1914_v26  ;;  %1109 = vmatpush.msrb.mxu0 %v1914_v26  ;;  %v1928_v28 = vpop.f32.mrf.mxu0 }
 0x135   : > { %476 = vmatpush.msra.mxu1 %v1922_v27  ;;  %1542 = vmatpush.msra.mxu2 %v1922_v27  ;;  %v2036_v5 = vadd.f32 %v1804_v7, %v1928_v28  ;;  %v446_v28 = vld [vmem:[#allocation4 + $0x8] sm:$0xff] }
 0x136   : > { %575 = vmatpush.msra.mxu3 %v1922_v27  ;;  %1110 = vmatpush.msrb.mxu0 %v1922_v27 }
 0x137   : > { %576 = vmatmul.f32.vlgmr.msra.gmra.mxu3 %v544_v33  ;;  %477 = vmatmul.f32.vlgmr.msra.gmra.mxu1 %v445_v41  ;;  %v656_v33 = vld [vmem:[#allocation4 + $0x128] sm:$0xff]  ;;  %v555_v41 = vld [vmem:[#allocation4 + $0xd8] sm:$0xff] }
 0x138   : > { %1309 = vmatpush.msra.mxu0 %v1807_v9  ;;  %489 = vmatmul.f32.vlgmr.msra.gmra.mxu2 %v453_v42  ;;  %v662_v42 = vld [vmem:[#allocation4 + $0x158] sm:$0xff] }
 0x13a   : > { %1310 = vmatpush.msra.mxu0 %v1810_v10 }
 0x13c   : > { %1311 = vmatpush.msra.mxu0 %v1817_v11  ;;  %v1937_v29 = vpop.f32.mrf.mxu0 }
 0x13d   : > { %v2029_v4 = vadd.f32 %v1804_v7, %v1937_v29  ;;  %v545_v29 = vld [vmem:[#allocation4 + $0x88] sm:$0xff] }
 0x13e   : > { %1312 = vmatpush.msra.mxu0 %v1824_v12 }
 0x13f   : > { %579 = vmatmul.f32.gmra.mxu3 %v546_v35  ;;  %480 = vmatmul.f32.gmra.mxu1 %v447_v45  ;;  %v551_v35 = vld [vmem:[#allocation4 + $0xb8] sm:$0xff]  ;;  %v664_v45 = vld [vmem:[#allocation4 + $0x168] sm:$0xff] }
 0x140   : > { %1313 = vmatpush.msra.mxu0 %v1833_v14  ;;  %492 = vmatmul.f32.gmra.mxu2 %v455_v46  ;;  %v460_v46 = vld [vmem:[#allocation4 + $0x78] sm:$0xff] }
 0x142   : > { %1314 = vmatpush.msra.mxu0 %v1840_v15 }
 0x144   : > { %1315 = vmatpush.msra.mxu0 %v1847_v16  ;;  %v1943_v30 = vpop.f32.mrf.mxu0 }
 0x145   : > { %v2022_v3 = vadd.f32 %v1804_v7, %v1943_v30  ;;  %v654_v30 = vld [vmem:[#allocation4 + $0x118] sm:$0xff] }
 0x146   : > { %1316 = vmatpush.msra.mxu0 %v1854_v17 }
 0x147   : > { %582 = vmatmul.f32.gmra.mxu3 %v548_v37  ;;  %483 = vmatmul.f32.gmra.mxu1 %v449_v49  ;;  %v454_v37 = vld [vmem:[#allocation4 + $0x48] sm:$0xff]  ;;  %v651_v49 = vld [vmem:[#allocation4 + $0x100] sm:$0xff] }
 0x148   : > { %1317 = vmatpush.msra.mxu0 %v1864_v19  ;;  %495 = vmatmul.f32.gmra.mxu2 %v457_v50  ;;  %v758_v50 = vld [vmem:[#allocation4 + $0x180] sm:$0xff] }
 0x14a   : > { %1318 = vmatpush.msra.mxu0 %v1872_v20 }
 0x14c   : > { %1319 = vmatpush.msra.mxu0 %v1880_v21  ;;  %v1949_v31 = vpop.f32.mrf.mxu0 }
 0x14d   : > { %v2015_v2 = vadd.f32 %v1804_v7, %v1949_v31  ;;  %v450_v31 = vld [vmem:[#allocation4 + $0x28] sm:$0xff] }
 0x14e   : > { %1320 = vmatpush.msra.mxu0 %v1888_v22 }
 0x14f   : > { %585 = vmatmul.f32.gmra.mxu3 %v550_v39  ;;  %486 = vmatmul.f32.gmra.mxu1 %v451_v53  ;;  %v660_v39 = vld [vmem:[#allocation4 + $0x148] sm:$0xff]  ;;  %v653_v53 = vld [vmem:[#allocation4 + $0x110] sm:$0xff] }
 0x150   : > { %1321 = vmatpush.msra.mxu0 %v1898_v24  ;;  %498 = vmatmul.f32.gmra.mxu2 %v459_v54  ;;  %v760_v54 = vld [vmem:[#allocation4 + $0x190] sm:$0xff] }
 0x152   : > { %1322 = vmatpush.msra.mxu0 %v1906_v25 }
 0x154   : > { %1323 = vmatpush.msra.mxu0 %v1914_v26  ;;  %v1955_v32 = vpop.f32.mrf.mxu0 }
 0x155   : > { %v2008_v1 = vadd.f32 %v1804_v7, %v1955_v32  ;;  %v549_v32 = vld [vmem:[#allocation4 + $0xa8] sm:$0xff] }
 0x156   : > { %1324 = vmatpush.msra.mxu0 %v1922_v27 }
 0x157   : > { %588 = vmatmul.f32.gmra.mxu3 %v552_v43  ;;  %v458_v43 = vld [vmem:[#allocation4 + $0x68] sm:$0xff] }
 0x15c   : > { %v1958_v34 = vpop.f32.mrf.mxu0 }
 0x15d   : > { %v2001_v0 = vadd.f32 %v1804_v7, %v1958_v34  ;;  %v452_v34 = vld [vmem:[#allocation4 + $0x38] sm:$0xff] }
 0x15f   : > { %591 = vmatmul.f32.gmra.mxu3 %v554_v47  ;;  %v559_v47 = vld [vmem:[#allocation4 + $0xf8] sm:$0xff] }
 0x164   : > { %v427_v36 = vpop.f32.mrf.mxu0 }
 0x165   : > { %v1994_v63 = vadd.f32 %v1804_v7, %v427_v36  ;;  %v658_v36 = vld [vmem:[#allocation4 + $0x138] sm:$0xff] }
 0x167   : > { %594 = vmatmul.f32.gmra.mxu3 %v556_v51  ;;  %v865_v51 = vld [vmem:[#allocation4 + $0x200] sm:$0xff] }
 0x16c   : > { %v430_v38 = vpop.f32.mrf.mxu0 }
 0x16d   : > { %v1988_v62 = vadd.f32 %v1804_v7, %v430_v38  ;;  %v553_v38 = vld [vmem:[#allocation4 + $0xc8] sm:$0xff] }
 0x16f   : > { %597 = vmatmul.f32.gmra.mxu3 %v558_v55  ;;  %v867_v55 = vld [vmem:[#allocation4 + $0x210] sm:$0xff] }
 0x174   : > { %v432_v40 = vpop.f32.mrf.mxu0 }
 0x175   : > { %v1982_v61 = vadd.f32 %v1804_v7, %v432_v40  ;;  %v456_v40 = vld [vmem:[#allocation4 + $0x58] sm:$0xff] }
 0x17c   : > { %v435_v44 = vpop.f32.mrf.mxu0 }
 0x17d   : > { %v1976_v60 = vadd.f32 %v1804_v7, %v435_v44  ;;  %v557_v44 = vld [vmem:[#allocation4 + $0xe8] sm:$0xff] }
 0x184   : > { %v437_v48 = vpop.f32.mrf.mxu0 }
 0x185   : > { %v1970_v59 = vadd.f32 %v1804_v7, %v437_v48  ;;  %v666_v48 = vld [vmem:[#allocation4 + $0x178] sm:$0xff] }
 0x18c   : > { %v440_v52 = vpop.f32.mrf.mxu0 }
 0x18d   : > { %v1964_v58 = vadd.f32 %v1804_v7, %v440_v52 }
 0x194   : > { %v442_v56 = vpop.f32.mrf.mxu0 }
 0x195   : > { %v1961_v57 = vadd.f32 %v1804_v7, %v442_v56  ;;  %v448_v7 = vld [vmem:[#allocation4 + $0x18] sm:$0xff] }
 0x197   : > { %502 = vmatpush.msrb.mxu2 %v1961_v57  ;;  %601 = vmatpush.msrb.mxu1 %v1961_v57 }
 0x198   : > { %708 = vmatpush.msrb.mxu3 %v1961_v57 }
 0x199   : > { %503 = vmatpush.msrb.mxu2 %v1964_v58  ;;  %602 = vmatpush.msrb.mxu1 %v1964_v58 }
 0x19a   : > { %709 = vmatpush.msrb.mxu3 %v1964_v58 }
 0x19b   : > { %504 = vmatpush.msrb.mxu2 %v1970_v59  ;;  %603 = vmatpush.msrb.mxu1 %v1970_v59 }
 0x19c   : > { %710 = vmatpush.msrb.mxu3 %v1970_v59 }
 0x19d   : > { %505 = vmatpush.msrb.mxu2 %v1976_v60  ;;  %604 = vmatpush.msrb.mxu1 %v1976_v60 }
 0x19e   : > { %711 = vmatpush.msrb.mxu3 %v1976_v60 }
 0x19f   : > { %506 = vmatpush.msrb.mxu2 %v1982_v61  ;;  %605 = vmatpush.msrb.mxu1 %v1982_v61 }
 0x1a0   : > { %712 = vmatpush.msrb.mxu3 %v1982_v61 }
 0x1a1   : > { %507 = vmatpush.msrb.mxu2 %v1988_v62  ;;  %606 = vmatpush.msrb.mxu1 %v1988_v62 }
 0x1a2   : > { %713 = vmatpush.msrb.mxu3 %v1988_v62 }
 0x1a3   : > { %508 = vmatpush.msrb.mxu2 %v1994_v63  ;;  %607 = vmatpush.msrb.mxu1 %v1994_v63 }
 0x1a4   : > { %714 = vmatpush.msrb.mxu3 %v1994_v63 }
 0x1a5   : > { %509 = vmatpush.msrb.mxu2 %v2001_v0  ;;  %608 = vmatpush.msrb.mxu1 %v2001_v0 }
 0x1a6   : > { %715 = vmatpush.msrb.mxu3 %v2001_v0 }
 0x1a7   : > { %510 = vmatpush.msrb.mxu2 %v2008_v1  ;;  %609 = vmatpush.msrb.mxu1 %v2008_v1 }
 0x1a8   : > { %716 = vmatpush.msrb.mxu3 %v2008_v1 }
 0x1a9   : > { %511 = vmatpush.msrb.mxu2 %v2015_v2  ;;  %610 = vmatpush.msrb.mxu1 %v2015_v2 }
 0x1aa   : > { %717 = vmatpush.msrb.mxu3 %v2015_v2 }
 0x1ab   : > { %512 = vmatpush.msrb.mxu2 %v2022_v3  ;;  %611 = vmatpush.msrb.mxu1 %v2022_v3 }
 0x1ac   : > { %718 = vmatpush.msrb.mxu3 %v2022_v3 }
 0x1ad   : > { %513 = vmatpush.msrb.mxu2 %v2029_v4  ;;  %612 = vmatpush.msrb.mxu1 %v2029_v4 }
 0x1ae   : > { %719 = vmatpush.msrb.mxu3 %v2029_v4 }
 0x1af   : > { %514 = vmatpush.msrb.mxu2 %v2036_v5  ;;  %613 = vmatpush.msrb.mxu1 %v2036_v5 }
 0x1b0   : > { %720 = vmatpush.msrb.mxu3 %v2036_v5 }
 0x1b1   : > { %515 = vmatpush.msrb.mxu2 %v2043_v6  ;;  %614 = vmatpush.msrb.mxu1 %v2043_v6 }
 0x1b2   : > { %721 = vmatpush.msrb.mxu3 %v2043_v6 }
 0x1b3   : > { %516 = vmatpush.msrb.mxu2 %v2050_v8  ;;  %615 = vmatpush.msrb.mxu1 %v2050_v8 }
 0x1b4   : > { %722 = vmatpush.msrb.mxu3 %v2050_v8 }
 0x1b5   : > { %517 = vmatpush.msrb.mxu2 %v2057_v23  ;;  %616 = vmatpush.msrb.mxu1 %v2057_v23 }
 0x1b6   : > { %723 = vmatpush.msrb.mxu3 %v2057_v23  ;;  %518 = vmatmul.f32.vlgmr.msrb.gmra.mxu2 %v446_v28  ;;  %v2183_v28 = vpop.f32.mrf.mxu1 }
 0x1b7   : > { %617 = vmatmul.f32.vlgmr.msrb.gmra.mxu1 %v545_v29  ;;  %667 = vmatpush.msra.mxu2 %v1807_v9  ;;  %v655_v29 = vld [vmem:[#allocation4 + $0x120] sm:$0xff] }
 0x1b8   : > { %724 = vmatmul.f32.vlgmr.msrb.gmra.mxu3 %v652_v18  ;;  %774 = vmatpush.msra.mxu1 %v1807_v9  ;;  %v762_v18 = vld [vmem:[#allocation4 + $0x1a0] sm:$0xff] }
 0x1b9   : > { %881 = vmatpush.msra.mxu3 %v1807_v9  ;;  %668 = vmatpush.msra.mxu2 %v1810_v10 }
 0x1ba   : > { %775 = vmatpush.msra.mxu1 %v1810_v10  ;;  %v2167_v52 = vpop.f32.mrf.mxu3 }
 0x1bb   : > { %882 = vmatpush.msra.mxu3 %v1810_v10  ;;  %669 = vmatpush.msra.mxu2 %v1817_v11 }
 0x1bc   : > { %776 = vmatpush.msra.mxu1 %v1817_v11 }
 0x1bd   : > { %883 = vmatpush.msra.mxu3 %v1817_v11  ;;  %670 = vmatpush.msra.mxu2 %v1824_v12 }
 0x1be   : > { %777 = vmatpush.msra.mxu1 %v1824_v12  ;;  %521 = vmatmul.f32.gmra.mxu2 %v448_v7  ;;  %v869_v7 = vld [vmem:[#allocation4 + $0x220] sm:$0xff] }
 0x1bf   : > { %884 = vmatpush.msra.mxu3 %v1824_v12  ;;  %620 = vmatmul.f32.gmra.mxu1 %v547_v13  ;;  %v2191_v13 = vpop.f32.mrf.mxu2 }
 0x1c0   : > { %671 = vmatpush.msra.mxu2 %v1833_v14  ;;  %727 = vmatmul.f32.gmra.mxu3 %v654_v30 }
 0x1c1   : > { %778 = vmatpush.msra.mxu1 %v1833_v14  ;;  %885 = vmatpush.msra.mxu3 %v1833_v14 }
 0x1c2   : > { %672 = vmatpush.msra.mxu2 %v1840_v15  ;;  %v2180_v56 = vpop.f32.mrf.mxu3 }
 0x1c3   : > { %779 = vmatpush.msra.mxu1 %v1840_v15  ;;  %886 = vmatpush.msra.mxu3 %v1840_v15 }
 0x1c4   : > { %673 = vmatpush.msra.mxu2 %v1847_v16 }
 0x1c5   : > { %780 = vmatpush.msra.mxu1 %v1847_v16  ;;  %887 = vmatpush.msra.mxu3 %v1847_v16 }
 0x1c6   : > { %674 = vmatpush.msra.mxu2 %v1854_v17 }
 0x1c7   : > { %781 = vmatpush.msra.mxu1 %v1854_v17  ;;  %888 = vmatpush.msra.mxu3 %v1854_v17 }
 0x1c8   : > { %524 = vmatmul.f32.gmra.mxu2 %v450_v31  ;;  %623 = vmatmul.f32.gmra.mxu1 %v549_v32  ;;  %v657_v31 = vld [vmem:[#allocation4 + $0x130] sm:$0xff]  ;;  %v2203_v32 = vpop.f32.mrf.mxu1 }
 0x1c9   : > { %675 = vmatpush.msra.mxu2 %v1864_v19  ;;  %730 = vmatmul.f32.gmra.mxu3 %v656_v33  ;;  %v764_v33 = vld [vmem:[#allocation4 + $0x1b0] sm:$0xff] }
 0x1ca   : > { %782 = vmatpush.msra.mxu1 %v1864_v19  ;;  %889 = vmatpush.msra.mxu3 %v1864_v19  ;;  %v2196_v30 = vpop.f32.mrf.mxu3 }
 0x1cb   : > { %676 = vmatpush.msra.mxu2 %v1872_v20 }
 0x1cc   : > { %783 = vmatpush.msra.mxu1 %v1872_v20  ;;  %890 = vmatpush.msra.mxu3 %v1872_v20 }
 0x1cd   : > { %677 = vmatpush.msra.mxu2 %v1880_v21 }
 0x1ce   : > { %784 = vmatpush.msra.mxu1 %v1880_v21  ;;  %891 = vmatpush.msra.mxu3 %v1880_v21 }
 0x1cf   : > { %678 = vmatpush.msra.mxu2 %v1888_v22 }
 0x1d0   : > { %785 = vmatpush.msra.mxu1 %v1888_v22  ;;  %892 = vmatpush.msra.mxu3 %v1888_v22 }
 0x1d1   : > { %527 = vmatmul.f32.gmra.mxu2 %v452_v34  ;;  %626 = vmatmul.f32.gmra.mxu1 %v551_v35  ;;  %v871_v34 = vld [vmem:[#allocation4 + $0x230] sm:$0xff]  ;;  %v2211_v35 = vpop.f32.mrf.mxu2 }
 0x1d2   : > { %679 = vmatpush.msra.mxu2 %v1898_v24  ;;  %733 = vmatmul.f32.gmra.mxu3 %v658_v36  ;;  %v2216_v36 = vpop.f32.mrf.mxu3 }
 0x1d3   : > { %786 = vmatpush.msra.mxu1 %v1898_v24  ;;  %893 = vmatpush.msra.mxu3 %v1898_v24 }
 0x1d4   : > { %680 = vmatpush.msra.mxu2 %v1906_v25 }
 0x1d5   : > { %787 = vmatpush.msra.mxu1 %v1906_v25  ;;  %894 = vmatpush.msra.mxu3 %v1906_v25 }
 0x1d6   : > { %681 = vmatpush.msra.mxu2 %v1914_v26 }
 0x1d7   : > { %788 = vmatpush.msra.mxu1 %v1914_v26  ;;  %895 = vmatpush.msra.mxu3 %v1914_v26 }
 0x1d8   : > { %682 = vmatpush.msra.mxu2 %v1922_v27 }
 0x1d9   : > { %789 = vmatpush.msra.mxu1 %v1922_v27  ;;  %896 = vmatpush.msra.mxu3 %v1922_v27 }
 0x1da   : > { %815 = vmatpush.msrb.mxu2 %v1961_v57  ;;  %629 = vmatmul.f32.gmra.mxu1 %v553_v38  ;;  %v766_v38 = vld [vmem:[#allocation4 + $0x1c0] sm:$0xff] }
 0x1db   : > { %922 = vmatpush.msrb.mxu1 %v1961_v57  ;;  %1029 = vmatpush.msrb.mxu3 %v1961_v57 }
 0x1dc   : > { %530 = vmatmul.f32.gmra.mxu2 %v454_v37  ;;  %736 = vmatmul.f32.gmra.mxu3 %v660_v39  ;;  %v659_v37 = vld [vmem:[#allocation4 + $0x140] sm:$0xff] }
 0x1dd   : > { %816 = vmatpush.msrb.mxu2 %v1964_v58  ;;  %923 = vmatpush.msrb.mxu1 %v1964_v58  ;;  %v873_v39 = vld [vmem:[#allocation4 + $0x240] sm:$0xff] }
 0x1de   : > { %1030 = vmatpush.msrb.mxu3 %v1964_v58 }
 0x1df   : > { %817 = vmatpush.msrb.mxu2 %v1970_v59  ;;  %924 = vmatpush.msrb.mxu1 %v1970_v59 }
 0x1e0   : > { %1031 = vmatpush.msrb.mxu3 %v1970_v59 }
 0x1e1   : > { %818 = vmatpush.msrb.mxu2 %v1976_v60  ;;  %925 = vmatpush.msrb.mxu1 %v1976_v60 }
 0x1e2   : > { %1032 = vmatpush.msrb.mxu3 %v1976_v60  ;;  %632 = vmatmul.f32.gmra.mxu1 %v555_v41  ;;  %v2227_v41 = vpop.f32.mrf.mxu2 }
 0x1e3   : > { %819 = vmatpush.msrb.mxu2 %v1982_v61  ;;  %926 = vmatpush.msrb.mxu1 %v1982_v61 }
 0x1e4   : > { %1033 = vmatpush.msrb.mxu3 %v1982_v61  ;;  %533 = vmatmul.f32.gmra.mxu2 %v456_v40  ;;  %v2222_v40 = vpop.f32.mrf.mxu1 }
 0x1e5   : > { %739 = vmatmul.f32.gmra.mxu3 %v662_v42  ;;  %820 = vmatpush.msrb.mxu2 %v1988_v62  ;;  %v661_v42 = vld [vmem:[#allocation4 + $0x150] sm:$0xff] }
 0x1e6   : > { %927 = vmatpush.msrb.mxu1 %v1988_v62  ;;  %1034 = vmatpush.msrb.mxu3 %v1988_v62 }
 0x1e7   : > { %821 = vmatpush.msrb.mxu2 %v1994_v63 }
 0x1e8   : > { %928 = vmatpush.msrb.mxu1 %v1994_v63  ;;  %1035 = vmatpush.msrb.mxu3 %v1994_v63 }
 0x1e9   : > { %822 = vmatpush.msrb.mxu2 %v2001_v0 }
 0x1ea   : > { %929 = vmatpush.msrb.mxu1 %v2001_v0  ;;  %1036 = vmatpush.msrb.mxu3 %v2001_v0 }
 0x1eb   : > { %823 = vmatpush.msrb.mxu2 %v2008_v1  ;;  %635 = vmatmul.f32.gmra.mxu1 %v557_v44  ;;  %v768_v44 = vld [vmem:[#allocation4 + $0x1d0] sm:$0xff] }
 0x1ec   : > { %930 = vmatpush.msrb.mxu1 %v2008_v1  ;;  %1037 = vmatpush.msrb.mxu3 %v2008_v1 }
 0x1ed   : > { %536 = vmatmul.f32.gmra.mxu2 %v458_v43  ;;  %742 = vmatmul.f32.gmra.mxu3 %v664_v45  ;;  %v2229_v43 = vpop.f32.mrf.mxu3  ;;  %v875_v45 = vld [vmem:[#allocation4 + $0x250] sm:$0xff] }
 0x1ee   : > { %824 = vmatpush.msrb.mxu2 %v2015_v2  ;;  %931 = vmatpush.msrb.mxu1 %v2015_v2 }
 0x1ef   : > { %1038 = vmatpush.msrb.mxu3 %v2015_v2 }
 0x1f0   : > { %825 = vmatpush.msrb.mxu2 %v2022_v3  ;;  %932 = vmatpush.msrb.mxu1 %v2022_v3 }
 0x1f1   : > { %1039 = vmatpush.msrb.mxu3 %v2022_v3 }
 0x1f2   : > { %826 = vmatpush.msrb.mxu2 %v2029_v4  ;;  %933 = vmatpush.msrb.mxu1 %v2029_v4 }
 0x1f3   : > { %1040 = vmatpush.msrb.mxu3 %v2029_v4  ;;  %638 = vmatmul.f32.gmra.mxu1 %v559_v47  ;;  %v663_v47 = vld [vmem:[#allocation4 + $0x160] sm:$0xff] }
 0x1f4   : > { %827 = vmatpush.msrb.mxu2 %v2036_v5  ;;  %934 = vmatpush.msrb.mxu1 %v2036_v5 }
 0x1f5   : > { %1041 = vmatpush.msrb.mxu3 %v2036_v5  ;;  %539 = vmatmul.f32.gmra.mxu2 %v460_v46  ;;  %v2231_v46 = vpop.f32.mrf.mxu1 }
 0x1f6   : > { %745 = vmatmul.f32.gmra.mxu3 %v666_v48  ;;  %828 = vmatpush.msrb.mxu2 %v2043_v6  ;;  %v2233_v48 = vpop.f32.mrf.mxu2 }
 0x1f7   : > { %935 = vmatpush.msrb.mxu1 %v2043_v6  ;;  %1042 = vmatpush.msrb.mxu3 %v2043_v6 }
 0x1f8   : > { %829 = vmatpush.msrb.mxu2 %v2050_v8 }
 0x1f9   : > { %936 = vmatpush.msrb.mxu1 %v2050_v8  ;;  %1043 = vmatpush.msrb.mxu3 %v2050_v8 }
 0x1fa   : > { %830 = vmatpush.msrb.mxu2 %v2057_v23 }
 0x1fb   : > { %937 = vmatpush.msrb.mxu1 %v2057_v23  ;;  %1044 = vmatpush.msrb.mxu3 %v2057_v23 }
 0x1fc   : > { %790 = vmatmul.f32.vlgmr.msra.gmra.mxu1 %v758_v50  ;;  %v770_v50 = vld [vmem:[#allocation4 + $0x1e0] sm:$0xff] }
 0x1fd   : > { %683 = vmatmul.f32.vlgmr.msra.gmra.mxu2 %v651_v49  ;;  %1136 = vmatpush.msra.mxu1 %v1961_v57  ;;  %v2235_v49 = vpop.f32.mrf.mxu3 }
 0x1fe   : > { %897 = vmatmul.f32.vlgmr.msra.gmra.mxu3 %v865_v51  ;;  %988 = vmatpush.msra.mxu2 %v1807_v9  ;;  %v877_v51 = vld [vmem:[#allocation4 + $0x260] sm:$0xff] }
 0x1ff   : > { %1543 = vmatpush.msra.mxu3 %v1807_v9  ;;  %1137 = vmatpush.msra.mxu1 %v1964_v58 }
 0x200   : > { %989 = vmatpush.msra.mxu2 %v1810_v10 }
 0x201   : > { %1544 = vmatpush.msra.mxu3 %v1810_v10  ;;  %1138 = vmatpush.msra.mxu1 %v1970_v59 }
 0x202   : > { %990 = vmatpush.msra.mxu2 %v1817_v11 }
 0x203   : > { %1545 = vmatpush.msra.mxu3 %v1817_v11  ;;  %1139 = vmatpush.msra.mxu1 %v1976_v60 }
 0x204   : > { %991 = vmatpush.msra.mxu2 %v1824_v12  ;;  %793 = vmatmul.f32.gmra.mxu1 %v760_v54  ;;  %v665_v54 = vld [vmem:[#allocation4 + $0x170] sm:$0xff] }
 0x205   : > { %1546 = vmatpush.msra.mxu3 %v1824_v12  ;;  %686 = vmatmul.f32.gmra.mxu2 %v653_v53 }
 0x206   : > { %900 = vmatmul.f32.gmra.mxu3 %v867_v55  ;;  %992 = vmatpush.msra.mxu2 %v1833_v14  ;;  %v772_v55 = vld [vmem:[#allocation4 + $0x1f0] sm:$0xff] }
 0x207   : > { %1547 = vmatpush.msra.mxu3 %v1833_v14  ;;  %1140 = vmatpush.msra.mxu1 %v1982_v61 }
 0x208   : > { %993 = vmatpush.msra.mxu2 %v1840_v15 }
 0x209   : > { %1548 = vmatpush.msra.mxu3 %v1840_v15  ;;  %1141 = vmatpush.msra.mxu1 %v1988_v62 }
 0x20a   : > { %994 = vmatpush.msra.mxu2 %v1847_v16 }
 0x20b   : > { %1549 = vmatpush.msra.mxu3 %v1847_v16  ;;  %1142 = vmatpush.msra.mxu1 %v1994_v63 }
 0x20c   : > { %995 = vmatpush.msra.mxu2 %v1854_v17  ;;  %796 = vmatmul.f32.gmra.mxu1 %v762_v18  ;;  %v2239_v18 = vpop.f32.mrf.mxu3 }
 0x20d   : > { %1550 = vmatpush.msra.mxu3 %v1854_v17  ;;  %1143 = vmatpush.msra.mxu1 %v2001_v0 }
 0x20e   : > { %689 = vmatmul.f32.gmra.mxu2 %v655_v29  ;;  %903 = vmatmul.f32.gmra.mxu3 %v869_v7  ;;  %v879_v29 = vld [vmem:[#allocation4 + $0x270] sm:$0xff] }
 0x20f   : > { %996 = vmatpush.msra.mxu2 %v1864_v19  ;;  %1551 = vmatpush.msra.mxu3 %v1864_v19 }
 0x210   : > { %1144 = vmatpush.msra.mxu1 %v2008_v1 }
 0x211   : > { %997 = vmatpush.msra.mxu2 %v1872_v20  ;;  %1552 = vmatpush.msra.mxu3 %v1872_v20 }
 0x212   : > { %1145 = vmatpush.msra.mxu1 %v2015_v2 }
 0x213   : > { %998 = vmatpush.msra.mxu2 %v1880_v21  ;;  %1553 = vmatpush.msra.mxu3 %v1880_v21 }
 0x214   : > { %1146 = vmatpush.msra.mxu1 %v2022_v3 }
 0x215   : > { %999 = vmatpush.msra.mxu2 %v1888_v22  ;;  %1554 = vmatpush.msra.mxu3 %v1888_v22 }
 0x216   : > { %1147 = vmatpush.msra.mxu1 %v2029_v4  ;;  %692 = vmatmul.f32.gmra.mxu2 %v657_v31 }
 0x217   : > { %799 = vmatmul.f32.gmra.mxu1 %v764_v33  ;;  %906 = vmatmul.f32.gmra.mxu3 %v871_v34  ;;  %v759_v33 = vld [vmem:[#allocation4 + $0x188] sm:$0xff] }
 0x218   : > { %1000 = vmatpush.msra.mxu2 %v1898_v24  ;;  %1555 = vmatpush.msra.mxu3 %v1898_v24  ;;  %v866_v34 = vld [vmem:[#allocation4 + $0x208] sm:$0xff] }
 0x219   : > { %1148 = vmatpush.msra.mxu1 %v2036_v5 }
 0x21a   : > { %1001 = vmatpush.msra.mxu2 %v1906_v25  ;;  %1556 = vmatpush.msra.mxu3 %v1906_v25 }
 0x21b   : > { %1149 = vmatpush.msra.mxu1 %v2043_v6 }
 0x21c   : > { %1002 = vmatpush.msra.mxu2 %v1914_v26  ;;  %1557 = vmatpush.msra.mxu3 %v1914_v26 }
 0x21d   : > { %1150 = vmatpush.msra.mxu1 %v2050_v8 }
 0x21e   : > { %1003 = vmatpush.msra.mxu2 %v1922_v27  ;;  %1558 = vmatpush.msra.mxu3 %v1922_v27 }
 0x21f   : > { %1151 = vmatpush.msra.mxu1 %v2057_v23  ;;  %695 = vmatmul.f32.gmra.mxu2 %v659_v37  ;;  %v973_v37 = vld [vmem:[#allocation4 + $0x288] sm:$0xff] }
 0x220   : > { %802 = vmatmul.f32.gmra.mxu1 %v766_v38  ;;  %909 = vmatmul.f32.gmra.mxu3 %v873_v39  ;;  %v2245_v38 = vpop.f32.mrf.mxu3 }
 0x227   : > { %698 = vmatmul.f32.gmra.mxu2 %v661_v42 }
 0x228   : > { %805 = vmatmul.f32.gmra.mxu1 %v768_v44  ;;  %912 = vmatmul.f32.gmra.mxu3 %v875_v45  ;;  %v761_v44 = vld [vmem:[#allocation4 + $0x198] sm:$0xff] }
 0x22f   : > { %701 = vmatmul.f32.gmra.mxu2 %v663_v47  ;;  %v985_v47 = vld [vmem:[#allocation4 + $0x2e8] sm:$0xff] }
 0x230   : > { %808 = vmatmul.f32.gmra.mxu1 %v770_v50  ;;  %915 = vmatmul.f32.gmra.mxu3 %v877_v51  ;;  %v1081_v50 = vld [vmem:[#allocation4 + $0x310] sm:$0xff] }
 0x234   : > { %v2237_v53 = vpop.f32.mrf.mxu1 }
 0x237   : > { %704 = vmatmul.f32.gmra.mxu2 %v665_v54 }
 0x238   : > { %811 = vmatmul.f32.gmra.mxu1 %v772_v55  ;;  %918 = vmatmul.f32.gmra.mxu3 %v879_v29  ;;  %v773_v55 = vld [vmem:[#allocation4 + $0x1f8] sm:$0xff] }
 0x239   : > { %v2241_v7 = vpop.f32.mrf.mxu2  ;;  %v880_v29 = vld [vmem:[#allocation4 + $0x278] sm:$0xff] }
 0x23b   : > { %v2259_v45 = vpop.f32.mrf.mxu3 }
 0x23c   : > { %v2243_v31 = vpop.f32.mrf.mxu1 }
 0x23f   : > { %831 = vmatmul.f32.vlgmr.msrb.gmra.mxu2 %v759_v33 }
 0x240   : > { %938 = vmatmul.f32.vlgmr.msrb.gmra.mxu1 %v866_v34  ;;  %1045 = vmatmul.f32.vlgmr.msrb.gmra.mxu3 %v973_v37  ;;  %v987_v34 = vld [vmem:[#allocation4 + $0x2f8] sm:$0xff]  ;;  %v1083_v37 = vld [vmem:[#allocation4 + $0x320] sm:$0xff] }
 0x241   : > { %v2247_v39 = vpop.f32.mrf.mxu2  ;;  %1202 = vmatpush.msrb.mxu2 %v1807_v9  ;;  %1243 = vmatpush.msrb.mxu3 %v1961_v57  ;;  %v868_v9 = vld [vmem:[#allocation4 + $0x218] sm:$0xff] }
 0x242   : > { %1350 = vmatpush.msrb.mxu1 %v1961_v57 }
 0x243   : > { %1203 = vmatpush.msrb.mxu2 %v1810_v10  ;;  %1244 = vmatpush.msrb.mxu3 %v1964_v58  ;;  %v2276_v57 = vpop.f32.mrf.mxu3 }
 0x244   : > { %1351 = vmatpush.msrb.mxu1 %v1964_v58  ;;  %v870_v58 = vld [vmem:[#allocation4 + $0x228] sm:$0xff] }
 0x245   : > { %v2252_v42 = vpop.f32.mrf.mxu1  ;;  %1204 = vmatpush.msrb.mxu2 %v1817_v11  ;;  %1245 = vmatpush.msrb.mxu3 %v1970_v59  ;;  %v975_v11 = vld [vmem:[#allocation4 + $0x298] sm:$0xff] }
 0x246   : > { %1352 = vmatpush.msrb.mxu1 %v1970_v59  ;;  %v765_v59 = vld [vmem:[#allocation4 + $0x1b8] sm:$0xff] }
 0x247   : > { %1205 = vmatpush.msrb.mxu2 %v1824_v12  ;;  %1246 = vmatpush.msrb.mxu3 %v1976_v60 }
 0x248   : > { %1353 = vmatpush.msrb.mxu1 %v1976_v60  ;;  %834 = vmatmul.f32.gmra.mxu2 %v761_v44  ;;  %v872_v60 = vld [vmem:[#allocation4 + $0x238] sm:$0xff]  ;;  %v520_v44 = vadd.f32 %v2241_v7, %v2183_v28  ;;  %v1085_v28 = vld [vmem:[#allocation4 + $0x330] sm:$0xff]  ;;  %v1087_v7 = vld [vmem:[#allocation4 + $0x340] sm:$0xff] }
 0x249   : > { %941 = vmatmul.f32.gmra.mxu1 %v868_v9  ;;  %1206 = vmatpush.msrb.mxu2 %v1833_v14  ;;  %v763_v14 = vld [vmem:[#allocation4 + $0x1a8] sm:$0xff]  ;;  %v619_v9 = vadd.f32 %v2237_v53, %v2167_v52  ;;  %v523_v52 = vadd.f32 %v2247_v39, %v2203_v32 }
 0x24a   : > { %1247 = vmatpush.msrb.mxu3 %v1982_v61  ;;  %1354 = vmatpush.msrb.mxu1 %v1982_v61  ;;  %v874_v61 = vld [vmem:[#allocation4 + $0x248] sm:$0xff] }
 0x24b   : > { %v2265_v10 = vpop.f32.mrf.mxu2  ;;  %1207 = vmatpush.msrb.mxu2 %v1840_v15  ;;  %1048 = vmatmul.f32.gmra.mxu3 %v975_v11 }
 0x24c   : > { %1248 = vmatpush.msrb.mxu3 %v1988_v62  ;;  %1355 = vmatpush.msrb.mxu1 %v1988_v62  ;;  %v526_v32 = vadd.f32 %v2265_v10, %v2222_v40 }
 0x24d   : > { %1208 = vmatpush.msrb.mxu2 %v1847_v16  ;;  %v977_v16 = vld [vmem:[#allocation4 + $0x2a8] sm:$0xff] }
 0x24e   : > { %v2273_v12 = vpop.f32.mrf.mxu1  ;;  %1249 = vmatpush.msrb.mxu3 %v1994_v63  ;;  %1356 = vmatpush.msrb.mxu1 %v1994_v63 }
 0x24f   : > { %1209 = vmatpush.msrb.mxu2 %v1854_v17  ;;  %v2291_v17 = vpop.f32.mrf.mxu3 }
 0x250   : > { %1250 = vmatpush.msrb.mxu3 %v2001_v0  ;;  %1357 = vmatpush.msrb.mxu1 %v2001_v0  ;;  %v769_v0 = vld [vmem:[#allocation4 + $0x1d8] sm:$0xff] }
 0x251   : > { %837 = vmatmul.f32.gmra.mxu2 %v763_v14  ;;  %944 = vmatmul.f32.gmra.mxu1 %v870_v58  ;;  %v642_v58 = vmax.f32 %v520_v44, %v619_v9  ;;  %v628_v44 = vadd.f32 %v2273_v12, %v2216_v36 }
 0x252   : > { %1210 = vmatpush.msrb.mxu2 %v1864_v19  ;;  %1251 = vmatpush.msrb.mxu3 %v2008_v1 }
 0x253   : > { %1358 = vmatpush.msrb.mxu1 %v2008_v1  ;;  %1051 = vmatmul.f32.gmra.mxu3 %v977_v16  ;;  %v876_v1 = vld [vmem:[#allocation4 + $0x258] sm:$0xff]  ;;  %v972_v16 = vld [vmem:[#allocation4 + $0x280] sm:$0xff] }
 0x254   : > { %v2283_v15 = vpop.f32.mrf.mxu2  ;;  %1211 = vmatpush.msrb.mxu2 %v1872_v20  ;;  %1252 = vmatpush.msrb.mxu3 %v2015_v2  ;;  %v979_v20 = vld [vmem:[#allocation4 + $0x2b8] sm:$0xff] }
 0x255   : > { %1359 = vmatpush.msrb.mxu1 %v2015_v2  ;;  %v529_v10 = vadd.f32 %v2283_v15, %v2231_v46  ;;  %v980_v15 = vld [vmem:[#allocation4 + $0x2c0] sm:$0xff] }
 0x256   : > { %1212 = vmatpush.msrb.mxu2 %v1880_v21  ;;  %1253 = vmatpush.msrb.mxu3 %v2022_v3 }
 0x257   : > { %v2295_v19 = vpop.f32.mrf.mxu1  ;;  %1360 = vmatpush.msrb.mxu1 %v2022_v3  ;;  %v983_v3 = vld [vmem:[#allocation4 + $0x2d8] sm:$0xff] }
 0x258   : > { %1213 = vmatpush.msrb.mxu2 %v1888_v22  ;;  %1254 = vmatpush.msrb.mxu3 %v2029_v4  ;;  %v2309_v22 = vpop.f32.mrf.mxu3  ;;  %v631_v36 = vadd.f32 %v2295_v19, %v2229_v43 }
 0x259   : > { %1361 = vmatpush.msrb.mxu1 %v2029_v4  ;;  %840 = vmatmul.f32.gmra.mxu2 %v765_v59 }
 0x25a   : > { %947 = vmatmul.f32.gmra.mxu1 %v872_v60  ;;  %1214 = vmatpush.msrb.mxu2 %v1898_v24  ;;  %v767_v24 = vld [vmem:[#allocation4 + $0x1c8] sm:$0xff] }
 0x25b   : > { %1255 = vmatpush.msrb.mxu3 %v2036_v5  ;;  %1362 = vmatpush.msrb.mxu1 %v2036_v5  ;;  %v1080_v60 = vld [vmem:[#allocation4 + $0x308] sm:$0xff] }
 0x25c   : > { %1215 = vmatpush.msrb.mxu2 %v1906_v25  ;;  %1054 = vmatmul.f32.gmra.mxu3 %v979_v20  ;;  %v981_v25 = vld [vmem:[#allocation4 + $0x2c8] sm:$0xff] }
 0x25d   : > { %1256 = vmatpush.msrb.mxu3 %v2043_v6  ;;  %1363 = vmatpush.msrb.mxu1 %v2043_v6  ;;  %v771_v6 = vld [vmem:[#allocation4 + $0x1e8] sm:$0xff] }
 0x25e   : > { %1216 = vmatpush.msrb.mxu2 %v1914_v26 }
 0x25f   : > { %v2304_v21 = vpop.f32.mrf.mxu2  ;;  %1257 = vmatpush.msrb.mxu3 %v2050_v8  ;;  %1364 = vmatpush.msrb.mxu1 %v2050_v8  ;;  %v2314_v62 = vpop.f32.mrf.mxu1  ;;  %v878_v8 = vld [vmem:[#allocation4 + $0x268] sm:$0xff] }
 0x260   : > { %1217 = vmatpush.msrb.mxu2 %v1922_v27  ;;  %v2321_v26 = vpop.f32.mrf.mxu3  ;;  %v1079_v27 = vld [vmem:[#allocation4 + $0x300] sm:$0xff]  ;;  %v532_v46 = vadd.f32 %v2304_v21, %v2191_v13  ;;  %v982_v21 = vld [vmem:[#allocation4 + $0x2d0] sm:$0xff]  ;;  %v634_v43 = vadd.f32 %v2314_v62, %v2235_v49  ;;  %v1092_v62 = vld [vmem:[#allocation4 + $0x368] sm:$0xff] }
 0x261   : > { %1258 = vmatpush.msrb.mxu3 %v2057_v23  ;;  %1365 = vmatpush.msrb.mxu1 %v2057_v23  ;;  %v984_v49 = vld [vmem:[#allocation4 + $0x2e0] sm:$0xff] }
 0x262   : > { %843 = vmatmul.f32.gmra.mxu2 %v767_v24  ;;  %950 = vmatmul.f32.gmra.mxu1 %v874_v61  ;;  %v622_v61 = vadd.f32 %v2243_v31, %v2180_v56  ;;  %v625_v56 = vadd.f32 %v2252_v42, %v2196_v30  ;;  %v976_v31 = vld [vmem:[#allocation4 + $0x2a0] sm:$0xff]  ;;  %v978_v30 = vld [vmem:[#allocation4 + $0x2b0] sm:$0xff]  ;;  %v1086_v42 = vld [vmem:[#allocation4 + $0x338] sm:$0xff] }
 0x263   : > { %1111 = vmatmul.f32.vlgmr.msrb.gmra.mxu0 %v1079_v27 }
 0x264   : > { %1057 = vmatmul.f32.gmra.mxu3 %v981_v25 }
 0x267   : > { %v2319_v63 = vpop.f32.mrf.mxu2 }
 0x268   : > { %v2323_v2 = vpop.f32.mrf.mxu1  ;;  %v2327_v5 = vpop.f32.mrf.mxu3  ;;  %v535_v13 = vadd.f32 %v2319_v63, %v2211_v35 }
 0x26a   : > { %846 = vmatmul.f32.gmra.mxu2 %v769_v0  ;;  %953 = vmatmul.f32.gmra.mxu1 %v876_v1  ;;  %v1082_v0 = vld [vmem:[#allocation4 + $0x318] sm:$0xff]  ;;  %v643_v1 = vmax.f32 %v523_v52, %v622_v61 }
 0x26b   : > { %1114 = vmatmul.f32.gmra.mxu0 %v1081_v50 }
 0x26c   : > { %1060 = vmatmul.f32.gmra.mxu3 %v983_v3 }
 0x270   : > { %v2325_v4 = vpop.f32.mrf.mxu2  ;;  %v2329_v23 = vpop.f32.mrf.mxu1 }
 0x271   : > { %v2331_v51 = vpop.f32.mrf.mxu3  ;;  %v538_v63 = vadd.f32 %v2325_v4, %v2227_v41 }
 0x272   : > { %849 = vmatmul.f32.gmra.mxu2 %v771_v6  ;;  %956 = vmatmul.f32.gmra.mxu1 %v878_v8  ;;  %v1089_v6 = vld [vmem:[#allocation4 + $0x350] sm:$0xff] }
 0x273   : > { %1117 = vmatmul.f32.gmra.mxu0 %v1083_v37 }
 0x274   : > { %1063 = vmatmul.f32.gmra.mxu3 %v985_v47  ;;  %v1084_v47 = vld [vmem:[#allocation4 + $0x328] sm:$0xff] }
 0x278   : > { %v2333_v54 = vpop.f32.mrf.mxu2 }
 0x279   : > { %v2335_v33 = vpop.f32.mrf.mxu1  ;;  %v2341_v11 = vpop.f32.mrf.mxu3  ;;  %v541_v4 = vadd.f32 %v2333_v54, %v2233_v48 }
 0x27a   : > { %852 = vmatmul.f32.gmra.mxu2 %v773_v55  ;;  %959 = vmatmul.f32.gmra.mxu1 %v880_v29  ;;  %v1091_v29 = vld [vmem:[#allocation4 + $0x360] sm:$0xff] }
 0x27b   : > { %1120 = vmatmul.f32.gmra.mxu0 %v1085_v28  ;;  %v1088_v28 = vld [vmem:[#allocation4 + $0x348] sm:$0xff] }
 0x27c   : > { %1066 = vmatmul.f32.gmra.mxu3 %v987_v34 }
 0x280   : > { %v684_v14 = vpop.f32.mrf.mxu2 }
 0x281   : > { %v726_v59 = vadd.f32 %v2259_v45, %v684_v14  ;;  %v2346_v24 = vpop.f32.mrf.mxu1  ;;  %v2350_v53 = vpop.f32.mrf.mxu3  ;;  %v974_v45 = vld [vmem:[#allocation4 + $0x290] sm:$0xff] }
 0x282   : > { %1004 = vmatmul.f32.vlgmr.msra.gmra.mxu2 %v972_v16  ;;  %1152 = vmatmul.f32.vlgmr.msra.gmra.mxu1 %v1080_v60 }
 0x283   : > { %v2344_v20 = vmax.f32 %v642_v58, %v726_v59  ;;  %v1093_v58 = vld [vmem:[#allocation4 + $0x370] sm:$0xff] }
 0x284   : > { %1123 = vmatmul.f32.vlgmr.msra.gmra.mxu3 %v1087_v7  ;;  %v646_v7 = vmax.f32 %v532_v46, %v631_v36  ;;  %v1186_v46 = vld [vmem:[#allocation4 + $0x380] sm:$0xff] }
 0x288   : > { %v687_v25 = vpop.f32.mrf.mxu2 }
 0x289   : > { %v729_v3 = vadd.f32 %v2276_v57, %v687_v25  ;;  %v2357_v8 = vpop.f32.mrf.mxu1  ;;  %v2361_v39 = vpop.f32.mrf.mxu3  ;;  %v644_v57 = vmax.f32 %v526_v32, %v625_v56 }
 0x28a   : > { %1007 = vmatmul.f32.gmra.mxu2 %v974_v45  ;;  %1155 = vmatmul.f32.gmra.mxu1 %v1082_v0  ;;  %v1090_v0 = vld [vmem:[#allocation4 + $0x358] sm:$0xff] }
 0x28b   : > { %v2355_v27 = vmax.f32 %v643_v1, %v729_v3  ;;  %v1189_v1 = vld [vmem:[#allocation4 + $0x398] sm:$0xff]  ;;  %v647_v3 = vmax.f32 %v535_v13, %v634_v43 }
 0x28c   : > { %1126 = vmatmul.f32.gmra.mxu3 %v1089_v6 }
 0x291   : > { %v690_v50 = vpop.f32.mrf.mxu2  ;;  %v2370_v40 = vpop.f32.mrf.mxu3 }
 0x292   : > { %v732_v55 = vadd.f32 %v2291_v17, %v690_v50  ;;  %1010 = vmatmul.f32.gmra.mxu2 %v976_v31  ;;  %1158 = vmatmul.f32.gmra.mxu1 %v1084_v47  ;;  %v645_v17 = vmax.f32 %v529_v10, %v628_v44  ;;  %v637_v31 = vadd.f32 %v2323_v2, %v2239_v18  ;;  %v1295_v50 = vld [vmem:[#allocation4 + $0x410] sm:$0xff]  ;;  %v1094_v2 = vld [vmem:[#allocation4 + $0x378] sm:$0xff]  ;;  %v1297_v44 = vld [vmem:[#allocation4 + $0x420] sm:$0xff] }
 0x293   : > { %v986_v18 = vld [vmem:[#allocation4 + $0x2f0] sm:$0xff] }
 0x294   : > { %v2366_v34 = vmax.f32 %v644_v57, %v732_v55  ;;  %v2368_v37 = vpop.f32.mrf.mxu1  ;;  %1129 = vmatmul.f32.gmra.mxu3 %v1091_v29  ;;  %v648_v57 = vmax.f32 %v538_v63, %v637_v31  ;;  %v1199_v63 = vld [vmem:[#allocation4 + $0x3e8] sm:$0xff] }
 0x299   : > { %v693_v9 = vpop.f32.mrf.mxu2 }
 0x29a   : > { %1013 = vmatmul.f32.gmra.mxu2 %v978_v30  ;;  %v735_v14 = vadd.f32 %v2309_v22, %v693_v9  ;;  %1161 = vmatmul.f32.gmra.mxu1 %v1086_v42  ;;  %v2381_v60 = vpop.f32.mrf.mxu3  ;;  %v1187_v22 = vld [vmem:[#allocation4 + $0x388] sm:$0xff]  ;;  %v640_v30 = vadd.f32 %v2329_v23, %v2245_v38 }
 0x29b   : > { %v1195_v23 = vld [vmem:[#allocation4 + $0x3c8] sm:$0xff] }
 0x29c   : > { %v2377_v16 = vmax.f32 %v645_v17, %v735_v14  ;;  %1132 = vmatmul.f32.gmra.mxu3 %v1093_v58  ;;  %v649_v9 = vmax.f32 %v541_v4, %v640_v30  ;;  %v1305_v4 = vld [vmem:[#allocation4 + $0x460] sm:$0xff] }
 0x29d   : > { %v2379_v59 = vpop.f32.mrf.mxu1 }
 0x2a2   : > { %1016 = vmatmul.f32.gmra.mxu2 %v980_v15  ;;  %v696_v12 = vpop.f32.mrf.mxu2  ;;  %1164 = vmatmul.f32.gmra.mxu1 %v1088_v28  ;;  %v1294_v15 = vld [vmem:[#allocation4 + $0x408] sm:$0xff]  ;;  %v1299_v28 = vld [vmem:[#allocation4 + $0x430] sm:$0xff] }
 0x2a3   : > { %v738_v52 = vadd.f32 %v2321_v26, %v696_v12  ;;  %v2392_v25 = vpop.f32.mrf.mxu3  ;;  %v1293_v26 = vld [vmem:[#allocation4 + $0x400] sm:$0xff] }
 0x2a4   : > { %1259 = vmatmul.f32.vlgmr.msrb.gmra.mxu3 %v1187_v22  ;;  %1325 = vmatmul.f32.vlgmr.msra.gmra.mxu0 %v1293_v26  ;;  %v1190_v26 = vld [vmem:[#allocation4 + $0x3a0] sm:$0xff] }
 0x2a5   : > { %v2388_v61 = vmax.f32 %v646_v7, %v738_v52  ;;  %v2390_v45 = vpop.f32.mrf.mxu1  ;;  %v1188_v7 = vld [vmem:[#allocation4 + $0x390] sm:$0xff]  ;;  %v1296_v52 = vld [vmem:[#allocation4 + $0x418] sm:$0xff] }
 0x2aa   : > { %1019 = vmatmul.f32.gmra.mxu2 %v982_v21  ;;  %v699_v19 = vpop.f32.mrf.mxu2  ;;  %1167 = vmatmul.f32.gmra.mxu1 %v1090_v0  ;;  %v1197_v21 = vld [vmem:[#allocation4 + $0x3d8] sm:$0xff]  ;;  %v1301_v0 = vld [vmem:[#allocation4 + $0x440] sm:$0xff] }
 0x2ab   : > { %v741_v6 = vadd.f32 %v2327_v5, %v699_v19  ;;  %v2403_v35 = vpop.f32.mrf.mxu3  ;;  %v1191_v5 = vld [vmem:[#allocation4 + $0x3a8] sm:$0xff] }
 0x2ac   : > { %1262 = vmatmul.f32.gmra.mxu3 %v1189_v1  ;;  %1328 = vmatmul.f32.gmra.mxu0 %v1295_v50 }
 0x2ad   : > { %v2399_v32 = vmax.f32 %v647_v3, %v741_v6  ;;  %v2401_v56 = vpop.f32.mrf.mxu1  ;;  %v1298_v3 = vld [vmem:[#allocation4 + $0x428] sm:$0xff] }
 0x2b2   : > { %1022 = vmatmul.f32.gmra.mxu2 %v984_v49  ;;  %v702_v47 = vpop.f32.mrf.mxu2  ;;  %1170 = vmatmul.f32.gmra.mxu1 %v1092_v62  ;;  %v1303_v49 = vld [vmem:[#allocation4 + $0x450] sm:$0xff] }
 0x2b3   : > { %v744_v55 = vadd.f32 %v2331_v51, %v702_v47  ;;  %v2414_v41 = vpop.f32.mrf.mxu3  ;;  %v1193_v51 = vld [vmem:[#allocation4 + $0x3b8] sm:$0xff] }
 0x2b4   : > { %1265 = vmatmul.f32.gmra.mxu3 %v1191_v5  ;;  %1331 = vmatmul.f32.gmra.mxu0 %v1297_v44  ;;  %v1192_v5 = vld [vmem:[#allocation4 + $0x3b0] sm:$0xff] }
 0x2b5   : > { %v2410_v29 = vmax.f32 %v648_v57, %v744_v55  ;;  %v2412_v10 = vpop.f32.mrf.mxu1  ;;  %v1201_v55 = vld [vmem:[#allocation4 + $0x3f8] sm:$0xff]  ;;  %v1307_v44 = vld [vmem:[#allocation4 + $0x470] sm:$0xff] }
 0x2ba   : > { %1025 = vmatmul.f32.gmra.mxu2 %v986_v18  ;;  %v705_v42 = vpop.f32.mrf.mxu2  ;;  %1173 = vmatmul.f32.gmra.mxu1 %v1094_v2 }
 0x2bb   : > { %v747_v17 = vadd.f32 %v2341_v11, %v705_v42  ;;  %v2424_v54 = vpop.f32.mrf.mxu3  ;;  %v1302_v42 = vld [vmem:[#allocation4 + $0x448] sm:$0xff] }
 0x2bc   : > { %1268 = vmatmul.f32.gmra.mxu3 %v1193_v51  ;;  %1334 = vmatmul.f32.gmra.mxu0 %v1299_v28 }
 0x2bd   : > { %v2421_v14 = vmax.f32 %v649_v9, %v747_v17  ;;  %v939_v58 = vpop.f32.mrf.mxu1 }
 0x2be   : > { %v940_v48 = vadd.f32 %v939_v58, %v2350_v53 }
 0x2c2   : > { %1218 = vmatmul.f32.vlgmr.msrb.gmra.mxu2 %v1186_v46  ;;  %v832_v38 = vpop.f32.mrf.mxu2  ;;  %1366 = vmatmul.f32.vlgmr.msrb.gmra.mxu1 %v1294_v15  ;;  %v1304_v46 = vld [vmem:[#allocation4 + $0x458] sm:$0xff] }
 0x2c3   : > { %v833_v36 = vadd.f32 %v832_v38, %v2335_v33  ;;  %v2428_v22 = vpop.f32.mrf.mxu3 }
 0x2c4   : > { %1271 = vmatmul.f32.gmra.mxu3 %v1195_v23  ;;  %1337 = vmatmul.f32.gmra.mxu0 %v1301_v0  ;;  %v1200_v0 = vld [vmem:[#allocation4 + $0x3f0] sm:$0xff] }
 0x2c5   : > { %v856_v11 = vmax.f32 %v2344_v20, %v833_v36 }
 0x2c6   : > { %v942_v12 = vpop.f32.mrf.mxu1 }
 0x2c7   : > { %v943_v53 = vadd.f32 %v942_v12, %v2361_v39  ;;  %v2431_v13 = vmax.f32 %v856_v11, %v940_v48  ;;  %v1198_v11 = vld [vmem:[#allocation4 + $0x3e0] sm:$0xff]  ;;  %v1306_v12 = vld [vmem:[#allocation4 + $0x468] sm:$0xff] }
 0x2ca   : > { %1221 = vmatmul.f32.gmra.mxu2 %v1188_v7  ;;  %1369 = vmatmul.f32.gmra.mxu1 %v1296_v52 }
 0x2cb   : > { %v835_v43 = vpop.f32.mrf.mxu2 }
 0x2cc   : > { %v836_v33 = vadd.f32 %v835_v43, %v2346_v24  ;;  %1274 = vmatmul.f32.gmra.mxu3 %v1197_v21  ;;  %1340 = vmatmul.f32.gmra.mxu0 %v1303_v49  ;;  %v1308_v43 = vld [vmem:[#allocation4 + $0x478] sm:$0xff] }
 0x2ce   : > { %v857_v20 = vmax.f32 %v2355_v27, %v836_v33  ;;  %v945_v19 = vpop.f32.mrf.mxu1  ;;  %v2435_v1 = vpop.f32.mrf.mxu3 }
 0x2cf   : > { %v946_v39 = vadd.f32 %v945_v19, %v2370_v40  ;;  %v1300_v40 = vld [vmem:[#allocation4 + $0x438] sm:$0xff] }
 0x2d0   : > { %v2438_v6 = vmax.f32 %v857_v20, %v943_v53 }
 0x2d2   : > { %1224 = vmatmul.f32.gmra.mxu2 %v1190_v26  ;;  %1372 = vmatmul.f32.gmra.mxu1 %v1298_v3 }
 0x2d4   : > { %v838_v62 = vpop.f32.mrf.mxu2  ;;  %1277 = vmatmul.f32.gmra.mxu3 %v1199_v63  ;;  %1343 = vmatmul.f32.gmra.mxu0 %v1305_v4 }
 0x2d5   : > { %v839_v24 = vadd.f32 %v838_v62, %v2357_v8 }
 0x2d6   : > { %v2441_v31 = vpop.f32.mrf.mxu3 }
 0x2d7   : > { %v858_v27 = vmax.f32 %v2366_v34, %v839_v24  ;;  %v948_v47 = vpop.f32.mrf.mxu1  ;;  %v1194_v34 = vld [vmem:[#allocation4 + $0x3c0] sm:$0xff] }
 0x2d8   : > { %v949_v50 = vadd.f32 %v948_v47, %v2381_v60 }
 0x2d9   : > { %v2445_v57 = vmax.f32 %v858_v27, %v946_v39 }
 0x2da   : > { %1227 = vmatmul.f32.gmra.mxu2 %v1192_v5  ;;  %1375 = vmatmul.f32.gmra.mxu1 %v1300_v40 }
 0x2dc   : > { %v841_v18 = vpop.f32.mrf.mxu2  ;;  %1280 = vmatmul.f32.gmra.mxu3 %v1201_v55  ;;  %1346 = vmatmul.f32.gmra.mxu0 %v1307_v44 }
 0x2dd   : > { %v842_v8 = vadd.f32 %v841_v18, %v2368_v37  ;;  %v1196_v37 = vld [vmem:[#allocation4 + $0x3d0] sm:$0xff] }
 0x2df   : > { %v859_v2 = vmax.f32 %v2377_v16, %v842_v8  ;;  %v951_v30 = vpop.f32.mrf.mxu1  ;;  %v2449_v51 = vpop.f32.mrf.mxu3 }
 0x2e0   : > { %v952_v60 = vadd.f32 %v951_v30, %v2392_v25  ;;  %v1112_v47 = vpop.f32.mrf.mxu0 }
 0x2e1   : > { %v2452_v9 = vmax.f32 %v859_v2, %v949_v50 }
 0x2e2   : > { %1230 = vmatmul.f32.gmra.mxu2 %v1194_v34  ;;  %1378 = vmatmul.f32.gmra.mxu1 %v1302_v42 }
 0x2e5   : > { %v844_v17 = vpop.f32.mrf.mxu2 }
 0x2e6   : > { %v845_v58 = vadd.f32 %v844_v17, %v2379_v59 }
 0x2e7   : > { %v954_v48 = vpop.f32.mrf.mxu1  ;;  %v1058_v16 = vpop.f32.mrf.mxu3 }
 0x2e8   : > { %v860_v15 = vmax.f32 %v2388_v61, %v845_v58  ;;  %v955_v38 = vadd.f32 %v954_v48, %v2403_v35  ;;  %v1115_v4 = vpop.f32.mrf.mxu0 }
 0x2ea   : > { %1233 = vmatmul.f32.gmra.mxu2 %v1196_v37  ;;  %1381 = vmatmul.f32.gmra.mxu1 %v1304_v46  ;;  %v2457_v25 = vmax.f32 %v860_v15, %v952_v60 }
 0x2ed   : > { %v847_v23 = vpop.f32.mrf.mxu2 }
 0x2ee   : > { %v848_v28 = vadd.f32 %v847_v23, %v2390_v45 }
 0x2ef   : > { %v957_v36 = vpop.f32.mrf.mxu1  ;;  %v1061_v53 = vpop.f32.mrf.mxu3 }
 0x2f0   : > { %v861_v59 = vmax.f32 %v2399_v32, %v848_v28  ;;  %v958_v7 = vadd.f32 %v957_v36, %v2414_v41 }
 0x2f2   : > { %1236 = vmatmul.f32.gmra.mxu2 %v1198_v11  ;;  %1384 = vmatmul.f32.gmra.mxu1 %v1306_v12  ;;  %v2462_v61 = vmax.f32 %v861_v59, %v955_v38 }
 0x2f5   : > { %v850_v35 = vpop.f32.mrf.mxu2 }
 0x2f6   : > { %v851_v52 = vadd.f32 %v850_v35, %v2401_v56 }
 0x2f7   : > { %v960_v21 = vpop.f32.mrf.mxu1  ;;  %v1064_v20 = vpop.f32.mrf.mxu3 }
 0x2f8   : > { %v862_v45 = vmax.f32 %v2410_v29, %v851_v52  ;;  %v961_v33 = vadd.f32 %v960_v21, %v2424_v54 }
 0x2fa   : > { %1239 = vmatmul.f32.gmra.mxu2 %v1200_v0  ;;  %1387 = vmatmul.f32.gmra.mxu1 %v1308_v43  ;;  %v2467_v32 = vmax.f32 %v862_v45, %v958_v7 }
 0x2fd   : > { %v853_v41 = vpop.f32.mrf.mxu2 }
 0x2fe   : > { %v854_v19 = vadd.f32 %v853_v41, %v2412_v10 }
 0x2ff   : > { %v1153_v39 = vpop.f32.mrf.mxu1  ;;  %v1067_v3 = vpop.f32.mrf.mxu3 }
 0x300   : > { %v863_v26 = vmax.f32 %v2421_v14, %v854_v19 }
 0x302   : > { %v2471_v56 = vmax.f32 %v863_v26, %v961_v33 }
 0x305   : > { %v1005_v63 = vpop.f32.mrf.mxu2 }
 0x306   : > { %v1047_v49 = vadd.f32 %v2428_v22, %v1005_v63 }
 0x307   : > { %v1156_v29 = vpop.f32.mrf.mxu1  ;;  %v2475_v62 = vpop.f32.mrf.mxu3 }
 0x308   : > { %v1070_v54 = vmax.f32 %v2431_v13, %v1047_v49  ;;  %v1157_v33 = vadd.f32 %v1156_v29, %v1115_v4 }
 0x30d   : > { %v1008_v24 = vpop.f32.mrf.mxu2 }
 0x30e   : > { %v1050_v27 = vadd.f32 %v2435_v1, %v1008_v24 }
 0x30f   : > { %v1159_v5 = vpop.f32.mrf.mxu1  ;;  %v2480_v50 = vpop.f32.mrf.mxu3 }
 0x310   : > { %v1071_v10 = vmax.f32 %v2438_v6, %v1050_v27  ;;  %v1118_v6 = vpop.f32.mrf.mxu0 }
 0x311   : > { %v1160_v49 = vadd.f32 %v1159_v5, %v1118_v6 }
 0x312   : > { %v1178_v19 = vmax.f32 %v1071_v10, %v1157_v33 }
 0x315   : > { %v1011_v40 = vpop.f32.mrf.mxu2 }
 0x316   : > { %v1053_v14 = vadd.f32 %v2441_v31, %v1011_v40 }
 0x317   : > { %v1162_v55 = vpop.f32.mrf.mxu1  ;;  %v2490_v2 = vpop.f32.mrf.mxu3 }
 0x318   : > { %v1072_v22 = vmax.f32 %v2445_v57, %v1053_v14 }
 0x31a   : > { %v1179_v40 = vmax.f32 %v1072_v22, %v1160_v49 }
 0x31d   : > { %v1014_v18 = vpop.f32.mrf.mxu2 }
 0x31e   : > { %v2484_v13 = vadd.f32 %v2449_v51, %v1014_v18  ;;  %v1121_v51 = vpop.f32.mrf.mxu0 }
 0x31f   : > { %v2486_v8 = vpop.f32.mrf.mxu1  ;;  %v2498_v42 = vpop.f32.mrf.mxu3 }
 0x320   : > { %v1073_v1 = vmax.f32 %v2452_v9, %v2484_v13  ;;  %v1163_v13 = vadd.f32 %v1162_v55, %v1121_v51  ;;  %v1166_v22 = vadd.f32 %v2486_v8, %v2475_v62 }
 0x325   : > { %v1017_v30 = vpop.f32.mrf.mxu2 }
 0x326   : > { %v2492_v31 = vadd.f32 %v1058_v16, %v1017_v30  ;;  %v1326_v37 = vpop.f32.mrf.mxu0 }
 0x327   : > { %v2494_v34 = vpop.f32.mrf.mxu1  ;;  %v1260_v58 = vpop.f32.mrf.mxu3 }
 0x328   : > { %v1074_v57 = vmax.f32 %v2457_v25, %v2492_v31 }
 0x32a   : > { %v1181_v55 = vmax.f32 %v1074_v57, %v1166_v22 }
 0x32d   : > { %v1020_v60 = vpop.f32.mrf.mxu2 }
 0x32e   : > { %v2500_v44 = vadd.f32 %v1061_v53, %v1020_v60  ;;  %v1329_v11 = vpop.f32.mrf.mxu0  ;;  %v1154_v53 = vadd.f32 %v1153_v39, %v1112_v47 }
 0x32f   : > { %v2502_v17 = vpop.f32.mrf.mxu1  ;;  %v1263_v28 = vpop.f32.mrf.mxu3 }
 0x330   : > { %v1075_v9 = vmax.f32 %v2462_v61, %v2500_v44  ;;  %v1177_v7 = vmax.f32 %v1070_v54, %v1154_v53  ;;  %v1172_v33 = vadd.f32 %v2502_v17, %v2490_v2 }
 0x335   : > { %v1023_v48 = vpop.f32.mrf.mxu2 }
 0x336   : > { %v2506_v46 = vadd.f32 %v1064_v20, %v1023_v48  ;;  %v1332_v45 = vpop.f32.mrf.mxu0  ;;  %v1180_v48 = vmax.f32 %v1073_v1, %v1163_v13 }
 0x337   : > { %v2508_v16 = vpop.f32.mrf.mxu1  ;;  %v1266_v43 = vpop.f32.mrf.mxu3 }
 0x338   : > { %v1076_v15 = vmax.f32 %v2467_v32, %v2506_v46 }
 0x33d   : > { %v1026_v38 = vpop.f32.mrf.mxu2 }
 0x33e   : > { %v2512_v23 = vadd.f32 %v1067_v3, %v1026_v38  ;;  %v1335_v27 = vpop.f32.mrf.mxu0 }
 0x33f   : > { %v1367_v36 = vpop.f32.mrf.mxu1  ;;  %v1269_v24 = vpop.f32.mrf.mxu3 }
 0x340   : > { %v1077_v12 = vmax.f32 %v2471_v56, %v2512_v23  ;;  %v1368_v52 = vadd.f32 %v1367_v36, %v1326_v37 }
 0x345   : > { %v1219_v59 = vpop.f32.mrf.mxu2 }
 0x346   : > { %v1261_v35 = vadd.f32 %v1260_v58, %v1219_v59  ;;  %v1338_v58 = vpop.f32.mrf.mxu0 }
 0x347   : > { %v1370_v21 = vpop.f32.mrf.mxu1  ;;  %v1272_v10 = vpop.f32.mrf.mxu3 }
 0x348   : > { %v1284_v0 = vmax.f32 %v1177_v7, %v1261_v35  ;;  %v1371_v26 = vadd.f32 %v1370_v21, %v1329_v11 }
 0x34a   : > { %v1391_v20 = vmax.f32 %v1284_v0, %v1368_v52  ;;  %v1169_v52 = vadd.f32 %v2494_v34, %v2480_v50  ;;  %v1183_v50 = vmax.f32 %v1076_v15, %v1172_v33 }
 0x34c   : > { %1399 = vst [vmem:[%s2520_s16] sm:$0xff] %v1391_v20  ;;  %v1182_v62 = vmax.f32 %v1075_v9, %v1169_v52 }
 0x34d   : > { %v1222_v41 = vpop.f32.mrf.mxu2 }
 0x34e   : > { %v1264_v39 = vadd.f32 %v1263_v28, %v1222_v41  ;;  %v1341_v59 = vpop.f32.mrf.mxu0 }
 0x34f   : > { %v1373_v3 = vpop.f32.mrf.mxu1  ;;  %v1275_v53 = vpop.f32.mrf.mxu3 }
 0x350   : > { %v1285_v63 = vmax.f32 %v1178_v19, %v1264_v39  ;;  %v1374_v18 = vadd.f32 %v1373_v3, %v1332_v45 }
 0x352   : > { %v1392_v54 = vmax.f32 %v1285_v63, %v1371_v26  ;;  %v1175_v26 = vadd.f32 %v2508_v16, %v2498_v42 }
 0x354   : > { %1400 = vst [vmem:[%s2520_s16 + $0x8] sm:$0xff] %v1392_v54  ;;  %v1184_v2 = vmax.f32 %v1077_v12, %v1175_v26 }
 0x355   : > { %v1225_v47 = vpop.f32.mrf.mxu2 }
 0x356   : > { %v1267_v14 = vadd.f32 %v1266_v43, %v1225_v47  ;;  %v1344_v0 = vpop.f32.mrf.mxu0 }
 0x357   : > { %v1376_v29 = vpop.f32.mrf.mxu1  ;;  %v1278_v57 = vpop.f32.mrf.mxu3 }
 0x358   : > { %v1286_v4 = vmax.f32 %v1179_v40, %v1267_v14  ;;  %v1377_v5 = vadd.f32 %v1376_v29, %v1335_v27 }
 0x35a   : > { %v1393_v30 = vmax.f32 %v1286_v4, %v1374_v18 }
 0x35c   : > { %1401 = vst [vmem:[%s2520_s16 + $0x10] sm:$0xff] %v1393_v30 }
 0x35d   : > { %v1228_v60 = vpop.f32.mrf.mxu2 }
 0x35e   : > { %v1270_v37 = vadd.f32 %v1269_v24, %v1228_v60  ;;  %v1347_v19 = vpop.f32.mrf.mxu0 }
 0x35f   : > { %v1379_v6 = vpop.f32.mrf.mxu1  ;;  %v1281_v41 = vpop.f32.mrf.mxu3 }
 0x360   : > { %v1287_v38 = vmax.f32 %v1180_v48, %v1270_v37  ;;  %v1380_v11 = vadd.f32 %v1379_v6, %v1338_v58 }
 0x362   : > { %v1394_v28 = vmax.f32 %v1287_v38, %v1377_v5 }
 0x364   : > { %1402 = vst [vmem:[%s2520_s16 + $0x18] sm:$0xff] %v1394_v28 }
 0x365   : > { %v1231_v36 = vpop.f32.mrf.mxu2 }
 0x366   : > { %v1273_v51 = vadd.f32 %v1272_v10, %v1231_v36 }
 0x367   : > { %v1382_v1 = vpop.f32.mrf.mxu1 }
 0x368   : > { %v1288_v7 = vmax.f32 %v1181_v55, %v1273_v51  ;;  %v1383_v25 = vadd.f32 %v1382_v1, %v1341_v59 }
 0x36a   : > { %v1395_v35 = vmax.f32 %v1288_v7, %v1380_v11 }
 0x36c   : > { %1403 = vst [vmem:[%s2520_s16 + $0x20] sm:$0xff] %v1395_v35 }
 0x36d   : > { %v1234_v21 = vpop.f32.mrf.mxu2 }
 0x36e   : > { %v1276_v8 = vadd.f32 %v1275_v53, %v1234_v21 }
 0x36f   : > { %v1385_v43 = vpop.f32.mrf.mxu1 }
 0x370   : > { %v1289_v31 = vmax.f32 %v1182_v62, %v1276_v8  ;;  %v1386_v34 = vadd.f32 %v1385_v43, %v1344_v0 }
 0x372   : > { %v1396_v45 = vmax.f32 %v1289_v31, %v1383_v25 }
 0x374   : > { %1404 = vst [vmem:[%s2520_s16 + $0x28] sm:$0xff] %v1396_v45 }
 0x375   : > { %v1237_v20 = vpop.f32.mrf.mxu2 }
 0x376   : > { %v1279_v61 = vadd.f32 %v1278_v57, %v1237_v20 }
 0x377   : > { %v1388_v39 = vpop.f32.mrf.mxu1 }
 0x378   : > { %v1290_v44 = vmax.f32 %v1183_v50, %v1279_v61  ;;  %v1389_v32 = vadd.f32 %v1388_v39, %v1347_v19 }
 0x37a   : > { %v1397_v9 = vmax.f32 %v1290_v44, %v1386_v34 }
 0x37c   : > { %1405 = vst [vmem:[%s2520_s16 + $0x30] sm:$0xff] %v1397_v9 }
 0x37d   : > { %v1240_v3 = vpop.f32.mrf.mxu2 }
 0x37e   : > { %v1282_v17 = vadd.f32 %v1281_v41, %v1240_v3 }
 0x380   : > { %v1291_v46 = vmax.f32 %v1184_v2, %v1282_v17 }
 0x382   : > { %v1398_v15 = vmax.f32 %v1291_v46, %v1389_v32 }
 0x384   : > { %1406 = vst [vmem:[%s2520_s16 + $0x38] sm:$0xff] %v1398_v15 }
 0x385 PF: > { %s16_s15 = sadd.s32 1, %s1668_s15  }
 0x386   : > { %p13_p7 = scmp.ge.s32.totalorder %s16_s15, 4  }
 0x388   :  { %15 = sbr.rel (!%p13_p7) target bundleno = 2 (0x2), region = 83 }
 0x38d   :  { %1428 = vsyncpa [#allocation3], 1 }
 0x38e   :  { %1430 = vsyncpa [#allocation3 + $0x1], 1 }
 0x38f   :  { %1431 = vsyncpa [#allocation5], 1 }

// kernel: _lambda_.9
= control target key start
LH: loop header
LB: loop body
LE: loop exit
PB: predicated region body
PF: predicated region fallthrough
CT: control target
= control target key end

     0   :  { %s2369_s0 = inlined_call_operand.vmem [shape: f32[2,16,256], index: 0, kind: input, shape index: {}]   ;;  %s2370_s1 = inlined_call_operand.vmem [shape: bf16[3,256,128], index: 1, kind: input, shape index: {}]   ;;  %s2371_s2 = inlined_call_operand.hbm [shape: f32[3,1,128], index: 2, kind: input, shape index: {}]   ;;  %s2372_s3 = inlined_call_operand.hbm [shape: f32[3,9,128], index: 3, kind: input, shape index: {}]   ;;  %s2373_s4 = inlined_call_operand.hbm [shape: f32[3,1,128], index: 4, kind: input, shape index: {}]   ;;  %s2374_s5 = inlined_call_operand.hbm [shape: bf16[3,128,256], index: 5, kind: input, shape index: {}]   ;;  %s2375_s6 = inlined_call_operand.hbm [shape: f32[3,1,256], index: 6, kind: input, shape index: {}]   ;;  %s2376_s7 = inlined_call_operand.hbm [shape: f32[9,16,16], index: 7, kind: input, shape index: {}]   ;;  %s2377_s8 = inlined_call_operand.vmem [shape: f32[2,16,256], index: 8, kind: output, shape index: {}]  }
   0x1   :  { %2382 = sst [smem:[#allocation22_spill]] %s2371_s2 }
   0x2   :  { %2383 = sst [smem:[#allocation23_spill]] %s2372_s3 }
   0x3   :  { %2384 = sst [smem:[#allocation24_spill]] %s2374_s5 }
   0x4   :  { %2385 = sst [smem:[#allocation25_spill]] %s2376_s7 }
   0x5   :  { %2386 = sst [smem:[#allocation26_spill]] %s2377_s8 }
   0x6   :  { %13 = vsyncpa [#allocation4], 0 }
   0x7   :  { %15 = vsyncpa [#allocation4 + $0x1], 0 }
   0x8   :  { %16 = vsyncpa [#allocation6], 0 }
   0x9   :  { %18 = vsyncpa [#allocation6 + $0x1], 0 }
   0xa   :  { %19 = vsyncpa [#allocation9], 0 }
   0xb   :  { %21 = vsyncpa [#allocation9 + $0x1], 0 }
   0xc   :  { %22 = vsyncpa [#allocation12], 0  ;;  %s2025_s27 = smov 0   ;;  %s2027_s28 = smov 0  }
   0xd   :  { %s2029_s29 = smov 0   ;;  %s2031_s30 = smov 0  }
   0xe   :  { %s2033_s9 = smov 0   ;;  %s2035_s10 = smov 0  }
   0xf   :  { %s2037_s11 = smov 0   ;;  %s2039_s12 = smov 0  }
  0x10 LB: > { %2387 = sst [smem:[#allocation17_spill]] %s1955_s29  ;;  %s37_s13 = sadd.s32 1, %s1967_s10  ;;  %s1975_s12 = sphi %s2039_s12, %s28_s12   ;;  %s1971_s11 = sphi %s2037_s11, %s2406_s11   ;;  %s1967_s10 = sphi %s2035_s10, %s2410_s10   ;;  %s1963_s9 = sphi %s2033_s9, %s2404_s9   ;;  %s1959_s30 = sphi %s2031_s30, %s2409_s30   ;;  %s1955_s29 = sphi %s2029_s29, %s2403_s29   ;;  %s1951_s28 = sphi %s2027_s28, %s2408_s28   ;;  %s1947_s27 = sphi %s2025_s27, %s2407_s27  }
  0x11   : > { %2388 = sst [smem:[#allocation18_spill]] %s1971_s11  ;;  %s40_s14 = sadd.s32 1, %s1971_s11 }
  0x12   : > { %p38_p0 = scmp.ge.s32.totalorder %s37_s13, 3  ;;  %s99_s15 = sadd.s32 1, %s1955_s29 }
  0x13   : > { %p106_p1 = scmp.ne.s32.totalorder %s1955_s29, %s1951_s28  ;;  %p107_p2 = scmp.eq.s32.totalorder %s1975_s12, 0 }
  0x14   : > { %s2412_s13 = smov (%p38_p0, %s37_s13), 0  ;;  %s2414_s14 = smov (!%p38_p0, %s40_s14), %s1971_s11 }
  0x15   : > { %2389 = sst [smem:[#allocation19_spill]] %s2412_s13  ;;  %s96_s16 = ssub.s32 %s1967_s10, %s2412_s13 }
  0x16   : > { %p108_p3 = por %p107_p2, %p106_p1  ;;  %p42_p4 = scmp.ge.s32.totalorder %s2414_s14, 2 }
  0x17   : > { %p97_p5 = scmp.eq.s32.totalorder %s96_s16, 0  ;;  %p1645_p6 = scmp.lt.s32.totalorder %s1975_s12, 6 }
  0x18   : > { %s2416_s14 = smov (%p42_p4, %s2414_s14), 0  ;;  %s2083_s18 = sand.u32 1, %s1955_s29  }
  0x19   : > { %2390 = sst [smem:[#allocation20_spill]] %s2416_s14  ;;  %s334_s19 = sand.u32 1, %s1975_s12  }
  0x1a   : > { %s2079_s17 = scalar_select %p97_p5, %s1955_s29, %s99_s15  }
  0x1b   : > { %p2086_p7 = pnand %p1645_p6, %p108_p3  ;;  %s1403_s21 = sshll.u32 %s2083_s18, 4 }
  0x1c   : > { %2391 = sst [smem:[#allocation21_spill]] %s2079_s17  ;;  %s1571_s22 = sshll.u32 %s1967_s10, 4 }
  0x1d   : > { %s2393_s3 = sld [smem:[#allocation23_spill]]  ;;  %s338_s26 = scalar_lea.vmem [#allocation5], %s1403_s21 }
  0x1e   : > { %s346_s15 = sshll.u32 %s338_s26, 4  ;;  %s2095_s14 = scalar_lea.sflag [#allocation6], %s334_s19  ;;  %s347_s15 = int_to_ptr.vmem [resolvable:$true] %s346_s15 }
  0x1f   : > { %s1977_s13 = smov 128   ;;  %s1978_s11 = smov 8  }
  0x20   : > { %s1406_s21 = sshll.u32 %s2083_s18, 7  ;;  %s2394_s5 = sld [smem:[#allocation24_spill]] }
  0x21   : > { %s2108_s29 = scalar_lea.sflag [#allocation9], %s334_s19  ;;  %p112_p8 = scmp.ne.s32.totalorder %s1951_s28, %s1947_s27 }
  0x22   : > { %p1400_p10 = scmp.ge.s32.totalorder %s1975_s12, 1  ;;  %p274_p11 = scmp.lt.s32.totalorder %s1975_s12, 7 }
  0x23   : > { %s343_s25 = scalar_lea.hbm %s2393_s3, %s1571_s22  ;;  %s1572_s22 = sshll.u32 %s1967_s10, 7 }
  0x24   : > { %s344_s16 = sshll.u32 %s343_s25, 4  ;;  %s377_s3 = scalar_lea.vmem [#allocation8], %s1406_s21  ;;  %s345_s16 = int_to_ptr.hbm [resolvable:$true] %s344_s16 }
  0x25   : > { %1634 = dma.hbm_to_vmem [thread:$0]  (!%p2086_p7), %s345_s16, 256, %s347_s15, %s2095_s14, %s1977_s13, %s1977_s13, %s1978_s11  }
  0x26   : > { %s382_s25 = scalar_lea.hbm %s2394_s5, %s1572_s22  ;;  %s385_s17 = sshll.u32 %s377_s3, 4  ;;  %s386_s17 = int_to_ptr.vmem [resolvable:$true] %s385_s17 }
  0x27   : > { %s383_s26 = sshll.u32 %s382_s25, 4  ;;  %s2381_s15 = sadd.s32 4294967295, %s1975_s12   ;;  %s384_s26 = int_to_ptr.hbm [resolvable:$true] %s383_s26 }
  0x28   : > { %1640 = dma.hbm_to_vmem [thread:$0]  (!%p2086_p7), %s384_s26, 2048, %s386_s17, %s2108_s29, %s1977_s13, %s1977_s13, %s1978_s11  }
  0x29   : > { %p2121_p9 = scmp.eq.s32.totalorder %s2381_s15, 0  ;;  %s2397_s7 = sld [smem:[#allocation25_spill]] }
  0x2a   : > { %p2136_p13 = pnand %p1400_p10, %p274_p11  ;;  %s1979_s22 = smov [#allocation11]  }
  0x2b   : > { %p2129_p12 = por %p2121_p9, %p112_p8  ;;  %s287_s23 = sshll.u32 %s1979_s22, 4  ;;  %s288_s23 = int_to_ptr.vmem [resolvable:$true] %s287_s23 }
  0x2c   : > { %p1624_p0 = pneg %p2136_p13  ;;  %s2399_s2 = sld [smem:[#allocation22_spill]] }
  0x2d   : > { %s320_s21 = scalar_lea.vmem [#allocation3], %s2083_s18  ;;  %s318_s22 = scalar_lea.sflag [#allocation4], %s2083_s18 }
  0x2e   : > { %p1625_p1 = pnand %p1624_p0, %p2121_p9  ;;  %s327_s15 = sshll.u32 %s320_s21, 4  ;;  %s328_s15 = int_to_ptr.vmem [resolvable:$true] %s327_s15 }
  0x2f   : > { %s285_s17 = sshll.u32 %s2397_s7, 4  ;;  %s362_s24 = scalar_lea.hbm %s2373_s4, %s1967_s10  ;;  %s286_s17 = int_to_ptr.hbm [resolvable:$true] %s285_s17 }
  0x30   : > { %1627 = dma.hbm_to_vmem [thread:$0]  (!%p1625_p1), %s286_s17, 2304, %s288_s23, [#allocation12], %s1977_s13, %s1977_s13, %s1978_s11  }
  0x31   : > { %s359_s25 = scalar_lea.vmem [#allocation7], %s2083_s18  ;;  %s1409_s21 = sshll.u32 %s2083_s18, 1 }
  0x32   : > { %s323_s26 = scalar_lea.hbm %s2399_s2, %s1967_s10  ;;  %s364_s2 = sshll.u32 %s362_s24, 4  ;;  %s365_s2 = int_to_ptr.hbm [resolvable:$true] %s364_s2 }
  0x33   : > { %s325_s19 = sshll.u32 %s323_s26, 4  ;;  %s366_s26 = sshll.u32 %s359_s25, 4  ;;  %s326_s19 = int_to_ptr.hbm [resolvable:$true] %s325_s19  ;;  %s367_s26 = int_to_ptr.vmem [resolvable:$true] %s366_s26 }
  0x34   : > { %1631 = dma.hbm_to_vmem [thread:$0]  (!%p2086_p7), %s326_s19, 16, %s328_s15, %s318_s22  }
  0x35   : > { %1637 = dma.hbm_to_vmem [thread:$0]  (!%p2086_p7), %s365_s2, 16, %s367_s26, %s2095_s14  }
  0x36   : > { %s1410_s8 = sshll.u32 %s1967_s10, 1  ;;  %s399_s15 = scalar_lea.vmem [#allocation10], %s1409_s21 }
  0x37   : > { %s403_s17 = scalar_lea.hbm %s2375_s6, %s1410_s8  ;;  %s407_s23 = sshll.u32 %s399_s15, 4  ;;  %s408_s23 = int_to_ptr.vmem [resolvable:$true] %s407_s23 }
  0x38   : > { %s405_s19 = sshll.u32 %s403_s17, 4  ;;  %416 = sbr.rel (%p2136_p13) target bundleno = 611 (0x263), region = 52  ;;  %s406_s19 = int_to_ptr.hbm [resolvable:$true] %s405_s19 }
  0x39   : > { %1643 = dma.hbm_to_vmem [thread:$0]  (!%p2086_p7), %s406_s19, 32, %s408_s23, %s2108_s29  }
  0x3a   : > { %s2174_s5 = sand.u32 (!%p2136_p13), 1, %s1951_s28  }
  0x3b   : > { %s419_s2 = scalar_lea.sflag (!%p2136_p13), [#allocation4], %s2174_s5  ;;  %s421_s7 = scalar_lea.vmem (!%p2136_p13), [#allocation3], %s2174_s5 }
  0x3d   : > { %1930 = dma.done.wait (%p2129_p12), %s419_s2, 16  }
  0x3e   : > { %1932 = vsyncadd (%p2129_p12), %s419_s2, 4294967280  ;;  %s2400_s8 = sadd.s32 4294967295, %s1975_s12   ;;  %s1412_s14 = sshll.u32 %s2174_s5, 4 }
  0x3f   : > { %s427_s29 = sand.u32 1, %s2400_s8   ;;  %s2185_s20 = scalar_lea.vmem [#allocation5], %s1412_s14 }
  0x40   : > { %s428_s18 = scalar_lea.sflag [#allocation6], %s427_s29 }
  0x41   : > { %1934 = dma.done.wait (%p2129_p12), %s428_s18, 272  }
  0x42   : > { %1936 = vsyncadd (%p2129_p12), %s428_s18, 4294967024  ;;  %s1413_s27 = sshll.u32 %s2174_s5, 7  ;;  %s440_s22 = scalar_lea.vmem [#allocation7], %s2174_s5 }
  0x43   : > { %s447_s24 = scalar_lea.sflag [#allocation9], %s427_s29  ;;  %s2193_s25 = scalar_lea.vmem [#allocation8], %s1413_s27 }
  0x44   : > { %1938 = dma.done.wait (%p2129_p12), %s447_s24, 2080  }
  0x45   : > { %1940 = vsyncadd (%p2129_p12), %s447_s24, 4294965216  ;;  %s1414_s26 = sshll.u32 %s2174_s5, 1 }
  0x46   : > { %s2200_s21 = scalar_lea.vmem [#allocation10], %s1414_s26 }
  0x47   : > { %1942 = dma.done.wait (%p2121_p9), [#allocation12], 2304  }
  0x48   : > { %1944 = vsyncadd (%p2121_p9), [#allocation12], 4294964992  ;;  %p527_p2 = scmp.lt.s32.totalorder %s1963_s9, 1  ;;  %p532_p3 = scmp.lt.s32.totalorder %s1959_s30, 2 }
  0x49   : > { %s2401_s14 = sld [smem:[#allocation26_spill]]  ;;  %p1422_p4 = scmp.ne.s32.totalorder %s1959_s30, 0 }
  0x4a   : > { %s2418_s9 = smov (!%p527_p2, %s1963_s9), 1 }
  0x4b   : > { %s533_s11 = scalar_select %p532_p3, %s1959_s30, 2 }
  0x4c   : > { %s1573_s3 = sshll.u32 %s2418_s9, 5  ;;  %545 = sbr.rel (%p1422_p4) target bundleno = 86 (0x56), region = 80 }
  0x4d   : > { %s531_s15 = scalar_lea.vmem %s2369_s0, %s1573_s3  ;;  %s1574_s23 = sshll.u32 %s533_s11, 7 }
  0x4e   : > { %s2216_s8 = scalar_lea.vmem %s2370_s1, %s1574_s23 }
  0x4f   : > { %s2221_s18 = scalar_lea.vmem %s2401_s14, %s1573_s3 }
  0x51   : > { %v546_v0 = vld [vmem:[%s531_s15] sm:$0xff]  ;;  %v547_v1 = vld [vmem:[%s531_s15 + $0x8] sm:$0xff]  ;;  %v548_v2 = vld [vmem:[%s531_s15 + $0x10] sm:$0xff] }
  0x52   : > { %550 = vst [vmem:[#allocation2 + $0x10] sm:$0xff] %v546_v0  ;;  %v549_v3 = vld [vmem:[%s531_s15 + $0x18] sm:$0xff] }
  0x53   : > { %551 = vst [vmem:[#allocation2] sm:$0xff] %v547_v1 }
  0x54   : > { %552 = vst [vmem:[#allocation2 + $0x18] sm:$0xff] %v548_v2 }
  0x55   : > { %553 = vst [vmem:[#allocation2 + $0x8] sm:$0xff] %v549_v3 }
  0x56 PF: > { %v1583_v4 = vld [vmem:[%s2216_s8 + $0x38] sm:$0xff]  ;;  %v1582_v6 = vld [vmem:[%s2216_s8 + $0x30] sm:$0xff]  ;;  %v1581_v8 = vld [vmem:[%s2216_s8 + $0x28] sm:$0xff]  ;;  %vm727_vm0 = vcmask 130048  }
  0x57   : > { %v1591_v5 = vld [vmem:[%s2216_s8 + $0x78] sm:$0xff]  ;;  %692 = vmatpush.bf16.msra.mxu0 %v1583_v4  ;;  %v1590_v7 = vld [vmem:[%s2216_s8 + $0x70] sm:$0xff]  ;;  %v1589_v9 = vld [vmem:[%s2216_s8 + $0x68] sm:$0xff] }
  0x58   : > { %706 = vmatpush.bf16.msra.mxu1 %v1591_v5  ;;  %v1580_v10 = vld [vmem:[%s2216_s8 + $0x20] sm:$0xff]  ;;  %v1579_v12 = vld [vmem:[%s2216_s8 + $0x18] sm:$0xff]  ;;  %v1578_v14 = vld [vmem:[%s2216_s8 + $0x10] sm:$0xff] }
  0x59   : > { %v1588_v11 = vld [vmem:[%s2216_s8 + $0x60] sm:$0xff]  ;;  %v1587_v13 = vld [vmem:[%s2216_s8 + $0x58] sm:$0xff]  ;;  %v1586_v15 = vld [vmem:[%s2216_s8 + $0x50] sm:$0xff] }
  0x5a   : > { %v1577_v16 = vld [vmem:[%s2216_s8 + $0x8] sm:$0xff]  ;;  %v1576_v18 = vld [vmem:[%s2216_s8] sm:$0xff]  ;;  %v2240_v20 = vld [vmem:[#allocation2 + $0x10] sm:$0xff] }
  0x5b   : > { %693 = vmatpush.bf16.msra.mxu0 %v1582_v6  ;;  %v1585_v17 = vld [vmem:[%s2216_s8 + $0x48] sm:$0xff]  ;;  %v1584_v19 = vld [vmem:[%s2216_s8 + $0x40] sm:$0xff]  ;;  %v2242_v21 = vld [vmem:[#allocation2 + $0x18] sm:$0xff] }
  0x5c   : > { %707 = vmatpush.bf16.msra.mxu1 %v1590_v7  ;;  %v2244_v22 = vld [vmem:[#allocation2] sm:$0xff]  ;;  %v2246_v23 = vld [vmem:[#allocation2 + $0x8] sm:$0xff]  ;;  %v558_v24 = vpack.c.bf16 %v2242_v21, %v2240_v20  ;;  %v726_v40 = vld [vmem:[#allocation11 + $0x8] sm:$0xff] }
  0x5d   : > { %v559_v25 = vpack.c.bf16 %v2246_v23, %v2244_v22  ;;  %v1714_v28 = vld [vmem:[%s421_s7] ss:$0 sm:$0xff]  ;;  %v725_v37 = vld [vmem:[#allocation11] sm:$0xff]  ;;  %v840_v41 = vld [vmem:[#allocation11 + $0x30] sm:$0xff] }
  0x5e   : > { %v767_v38 = vld [vmem:[#allocation11 + $0x18] sm:$0xff]  ;;  %v951_v39 = vld [vmem:[#allocation11 + $0x60] sm:$0xff]  ;;  %v952_v42 = vld [vmem:[#allocation11 + $0x68] sm:$0xff] }
  0x5f   : > { %694 = vmatpush.bf16.msra.mxu0 %v1581_v8  ;;  %v766_v43 = vld [vmem:[#allocation11 + $0x10] sm:$0xff]  ;;  %v841_v44 = vld [vmem:[#allocation11 + $0x38] sm:$0xff]  ;;  %v803_v46 = vld [vmem:[#allocation11 + $0x20] sm:$0xff] }
  0x60   : > { %708 = vmatpush.bf16.msra.mxu1 %v1589_v9  ;;  %v988_v45 = vld [vmem:[#allocation11 + $0x70] sm:$0xff]  ;;  %v989_v48 = vld [vmem:[#allocation11 + $0x78] sm:$0xff]  ;;  %v804_v49 = vld [vmem:[#allocation11 + $0x28] sm:$0xff] }
  0x61   : > { %v914_v47 = vld [vmem:[#allocation11 + $0x50] sm:$0xff]  ;;  %v915_v50 = vld [vmem:[#allocation11 + $0x58] sm:$0xff]  ;;  %v877_v51 = vld [vmem:[#allocation11 + $0x40] sm:$0xff] }
  0x62   : > { %v878_v52 = vld [vmem:[#allocation11 + $0x48] sm:$0xff]  ;;  %v1025_v53 = vld [vmem:[#allocation11 + $0x80] sm:$0xff]  ;;  %v1607_v57 = vld [vmem:[%s2193_s25 + $0x74] sm:$0xf0] }
  0x63   : > { %695 = vmatpush.bf16.msra.mxu0 %v1580_v10  ;;  %v1026_v54 = vld [vmem:[#allocation11 + $0x88] sm:$0xff]  ;;  %v1606_v58 = vld [vmem:[%s2193_s25 + $0x74] sm:$0xf]  ;;  %v1565_v61 = vld [vmem:[%s2193_s25 + $0x78] sm:$0xf0] }
  0x64   : > { %709 = vmatpush.bf16.msra.mxu1 %v1588_v11  ;;  %v1563_v56 = vld [vmem:[%s2193_s25 + $0x70] sm:$0xf]  ;;  %v1568_v62 = vor.u32 %v1606_v58, %v1565_v61  ;;  %v1555_v63 = vld [vmem:[%s2193_s25 + $0x60] sm:$0xf]  ;;  %v1605_v0 = vld [vmem:[%s2193_s25 + $0x64] sm:$0xf0] }
  0x65   : > { %v1564_v60 = vor.u32 %v1607_v57, %v1563_v56  ;;  %v1556_v2 = vor.u32 %v1605_v0, %v1555_v63  ;;  %v1604_v3 = vld [vmem:[%s2193_s25 + $0x64] sm:$0xf]  ;;  %v1557_v4 = vld [vmem:[%s2193_s25 + $0x68] sm:$0xf0]  ;;  %v1547_v6 = vld [vmem:[%s2193_s25 + $0x50] sm:$0xf] }
  0x66   : > { %v1560_v5 = vor.u32 %v1604_v3, %v1557_v4  ;;  %v1603_v7 = vld [vmem:[%s2193_s25 + $0x54] sm:$0xf0]  ;;  %v1602_v10 = vld [vmem:[%s2193_s25 + $0x54] sm:$0xf]  ;;  %v1549_v11 = vld [vmem:[%s2193_s25 + $0x58] sm:$0xf0] }
  0x67   : > { %696 = vmatpush.bf16.msra.mxu0 %v1579_v12  ;;  %v1548_v9 = vor.u32 %v1603_v7, %v1547_v6  ;;  %v1552_v12 = vor.u32 %v1602_v10, %v1549_v11 }
  0x68   : > { %710 = vmatpush.bf16.msra.mxu1 %v1587_v13  ;;  %v1539_v13 = vld [vmem:[%s2193_s25 + $0x40] sm:$0xf] }
  0x6b   : > { %697 = vmatpush.bf16.msra.mxu0 %v1578_v14  ;;  %v1601_v14 = vld [vmem:[%s2193_s25 + $0x44] sm:$0xf0] }
  0x6c   : > { %711 = vmatpush.bf16.msra.mxu1 %v1586_v15  ;;  %v1600_v15 = vld [vmem:[%s2193_s25 + $0x44] sm:$0xf] }
  0x6f   : > { %698 = vmatpush.bf16.msra.mxu0 %v1577_v16 }
  0x70   : > { %712 = vmatpush.bf16.msra.mxu1 %v1585_v17  ;;  %v1540_v17 = vor.u32 %v1601_v14, %v1539_v13 }
  0x73   : > { %699 = vmatpush.bf16.msra.mxu0 %v1576_v18  ;;  %v1541_v18 = vld [vmem:[%s2193_s25 + $0x48] sm:$0xf0] }
  0x74   : > { %713 = vmatpush.bf16.msra.mxu1 %v1584_v19  ;;  %v1544_v19 = vor.u32 %v1600_v15, %v1541_v18 }
  0x76   : > { %700 = vmatmul.bf16.vlgmr.msra.gmra.mxu0 %v558_v24  ;;  %v1531_v24 = vld [vmem:[%s2193_s25 + $0x30] sm:$0xf] }
  0x77   : > { %714 = vmatmul.bf16.vlgmr.msra.gmra.mxu1 %v559_v25  ;;  %1178 = vmatpush.bf16.msrb.mxu0 %v1568_v62  ;;  %v1599_v25 = vld [vmem:[%s2193_s25 + $0x34] sm:$0xf0] }
  0x7b   : > { %1179 = vmatpush.bf16.msrb.mxu0 %v1560_v5 }
  0x7f   : > { %1180 = vmatpush.bf16.msrb.mxu0 %v1552_v12 }
  0x83   : > { %1181 = vmatpush.bf16.msrb.mxu0 %v1544_v19 }
  0xf3   : > { %v701_v26 = vpop.f32.mrf.mxu0 }
  0xf4   : > { %v715_v27 = vpop.f32.mrf.mxu1  ;;  %v702_v29 = vadd.f32 %v1714_v28, %v701_v26  ;;  %v1598_v26 = vld [vmem:[%s2193_s25 + $0x34] sm:$0xf] }
  0xf6   : > { %v716_v33 = vadd.f32 %v715_v27, %v702_v29  ;;  %v1533_v29 = vld [vmem:[%s2193_s25 + $0x38] sm:$0xf0] }
  0xf8   : > { %v720_v36 = vmax.f32 %v716_v33, 0.0  ;;  %v1596_v33 = vld [vmem:[%s2193_s25 + $0x24] sm:$0xf] }
  0xfb   : > { %v703_v30 = vpop.f32.mrf.mxu0 }
  0xfc   : > { %v704_v31 = vadd.f32 %v1714_v28, %v703_v30  ;;  %v717_v32 = vpop.f32.mrf.mxu1  ;;  %v1532_v28 = vor.u32 %v1599_v25, %v1531_v24  ;;  %v1536_v30 = vor.u32 %v1598_v26, %v1533_v29 }
  0xfe   : > { %v718_v34 = vadd.f32 %v717_v32, %v704_v31  ;;  %1182 = vmatpush.bf16.msrb.mxu0 %v1536_v30  ;;  %v1523_v31 = vld [vmem:[%s2193_s25 + $0x20] sm:$0xf]  ;;  %v1597_v32 = vld [vmem:[%s2193_s25 + $0x24] sm:$0xf0] }
 0x100   : > { %v721_v35 = vmax.f32 %v718_v34, 0.0 }
 0x102   : > { %748 = vmatpush.msra.mxu2 %v721_v35  ;;  %1608 = vmatpush.msra.mxu3 %v721_v35 }
 0x103   : > { %973 = vmatpush.msrb.mxu1 %v721_v35 }
 0x104   : > { %749 = vmatpush.msra.mxu2 %v720_v36  ;;  %1609 = vmatpush.msra.mxu3 %v720_v36 }
 0x105   : > { %974 = vmatpush.msrb.mxu1 %v720_v36  ;;  %1487 = vmatmul.msk.f32.vlgmr.msra.gmra.mxu2 %vm727_vm0, %v725_v37 }
 0x106   : > { %788 = vmatpush.msrb.mxu2 %v721_v35  ;;  %862 = vmatpush.msrb.mxu3 %v721_v35 }
 0x107   : > { %1010 = vmatpush.msra.mxu1 %v721_v35  ;;  %1490 = vmatmul.msk.f32.vlgmr.msra.gmra.mxu3 %vm727_vm0, %v767_v38  ;;  %v2309_v38 = vld [vmem:[%s2185_s20] sm:$0xff] }
 0x108   : > { %789 = vmatpush.msrb.mxu2 %v720_v36  ;;  %863 = vmatpush.msrb.mxu3 %v720_v36  ;;  %v834_v61 = vperm.slane %v2309_v38, 2  ;;  %v871_v5 = vperm.slane %v2309_v38, 3  ;;  %v982_v29 = vperm.slane %v2309_v38, 6 }
 0x109   : > { %1011 = vmatpush.msra.mxu1 %v720_v36 }
 0x10a   : > { %825 = vmatpush.msra.mxu2 %v721_v35  ;;  %936 = vmatpush.msra.mxu3 %v721_v35 }
 0x10b   : > { %1499 = vmatmul.msk.f32.vlgmr.msrb.gmra.mxu1 %vm727_vm0, %v951_v39 }
 0x10c   : > { %826 = vmatpush.msra.mxu2 %v720_v36  ;;  %937 = vmatpush.msra.mxu3 %v720_v36 }
 0x10d   : > { %1488 = vmatmul.msk.f32.gmra.mxu2 %vm727_vm0, %v726_v40  ;;  %v1515_v40 = vld [vmem:[%s2193_s25 + $0x10] sm:$0xf] }
 0x10f   : > { %1493 = vmatmul.msk.f32.vlgmr.msrb.gmra.mxu3 %vm727_vm0, %v840_v41  ;;  %v1595_v41 = vld [vmem:[%s2193_s25 + $0x14] sm:$0xf0] }
 0x110   : > { %1164 = vmatpush.bf16.msrb.mxu3 %v1564_v60  ;;  %v1715_v60 = vld [vmem:[%s440_s22] ss:$0 sm:$0xff] }
 0x113   : > { %1500 = vmatmul.msk.f32.gmra.mxu1 %vm727_vm0, %v952_v42  ;;  %v1594_v42 = vld [vmem:[%s2193_s25 + $0x14] sm:$0xf] }
 0x114   : > { %1165 = vmatpush.bf16.msrb.mxu3 %v1556_v2 }
 0x115   : > { %1489 = vmatmul.msk.f32.vlgmr.msrb.gmra.mxu2 %vm727_vm0, %v766_v43 }
 0x116   : > { %899 = vmatpush.msrb.mxu2 %v721_v35 }
 0x117   : > { %1494 = vmatmul.msk.f32.gmra.mxu3 %vm727_vm0, %v841_v44  ;;  %v1516_v44 = vor.u32 %v1595_v41, %v1515_v40 }
 0x118   : > { %900 = vmatpush.msrb.mxu2 %v720_v36  ;;  %1166 = vmatpush.bf16.msrb.mxu3 %v1548_v9 }
 0x11b   : > { %1501 = vmatmul.msk.f32.vlgmr.msra.gmra.mxu1 %vm727_vm0, %v988_v45  ;;  %v1517_v45 = vld [vmem:[%s2193_s25 + $0x18] sm:$0xf0] }
 0x11c   : > { %1167 = vmatpush.bf16.msrb.mxu3 %v1540_v17 }
 0x11d   : > { %1491 = vmatmul.msk.f32.vlgmr.msra.gmra.mxu2 %vm727_vm0, %v803_v46  ;;  %v1520_v46 = vor.u32 %v1594_v42, %v1517_v45 }
 0x11e   : > { %1047 = vmatpush.msra.mxu2 %v721_v35  ;;  %v1524_v35 = vor.u32 %v1597_v32, %v1523_v31  ;;  %v1019_v31 = vperm.slane %v2309_v38, 7 }
 0x11f   : > { %1497 = vmatmul.msk.f32.vlgmr.msra.gmra.mxu3 %vm727_vm0, %v914_v47  ;;  %v757_v47 = vperm.slane %v2309_v38, 0 }
 0x120   : > { %1048 = vmatpush.msra.mxu2 %v720_v36  ;;  %1168 = vmatpush.bf16.msrb.mxu3 %v1532_v28  ;;  %v1525_v36 = vld [vmem:[%s2193_s25 + $0x28] sm:$0xf0] }
 0x121   : > { %v1528_v37 = vor.u32 %v1596_v33, %v1525_v36 }
 0x123   : > { %1502 = vmatmul.msk.f32.gmra.mxu1 %vm727_vm0, %v989_v48  ;;  %1183 = vmatpush.bf16.msrb.mxu0 %v1528_v37  ;;  %v1507_v48 = vld [vmem:[%s2193_s25] sm:$0xf]  ;;  %v1716_v37 = vld [vmem:[%s2185_s20 + $0x8] ss:$0 sm:$0xff] }
 0x124   : > { %1169 = vmatpush.bf16.msrb.mxu3 %v1524_v35 }
 0x125   : > { %1492 = vmatmul.msk.f32.gmra.mxu2 %vm727_vm0, %v804_v49  ;;  %v1593_v49 = vld [vmem:[%s2193_s25 + $0x4] sm:$0xf0] }
 0x127   : > { %1498 = vmatmul.msk.f32.gmra.mxu3 %vm727_vm0, %v915_v50  ;;  %1184 = vmatpush.bf16.msrb.mxu0 %v1520_v46  ;;  %v1592_v50 = vld [vmem:[%s2193_s25 + $0x4] sm:$0xf] }
 0x128   : > { %1170 = vmatpush.bf16.msrb.mxu3 %v1516_v44 }
 0x12d   : > { %1495 = vmatmul.msk.f32.vlgmr.msrb.gmra.mxu2 %vm727_vm0, %v877_v51  ;;  %v1508_v51 = vor.u32 %v1593_v49, %v1507_v48 }
 0x12f   : > { %1171 = vmatpush.bf16.msrb.mxu3 %v1508_v51 }
 0x135   : > { %1496 = vmatmul.msk.f32.gmra.mxu2 %vm727_vm0, %v878_v52  ;;  %v1509_v52 = vld [vmem:[%s2193_s25 + $0x8] sm:$0xf0] }
 0x136   : > { %v1512_v56 = vor.u32 %v1592_v50, %v1509_v52  ;;  %v1078_v50 = vld [vmem:[%s2200_s21] sm:$0x3] }
 0x138   : > { %1185 = vmatpush.bf16.msrb.mxu0 %v1512_v56 }
 0x13d   : > { %1503 = vmatmul.msk.f32.vlgmr.msra.gmra.mxu2 %vm727_vm0, %v1025_v53 }
 0x145   : > { %1504 = vmatmul.msk.f32.gmra.mxu2 %vm727_vm0, %v1026_v54  ;;  %v797_v54 = vperm.slane %v2309_v38, 1 }
 0x188   : > { %v2272_v55 = vpop.f32.mrf.mxu2  ;;  %v2305_v34 = vpop.f32.mrf.mxu1 }
 0x189   : > { %v758_v58 = vmul.f32 %v757_v47, %v2272_v55  ;;  %v908_v55 = vperm.slane %v2309_v38, 4  ;;  %v983_v35 = vmul.f32 %v982_v29, %v2305_v34  ;;  %v1081_v34 = vperm.slane %v1078_v50, 1 }
 0x18a   : > { %v2282_v1 = vpop.f32.mrf.mxu3 }
 0x18b   : > { %v799_v2 = vmul.f32 %v797_v54, %v2282_v1  ;;  %v945_v1 = vperm.slane %v2309_v38, 5 }
 0x190   : > { %v2277_v59 = vpop.f32.mrf.mxu2  ;;  %v979_v57 = vpop.f32.mrf.mxu1 }
 0x191   : > { %v759_v53 = vmul.f32 %v757_v47, %v2277_v59  ;;  %v763_v59 = vadd.f32 %v1715_v60, %v758_v58  ;;  %v984_v36 = vmul.f32 %v982_v29, %v979_v57 }
 0x192   : > { %v2295_v16 = vpop.f32.mrf.mxu3 }
 0x193   : > { %v764_v0 = vadd.f32 %v1715_v60, %v759_v53  ;;  %v872_v11 = vmul.f32 %v871_v5, %v2295_v16 }
 0x195   : > { %v801_v7 = vadd.f32 %v799_v2, %v764_v0 }
 0x198   : > { %v2288_v8 = vpop.f32.mrf.mxu2  ;;  %v1013_v14 = vpop.f32.mrf.mxu1 }
 0x199   : > { %v798_v3 = vmul.f32 %v797_v54, %v2288_v8  ;;  %v1020_v40 = vmul.f32 %v1019_v31, %v1013_v14  ;;  %v1080_v54 = vperm.slane %v1078_v50, 0 }
 0x19a   : > { %v868_v39 = vpop.f32.mrf.mxu3 }
 0x19b   : > { %v800_v9 = vadd.f32 %v798_v3, %v763_v59  ;;  %v873_v13 = vmul.f32 %v871_v5, %v868_v39 }
 0x1a0   : > { %v828_v27 = vpop.f32.mrf.mxu2  ;;  %v1016_v33 = vpop.f32.mrf.mxu1 }
 0x1a1   : > { %v835_v4 = vmul.f32 %v834_v61, %v828_v27  ;;  %v1021_v42 = vmul.f32 %v1019_v31, %v1016_v33 }
 0x1a2   : > { %v939_v63 = vpop.f32.mrf.mxu3 }
 0x1a3   : > { %v837_v10 = vadd.f32 %v835_v4, %v800_v9  ;;  %v946_v26 = vmul.f32 %v945_v1, %v939_v63 }
 0x1a5   : > { %v874_v19 = vadd.f32 %v872_v11, %v837_v10 }
 0x1a8   : > { %v831_v43 = vpop.f32.mrf.mxu2 }
 0x1a9   : > { %v836_v6 = vmul.f32 %v834_v61, %v831_v43 }
 0x1aa   : > { %v942_v18 = vpop.f32.mrf.mxu3 }
 0x1ab   : > { %v838_v12 = vadd.f32 %v836_v6, %v801_v7  ;;  %v947_v28 = vmul.f32 %v945_v1, %v942_v18 }
 0x1ad   : > { %v875_v24 = vadd.f32 %v873_v13, %v838_v12 }
 0x1b0   : > { %v902_v62 = vpop.f32.mrf.mxu2 }
 0x1b1   : > { %v909_v17 = vmul.f32 %v908_v55, %v902_v62 }
 0x1b3   : > { %v911_v25 = vadd.f32 %v909_v17, %v874_v19 }
 0x1b5   : > { %v948_v16 = vadd.f32 %v946_v26, %v911_v25 }
 0x1b7   : > { %v985_v39 = vadd.f32 %v983_v35, %v948_v16 }
 0x1b8   : > { %v905_v15 = vpop.f32.mrf.mxu2 }
 0x1b9   : > { %v910_v8 = vmul.f32 %v908_v55, %v905_v15  ;;  %v1022_v45 = vadd.f32 %v1020_v40, %v985_v39 }
 0x1bb   : > { %v912_v27 = vadd.f32 %v910_v8, %v875_v24 }
 0x1bd   : > { %v949_v32 = vadd.f32 %v947_v28, %v912_v27 }
 0x1bf   : > { %v986_v41 = vadd.f32 %v984_v36, %v949_v32 }
 0x1c0   : > { %v1050_v30 = vpop.f32.mrf.mxu2 }
 0x1c1   : > { %v1057_v43 = vmul.f32 %v1716_v37, %v1050_v30  ;;  %v1023_v46 = vadd.f32 %v1021_v42, %v986_v41 }
 0x1c3   : > { %v1059_v48 = vadd.f32 %v1057_v43, %v1022_v45 }
 0x1c8   : > { %v1053_v44 = vpop.f32.mrf.mxu2 }
 0x1c9   : > { %v1058_v47 = vmul.f32 %v1716_v37, %v1053_v44 }
 0x1cb   : > { %v1060_v49 = vadd.f32 %v1058_v47, %v1023_v46 }
 0x1cd   : > { %v1061_v38 = vpack.c.bf16 %v1060_v49, %v1059_v48 }
 0x1cf   : > { %1172 = vmatmul.bf16.vlgmr.msrb.gmra.mxu3 %v1061_v38  ;;  %1186 = vmatmul.bf16.vlgmr.msrb.gmra.mxu0 %v1061_v38 }
 0x24c   : > { %v1187_v51 = vpop.f32.mrf.mxu0 }
 0x24d   : > { %v1188_v52 = vadd.f32 %v1187_v51, %v1081_v34 }
 0x24f   : > { %v1193_v53 = vadd.f32 %v1188_v52, %v2244_v22 }
 0x251   : > { %v1197_v56 = vmax.f32 %v1193_v53, 0.0 }
 0x252   : > { %v1173_v57 = vpop.f32.mrf.mxu3 }
 0x253   : > { %1201 = vst [vmem:[#allocation2] sm:$0xff] %v1197_v56  ;;  %v1174_v58 = vadd.f32 %v1173_v57, %v1080_v54 }
 0x254   : > { %1205 = vst [vmem:[%s2221_s18 + $0x8] sm:$0xff] %v1197_v56  ;;  %v1189_v60 = vpop.f32.mrf.mxu0 }
 0x255   : > { %v1192_v61 = vadd.f32 %v1174_v58, %v2240_v20  ;;  %v1190_v62 = vadd.f32 %v1189_v60, %v1081_v34 }
 0x257   : > { %v1196_v63 = vmax.f32 %v1192_v61, 0.0  ;;  %v1195_v0 = vadd.f32 %v1190_v62, %v2246_v23 }
 0x259   : > { %1200 = vst [vmem:[#allocation2 + $0x10] sm:$0xff] %v1196_v63  ;;  %v1199_v2 = vmax.f32 %v1195_v0, 0.0 }
 0x25a   : > { %1204 = vst [vmem:[%s2221_s18] sm:$0xff] %v1196_v63  ;;  %v1175_v3 = vpop.f32.mrf.mxu3 }
 0x25b   : > { %1203 = vst [vmem:[#allocation2 + $0x8] sm:$0xff] %v1199_v2  ;;  %v1176_v22 = vadd.f32 %v1175_v3, %v1080_v54 }
 0x25c   : > { %1207 = vst [vmem:[%s2221_s18 + $0x18] sm:$0xff] %v1199_v2 }
 0x25d   : > { %v1194_v59 = vadd.f32 %v1176_v22, %v2242_v21 }
 0x25f   : > { %v1198_v4 = vmax.f32 %v1194_v59, 0.0 }
 0x261   : > { %1202 = vst [vmem:[#allocation2 + $0x18] sm:$0xff] %v1198_v4 }
 0x262   : > { %1206 = vst [vmem:[%s2221_s18 + $0x10] sm:$0xff] %v1198_v4 }
 0x263 PF: > { %s28_s12 = sadd.s32 1, %s1975_s12   ;;  %s2402_s30 = sld [smem:[#allocation17_spill]] }
 0x264   : > { %p25_p5 = scmp.ge.s32.totalorder %s28_s12, 8   ;;  %s2403_s29 = sld [smem:[#allocation21_spill]] }
 0x265   : > { %s2404_s9 = sld [smem:[#allocation18_spill]]  ;;  %s2407_s27 = smov %s1951_s28 }
 0x266   : > { %s2405_s5 = sld [smem:[#allocation19_spill]] }
 0x267   : > { %s2406_s11 = sld [smem:[#allocation20_spill]] }
 0x268   :  { %27 = sbr.rel (!%p25_p5) target bundleno = 16 (0x10), region = 162 }
 0x269   : > { %s2408_s28 = smov %s2402_s30  ;;  %s2409_s30 = smov %s1967_s10 }
 0x26c   : > { %s2410_s10 = smov %s2405_s5 }
 0x26d   :  { %1229 = vsyncpa [#allocation4], 1 }
 0x26e   :  { %1231 = vsyncpa [#allocation4 + $0x1], 1 }
 0x26f   :  { %1232 = vsyncpa [#allocation6], 1 }
 0x270   :  { %1234 = vsyncpa [#allocation6 + $0x1], 1 }
 0x271   :  { %1235 = vsyncpa [#allocation9], 1 }
 0x272   :  { %1237 = vsyncpa [#allocation9 + $0x1], 1 }
 0x273   :  { %1238 = vsyncpa [#allocation12], 1 }

// kernel: _lambda_.10
= control target key start
LH: loop header
LB: loop body
LE: loop exit
PB: predicated region body
PF: predicated region fallthrough
CT: control target
= control target key end

     0   :  { %14 = vsyncpa [#allocation3], 0  ;;  %s2187_s0 = inlined_call_operand.vmem [shape: f32[2,16,256], index: 0, kind: input, shape index: {}]   ;;  %s2188_s1 = inlined_call_operand.hbm [shape: bf16[256,128], index: 1, kind: input, shape index: {}]   ;;  %s2189_s2 = inlined_call_operand.hbm [shape: f32[1,128], index: 2, kind: input, shape index: {}]   ;;  %s2190_s3 = inlined_call_operand.hbm [shape: f32[9,128], index: 3, kind: input, shape index: {}]   ;;  %s2191_s4 = inlined_call_operand.hbm [shape: f32[1,128], index: 4, kind: input, shape index: {}]   ;;  %s2192_s5 = inlined_call_operand.hbm [shape: bf16[128,512], index: 5, kind: input, shape index: {}]   ;;  %s2193_s6 = inlined_call_operand.hbm [shape: f32[1,512], index: 6, kind: input, shape index: {}]   ;;  %s2194_s7 = inlined_call_operand.hbm [shape: f32[9,4,16], index: 7, kind: input, shape index: {}]   ;;  %s2195_s8 = inlined_call_operand.hbm [shape: f32[4,16], index: 8, kind: input, shape index: {}]   ;;  %s2196_s9 = inlined_call_operand.vmem [shape: f32[2,4,512], index: 9, kind: output, shape index: {}]  }
   0x1   :  { %15 = vsyncpa [#allocation5], 0 }
   0x2   :  { %16 = vsyncpa [#allocation8], 0 }
   0x3   :  { %17 = vsyncpa [#allocation11], 0 }
   0x4   :  { %18 = vsyncpa [#allocation14], 0  ;;  %s2048_s30 = smov 0  }
   0x5 LB: > { %s275_s12 = sshll.u32 %s2189_s2, 4  ;;  %s2057_s13 = sadd.s32 4294967295, %s1982_s30   ;;  %s1982_s30 = sphi %s2048_s30, %s24_s30   ;;  %s276_s12 = int_to_ptr.hbm [resolvable:$true] %s275_s12 }
   0x6   : > { %p1340_p0 = scmp.ge.s32.totalorder %s1982_s30, 1  ;;  %p249_p1 = scmp.lt.s32.totalorder %s1982_s30, 3 }
   0x7   : > { %p1675_p2 = scmp.eq.s32.totalorder %s2057_s13, 0  ;;  %s1984_s15 = smov [#allocation4]  }
   0x8   : > { %p2062_p3 = pnand %p1340_p0, %p249_p1  ;;  %s277_s16 = sshll.u32 %s1984_s15, 4  ;;  %s278_s16 = int_to_ptr.vmem [resolvable:$true] %s277_s16 }
   0x9   : > { %s301_s19 = sshll.u32 %s2191_s4, 4  ;;  %s327_s22 = sshll.u32 %s2193_s6, 4  ;;  %s302_s19 = int_to_ptr.hbm [resolvable:$true] %s301_s19  ;;  %s328_s22 = int_to_ptr.hbm [resolvable:$true] %s327_s22 }
   0xa   : > { %p1650_p4 = pneg %p2062_p3  ;;  %s1985_s24 = smov [#allocation7]  }
   0xb   : > { %s303_s25 = sshll.u32 %s1985_s24, 4  ;;  %s1986_s26 = smov [#allocation10]   ;;  %s304_s25 = int_to_ptr.vmem [resolvable:$true] %s303_s25 }
   0xc   : > { %p2076_p5 = pnand %p1675_p2, %p1650_p4  ;;  %s329_s27 = sshll.u32 %s1986_s26, 4  ;;  %s330_s27 = int_to_ptr.vmem [resolvable:$true] %s329_s27 }
   0xd   : > { %s260_s10 = sshll.u32 %s2188_s1, 4  ;;  %s1987_s11 = smov [#allocation2]   ;;  %s261_s10 = int_to_ptr.hbm [resolvable:$true] %s260_s10 }
   0xe   : > { %1656 = dma.hbm_to_vmem [thread:$0]  (!%p2076_p5), %s276_s12, 16, %s278_s16, [#allocation5]  }
   0xf   : > { %1662 = dma.hbm_to_vmem [thread:$0]  (!%p2076_p5), %s302_s19, 16, %s304_s25, [#allocation8]  }
  0x10   : > { %1668 = dma.hbm_to_vmem [thread:$0]  (!%p2076_p5), %s328_s22, 64, %s330_s27, [#allocation11]  }
  0x11   : > { %s262_s15 = sshll.u32 %s1987_s11, 4  ;;  %s286_s12 = sshll.u32 %s2190_s3, 4  ;;  %s263_s15 = int_to_ptr.vmem [resolvable:$true] %s262_s15  ;;  %s287_s12 = int_to_ptr.hbm [resolvable:$true] %s286_s12 }
  0x12   : > { %s1988_s16 = smov 64   ;;  %s1989_s19 = smov 4  }
  0x13   : > { %1653 = dma.hbm_to_vmem [thread:$0]  (!%p2076_p5), %s261_s10, 2048, %s263_s15, [#allocation3], %s1988_s16, %s1988_s16, %s1989_s19  }
  0x14   : > { %s1990_s20 = smov [#allocation6]   ;;  %s1991_s24 = smov 128  }
  0x15   : > { %s288_s21 = sshll.u32 %s1990_s20, 4  ;;  %s1992_s25 = smov 8   ;;  %s289_s21 = int_to_ptr.vmem [resolvable:$true] %s288_s21 }
  0x16   : > { %1659 = dma.hbm_to_vmem [thread:$0]  (!%p2076_p5), %s287_s12, 256, %s289_s21, [#allocation5], %s1991_s24, %s1991_s24, %s1992_s25  }
  0x17   : > { %s312_s27 = sshll.u32 %s2192_s5, 4  ;;  %s1993_s28 = smov [#allocation9]   ;;  %s313_s27 = int_to_ptr.hbm [resolvable:$true] %s312_s27 }
  0x18   : > { %s314_s29 = sshll.u32 %s1993_s28, 4  ;;  %s338_s15 = sshll.u32 %s2194_s7, 4  ;;  %s315_s29 = int_to_ptr.vmem [resolvable:$true] %s314_s29  ;;  %s339_s15 = int_to_ptr.hbm [resolvable:$true] %s338_s15 }
  0x19   : > { %s1994_s17 = smov 256   ;;  %s1995_s18 = smov 16  }
  0x1a   : > { %1665 = dma.hbm_to_vmem [thread:$0]  (!%p2076_p5), %s313_s27, 4096, %s315_s29, [#allocation8], %s1994_s17, %s1994_s17, %s1995_s18  }
  0x1b   : > { %s1996_s20 = smov [#allocation12]   ;;  %s353_s25 = sshll.u32 %s2195_s8, 4  ;;  %s354_s25 = int_to_ptr.hbm [resolvable:$true] %s353_s25 }
  0x1c   : > { %s340_s12 = sshll.u32 %s1996_s20, 4  ;;  %s1997_s22 = smov [#allocation13]   ;;  %s341_s12 = int_to_ptr.vmem [resolvable:$true] %s340_s12 }
  0x1d   : > { %1671 = dma.hbm_to_vmem [thread:$0]  (!%p2076_p5), %s339_s15, 576, %s341_s12, [#allocation11], %s1988_s16, %s1988_s16, %s1989_s19  }
  0x1e   : > { %s355_s26 = sshll.u32 %s1997_s22, 4  ;;  %376 = sbr.rel (%p2062_p3) target bundleno = 543 (0x21f), region = 56  ;;  %s356_s26 = int_to_ptr.vmem [resolvable:$true] %s355_s26 }
  0x1f   : > { %1674 = dma.hbm_to_vmem [thread:$0]  (!%p2076_p5), %s354_s25, 64, %s356_s26, [#allocation14]  }
  0x23   : > { %1961 = dma.done.wait (%p1675_p2), [#allocation3], 2048  }
  0x24   : > { %1963 = vsyncadd (%p1675_p2), [#allocation3], 4294965248 }
  0x25   : > { %1965 = dma.done.wait (%p1675_p2), [#allocation5], 272  }
  0x26   : > { %1967 = vsyncadd (%p1675_p2), [#allocation5], 4294967024 }
  0x27   : > { %1969 = dma.done.wait (%p1675_p2), [#allocation8], 4112  }
  0x28   : > { %1971 = vsyncadd (%p1675_p2), [#allocation8], 4294963184 }
  0x29   : > { %1973 = dma.done.wait (%p1675_p2), [#allocation11], 640  }
  0x2a   : > { %1975 = vsyncadd (%p1675_p2), [#allocation11], 4294966656 }
  0x2b   : > { %1977 = dma.done.wait (%p1675_p2), [#allocation14], 64  }
  0x2c   : > { %1979 = vsyncadd (%p1675_p2), [#allocation14], 4294967232  ;;  %v1577_v0 = vld [vmem:[#allocation2 + $0x38] sm:$0xff]  ;;  %v1576_v2 = vld [vmem:[#allocation2 + $0x30] sm:$0xff]  ;;  %p448_p6 = scmp.lt.s32.totalorder %s2057_s13, 1  ;;  %vm630_vm0 = vcmask 130048  }
  0x2d   : > { %v1585_v1 = vld [vmem:[#allocation2 + $0x78] sm:$0xff]  ;;  %596 = vmatpush.bf16.msra.mxu0 %v1577_v0  ;;  %v1584_v3 = vld [vmem:[#allocation2 + $0x70] sm:$0xff]  ;;  %v1575_v4 = vld [vmem:[#allocation2 + $0x28] sm:$0xff]  ;;  %vm1197_vm1 = vcmask 1043456  }
  0x2e   : > { %610 = vmatpush.bf16.msra.mxu1 %v1585_v1  ;;  %v1583_v5 = vld [vmem:[#allocation2 + $0x68] sm:$0xff]  ;;  %v1574_v6 = vld [vmem:[#allocation2 + $0x20] sm:$0xff]  ;;  %v1573_v8 = vld [vmem:[#allocation2 + $0x18] sm:$0xff]  ;;  %s2200_s13 = smov (!%p448_p6, %s2057_s13), 1 }
  0x2f   : > { %v1582_v7 = vld [vmem:[#allocation2 + $0x60] sm:$0xff]  ;;  %v1581_v9 = vld [vmem:[#allocation2 + $0x58] sm:$0xff]  ;;  %v1572_v10 = vld [vmem:[#allocation2 + $0x10] sm:$0xff]  ;;  %s1568_s14 = sshll.u32 %s2200_s13, 5  ;;  %s1569_s27 = sshll.u32 %s2200_s13, 4 }
  0x30   : > { %v1580_v11 = vld [vmem:[#allocation2 + $0x50] sm:$0xff]  ;;  %v1571_v12 = vld [vmem:[#allocation2 + $0x8] sm:$0xff]  ;;  %s452_s19 = scalar_lea.vmem %s2187_s0, %s1568_s14  ;;  %v1570_v14 = vld [vmem:[#allocation2] sm:$0xff]  ;;  %s457_s10 = scalar_lea.vmem %s2196_s9, %s1569_s27 }
  0x31   : > { %597 = vmatpush.bf16.msra.mxu0 %v1576_v2  ;;  %v1579_v13 = vld [vmem:[#allocation2 + $0x48] sm:$0xff]  ;;  %v1578_v15 = vld [vmem:[#allocation2 + $0x40] sm:$0xff]  ;;  %v2143_v17 = vld [vmem:[%s452_s19 + $0x10] sm:$0xff] }
  0x32   : > { %611 = vmatpush.bf16.msra.mxu1 %v1584_v3  ;;  %v2141_v16 = vld [vmem:[%s452_s19] sm:$0xff]  ;;  %v2145_v18 = vld [vmem:[%s452_s19 + $0x8] sm:$0xff]  ;;  %v2147_v19 = vld [vmem:[%s452_s19 + $0x18] sm:$0xff] }
  0x33   : > { %v462_v20 = vpack.c.bf16 %v2143_v17, %v2141_v16  ;;  %v463_v21 = vpack.c.bf16 %v2147_v19, %v2145_v18  ;;  %v1713_v24 = vld [vmem:[#allocation4] ss:$0 sm:$0xff]  ;;  %v629_v33 = vld [vmem:[#allocation12] sm:$0xf]  ;;  %v661_v34 = vld [vmem:[#allocation12 + $0x4] sm:$0xf] }
  0x34   : > { %v689_v35 = vld [vmem:[#allocation12 + $0x8] sm:$0xf]  ;;  %v717_v36 = vld [vmem:[#allocation12 + $0xc] sm:$0xf]  ;;  %v745_v37 = vld [vmem:[#allocation12 + $0x10] sm:$0xf] }
  0x35   : > { %598 = vmatpush.bf16.msra.mxu0 %v1575_v4  ;;  %v773_v38 = vld [vmem:[#allocation12 + $0x14] sm:$0xf]  ;;  %v801_v39 = vld [vmem:[#allocation12 + $0x18] sm:$0xf]  ;;  %v829_v40 = vld [vmem:[#allocation12 + $0x1c] sm:$0xf] }
  0x36   : > { %612 = vmatpush.bf16.msra.mxu1 %v1583_v5  ;;  %v857_v41 = vld [vmem:[#allocation12 + $0x20] sm:$0xf]  ;;  %v1550_v42 = vld [vmem:[#allocation9 + $0xe0] sm:$0xf]  ;;  %v1616_v43 = vld [vmem:[#allocation9 + $0xec] sm:$0xf0] }
  0x37   : > { %v1614_v44 = vld [vmem:[#allocation9 + $0xe4] sm:$0xf]  ;;  %v1551_v45 = vor.u32 %v1616_v43, %v1550_v42  ;;  %v1552_v46 = vld [vmem:[#allocation9 + $0xf0] sm:$0xf0]  ;;  %v1558_v47 = vld [vmem:[#allocation9 + $0xe8] sm:$0xf] }
  0x38   : > { %v1617_v48 = vld [vmem:[#allocation9 + $0xf4] sm:$0xf0]  ;;  %v1555_v49 = vor.u32 %v1614_v44, %v1552_v46  ;;  %v1615_v51 = vld [vmem:[#allocation9 + $0xec] sm:$0xf]  ;;  %v1560_v52 = vld [vmem:[#allocation9 + $0xf8] sm:$0xf0] }
  0x39   : > { %599 = vmatpush.bf16.msra.mxu0 %v1574_v6  ;;  %v1559_v50 = vor.u32 %v1617_v48, %v1558_v47  ;;  %v1563_v53 = vor.u32 %v1615_v51, %v1560_v52  ;;  %v1534_v54 = vld [vmem:[#allocation9 + $0xc0] sm:$0xf]  ;;  %v1612_v55 = vld [vmem:[#allocation9 + $0xcc] sm:$0xf0]  ;;  %v1610_v57 = vld [vmem:[#allocation9 + $0xc4] sm:$0xf] }
  0x3a   : > { %613 = vmatpush.bf16.msra.mxu1 %v1582_v7  ;;  %v1535_v56 = vor.u32 %v1612_v55, %v1534_v54  ;;  %v1536_v58 = vld [vmem:[#allocation9 + $0xd0] sm:$0xf0]  ;;  %v1542_v59 = vld [vmem:[#allocation9 + $0xc8] sm:$0xf]  ;;  %v1613_v61 = vld [vmem:[#allocation9 + $0xd4] sm:$0xf0] }
  0x3b   : > { %v1539_v60 = vor.u32 %v1610_v57, %v1536_v58  ;;  %v1611_v62 = vld [vmem:[#allocation9 + $0xcc] sm:$0xf]  ;;  %v1544_v63 = vld [vmem:[#allocation9 + $0xd8] sm:$0xf0]  ;;  %v1543_v0 = vor.u32 %v1613_v61, %v1542_v59  ;;  %v1518_v2 = vld [vmem:[#allocation9 + $0xa0] sm:$0xf] }
  0x3c   : > { %v1547_v1 = vor.u32 %v1611_v62, %v1544_v63  ;;  %v1608_v3 = vld [vmem:[#allocation9 + $0xac] sm:$0xf0]  ;;  %v1606_v4 = vld [vmem:[#allocation9 + $0xa4] sm:$0xf]  ;;  %v1520_v6 = vld [vmem:[#allocation9 + $0xb0] sm:$0xf0] }
  0x3d   : > { %600 = vmatpush.bf16.msra.mxu0 %v1573_v8  ;;  %v1519_v5 = vor.u32 %v1608_v3, %v1518_v2  ;;  %v1526_v7 = vld [vmem:[#allocation9 + $0xa8] sm:$0xf]  ;;  %v1609_v8 = vld [vmem:[#allocation9 + $0xb4] sm:$0xf0]  ;;  %v1470_v42 = vld [vmem:[#allocation9 + $0x40] sm:$0xf] }
  0x3e   : > { %614 = vmatpush.bf16.msra.mxu1 %v1581_v9  ;;  %v1523_v9 = vor.u32 %v1606_v4, %v1520_v6  ;;  %v1596_v43 = vld [vmem:[#allocation9 + $0x4c] sm:$0xf0]  ;;  %v1472_v46 = vld [vmem:[#allocation9 + $0x50] sm:$0xf0]  ;;  %v1478_v47 = vld [vmem:[#allocation9 + $0x48] sm:$0xf] }
  0x3f   : > { %v1471_v44 = vor.u32 %v1596_v43, %v1470_v42  ;;  %v1480_v51 = vld [vmem:[#allocation9 + $0x58] sm:$0xf0]  ;;  %v2162_v52 = vld [vmem:[#allocation6] sm:$0xff]  ;;  %v1454_v55 = vld [vmem:[#allocation9 + $0x20] sm:$0xf] }
  0x40   : > { %v1590_v57 = vld [vmem:[#allocation9 + $0x24] sm:$0xf]  ;;  %v1456_v59 = vld [vmem:[#allocation9 + $0x30] sm:$0xf0]  ;;  %v1593_v61 = vld [vmem:[#allocation9 + $0x34] sm:$0xf0] }
  0x41   : > { %601 = vmatpush.bf16.msra.mxu0 %v1572_v10  ;;  %v1527_v10 = vor.u32 %v1609_v8, %v1526_v7  ;;  %v1591_v2 = vld [vmem:[#allocation9 + $0x2c] sm:$0xf]  ;;  %v1464_v3 = vld [vmem:[#allocation9 + $0x38] sm:$0xf0]  ;;  %v654_v4 = vperm.slane %v2162_v52, 0  ;;  %v853_v42 = vperm.slane %v2162_v52, 7 }
  0x42   : > { %615 = vmatpush.bf16.msra.mxu1 %v1580_v11  ;;  %v1607_v11 = vld [vmem:[#allocation9 + $0xac] sm:$0xf]  ;;  %v1438_v6 = vld [vmem:[#allocation9] sm:$0xf]  ;;  %v1588_v7 = vld [vmem:[#allocation9 + $0xc] sm:$0xf0] }
  0x43   : > { %v1586_v8 = vld [vmem:[#allocation9 + $0x4] sm:$0xf] }
  0x45   : > { %602 = vmatpush.bf16.msra.mxu0 %v1571_v12  ;;  %v1528_v12 = vld [vmem:[#allocation9 + $0xb8] sm:$0xf0] }
  0x46   : > { %616 = vmatpush.bf16.msra.mxu1 %v1579_v13  ;;  %v1531_v13 = vor.u32 %v1607_v11, %v1528_v12  ;;  %v1446_v11 = vld [vmem:[#allocation9 + $0x8] sm:$0xf]  ;;  %v1589_v12 = vld [vmem:[#allocation9 + $0x14] sm:$0xf0] }
  0x49   : > { %603 = vmatpush.bf16.msra.mxu0 %v1570_v14  ;;  %v1502_v14 = vld [vmem:[#allocation9 + $0x80] sm:$0xf] }
  0x4a   : > { %617 = vmatpush.bf16.msra.mxu1 %v1578_v15  ;;  %v1604_v15 = vld [vmem:[#allocation9 + $0x8c] sm:$0xf0] }
  0x4c   : > { %604 = vmatmul.bf16.vlgmr.msra.gmra.mxu0 %v462_v20  ;;  %v1503_v20 = vor.u32 %v1604_v15, %v1502_v14  ;;  %v1447_v14 = vor.u32 %v1589_v12, %v1446_v11  ;;  %v1587_v15 = vld [vmem:[#allocation9 + $0xc] sm:$0xf] }
  0x4d   : > { %618 = vmatmul.bf16.vlgmr.msra.gmra.mxu1 %v463_v21  ;;  %1100 = vmatpush.bf16.msrb.mxu0 %v1555_v49  ;;  %v1602_v21 = vld [vmem:[#allocation9 + $0x84] sm:$0xf]  ;;  %v1597_v49 = vld [vmem:[#allocation9 + $0x54] sm:$0xf0] }
  0x4e   : > { %1113 = vmatpush.bf16.msrb.mxu1 %v1559_v50  ;;  %v1595_v50 = vld [vmem:[#allocation9 + $0x4c] sm:$0xf] }
  0x4f   : > { %v1483_v54 = vor.u32 %v1595_v50, %v1480_v51 }
  0x51   : > { %1101 = vmatpush.bf16.msrb.mxu0 %v1539_v60  ;;  %v1462_v60 = vld [vmem:[#allocation9 + $0x28] sm:$0xf] }
  0x52   : > { %1114 = vmatpush.bf16.msrb.mxu1 %v1543_v0  ;;  %v1459_v0 = vor.u32 %v1590_v57, %v1456_v59 }
  0x55   : > { %1102 = vmatpush.bf16.msrb.mxu0 %v1523_v9  ;;  %v1439_v9 = vor.u32 %v1588_v7, %v1438_v6 }
  0x56   : > { %1115 = vmatpush.bf16.msrb.mxu1 %v1527_v10  ;;  %v1440_v10 = vld [vmem:[#allocation9 + $0x10] sm:$0xf0] }
  0xc9   : > { %v605_v22 = vpop.f32.mrf.mxu0 }
  0xca   : > { %v619_v23 = vpop.f32.mrf.mxu1  ;;  %v606_v25 = vadd.f32 %v1713_v24, %v605_v22  ;;  %v1504_v22 = vld [vmem:[#allocation9 + $0x90] sm:$0xf0] }
  0xcc   : > { %v620_v29 = vadd.f32 %v619_v23, %v606_v25  ;;  %v1510_v23 = vld [vmem:[#allocation9 + $0x88] sm:$0xf]  ;;  %v1605_v25 = vld [vmem:[#allocation9 + $0x94] sm:$0xf0] }
  0xce   : > { %v624_v32 = vmax.f32 %v620_v29, 0.0 }
  0xd1   : > { %v607_v26 = vpop.f32.mrf.mxu0 }
  0xd2   : > { %v608_v27 = vadd.f32 %v1713_v24, %v607_v26  ;;  %v621_v28 = vpop.f32.mrf.mxu1  ;;  %v1507_v24 = vor.u32 %v1602_v21, %v1504_v22  ;;  %v1603_v26 = vld [vmem:[#allocation9 + $0x8c] sm:$0xf] }
  0xd4   : > { %v622_v30 = vadd.f32 %v621_v28, %v608_v27  ;;  %v1512_v27 = vld [vmem:[#allocation9 + $0x98] sm:$0xf0]  ;;  %v1511_v28 = vor.u32 %v1605_v25, %v1510_v23  ;;  %1103 = vmatpush.bf16.msrb.mxu0 %v1507_v24  ;;  %v685_v24 = vperm.slane %v2162_v52, 1 }
  0xd5   : > { %v1515_v29 = vor.u32 %v1603_v26, %v1512_v27  ;;  %v1714_v23 = vld [vmem:[#allocation7] ss:$0 sm:$0xff]  ;;  %v713_v27 = vperm.slane %v2162_v52, 2 }
  0xd6   : > { %v625_v31 = vmax.f32 %v622_v30, 0.0  ;;  %v1486_v30 = vld [vmem:[#allocation9 + $0x60] sm:$0xf]  ;;  %1116 = vmatpush.bf16.msrb.mxu1 %v1511_v28 }
  0xd8   : > { %648 = vmatpush.msra.mxu2 %v625_v31  ;;  %679 = vmatpush.msra.mxu3 %v625_v31 }
  0xda   : > { %649 = vmatpush.msra.mxu2 %v624_v32  ;;  %680 = vmatpush.msra.mxu3 %v624_v32 }
  0xdb   : > { %1427 = vmatmul.msk.f32.vlgmr.msra.gmra.mxu2 %vm630_vm0, %v629_v33  ;;  %1428 = vmatmul.msk.f32.vlgmr.msra.gmra.mxu3 %vm630_vm0, %v661_v34  ;;  %v1488_v34 = vld [vmem:[#allocation9 + $0x70] sm:$0xf0] }
  0xdc   : > { %707 = vmatpush.msrb.mxu2 %v625_v31  ;;  %735 = vmatpush.msrb.mxu3 %v625_v31 }
  0xde   : > { %708 = vmatpush.msrb.mxu2 %v624_v32  ;;  %736 = vmatpush.msrb.mxu3 %v624_v32 }
  0xe0   : > { %763 = vmatpush.msra.mxu2 %v625_v31  ;;  %791 = vmatpush.msra.mxu3 %v625_v31 }
  0xe2   : > { %764 = vmatpush.msra.mxu2 %v624_v32  ;;  %792 = vmatpush.msra.mxu3 %v624_v32 }
  0xe3   : > { %1429 = vmatmul.msk.f32.vlgmr.msrb.gmra.mxu2 %vm630_vm0, %v689_v35  ;;  %1430 = vmatmul.msk.f32.vlgmr.msrb.gmra.mxu3 %vm630_vm0, %v717_v36  ;;  %v1494_v35 = vld [vmem:[#allocation9 + $0x68] sm:$0xf]  ;;  %v1601_v36 = vld [vmem:[#allocation9 + $0x74] sm:$0xf0] }
  0xe4   : > { %819 = vmatpush.msrb.mxu2 %v625_v31  ;;  %847 = vmatpush.msrb.mxu3 %v625_v31 }
  0xe6   : > { %820 = vmatpush.msrb.mxu2 %v624_v32  ;;  %848 = vmatpush.msrb.mxu3 %v624_v32 }
  0xeb   : > { %1431 = vmatmul.msk.f32.vlgmr.msra.gmra.mxu2 %vm630_vm0, %v745_v37  ;;  %1432 = vmatmul.msk.f32.vlgmr.msra.gmra.mxu3 %vm630_vm0, %v773_v38  ;;  %v1495_v38 = vor.u32 %v1601_v36, %v1494_v35 }
  0xec   : > { %875 = vmatpush.msra.mxu2 %v625_v31  ;;  %1087 = vmatpush.bf16.msra.mxu3 %v1551_v45  ;;  %v1600_v31 = vld [vmem:[#allocation9 + $0x6c] sm:$0xf0]  ;;  %v1594_v45 = vld [vmem:[#allocation9 + $0x44] sm:$0xf] }
  0xed   : > { %v1487_v33 = vor.u32 %v1600_v31, %v1486_v30  ;;  %1117 = vmatpush.bf16.msrb.mxu1 %v1495_v38  ;;  %v1475_v48 = vor.u32 %v1594_v45, %v1472_v46  ;;  %v825_v38 = vperm.slane %v2162_v52, 6 }
  0xee   : > { %876 = vmatpush.msra.mxu2 %v624_v32  ;;  %v1598_v32 = vld [vmem:[#allocation9 + $0x64] sm:$0xf] }
  0xef   : > { %v1491_v37 = vor.u32 %v1598_v32, %v1488_v34  ;;  %v769_v32 = vperm.slane %v2162_v52, 4 }
  0xf0   : > { %1088 = vmatpush.bf16.msra.mxu3 %v1535_v56  ;;  %v1592_v56 = vld [vmem:[#allocation9 + $0x2c] sm:$0xf0] }
  0xf1   : > { %1104 = vmatpush.bf16.msrb.mxu0 %v1491_v37  ;;  %v1455_v58 = vor.u32 %v1592_v56, %v1454_v55  ;;  %v917_v55 = vld [vmem:[#allocation10] sm:$0xf] }
  0xf2   : > { %v921_v57 = vperm.slane %v917_v55, 2 }
  0xf3   : > { %1433 = vmatmul.msk.f32.vlgmr.msrb.gmra.mxu2 %vm630_vm0, %v801_v39  ;;  %1434 = vmatmul.msk.f32.vlgmr.msrb.gmra.mxu3 %vm630_vm0, %v829_v40  ;;  %v1599_v39 = vld [vmem:[#allocation9 + $0x6c] sm:$0xf]  ;;  %v1496_v40 = vld [vmem:[#allocation9 + $0x78] sm:$0xf0] }
  0xf4   : > { %1126 = vmatpush.bf16.msrb.mxu2 %v1563_v53  ;;  %1089 = vmatpush.bf16.msra.mxu3 %v1519_v5  ;;  %v1479_v53 = vor.u32 %v1597_v49, %v1478_v47  ;;  %v1467_v5 = vor.u32 %v1591_v2, %v1464_v3  ;;  %v1715_v47 = vld [vmem:[#allocation6 + $0x8] ss:$0 sm:$0xff]  ;;  %v920_v2 = vperm.slane %v917_v55, 1 }
  0xf5   : > { %1105 = vmatpush.bf16.msrb.mxu0 %v1475_v48 }
  0xf6   : > { %1118 = vmatpush.bf16.msrb.mxu1 %v1479_v53 }
  0xf8   : > { %1127 = vmatpush.bf16.msrb.mxu2 %v1547_v1  ;;  %1090 = vmatpush.bf16.msra.mxu3 %v1503_v20  ;;  %v1463_v1 = vor.u32 %v1593_v61, %v1462_v60  ;;  %v1448_v20 = vld [vmem:[#allocation9 + $0x18] sm:$0xf0] }
  0xf9   : > { %1106 = vmatpush.bf16.msrb.mxu0 %v1459_v0  ;;  %v1451_v21 = vor.u32 %v1587_v15, %v1448_v20 }
  0xfa   : > { %1119 = vmatpush.bf16.msrb.mxu1 %v1463_v1 }
  0xfb   : > { %1435 = vmatmul.msk.f32.vlgmr.msra.gmra.mxu2 %vm630_vm0, %v857_v41  ;;  %v1499_v41 = vor.u32 %v1599_v39, %v1496_v40 }
  0xfc   : > { %1128 = vmatpush.bf16.msrb.mxu2 %v1531_v13  ;;  %1091 = vmatpush.bf16.msra.mxu3 %v1487_v33  ;;  %v1443_v13 = vor.u32 %v1586_v8, %v1440_v10  ;;  %v919_v10 = vperm.slane %v917_v55, 0 }
  0xfe   : > { %1107 = vmatpush.bf16.msrb.mxu0 %v1443_v13  ;;  %1120 = vmatpush.bf16.msrb.mxu1 %v1447_v14 }
 0x100   : > { %1129 = vmatpush.bf16.msrb.mxu2 %v1515_v29  ;;  %1092 = vmatpush.bf16.msra.mxu3 %v1471_v44 }
 0x102   : > { %1177 = vmatpush.msra.mxu0 %v2147_v19  ;;  %v797_v19 = vperm.slane %v2162_v52, 5 }
 0x104   : > { %1130 = vmatpush.bf16.msrb.mxu2 %v1499_v41  ;;  %1093 = vmatpush.bf16.msra.mxu3 %v1455_v58  ;;  %v922_v58 = vperm.slane %v917_v55, 3 }
 0x105   : > { %1178 = vmatpush.msra.mxu0 %v2145_v18 }
 0x108   : > { %1131 = vmatpush.bf16.msrb.mxu2 %v1483_v54  ;;  %1094 = vmatpush.bf16.msra.mxu3 %v1439_v9  ;;  %v1139_v54 = vld [vmem:[#allocation13] sm:$0xf] }
 0x10c   : > { %1132 = vmatpush.bf16.msrb.mxu2 %v1467_v5  ;;  %1157 = vmatpush.msrb.mxu3 %v2143_v17  ;;  %v741_v17 = vperm.slane %v2162_v52, 3 }
 0x10e   : > { %1158 = vmatpush.msrb.mxu3 %v2141_v16 }
 0x110   : > { %1133 = vmatpush.bf16.msrb.mxu2 %v1451_v21 }
 0x15e   : > { %v651_v62 = vpop.f32.mrf.mxu2  ;;  %v682_v63 = vpop.f32.mrf.mxu3 }
 0x15f   : > { %v655_v22 = vmul.f32 %v654_v4, %v651_v62  ;;  %v686_v29 = vmul.f32 %v685_v24, %v682_v63 }
 0x161   : > { %v659_v28 = vadd.f32 %v1714_v23, %v655_v22 }
 0x163   : > { %v687_v31 = vadd.f32 %v686_v29, %v659_v28 }
 0x166   : > { %v710_v25 = vpop.f32.mrf.mxu2  ;;  %v738_v26 = vpop.f32.mrf.mxu3 }
 0x167   : > { %v714_v30 = vmul.f32 %v713_v27, %v710_v25  ;;  %v742_v36 = vmul.f32 %v741_v17, %v738_v26 }
 0x169   : > { %v715_v35 = vadd.f32 %v714_v30, %v687_v31 }
 0x16b   : > { %v743_v16 = vadd.f32 %v742_v36, %v715_v35 }
 0x16e   : > { %v766_v33 = vpop.f32.mrf.mxu2  ;;  %v794_v34 = vpop.f32.mrf.mxu3 }
 0x16f   : > { %v770_v37 = vmul.f32 %v769_v32, %v766_v33  ;;  %v798_v18 = vmul.f32 %v797_v19, %v794_v34 }
 0x171   : > { %v771_v39 = vadd.f32 %v770_v37, %v743_v16 }
 0x173   : > { %v799_v44 = vadd.f32 %v798_v18, %v771_v39 }
 0x176   : > { %v822_v40 = vpop.f32.mrf.mxu2  ;;  %v850_v43 = vpop.f32.mrf.mxu3 }
 0x177   : > { %v826_v41 = vmul.f32 %v825_v38, %v822_v40  ;;  %v854_v46 = vmul.f32 %v853_v42, %v850_v43 }
 0x179   : > { %v827_v45 = vadd.f32 %v826_v41, %v799_v44 }
 0x17b   : > { %v855_v49 = vadd.f32 %v854_v46, %v827_v45 }
 0x17e   : > { %v878_v48 = vpop.f32.mrf.mxu2 }
 0x17f   : > { %v882_v50 = vmul.f32 %v1715_v47, %v878_v48 }
 0x181   : > { %v883_v51 = vadd.f32 %v882_v50, %v855_v49 }
 0x183   : > { %v884_v53 = vpack.c.bf16 %v883_v51, %v883_v51 }
 0x185   : > { %1095 = vmatmul.bf16.vlgmr.msra.gmra.mxu3 %v884_v53  ;;  %1108 = vmatmul.bf16.vlgmr.msrb.gmra.mxu0 %v884_v53 }
 0x186   : > { %1121 = vmatmul.bf16.vlgmr.msrb.gmra.mxu1 %v884_v53  ;;  %1134 = vmatmul.bf16.vlgmr.msrb.gmra.mxu2 %v884_v53 }
 0x195   : > { %1564 = vmatmul.msk.f32.vlgmr.msrb.gmra.mxu3 %vm630_vm0, %v1139_v54  ;;  %1565 = vmatmul.msk.f32.vlgmr.msra.gmra.mxu0 %vm630_vm0, %v1139_v54 }
 0x202   : > { %v1109_v52 = vpop.f32.mrf.mxu0 }
 0x203   : > { %v1122_v56 = vpop.f32.mrf.mxu1  ;;  %v1110_v7 = vadd.f32 %v1109_v52, %v920_v2 }
 0x204   : > { %v1123_v61 = vadd.f32 %v1122_v56, %v921_v57 }
 0x206   : > { %v1189_v3 = vmax.f32 %v1123_v61, 0.0 }
 0x208   : > { %v1096_v59 = vpop.f32.mrf.mxu3 }
 0x209   : > { %v1135_v60 = vpop.f32.mrf.mxu2  ;;  %v1097_v12 = vadd.f32 %v1096_v59, %v919_v10 }
 0x20a   : > { %v1136_v62 = vadd.f32 %v1135_v60, %v922_v58  ;;  %v1111_v63 = vpop.f32.mrf.mxu0 }
 0x20b   : > { %v1124_v0 = vpop.f32.mrf.mxu1 }
 0x20c   : > { %v1190_v1 = vmax.f32 %v1136_v62, 0.0 }
 0x20e   : > { %v1196_v4 = vrot.slane %v1190_v1, 4 }
 0x210   : > { %v1199_v5 = vsel %vm1197_vm1, %v1189_v3, %v1196_v4  ;;  %v1098_v6 = vpop.f32.mrf.mxu3 }
 0x211   : > { %1203 = vst [vmem:[%s457_s10 + $0x8] sm:$0xff] %v1199_v5  ;;  %v1137_v8 = vpop.f32.mrf.mxu2 }
 0x212   : > { %v1180_v9 = vpop.f32.mrf.mxu0 }
 0x213   : > { %v1184_v11 = vadd.f32 %v1180_v9, %v1110_v7 }
 0x215   : > { %v1188_v13 = vmax.f32 %v1184_v11, 0.0 }
 0x217   : > { %v1195_v20 = vrot.slane %v1188_v13, 4 }
 0x218   : > { %v1160_v14 = vpop.f32.mrf.mxu3 }
 0x219   : > { %v1183_v15 = vadd.f32 %v1160_v14, %v1097_v12 }
 0x21b   : > { %v1187_v21 = vmax.f32 %v1183_v15, 0.0 }
 0x21d   : > { %v1198_v22 = vsel %vm1197_vm1, %v1187_v21, %v1195_v20 }
 0x21e   : > { %1202 = vst [vmem:[%s457_s10] sm:$0xff] %v1198_v22 }
 0x21f PF: > { %s24_s30 = sadd.s32 1, %s1982_s30  }
 0x220   : > { %p21_p7 = scmp.ge.s32.totalorder %s24_s30, 4  }
 0x222   :  { %23 = sbr.rel (!%p21_p7) target bundleno = 5 (0x5), region = 127 }
 0x227   :  { %1225 = vsyncpa [#allocation3], 1 }
 0x228   :  { %1227 = vsyncpa [#allocation3 + $0x1], 1 }
 0x229   :  { %1228 = vsyncpa [#allocation5], 1 }
 0x22a   :  { %1229 = vsyncpa [#allocation8], 1 }
 0x22b   :  { %1230 = vsyncpa [#allocation11], 1 }
 0x22c   :  { %1231 = vsyncpa [#allocation14], 1 }

// kernel: _lambda_.11
= control target key start
LH: loop header
LB: loop body
LE: loop exit
PB: predicated region body
PF: predicated region fallthrough
CT: control target
= control target key end

     0   :  { %s2450_s0 = inlined_call_operand.vmem [shape: f32[2,4,512], index: 0, kind: input, shape index: {}]   ;;  %s2451_s1 = inlined_call_operand.vmem [shape: bf16[7,512,128], index: 1, kind: input, shape index: {}]   ;;  %s2452_s2 = inlined_call_operand.hbm [shape: f32[7,1,128], index: 2, kind: input, shape index: {}]   ;;  %s2453_s3 = inlined_call_operand.hbm [shape: f32[7,9,128], index: 3, kind: input, shape index: {}]   ;;  %s2454_s4 = inlined_call_operand.hbm [shape: f32[7,1,128], index: 4, kind: input, shape index: {}]   ;;  %s2455_s5 = inlined_call_operand.hbm [shape: bf16[7,128,512], index: 5, kind: input, shape index: {}]   ;;  %s2456_s6 = inlined_call_operand.hbm [shape: f32[7,1,512], index: 6, kind: input, shape index: {}]   ;;  %s2457_s7 = inlined_call_operand.vmem [shape: f32[2,4,512], index: 7, kind: output, shape index: {}]  }
   0x1   :  { %2462 = sst [smem:[#allocation19_spill]] %s2452_s2 }
   0x2   :  { %2463 = sst [smem:[#allocation20_spill]] %s2453_s3 }
   0x3   :  { %2464 = sst [smem:[#allocation21_spill]] %s2455_s5 }
   0x4   :  { %12 = vsyncpa [#allocation4], 0 }
   0x5   :  { %14 = vsyncpa [#allocation4 + $0x1], 0 }
   0x6   :  { %15 = vsyncpa [#allocation6], 0 }
   0x7   :  { %17 = vsyncpa [#allocation6 + $0x1], 0 }
   0x8   :  { %18 = vsyncpa [#allocation9], 0 }
   0x9   :  { %20 = vsyncpa [#allocation9 + $0x1], 0  ;;  %s2118_s24 = smov 0   ;;  %s2120_s25 = smov 0  }
   0xa   :  { %s2122_s26 = smov 0   ;;  %s2124_s27 = smov 0  }
   0xb   :  { %s2126_s28 = smov 0   ;;  %s2128_s29 = smov 0  }
   0xc   :  { %s2130_s30 = smov 0   ;;  %s2132_s8 = smov 0  }
   0xd LB: > { %2465 = sst [smem:[#allocation14_spill]] %s2052_s26  ;;  %s2458_s9 = sadd.s32 4294967295, %s2072_s8   ;;  %s2072_s8 = sphi %s2132_s8, %s26_s8   ;;  %s2068_s30 = sphi %s2130_s30, %s2481_s30   ;;  %s2064_s29 = sphi %s2128_s29, %s2485_s29   ;;  %s2060_s28 = sphi %s2126_s28, %s2479_s28   ;;  %s2056_s27 = sphi %s2124_s27, %s2484_s27   ;;  %s2052_s26 = sphi %s2122_s26, %s2478_s26   ;;  %s2048_s25 = sphi %s2120_s25, %s2483_s25   ;;  %s2044_s24 = sphi %s2118_s24, %s2482_s24  }
   0xe   : > { %2466 = sst [smem:[#allocation15_spill]] %s2068_s30  ;;  %s35_s10 = sadd.s32 1, %s2064_s29 }
   0xf   : > { %p36_p0 = scmp.ge.s32.totalorder %s35_s10, 7  ;;  %s38_s11 = sadd.s32 1, %s2068_s30 }
  0x10   : > { %s97_s12 = sadd.s32 1, %s2052_s26  ;;  %p104_p1 = scmp.ne.s32.totalorder %s2052_s26, %s2048_s25 }
  0x11   : > { %s2487_s10 = smov (%p36_p0, %s35_s10), 0  ;;  %s2489_s11 = smov (!%p36_p0, %s38_s11), %s2068_s30 }
  0x12   : > { %2467 = sst [smem:[#allocation16_spill]] %s2487_s10  ;;  %s94_s13 = ssub.s32 %s2064_s29, %s2487_s10 }
  0x13   : > { %p105_p2 = scmp.eq.s32.totalorder %s2072_s8, 0  ;;  %p40_p3 = scmp.ge.s32.totalorder %s2489_s11, 2 }
  0x14   : > { %p95_p4 = scmp.eq.s32.totalorder %s94_s13, 0  ;;  %p110_p6 = scmp.ne.s32.totalorder %s2048_s25, %s2044_s24 }
  0x15   : > { %p106_p5 = por %p105_p2, %p104_p1  ;;  %s2491_s11 = smov (%p40_p3, %s2489_s11), 0 }
  0x16   : > { %2468 = sst [smem:[#allocation17_spill]] %s2491_s11  ;;  %p111_p7 = scmp.eq.s32.totalorder %s2458_s9, 0 }
  0x17   : > { %s2172_s14 = scalar_select %p95_p4, %s2052_s26, %s97_s12  }
  0x18   : > { %p1778_p8 = scmp.lt.s32.totalorder %s2072_s8, 14  ;;  %s2178_s15 = sand.u32 1, %s2052_s26  }
  0x19   : > { %2469 = sst [smem:[#allocation18_spill]] %s2172_s14  ;;  %p2180_p9 = por %p111_p7, %p110_p6 }
  0x1a   : > { %s297_s17 = sand.u32 1, %s2072_s8   ;;  %p2185_p10 = pnand %p1778_p8, %p106_p5 }
  0x1b   : > { %s1406_s19 = sshll.u32 %s2178_s15, 4  ;;  %s1683_s20 = sshll.u32 %s2064_s29, 4 }
  0x1c   : > { %s2472_s3 = sld [smem:[#allocation20_spill]]  ;;  %s301_s24 = scalar_lea.vmem [#allocation5], %s1406_s19 }
  0x1d   : > { %s309_s12 = sshll.u32 %s301_s24, 4  ;;  %p1414_p11 = scmp.ge.s32.totalorder %s2072_s8, 1  ;;  %s310_s12 = int_to_ptr.vmem [resolvable:$true] %s309_s12 }
  0x1e   : > { %s2195_s9 = scalar_lea.sflag [#allocation6], %s297_s17  ;;  %s2074_s11 = smov 128  }
  0x1f   : > { %s2075_s10 = smov 8   ;;  %p375_p12 = scmp.lt.s32.totalorder %s2072_s8, 15 }
  0x20   : > { %s1409_s30 = sshll.u32 %s2178_s15, 8  ;;  %s1684_s21 = sshll.u32 %s2064_s29, 8 }
  0x21   : > { %p2203_p13 = pnand %p1414_p11, %p375_p12  ;;  %s2474_s5 = sld [smem:[#allocation21_spill]] }
  0x22   : > { %s306_s23 = scalar_lea.hbm %s2472_s3, %s1683_s20  ;;  %s340_s24 = scalar_lea.vmem [#allocation8], %s1409_s30 }
  0x23   : > { %s307_s13 = sshll.u32 %s306_s23, 4  ;;  %s348_s3 = sshll.u32 %s340_s24, 4  ;;  %s308_s13 = int_to_ptr.hbm [resolvable:$true] %s307_s13  ;;  %s349_s3 = int_to_ptr.vmem [resolvable:$true] %s348_s3 }
  0x24   : > { %1768 = dma.hbm_to_vmem [thread:$0]  (!%p2185_p10), %s308_s13, 256, %s310_s12, %s2195_s9, %s2074_s11, %s2074_s11, %s2075_s10  }
  0x25   : > { %s337_s10 = scalar_lea.sflag [#allocation9], %s297_s17  ;;  %s2076_s11 = smov 256  }
  0x26   : > { %s2077_s12 = smov 16   ;;  %s2475_s2 = sld [smem:[#allocation19_spill]] }
  0x27   : > { %s345_s23 = scalar_lea.hbm %s2474_s5, %s1684_s21  ;;  %s283_s20 = scalar_lea.vmem [#allocation3], %s2178_s15 }
  0x28   : > { %s346_s14 = sshll.u32 %s345_s23, 4  ;;  %s290_s22 = sshll.u32 %s283_s20, 4  ;;  %s347_s14 = int_to_ptr.hbm [resolvable:$true] %s346_s14  ;;  %s291_s22 = int_to_ptr.vmem [resolvable:$true] %s290_s22 }
  0x29   : > { %1774 = dma.hbm_to_vmem [thread:$0]  (!%p2185_p10), %s347_s14, 4096, %s349_s3, %s337_s10, %s2076_s11, %s2076_s11, %s2077_s12  }
  0x2a   : > { %s281_s23 = scalar_lea.sflag [#allocation4], %s2178_s15  ;;  %s325_s5 = scalar_lea.hbm %s2454_s4, %s2064_s29 }
  0x2b   : > { %s327_s3 = sshll.u32 %s325_s5, 4  ;;  %s322_s14 = scalar_lea.vmem [#allocation7], %s2178_s15  ;;  %s328_s3 = int_to_ptr.hbm [resolvable:$true] %s327_s3 }
  0x2c   : > { %s286_s21 = scalar_lea.hbm %s2475_s2, %s2064_s29  ;;  %s329_s11 = sshll.u32 %s322_s14, 4  ;;  %s330_s11 = int_to_ptr.vmem [resolvable:$true] %s329_s11 }
  0x2d   : > { %s288_s30 = sshll.u32 %s286_s21, 4  ;;  %s1412_s26 = sshll.u32 %s2178_s15, 2  ;;  %s289_s30 = int_to_ptr.hbm [resolvable:$true] %s288_s30 }
  0x2e   : > { %1765 = dma.hbm_to_vmem [thread:$0]  (!%p2185_p10), %s289_s30, 16, %s291_s22, %s281_s23  }
  0x2f   : > { %1771 = dma.hbm_to_vmem [thread:$0]  (!%p2185_p10), %s328_s3, 16, %s330_s11, %s2195_s9  }
  0x30   : > { %s1413_s12 = sshll.u32 %s2064_s29, 2  ;;  %s362_s30 = scalar_lea.vmem [#allocation10], %s1412_s26 }
  0x31   : > { %s366_s20 = scalar_lea.hbm %s2456_s6, %s1413_s12  ;;  %s370_s22 = sshll.u32 %s362_s30, 4  ;;  %s371_s22 = int_to_ptr.vmem [resolvable:$true] %s370_s22 }
  0x32   : > { %s368_s2 = sshll.u32 %s366_s20, 4  ;;  %379 = sbr.rel (%p2203_p13) target bundleno = 496 (0x1f0), region = 48  ;;  %s369_s2 = int_to_ptr.hbm [resolvable:$true] %s368_s2 }
  0x33   : > { %1777 = dma.hbm_to_vmem [thread:$0]  (!%p2185_p10), %s369_s2, 64, %s371_s22, %s337_s10  }
  0x34   : > { %s2238_s5 = sand.u32 (!%p2203_p13), 1, %s2048_s25  }
  0x35   : > { %s382_s9 = scalar_lea.sflag (!%p2203_p13), [#allocation4], %s2238_s5  ;;  %s384_s15 = scalar_lea.vmem (!%p2203_p13), [#allocation3], %s2238_s5 }
  0x37   : > { %2031 = dma.done.wait (%p2180_p9), %s382_s9, 16  }
  0x38   : > { %2033 = vsyncadd (%p2180_p9), %s382_s9, 4294967280  ;;  %s2476_s23 = sadd.s32 4294967295, %s2072_s8   ;;  %s1415_s18 = sshll.u32 %s2238_s5, 4 }
  0x39   : > { %s390_s2 = sand.u32 1, %s2476_s23   ;;  %s2249_s10 = scalar_lea.vmem [#allocation5], %s1415_s18 }
  0x3a   : > { %s391_s19 = scalar_lea.sflag [#allocation6], %s390_s2 }
  0x3b   : > { %2035 = dma.done.wait (%p2180_p9), %s391_s19, 272  }
  0x3c   : > { %2037 = vsyncadd (%p2180_p9), %s391_s19, 4294967024  ;;  %s1416_s17 = sshll.u32 %s2238_s5, 8  ;;  %s403_s24 = scalar_lea.vmem [#allocation7], %s2238_s5 }
  0x3d   : > { %s410_s3 = scalar_lea.sflag [#allocation9], %s390_s2  ;;  %s2257_s14 = scalar_lea.vmem [#allocation8], %s1416_s17 }
  0x3e   : > { %2039 = dma.done.wait (%p2180_p9), %s410_s3, 4160  }
  0x3f   : > { %2041 = vsyncadd (%p2180_p9), %s410_s3, 4294963136  ;;  %s1417_s11 = sshll.u32 %s2238_s5, 2  ;;  %p483_p0 = scmp.lt.s32.totalorder %s2060_s28, 1 }
  0x40   : > { %p488_p1 = scmp.lt.s32.totalorder %s2056_s27, 6  ;;  %s2281_s19 = scalar_lea.vmem [#allocation10], %s1417_s11 }
  0x41   : > { %s2493_s28 = smov (!%p483_p0, %s2060_s28), 1  ;;  %p1424_p2 = scmp.ne.s32.totalorder %s2056_s27, 0 }
  0x42   : > { %s489_s26 = scalar_select %p488_p1, %s2056_s27, 6 }
  0x43   : > { %s1685_s12 = sshll.u32 %s2493_s28, 4  ;;  %501 = sbr.rel (%p1424_p2) target bundleno = 75 (0x4b), region = 72 }
  0x44   : > { %s487_s20 = scalar_lea.vmem %s2450_s0, %s1685_s12  ;;  %s1686_s30 = sshll.u32 %s489_s26, 8 }
  0x45   : > { %s2274_s16 = scalar_lea.vmem %s2451_s1, %s1686_s30  ;;  %s2279_s18 = scalar_lea.vmem %s2457_s7, %s1685_s12 }
  0x48   : > { %v502_v0 = vld [vmem:[%s487_s20] sm:$0xff]  ;;  %v503_v1 = vld [vmem:[%s487_s20 + $0x8] sm:$0xff] }
  0x49   : > { %504 = vst [vmem:[#allocation2] sm:$0xff] %v502_v0 }
  0x4a   : > { %505 = vst [vmem:[#allocation2 + $0x8] sm:$0xff] %v503_v1 }
  0x4b PF: > { %v1695_v2 = vld [vmem:[%s2274_s16 + $0x38] sm:$0xff]  ;;  %v1694_v6 = vld [vmem:[%s2274_s16 + $0x30] sm:$0xff]  ;;  %v1693_v10 = vld [vmem:[%s2274_s16 + $0x28] sm:$0xff]  ;;  %vm942_vm0 = vcmask 1040384   ;;  %vm944_vm1 = vcmask 1041408   ;;  %vm946_vm2 = vcmask 1042432  }
  0x4c   : > { %v1703_v3 = vld [vmem:[%s2274_s16 + $0x78] sm:$0xff]  ;;  %785 = vmatpush.bf16.msra.mxu0 %v1695_v2  ;;  %v1702_v7 = vld [vmem:[%s2274_s16 + $0x70] sm:$0xff]  ;;  %v1701_v11 = vld [vmem:[%s2274_s16 + $0x68] sm:$0xff]  ;;  %vm1209_vm3 = vcmask 1043456  }
  0x4d   : > { %v1711_v4 = vld [vmem:[%s2274_s16 + $0xb8] sm:$0xff]  ;;  %798 = vmatpush.bf16.msra.mxu1 %v1703_v3  ;;  %v1710_v8 = vld [vmem:[%s2274_s16 + $0xb0] sm:$0xff]  ;;  %v1709_v12 = vld [vmem:[%s2274_s16 + $0xa8] sm:$0xff] }
  0x4e   : > { %v1719_v5 = vld [vmem:[%s2274_s16 + $0xf8] sm:$0xff]  ;;  %811 = vmatpush.bf16.msra.mxu2 %v1711_v4  ;;  %v1718_v9 = vld [vmem:[%s2274_s16 + $0xf0] sm:$0xff]  ;;  %v1717_v13 = vld [vmem:[%s2274_s16 + $0xe8] sm:$0xff] }
  0x4f   : > { %824 = vmatpush.bf16.msra.mxu3 %v1719_v5  ;;  %v1692_v14 = vld [vmem:[%s2274_s16 + $0x20] sm:$0xff]  ;;  %v1691_v20 = vld [vmem:[%s2274_s16 + $0x18] sm:$0xff]  ;;  %v1690_v24 = vld [vmem:[%s2274_s16 + $0x10] sm:$0xff] }
  0x50   : > { %786 = vmatpush.bf16.msra.mxu0 %v1694_v6  ;;  %v1700_v15 = vld [vmem:[%s2274_s16 + $0x60] sm:$0xff]  ;;  %v2299_v17 = vld [vmem:[#allocation2] sm:$0xff]  ;;  %v1699_v21 = vld [vmem:[%s2274_s16 + $0x58] sm:$0xff] }
  0x51   : > { %799 = vmatpush.bf16.msra.mxu1 %v1702_v7  ;;  %v1708_v16 = vld [vmem:[%s2274_s16 + $0xa0] sm:$0xff]  ;;  %510 = vst [vmem:[#allocation1] ss:$2 sm:$0xff] %v2299_v17  ;;  %v2303_v19 = vld [vmem:[#allocation2 + $0x8] sm:$0xff]  ;;  %v1707_v22 = vld [vmem:[%s2274_s16 + $0x98] sm:$0xff] }
  0x52   : > { %812 = vmatpush.bf16.msra.mxu2 %v1710_v8  ;;  %v1716_v18 = vld [vmem:[%s2274_s16 + $0xe0] sm:$0xff]  ;;  %512 = vst [vmem:[#allocation1 + $0x10] ss:$2 sm:$0xff] %v2303_v19  ;;  %v1715_v23 = vld [vmem:[%s2274_s16 + $0xd8] sm:$0xff]  ;;  %v1698_v25 = vld [vmem:[%s2274_s16 + $0x50] sm:$0xff] }
  0x53   : > { %825 = vmatpush.bf16.msra.mxu3 %v1718_v9  ;;  %v1706_v26 = vld [vmem:[%s2274_s16 + $0x90] sm:$0xff]  ;;  %v1689_v28 = vld [vmem:[%s2274_s16 + $0x8] sm:$0xff]  ;;  %v1688_v32 = vld [vmem:[%s2274_s16] sm:$0xff] }
  0x54   : > { %787 = vmatpush.bf16.msra.mxu0 %v1693_v10  ;;  %v1714_v27 = vld [vmem:[%s2274_s16 + $0xd0] sm:$0xff]  ;;  %v1697_v29 = vld [vmem:[%s2274_s16 + $0x48] sm:$0xff]  ;;  %v1696_v33 = vld [vmem:[%s2274_s16 + $0x40] sm:$0xff] }
  0x55   : > { %800 = vmatpush.bf16.msra.mxu1 %v1701_v11  ;;  %v1705_v30 = vld [vmem:[%s2274_s16 + $0x88] sm:$0xff]  ;;  %v1704_v34 = vld [vmem:[%s2274_s16 + $0x80] sm:$0xff]  ;;  %v1667_v47 = vld [vmem:[%s2257_s14 + $0xe0] sm:$0xf] }
  0x56   : > { %813 = vmatpush.bf16.msra.mxu2 %v1709_v12  ;;  %v1713_v31 = vld [vmem:[%s2274_s16 + $0xc8] sm:$0xff]  ;;  %v1712_v35 = vld [vmem:[%s2274_s16 + $0xc0] sm:$0xff]  ;;  %v1669_v52 = vld [vmem:[%s2257_s14 + $0xf0] sm:$0xf0] }
  0x57   : > { %826 = vmatpush.bf16.msra.mxu3 %v1717_v13  ;;  %v1847_v44 = vld [vmem:[%s384_s15] ss:$0 sm:$0xff]  ;;  %v1750_v48 = vld [vmem:[%s2257_s14 + $0xec] sm:$0xf0]  ;;  %v1675_v53 = vld [vmem:[%s2257_s14 + $0xe8] sm:$0xf] }
  0x58   : > { %788 = vmatpush.bf16.msra.mxu0 %v1692_v14  ;;  %v513_v36 = vld.sshfl [vmem:[#allocation1] sm:$0xff pattern:$0x75316420]  ;;  %v514_v37 = vld.sshfl [vmem:[#allocation1 + $0x8] sm:$0xff pattern:$0x75316420]  ;;  %v1668_v51 = vor.u32 %v1750_v48, %v1667_v47 }
  0x59   : > { %801 = vmatpush.bf16.msra.mxu1 %v1700_v15  ;;  %v515_v38 = vld.sshfl [vmem:[#allocation1 + $0x10] sm:$0xff pattern:$0x75316420]  ;;  %v516_v39 = vld.sshfl [vmem:[#allocation1 + $0x18] sm:$0xff pattern:$0x75316420]  ;;  %v521_v40 = vpack.c.bf16 %v513_v36, %v513_v36  ;;  %v522_v41 = vpack.c.bf16 %v514_v37, %v514_v37 }
  0x5a   : > { %814 = vmatpush.bf16.msra.mxu2 %v1708_v16  ;;  %v523_v42 = vpack.c.bf16 %v515_v38, %v515_v38  ;;  %v524_v43 = vpack.c.bf16 %v516_v39, %v516_v39  ;;  %v1748_v49 = vld [vmem:[%s2257_s14 + $0xe4] sm:$0xf]  ;;  %v1751_v54 = vld [vmem:[%s2257_s14 + $0xf4] sm:$0xf0]  ;;  %v1749_v57 = vld [vmem:[%s2257_s14 + $0xec] sm:$0xf] }
  0x5b   : > { %827 = vmatpush.bf16.msra.mxu3 %v1716_v18  ;;  %v1672_v55 = vor.u32 %v1748_v49, %v1669_v52  ;;  %v1676_v56 = vor.u32 %v1751_v54, %v1675_v53  ;;  %v1677_v58 = vld [vmem:[%s2257_s14 + $0xf8] sm:$0xf0]  ;;  %v1651_v59 = vld [vmem:[%s2257_s14 + $0xc0] sm:$0xf]  ;;  %v1746_v61 = vld [vmem:[%s2257_s14 + $0xcc] sm:$0xf0] }
  0x5c   : > { %789 = vmatpush.bf16.msra.mxu0 %v1691_v20  ;;  %v1680_v60 = vor.u32 %v1749_v57, %v1677_v58  ;;  %v1744_v62 = vld [vmem:[%s2257_s14 + $0xc4] sm:$0xf]  ;;  %v1653_v63 = vld [vmem:[%s2257_s14 + $0xd0] sm:$0xf0]  ;;  %v1652_v1 = vor.u32 %v1746_v61, %v1651_v59  ;;  %v1659_v3 = vld [vmem:[%s2257_s14 + $0xc8] sm:$0xf] }
  0x5d   : > { %802 = vmatpush.bf16.msra.mxu1 %v1699_v21  ;;  %v1656_v2 = vor.u32 %v1744_v62, %v1653_v63  ;;  %v1747_v4 = vld [vmem:[%s2257_s14 + $0xd4] sm:$0xf0]  ;;  %v1745_v5 = vld [vmem:[%s2257_s14 + $0xcc] sm:$0xf]  ;;  %v1661_v8 = vld [vmem:[%s2257_s14 + $0xd8] sm:$0xf0] }
  0x5e   : > { %815 = vmatpush.bf16.msra.mxu2 %v1707_v22  ;;  %v2340_v6 = vld [vmem:[%s2249_s10] sm:$0xff]  ;;  %v1660_v7 = vor.u32 %v1747_v4, %v1659_v3  ;;  %v1664_v11 = vor.u32 %v1745_v5, %v1661_v8  ;;  %v1643_v14 = vld [vmem:[%s2257_s14 + $0xa8] sm:$0xf]  ;;  %v1743_v20 = vld [vmem:[%s2257_s14 + $0xb4] sm:$0xf0] }
  0x5f   : > { %828 = vmatpush.bf16.msra.mxu3 %v1715_v23  ;;  %v1635_v9 = vld [vmem:[%s2257_s14 + $0xa0] sm:$0xf]  ;;  %v1742_v10 = vld [vmem:[%s2257_s14 + $0xac] sm:$0xf0]  ;;  %v1740_v12 = vld [vmem:[%s2257_s14 + $0xa4] sm:$0xf] }
  0x60   : > { %790 = vmatpush.bf16.msra.mxu0 %v1690_v24  ;;  %v1637_v13 = vld [vmem:[%s2257_s14 + $0xb0] sm:$0xf0]  ;;  %v1636_v18 = vor.u32 %v1742_v10, %v1635_v9  ;;  %v1741_v21 = vld [vmem:[%s2257_s14 + $0xac] sm:$0xf]  ;;  %v1645_v22 = vld [vmem:[%s2257_s14 + $0xb8] sm:$0xf0] }
  0x61   : > { %803 = vmatpush.bf16.msra.mxu1 %v1698_v25  ;;  %v842_v36 = vrot.slane %v2340_v6, 4  ;;  %v1737_v37 = vld [vmem:[%s2257_s14 + $0x8c] sm:$0xf]  ;;  %v1629_v38 = vld [vmem:[%s2257_s14 + $0x98] sm:$0xf0] }
  0x62   : > { %816 = vmatpush.bf16.msra.mxu2 %v1706_v26  ;;  %v1640_v26 = vor.u32 %v1740_v12, %v1637_v13  ;;  %v1605_v47 = vld [vmem:[%s2257_s14 + $0x70] sm:$0xf0]  ;;  %v1611_v48 = vld [vmem:[%s2257_s14 + $0x68] sm:$0xf]  ;;  %v1735_v49 = vld [vmem:[%s2257_s14 + $0x74] sm:$0xf0] }
  0x63   : > { %829 = vmatpush.bf16.msra.mxu3 %v1714_v27  ;;  %v1644_v27 = vor.u32 %v1743_v20, %v1643_v14  ;;  %v1613_v52 = vld [vmem:[%s2257_s14 + $0x78] sm:$0xf0]  ;;  %v1612_v58 = vor.u32 %v1735_v49, %v1611_v48  ;;  %v1730_v59 = vld [vmem:[%s2257_s14 + $0x4c] sm:$0xf0]  ;;  %v1589_v62 = vld [vmem:[%s2257_s14 + $0x50] sm:$0xf0] }
  0x64   : > { %791 = vmatpush.bf16.msra.mxu0 %v1689_v28  ;;  %v1619_v28 = vld [vmem:[%s2257_s14 + $0x80] sm:$0xf]  ;;  %v1595_v63 = vld [vmem:[%s2257_s14 + $0x48] sm:$0xf]  ;;  %v1729_v3 = vld [vmem:[%s2257_s14 + $0x4c] sm:$0xf] }
  0x65   : > { %804 = vmatpush.bf16.msra.mxu1 %v1697_v29  ;;  %v1738_v29 = vld [vmem:[%s2257_s14 + $0x8c] sm:$0xf0]  ;;  %v1597_v4 = vld [vmem:[%s2257_s14 + $0x58] sm:$0xf0]  ;;  %v1571_v9 = vld [vmem:[%s2257_s14 + $0x20] sm:$0xf] }
  0x66   : > { %817 = vmatpush.bf16.msra.mxu2 %v1705_v30  ;;  %v1736_v30 = vld [vmem:[%s2257_s14 + $0x84] sm:$0xf]  ;;  %v1620_v39 = vor.u32 %v1738_v29, %v1619_v28  ;;  %v1726_v10 = vld [vmem:[%s2257_s14 + $0x2c] sm:$0xf0]  ;;  %v1600_v12 = vor.u32 %v1729_v3, %v1597_v4  ;;  %v1573_v13 = vld [vmem:[%s2257_s14 + $0x30] sm:$0xf0] }
  0x67   : > { %830 = vmatpush.bf16.msra.mxu3 %v1713_v31  ;;  %v1648_v31 = vor.u32 %v1741_v21, %v1645_v22  ;;  %v1579_v14 = vld [vmem:[%s2257_s14 + $0x28] sm:$0xf]  ;;  %v1581_v20 = vld [vmem:[%s2257_s14 + $0x38] sm:$0xf0]  ;;  %v839_v21 = vld [vmem:[%s2249_s10 + $0x8] sm:$0x1] }
  0x68   : > { %792 = vmatpush.bf16.msra.mxu0 %v1688_v32  ;;  %v1621_v32 = vld [vmem:[%s2257_s14 + $0x90] sm:$0xf0]  ;;  %v1720_v28 = vld [vmem:[%s2257_s14 + $0x4] sm:$0xf] }
  0x69   : > { %805 = vmatpush.bf16.msra.mxu1 %v1696_v33  ;;  %v1627_v33 = vld [vmem:[%s2257_s14 + $0x88] sm:$0xf] }
  0x6a   : > { %818 = vmatpush.bf16.msra.mxu2 %v1704_v34  ;;  %v1739_v34 = vld [vmem:[%s2257_s14 + $0x94] sm:$0xf0] }
  0x6b   : > { %831 = vmatpush.bf16.msra.mxu3 %v1712_v35  ;;  %793 = vmatmul.bf16.vlgmr.msra.gmra.mxu0 %v521_v40  ;;  %v1603_v40 = vld [vmem:[%s2257_s14 + $0x60] sm:$0xf] }
  0x6c   : > { %806 = vmatmul.bf16.vlgmr.msra.gmra.mxu1 %v522_v41  ;;  %1151 = vmatpush.bf16.msrb.mxu0 %v1668_v51  ;;  %v1733_v51 = vld [vmem:[%s2257_s14 + $0x6c] sm:$0xf] }
  0x6d   : > { %819 = vmatmul.bf16.vlgmr.msra.gmra.mxu2 %v523_v42  ;;  %1164 = vmatpush.bf16.msrb.mxu1 %v1672_v55  ;;  %v1624_v42 = vor.u32 %v1736_v30, %v1621_v32  ;;  %v1616_v61 = vor.u32 %v1733_v51, %v1613_v52  ;;  %v1557_v30 = vld [vmem:[%s2257_s14 + $0x10] sm:$0xf0]  ;;  %v1723_v32 = vld [vmem:[%s2257_s14 + $0x14] sm:$0xf0] }
  0x6e   : > { %832 = vmatmul.bf16.vlgmr.msra.gmra.mxu3 %v524_v43  ;;  %1177 = vmatpush.bf16.msrb.mxu2 %v1676_v56  ;;  %v1628_v43 = vor.u32 %v1739_v34, %v1627_v33  ;;  %v1587_v56 = vld [vmem:[%s2257_s14 + $0x40] sm:$0xf]  ;;  %v862_v33 = vrot.slane %v839_v21, 5  ;;  %v1721_v34 = vld [vmem:[%s2257_s14 + $0xc] sm:$0xf] }
  0x6f   : > { %1190 = vmatpush.bf16.msrb.mxu3 %v1680_v60  ;;  %v1728_v60 = vld [vmem:[%s2257_s14 + $0x44] sm:$0xf]  ;;  %v1588_v5 = vor.u32 %v1730_v59, %v1587_v56 }
  0x70   : > { %1152 = vmatpush.bf16.msrb.mxu0 %v1652_v1  ;;  %v981_v21 = vld [vmem:[%s2281_s19] sm:$0xf] }
  0x71   : > { %1165 = vmatpush.bf16.msrb.mxu1 %v1656_v2  ;;  %v852_v2 = vrot.slane %v2340_v6, 5 }
  0x72   : > { %1178 = vmatpush.bf16.msrb.mxu2 %v1660_v7  ;;  %v1592_v7 = vor.u32 %v1728_v60, %v1589_v62 }
  0x73   : > { %1191 = vmatpush.bf16.msrb.mxu3 %v1664_v11  ;;  %v1724_v11 = vld [vmem:[%s2257_s14 + $0x24] sm:$0xf] }
  0x74   : > { %1153 = vmatpush.bf16.msrb.mxu0 %v1636_v18  ;;  %v1725_v18 = vld [vmem:[%s2257_s14 + $0x2c] sm:$0xf] }
  0x75   : > { %1166 = vmatpush.bf16.msrb.mxu1 %v1640_v26  ;;  %v1584_v29 = vor.u32 %v1725_v18, %v1581_v20 }
  0x76   : > { %1179 = vmatpush.bf16.msrb.mxu2 %v1644_v27  ;;  %v1722_v27 = vld [vmem:[%s2257_s14 + $0xc] sm:$0xf0] }
  0x77   : > { %1192 = vmatpush.bf16.msrb.mxu3 %v1648_v31  ;;  %v1563_v31 = vld [vmem:[%s2257_s14 + $0x8] sm:$0xf] }
  0x78   : > { %1154 = vmatpush.bf16.msrb.mxu0 %v1620_v39 }
  0x79   : > { %1167 = vmatpush.bf16.msrb.mxu1 %v1624_v42 }
  0x7a   : > { %1180 = vmatpush.bf16.msrb.mxu2 %v1628_v43  ;;  %v840_v43 = vld [vmem:[%s403_s24] sm:$0x1] }
  0x7e   : > { %1181 = vmatpush.bf16.msrb.mxu2 %v1612_v58 }
  0xe8   : > { %v794_v45 = vpop.f32.mrf.mxu0 }
  0xe9   : > { %v807_v46 = vpop.f32.mrf.mxu1  ;;  %v795_v50 = vadd.f32 %v1847_v44, %v794_v45  ;;  %v1734_v44 = vld [vmem:[%s2257_s14 + $0x6c] sm:$0xf0]  ;;  %v1732_v45 = vld [vmem:[%s2257_s14 + $0x64] sm:$0xf] }
  0xea   : > { %v1604_v55 = vor.u32 %v1734_v44, %v1603_v40  ;;  %v1608_v57 = vor.u32 %v1732_v45, %v1605_v47  ;;  %v871_v45 = vrot.slane %v2340_v6, 3 }
  0xeb   : > { %v808_v0 = vadd.f32 %v807_v46, %v795_v50  ;;  %v1632_v46 = vor.u32 %v1737_v37, %v1629_v38  ;;  %v1560_v37 = vor.u32 %v1720_v28, %v1557_v30  ;;  %v1564_v38 = vor.u32 %v1723_v32, %v1563_v31 }
  0xec   : > { %1155 = vmatpush.bf16.msrb.mxu0 %v1604_v55  ;;  %1168 = vmatpush.bf16.msrb.mxu1 %v1608_v57  ;;  %v986_v28 = vperm.slane %v981_v21, 3  ;;  %v985_v31 = vperm.slane %v981_v21, 2 }
  0xed   : > { %1193 = vmatpush.bf16.msrb.mxu3 %v1632_v46 }
  0xf0   : > { %v820_v15 = vpop.f32.mrf.mxu2  ;;  %v796_v24 = vpop.f32.mrf.mxu0  ;;  %1156 = vmatpush.bf16.msrb.mxu0 %v1588_v5  ;;  %1169 = vmatpush.bf16.msrb.mxu1 %v1592_v7 }
  0xf1   : > { %v833_v16 = vpop.f32.mrf.mxu3  ;;  %v821_v23 = vadd.f32 %v820_v15, %v808_v0  ;;  %v809_v25 = vpop.f32.mrf.mxu1  ;;  %v1731_v0 = vld [vmem:[%s2257_s14 + $0x54] sm:$0xf0]  ;;  %1194 = vmatpush.bf16.msrb.mxu3 %v1616_v61  ;;  %v1555_v24 = vld [vmem:[%s2257_s14] sm:$0xf]  ;;  %v901_v61 = vrot.slane %v2340_v6, 2 }
  0xf2   : > { %v1596_v8 = vor.u32 %v1731_v0, %v1595_v63  ;;  %v1727_v15 = vld [vmem:[%s2257_s14 + $0x34] sm:$0xf0]  ;;  %v1576_v25 = vor.u32 %v1724_v11, %v1573_v13 }
  0xf3   : > { %v834_v35 = vadd.f32 %v833_v16, %v821_v23  ;;  %v1572_v23 = vor.u32 %v1726_v10, %v1571_v9  ;;  %v1580_v26 = vor.u32 %v1727_v15, %v1579_v14 }
  0xf4   : > { %1182 = vmatpush.bf16.msrb.mxu2 %v1596_v8  ;;  %1170 = vmatpush.bf16.msrb.mxu1 %v1576_v25 }
  0xf5   : > { %v2361_v41 = vmax.f32 %v834_v35, 0.0  ;;  %1195 = vmatpush.bf16.msrb.mxu3 %v1600_v12  ;;  %v1565_v35 = vld [vmem:[%s2257_s14 + $0x18] sm:$0xf0]  ;;  %1157 = vmatpush.bf16.msrb.mxu0 %v1572_v23 }
  0xf6   : > { %v1568_v39 = vor.u32 %v1721_v34, %v1565_v35 }
  0xf7   : > { %v2369_v50 = vmul.f32 %v842_v36, %v2361_v41  ;;  %v2382_v1 = vmul.f32 %v2340_v6, %v2361_v41  ;;  %v854_v16 = vmul.f32 %v852_v2, %v2361_v41  ;;  %v1556_v36 = vor.u32 %v1722_v27, %v1555_v24 }
  0xf8   : > { %v822_v53 = vpop.f32.mrf.mxu2  ;;  %1183 = vmatpush.bf16.msrb.mxu2 %v1580_v26  ;;  %v864_v40 = vmul.f32 %v862_v33, %v2361_v41  ;;  %1171 = vmatpush.bf16.msrb.mxu1 %v1560_v37  ;;  %v873_v48 = vmul.f32 %v871_v45, %v2361_v41  ;;  %v903_v0 = vmul.f32 %v901_v61, %v2361_v41 }
  0xf9   : > { %v835_v54 = vpop.f32.mrf.mxu3  ;;  %847 = vst [vmem:[#allocation1] sm:$0xff] %v2369_v50  ;;  %1196 = vmatpush.bf16.msrb.mxu3 %v1584_v29  ;;  %1158 = vmatpush.bf16.msrb.mxu0 %v1556_v36  ;;  %v845_v44 = vadd.f32 %v2369_v50, %v840_v43 }
  0xfa   : > { %v891_v54 = vrot.slane %v2340_v6, 1  ;;  %v874_v55 = vadd.f32 %v873_v48, %v840_v43  ;;  %v916_v6 = vadd.f32 %v2382_v1, %v840_v43 }
  0xfc   : > { %1184 = vmatpush.bf16.msrb.mxu2 %v1564_v38  ;;  %v893_v57 = vmul.f32 %v891_v54, %v2361_v41 }
  0xfd   : > { %1197 = vmatpush.bf16.msrb.mxu3 %v1568_v39 }
  0xfe   : > { %v894_v5 = vadd.f32 %v893_v57, %v840_v43 }
 0x100   : > { %v849_v22 = vld [vmem:[#allocation1 + $0x1] ss:$9 sm:$0xff] }
 0x101   : > { %856 = vst [vmem:[#allocation1] sm:$0xff] %v854_v16  ;;  %v851_v46 = vadd.f32 %v849_v22, %v845_v44  ;;  %v984_v22 = vperm.slane %v981_v21, 1 }
 0x108   : > { %v858_v42 = vld [vmem:[#allocation1 + $0x2] ss:$9 sm:$0xff] }
 0x109   : > { %866 = vst [vmem:[#allocation1] sm:$0xff] %v864_v40  ;;  %v860_v47 = vadd.f32 %v858_v42, %v851_v46 }
 0x110   : > { %v868_v49 = vld [vmem:[#allocation1 + $0x3] ss:$9 sm:$0xff] }
 0x111   : > { %v870_v51 = vadd.f32 %v868_v49, %v860_v47  ;;  %876 = vst [vmem:[#allocation1] sm:$0xff] %v873_v48 }
 0x118   : > { %v878_v52 = vld [vmem:[#allocation1 + $0x1] ss:$9 sm:$0xff] }
 0x119   : > { %881 = vst [vmem:[#allocation1] sm:$0xff] %v2369_v50  ;;  %v880_v56 = vadd.f32 %v878_v52, %v874_v55 }
 0x120   : > { %v883_v53 = vld [vmem:[#allocation1 + $0x2] ss:$9 sm:$0xff] }
 0x121   : > { %886 = vst [vmem:[#allocation1] sm:$0xff] %v2369_v50  ;;  %v885_v58 = vadd.f32 %v883_v53, %v880_v56 }
 0x128   : > { %v888_v59 = vld [vmem:[#allocation1 + $0x3] ss:$9 sm:$0xff] }
 0x129   : > { %v890_v60 = vadd.f32 %v888_v59, %v885_v58  ;;  %896 = vst [vmem:[#allocation1] sm:$0xff] %v893_v57 }
 0x12b   : > { %v934_v62 = vperm.slane %v890_v60, 0 }
 0x12d   : > { %v943_v63 = vsel %vm942_vm0, %v870_v51, %v934_v62 }
 0x130   : > { %v898_v2 = vld [vmem:[#allocation1 + $0x1] ss:$9 sm:$0xff] }
 0x131   : > { %905 = vst [vmem:[#allocation1] sm:$0xff] %v903_v0  ;;  %v900_v7 = vadd.f32 %v898_v2, %v894_v5 }
 0x138   : > { %v907_v50 = vld [vmem:[#allocation1 + $0x2] ss:$9 sm:$0xff] }
 0x139   : > { %910 = vst [vmem:[#allocation1] sm:$0xff] %v903_v0  ;;  %v909_v9 = vadd.f32 %v907_v50, %v900_v7 }
 0x140   : > { %v912_v3 = vld [vmem:[#allocation1 + $0x3] ss:$9 sm:$0xff] }
 0x141   : > { %918 = vst [vmem:[#allocation1] sm:$0xff] %v2382_v1  ;;  %v914_v10 = vadd.f32 %v912_v3, %v909_v9  ;;  %v983_v1 = vperm.slane %v981_v21, 0 }
 0x143   : > { %v937_v13 = vperm.slane %v914_v10, 0 }
 0x145   : > { %v945_v16 = vsel %vm944_vm1, %v943_v63, %v937_v13 }
 0x148   : > { %v920_v4 = vld [vmem:[#allocation1 + $0x1] ss:$9 sm:$0xff] }
 0x149   : > { %923 = vst [vmem:[#allocation1] sm:$0xff] %v893_v57  ;;  %v922_v11 = vadd.f32 %v920_v4, %v916_v6 }
 0x150   : > { %v925_v8 = vld [vmem:[#allocation1 + $0x2] ss:$9 sm:$0xff] }
 0x151   : > { %928 = vst [vmem:[#allocation1] sm:$0xff] %v893_v57  ;;  %v927_v41 = vadd.f32 %v925_v8, %v922_v11 }
 0x158   : > { %v930_v12 = vld [vmem:[#allocation1 + $0x3] ss:$9 sm:$0xff] }
 0x159   : > { %v932_v14 = vadd.f32 %v930_v12, %v927_v41 }
 0x15b   : > { %v940_v15 = vperm.slane %v932_v14, 0 }
 0x15d   : > { %v947_v18 = vsel %vm946_vm2, %v945_v16, %v940_v15 }
 0x15e   : > { %v948_v20 = vpack.c.bf16 %v947_v18, %v947_v18 }
 0x160   : > { %1159 = vmatmul.bf16.vlgmr.msrb.gmra.mxu0 %v948_v20  ;;  %1172 = vmatmul.bf16.vlgmr.msrb.gmra.mxu1 %v948_v20 }
 0x161   : > { %1185 = vmatmul.bf16.vlgmr.msrb.gmra.mxu2 %v948_v20  ;;  %1198 = vmatmul.bf16.vlgmr.msrb.gmra.mxu3 %v948_v20 }
 0x1dd   : > { %v1160_v23 = vpop.f32.mrf.mxu0  ;;  %v1173_v24 = vpop.f32.mrf.mxu1 }
 0x1de   : > { %v1174_v25 = vadd.f32 %v1173_v24, %v984_v22  ;;  %v1161_v26 = vadd.f32 %v1160_v23, %v983_v1 }
 0x1e0   : > { %v1207_v27 = vrot.slane %v1174_v25, 4 }
 0x1e2   : > { %v1210_v29 = vsel %vm1209_vm3, %v1161_v26, %v1207_v27 }
 0x1e3   : > { %v1214_v30 = vadd.f32 %v1210_v29, %v2299_v17 }
 0x1e4   : > { %v1186_v32 = vpop.f32.mrf.mxu2  ;;  %v1199_v33 = vpop.f32.mrf.mxu3 }
 0x1e5   : > { %v1216_v34 = vmax.f32 %v1214_v30, 0.0  ;;  %v1200_v35 = vadd.f32 %v1199_v33, %v986_v28  ;;  %v1162_v36 = vpop.f32.mrf.mxu0  ;;  %v1175_v37 = vpop.f32.mrf.mxu1  ;;  %v1187_v38 = vadd.f32 %v1186_v32, %v985_v31 }
 0x1e7   : > { %1218 = vst [vmem:[#allocation2] sm:$0xff] %v1216_v34  ;;  %v1208_v39 = vrot.slane %v1200_v35, 4 }
 0x1e8   : > { %1220 = vst [vmem:[%s2279_s18] sm:$0xff] %v1216_v34 }
 0x1e9   : > { %v1211_v40 = vsel %vm1209_vm3, %v1187_v38, %v1208_v39 }
 0x1ea   : > { %v1215_v42 = vadd.f32 %v1211_v40, %v2303_v19 }
 0x1ec   : > { %v1217_v43 = vmax.f32 %v1215_v42, 0.0  ;;  %v1188_v44 = vpop.f32.mrf.mxu2  ;;  %v1201_v45 = vpop.f32.mrf.mxu3 }
 0x1ee   : > { %1219 = vst [vmem:[#allocation2 + $0x8] sm:$0xff] %v1217_v43 }
 0x1ef   : > { %1221 = vst [vmem:[%s2279_s18 + $0x8] sm:$0xff] %v1217_v43 }
 0x1f0 PF: > { %s26_s8 = sadd.s32 1, %s2072_s8   ;;  %s2477_s27 = sld [smem:[#allocation14_spill]] }
 0x1f1   : > { %p23_p3 = scmp.ge.s32.totalorder %s26_s8, 16   ;;  %s2478_s26 = sld [smem:[#allocation18_spill]] }
 0x1f2   : > { %s2479_s28 = sld [smem:[#allocation15_spill]]  ;;  %s2482_s24 = smov %s2048_s25 }
 0x1f3   : > { %s2480_s5 = sld [smem:[#allocation16_spill]] }
 0x1f4   : > { %s2481_s30 = sld [smem:[#allocation17_spill]] }
 0x1f5   :  { %25 = sbr.rel (!%p23_p3) target bundleno = 13 (0xd), region = 159 }
 0x1f6   : > { %s2483_s25 = smov %s2477_s27  ;;  %s2484_s27 = smov %s2064_s29 }
 0x1f9   : > { %s2485_s29 = smov %s2480_s5 }
 0x1fa   :  { %1243 = vsyncpa [#allocation4], 1 }
 0x1fb   :  { %1245 = vsyncpa [#allocation4 + $0x1], 1 }
 0x1fc   :  { %1246 = vsyncpa [#allocation6], 1 }
 0x1fd   :  { %1248 = vsyncpa [#allocation6 + $0x1], 1 }
 0x1fe   :  { %1249 = vsyncpa [#allocation9], 1 }
 0x1ff   :  { %1251 = vsyncpa [#allocation9 + $0x1], 1 }

// kernel: _lambda_.12
= control target key start
LH: loop header
LB: loop body
LE: loop exit
PB: predicated region body
PF: predicated region fallthrough
CT: control target
= control target key end

     0   :  { %12 = vsyncpa [#allocation3], 0  ;;  %s3633_s0 = inlined_call_operand.vmem [shape: f32[2,4,512], index: 0, kind: input, shape index: {}]   ;;  %s3634_s1 = inlined_call_operand.hbm [shape: bf16[512,256], index: 1, kind: input, shape index: {}]   ;;  %s3635_s2 = inlined_call_operand.hbm [shape: f32[1,256], index: 2, kind: input, shape index: {}]   ;;  %s3636_s3 = inlined_call_operand.hbm [shape: f32[9,256], index: 3, kind: input, shape index: {}]   ;;  %s3637_s4 = inlined_call_operand.hbm [shape: f32[1,256], index: 4, kind: input, shape index: {}]   ;;  %s3638_s5 = inlined_call_operand.hbm [shape: bf16[256,1024], index: 5, kind: input, shape index: {}]   ;;  %s3639_s6 = inlined_call_operand.hbm [shape: f32[1,1024], index: 6, kind: input, shape index: {}]   ;;  %s3640_s7 = inlined_call_operand.vmem [shape: f32[2,1,1024], index: 7, kind: output, shape index: {}]  }
   0x1   :  { %13 = vsyncpa [#allocation5], 0 }
   0x2   :  { %14 = vsyncpa [#allocation8], 0 }
   0x3   :  { %15 = vsyncpa [#allocation11], 0  ;;  %s3458_s24 = smov 0  }
   0x4 LB: > { %s230_s27 = sshll.u32 %s3635_s2, 4  ;;  %s3467_s28 = sadd.s32 4294967295, %s3404_s24   ;;  %s3404_s24 = sphi %s3458_s24, %s21_s24   ;;  %s231_s27 = int_to_ptr.hbm [resolvable:$true] %s230_s27 }
   0x5   : > { %p2140_p0 = scmp.ge.s32.totalorder %s3404_s24, 1  ;;  %p204_p1 = scmp.lt.s32.totalorder %s3404_s24, 3 }
   0x6   : > { %p3170_p2 = scmp.eq.s32.totalorder %s3467_s28, 0  ;;  %s3406_s30 = smov [#allocation4]  }
   0x7   : > { %p3472_p3 = pnand %p2140_p0, %p204_p1  ;;  %s232_s8 = sshll.u32 %s3406_s30, 4  ;;  %s233_s8 = int_to_ptr.vmem [resolvable:$true] %s232_s8 }
   0x8   : > { %s256_s11 = sshll.u32 %s3637_s4, 4  ;;  %s215_s14 = sshll.u32 %s3634_s1, 4  ;;  %s257_s11 = int_to_ptr.hbm [resolvable:$true] %s256_s11  ;;  %s216_s14 = int_to_ptr.hbm [resolvable:$true] %s215_s14 }
   0x9   : > { %p3151_p4 = pneg %p3472_p3  ;;  %s3407_s16 = smov [#allocation7]  }
   0xa   : > { %s258_s17 = sshll.u32 %s3407_s16, 4  ;;  %s3408_s18 = smov [#allocation2]   ;;  %s259_s17 = int_to_ptr.vmem [resolvable:$true] %s258_s17 }
   0xb   : > { %p3486_p5 = pnand %p3170_p2, %p3151_p4  ;;  %s217_s19 = sshll.u32 %s3408_s18, 4  ;;  %s218_s19 = int_to_ptr.vmem [resolvable:$true] %s217_s19 }
   0xc   : > { %s3409_s20 = smov 128   ;;  %s3410_s21 = smov 8  }
   0xd   : > { %3157 = dma.hbm_to_vmem [thread:$0]  (!%p3486_p5), %s231_s27, 32, %s233_s8, [#allocation5]  }
   0xe   : > { %3163 = dma.hbm_to_vmem [thread:$0]  (!%p3486_p5), %s257_s11, 32, %s259_s17, [#allocation8]  }
   0xf   : > { %3154 = dma.hbm_to_vmem [thread:$0]  (!%p3486_p5), %s216_s14, 8192, %s218_s19, [#allocation3], %s3409_s20, %s3409_s20, %s3410_s21  }
  0x10   : > { %s241_s25 = sshll.u32 %s3636_s3, 4  ;;  %s3411_s26 = smov [#allocation6]   ;;  %s242_s25 = int_to_ptr.hbm [resolvable:$true] %s241_s25 }
  0x11   : > { %s243_s30 = sshll.u32 %s3411_s26, 4  ;;  %s267_s9 = sshll.u32 %s3638_s5, 4  ;;  %s244_s30 = int_to_ptr.vmem [resolvable:$true] %s243_s30  ;;  %s268_s9 = int_to_ptr.hbm [resolvable:$true] %s267_s9 }
  0x12   : > { %s3412_s10 = smov 256   ;;  %s3413_s11 = smov 16  }
  0x13   : > { %3160 = dma.hbm_to_vmem [thread:$0]  (!%p3486_p5), %s242_s25, 512, %s244_s30, [#allocation5], %s3412_s10, %s3412_s10, %s3413_s11  }
  0x14   : > { %s3414_s12 = smov [#allocation9]   ;;  %s3415_s14 = smov 512  }
  0x15   : > { %s269_s13 = sshll.u32 %s3414_s12, 4  ;;  %s3416_s16 = smov 32   ;;  %s270_s13 = int_to_ptr.vmem [resolvable:$true] %s269_s13 }
  0x16   : > { %3166 = dma.hbm_to_vmem [thread:$0]  (!%p3486_p5), %s268_s9, 16384, %s270_s13, [#allocation8], %s3415_s14, %s3415_s14, %s3416_s16  }
  0x17   : > { %s282_s19 = sshll.u32 %s3639_s6, 4  ;;  %s3417_s20 = smov [#allocation10]   ;;  %s283_s19 = int_to_ptr.hbm [resolvable:$true] %s282_s19 }
  0x18   : > { %s284_s21 = sshll.u32 %s3417_s20, 4  ;;  %305 = sbr.rel (%p3472_p3) target bundleno = 486 (0x1e6), region = 48  ;;  %s285_s21 = int_to_ptr.vmem [resolvable:$true] %s284_s21 }
  0x19   : > { %3169 = dma.hbm_to_vmem [thread:$0]  (!%p3486_p5), %s283_s19, 128, %s285_s21, [#allocation11]  }
  0x1d   : > { %3387 = dma.done.wait (%p3170_p2), [#allocation3], 8192  }
  0x1e   : > { %3389 = vsyncadd (%p3170_p2), [#allocation3], 4294959104 }
  0x1f   : > { %3391 = dma.done.wait (%p3170_p2), [#allocation5], 544  }
  0x20   : > { %3393 = vsyncadd (%p3170_p2), [#allocation5], 4294966752 }
  0x21   : > { %3395 = dma.done.wait (%p3170_p2), [#allocation8], 16416  }
  0x22   : > { %3397 = vsyncadd (%p3170_p2), [#allocation8], 4294950880 }
  0x23   : > { %3399 = dma.done.wait (%p3170_p2), [#allocation11], 128  }
  0x24   : > { %3401 = vsyncadd (%p3170_p2), [#allocation11], 4294967168  ;;  %v2216_v0 = vld [vmem:[#allocation2 + $0x70] sm:$0xf]  ;;  %v2950_v1 = vld [vmem:[#allocation2 + $0x74] sm:$0xf0] }
  0x25   : > { %v2280_v2 = vld [vmem:[#allocation2 + $0xf0] sm:$0xf]  ;;  %v2217_v3 = vor.u32 %v2950_v1, %v2216_v0  ;;  %v2966_v4 = vld [vmem:[#allocation2 + $0xf4] sm:$0xf0]  ;;  %v2208_v11 = vld [vmem:[#allocation2 + $0x60] sm:$0xf] }
  0x26   : > { %v2344_v5 = vld [vmem:[#allocation2 + $0x170] sm:$0xf]  ;;  %v2982_v6 = vld [vmem:[#allocation2 + $0x174] sm:$0xf0]  ;;  %v2281_v7 = vor.u32 %v2966_v4, %v2280_v2  ;;  %v2948_v13 = vld [vmem:[#allocation2 + $0x64] sm:$0xf0] }
  0x27   : > { %v2345_v8 = vor.u32 %v2982_v6, %v2344_v5  ;;  %v2408_v9 = vld [vmem:[#allocation2 + $0x1f0] sm:$0xf]  ;;  %v2998_v10 = vld [vmem:[#allocation2 + $0x1f4] sm:$0xf0]  ;;  %780 = vmatpush.bf16.msra.mxu0 %v2217_v3  ;;  %v2272_v14 = vld [vmem:[#allocation2 + $0xe0] sm:$0xf]  ;;  %v2209_v16 = vor.u32 %v2948_v13, %v2208_v11 }
  0x28   : > { %v2409_v12 = vor.u32 %v2998_v10, %v2408_v9  ;;  %v2964_v15 = vld [vmem:[#allocation2 + $0xe4] sm:$0xf0]  ;;  %793 = vmatpush.bf16.msra.mxu1 %v2281_v7  ;;  %v2336_v18 = vld [vmem:[#allocation2 + $0x160] sm:$0xf]  ;;  %v2200_v23 = vld [vmem:[#allocation2 + $0x50] sm:$0xf] }
  0x29   : > { %806 = vmatpush.bf16.msra.mxu2 %v2345_v8  ;;  %v2273_v17 = vor.u32 %v2964_v15, %v2272_v14  ;;  %v2980_v19 = vld [vmem:[#allocation2 + $0x164] sm:$0xf0]  ;;  %v2400_v20 = vld [vmem:[#allocation2 + $0x1e0] sm:$0xf]  ;;  %v2946_v24 = vld [vmem:[#allocation2 + $0x54] sm:$0xf0] }
  0x2a   : > { %819 = vmatpush.bf16.msra.mxu3 %v2409_v12  ;;  %v2337_v21 = vor.u32 %v2980_v19, %v2336_v18  ;;  %v2996_v22 = vld [vmem:[#allocation2 + $0x1e4] sm:$0xf0]  ;;  %v2264_v26 = vld [vmem:[#allocation2 + $0xd0] sm:$0xf]  ;;  %v2962_v27 = vld [vmem:[#allocation2 + $0xd4] sm:$0xf0]  ;;  %v2201_v29 = vor.u32 %v2946_v24, %v2200_v23 }
  0x2b   : > { %v2401_v25 = vor.u32 %v2996_v22, %v2400_v20  ;;  %v2328_v28 = vld [vmem:[#allocation2 + $0x150] sm:$0xf]  ;;  %781 = vmatpush.bf16.msra.mxu0 %v2209_v16  ;;  %v2978_v30 = vld [vmem:[#allocation2 + $0x154] sm:$0xf0]  ;;  %v2265_v33 = vor.u32 %v2962_v27, %v2264_v26  ;;  %v2192_v35 = vld [vmem:[#allocation2 + $0x40] sm:$0xf] }
  0x2c   : > { %v2392_v31 = vld [vmem:[#allocation2 + $0x1d0] sm:$0xf]  ;;  %v2994_v32 = vld [vmem:[#allocation2 + $0x1d4] sm:$0xf0]  ;;  %794 = vmatpush.bf16.msra.mxu1 %v2273_v17  ;;  %v2329_v34 = vor.u32 %v2978_v30, %v2328_v28  ;;  %v2944_v36 = vld [vmem:[#allocation2 + $0x44] sm:$0xf0] }
  0x2d   : > { %807 = vmatpush.bf16.msra.mxu2 %v2337_v21  ;;  %v2256_v37 = vld [vmem:[#allocation2 + $0xc0] sm:$0xf]  ;;  %v2393_v38 = vor.u32 %v2994_v32, %v2392_v31  ;;  %v2960_v39 = vld [vmem:[#allocation2 + $0xc4] sm:$0xf0]  ;;  %v2193_v44 = vor.u32 %v2944_v36, %v2192_v35  ;;  %p362_p6 = scmp.lt.s32.totalorder %s3467_s28, 1  ;;  %vm902_vm0 = vcmask 1040384  }
  0x2e   : > { %820 = vmatpush.bf16.msra.mxu3 %v2401_v25  ;;  %v2320_v40 = vld [vmem:[#allocation2 + $0x140] sm:$0xf]  ;;  %v2976_v41 = vld [vmem:[#allocation2 + $0x144] sm:$0xf0]  ;;  %v2257_v45 = vor.u32 %v2960_v39, %v2256_v37  ;;  %v2184_v47 = vld [vmem:[#allocation2 + $0x30] sm:$0xf] }
  0x2f   : > { %v2384_v42 = vld [vmem:[#allocation2 + $0x1c0] sm:$0xf]  ;;  %v2992_v43 = vld [vmem:[#allocation2 + $0x1c4] sm:$0xf0]  ;;  %782 = vmatpush.bf16.msra.mxu0 %v2201_v29  ;;  %v2321_v46 = vor.u32 %v2976_v41, %v2320_v40  ;;  %v2942_v48 = vld [vmem:[#allocation2 + $0x34] sm:$0xf0] }
  0x30   : > { %795 = vmatpush.bf16.msra.mxu1 %v2265_v33  ;;  %v2248_v49 = vld [vmem:[#allocation2 + $0xb0] sm:$0xf]  ;;  %v2385_v50 = vor.u32 %v2992_v43, %v2384_v42  ;;  %v2958_v51 = vld [vmem:[#allocation2 + $0xb4] sm:$0xf0]  ;;  %v2185_v56 = vor.u32 %v2942_v48, %v2184_v47  ;;  %s3644_s28 = smov (!%p362_p6, %s3467_s28), 1  ;;  %vm2011_vm1 = vcmask 1042434  }
  0x31   : > { %808 = vmatpush.bf16.msra.mxu2 %v2329_v34  ;;  %v2312_v52 = vld [vmem:[#allocation2 + $0x130] sm:$0xf]  ;;  %v2974_v53 = vld [vmem:[#allocation2 + $0x134] sm:$0xf0]  ;;  %v2249_v57 = vor.u32 %v2958_v51, %v2248_v49  ;;  %v2176_v59 = vld [vmem:[#allocation2 + $0x20] sm:$0xf] }
  0x32   : > { %821 = vmatpush.bf16.msra.mxu3 %v2393_v38  ;;  %v2376_v54 = vld [vmem:[#allocation2 + $0x1b0] sm:$0xf]  ;;  %v2990_v55 = vld [vmem:[#allocation2 + $0x1b4] sm:$0xf0]  ;;  %v2313_v58 = vor.u32 %v2974_v53, %v2312_v52  ;;  %v2940_v60 = vld [vmem:[#allocation2 + $0x24] sm:$0xf0] }
  0x33   : > { %783 = vmatpush.bf16.msra.mxu0 %v2193_v44  ;;  %v2240_v61 = vld [vmem:[#allocation2 + $0xa0] sm:$0xf]  ;;  %v2377_v62 = vor.u32 %v2990_v55, %v2376_v54  ;;  %v2956_v63 = vld [vmem:[#allocation2 + $0xa4] sm:$0xf0]  ;;  %v2177_v4 = vor.u32 %v2940_v60, %v2176_v59  ;;  %s2934_s29 = sshll.u32 %s3644_s28, 4  ;;  %vm2013_vm2 = vcmask 1041408  }
  0x34   : > { %796 = vmatpush.bf16.msra.mxu1 %v2257_v45  ;;  %v2304_v0 = vld [vmem:[#allocation2 + $0x120] sm:$0xf]  ;;  %v2972_v1 = vld [vmem:[#allocation2 + $0x124] sm:$0xf0]  ;;  %v2241_v5 = vor.u32 %v2956_v63, %v2240_v61  ;;  %v2168_v7 = vld [vmem:[#allocation2 + $0x10] sm:$0xf]  ;;  %s3539_s23 = scalar_lea.vmem %s3633_s0, %s2934_s29 }
  0x35   : > { %809 = vmatpush.bf16.msra.mxu2 %v2321_v46  ;;  %v2368_v2 = vld [vmem:[#allocation2 + $0x1a0] sm:$0xf]  ;;  %v2988_v3 = vld [vmem:[#allocation2 + $0x1a4] sm:$0xf0]  ;;  %v2305_v6 = vor.u32 %v2972_v1, %v2304_v0  ;;  %v2938_v8 = vld [vmem:[#allocation2 + $0x14] sm:$0xf0] }
  0x36   : > { %822 = vmatpush.bf16.msra.mxu3 %v2385_v50  ;;  %v2232_v9 = vld [vmem:[#allocation2 + $0x90] sm:$0xf]  ;;  %v2369_v10 = vor.u32 %v2988_v3, %v2368_v2  ;;  %v2954_v11 = vld [vmem:[#allocation2 + $0x94] sm:$0xf0]  ;;  %v2160_v16 = vld [vmem:[#allocation2] sm:$0xf]  ;;  %v2169_v17 = vor.u32 %v2938_v8, %v2168_v7 }
  0x37   : > { %784 = vmatpush.bf16.msra.mxu0 %v2185_v56  ;;  %v2296_v12 = vld [vmem:[#allocation2 + $0x110] sm:$0xf]  ;;  %v2970_v13 = vld [vmem:[#allocation2 + $0x114] sm:$0xf0]  ;;  %v2936_v18 = vld [vmem:[#allocation2 + $0x4] sm:$0xf0]  ;;  %v2233_v21 = vor.u32 %v2954_v11, %v2232_v9 }
  0x38   : > { %797 = vmatpush.bf16.msra.mxu1 %v2249_v57  ;;  %v2360_v14 = vld [vmem:[#allocation2 + $0x190] sm:$0xf]  ;;  %v2986_v15 = vld [vmem:[#allocation2 + $0x194] sm:$0xf0]  ;;  %v2224_v19 = vld [vmem:[#allocation2 + $0x80] sm:$0xf]  ;;  %v2297_v22 = vor.u32 %v2970_v13, %v2296_v12  ;;  %v2161_v33 = vor.u32 %v2936_v18, %v2160_v16 }
  0x39   : > { %810 = vmatpush.bf16.msra.mxu2 %v2313_v58  ;;  %v2952_v20 = vld [vmem:[#allocation2 + $0x84] sm:$0xf0]  ;;  %v2288_v23 = vld [vmem:[#allocation2 + $0x100] sm:$0xf]  ;;  %v2361_v26 = vor.u32 %v2986_v15, %v2360_v14  ;;  %v2949_v28 = vld [vmem:[#allocation2 + $0x74] sm:$0xf] }
  0x3a   : > { %823 = vmatpush.bf16.msra.mxu3 %v2377_v62  ;;  %v2968_v24 = vld [vmem:[#allocation2 + $0x104] sm:$0xf0]  ;;  %v2352_v25 = vld [vmem:[#allocation2 + $0x180] sm:$0xf]  ;;  %v2218_v29 = vld [vmem:[#allocation2 + $0x78] sm:$0xf0]  ;;  %v2225_v36 = vor.u32 %v2952_v20, %v2224_v19 }
  0x3b   : > { %785 = vmatpush.bf16.msra.mxu0 %v2177_v4  ;;  %v2984_v27 = vld [vmem:[#allocation2 + $0x184] sm:$0xf0]  ;;  %v2965_v30 = vld [vmem:[#allocation2 + $0xf4] sm:$0xf]  ;;  %v2282_v31 = vld [vmem:[#allocation2 + $0xf8] sm:$0xf0]  ;;  %v2289_v37 = vor.u32 %v2968_v24, %v2288_v23  ;;  %v2221_v41 = vor.u32 %v2949_v28, %v2218_v29 }
  0x3c   : > { %798 = vmatpush.bf16.msra.mxu1 %v2241_v5  ;;  %v3542_v32 = vld [vmem:[%s3539_s23 + $0x8] sm:$0xff]  ;;  %v2981_v34 = vld [vmem:[#allocation2 + $0x174] sm:$0xf]  ;;  %v2346_v35 = vld [vmem:[#allocation2 + $0x178] sm:$0xf0]  ;;  %v2353_v40 = vor.u32 %v2984_v27, %v2352_v25  ;;  %v2285_v44 = vor.u32 %v2965_v30, %v2282_v31  ;;  %vm2015_vm3 = vcmask 1044484  }
  0x3d   : > { %811 = vmatpush.bf16.msra.mxu2 %v2305_v6  ;;  %377 = vst [vmem:[#allocation1 + $0x10] ss:$2 sm:$0xff] %v3542_v32  ;;  %v2997_v38 = vld [vmem:[#allocation2 + $0x1f4] sm:$0xf]  ;;  %v2410_v39 = vld [vmem:[#allocation2 + $0x1f8] sm:$0xf0]  ;;  %v2349_v45 = vor.u32 %v2981_v34, %v2346_v35 }
  0x3e   : > { %824 = vmatpush.bf16.msra.mxu3 %v2369_v10  ;;  %v2947_v42 = vld [vmem:[#allocation2 + $0x64] sm:$0xf]  ;;  %v2210_v43 = vld [vmem:[#allocation2 + $0x68] sm:$0xf0]  ;;  %v3546_v48 = vld [vmem:[%s3539_s23] sm:$0xff]  ;;  %v2413_v49 = vor.u32 %v2997_v38, %v2410_v39  ;;  %s2157_s25 = sshll.u32 %s3644_s28, 3 }
  0x3f   : > { %786 = vmatpush.bf16.msra.mxu0 %v2169_v17  ;;  %v2963_v46 = vld [vmem:[#allocation2 + $0xe4] sm:$0xf]  ;;  %v2274_v47 = vld [vmem:[#allocation2 + $0xe8] sm:$0xf0]  ;;  %375 = vst [vmem:[#allocation1] ss:$2 sm:$0xff] %v3546_v48  ;;  %v2213_v54 = vor.u32 %v2947_v42, %v2210_v43  ;;  %s370_s27 = scalar_lea.vmem %s3640_s7, %s2157_s25 }
  0x40   : > { %799 = vmatpush.bf16.msra.mxu1 %v2233_v21  ;;  %v2979_v50 = vld [vmem:[#allocation2 + $0x164] sm:$0xf]  ;;  %v2338_v51 = vld [vmem:[#allocation2 + $0x168] sm:$0xf0]  ;;  %v2945_v55 = vld [vmem:[#allocation2 + $0x54] sm:$0xf]  ;;  %v2277_v58 = vor.u32 %v2963_v46, %v2274_v47 }
  0x41   : > { %812 = vmatpush.bf16.msra.mxu2 %v2297_v22  ;;  %v2995_v52 = vld [vmem:[#allocation2 + $0x1e4] sm:$0xf]  ;;  %v2402_v53 = vld [vmem:[#allocation2 + $0x1e8] sm:$0xf0]  ;;  %v2202_v56 = vld [vmem:[#allocation2 + $0x58] sm:$0xf0]  ;;  %v2341_v59 = vor.u32 %v2979_v50, %v2338_v51 }
  0x42   : > { %825 = vmatpush.bf16.msra.mxu3 %v2361_v26  ;;  %v2961_v57 = vld [vmem:[#allocation2 + $0xd4] sm:$0xf]  ;;  %v2405_v62 = vor.u32 %v2995_v52, %v2402_v53  ;;  %v2266_v0 = vld [vmem:[#allocation2 + $0xd8] sm:$0xf0]  ;;  %v2205_v6 = vor.u32 %v2945_v55, %v2202_v56  ;;  %v2943_v7 = vld [vmem:[#allocation2 + $0x44] sm:$0xf] }
  0x43   : > { %787 = vmatpush.bf16.msra.mxu0 %v2161_v33  ;;  %v2977_v1 = vld [vmem:[#allocation2 + $0x154] sm:$0xf]  ;;  %v2330_v2 = vld [vmem:[#allocation2 + $0x158] sm:$0xf0]  ;;  %v2194_v8 = vld [vmem:[#allocation2 + $0x48] sm:$0xf0]  ;;  %v2269_v10 = vor.u32 %v2961_v57, %v2266_v0 }
  0x44   : > { %800 = vmatpush.bf16.msra.mxu1 %v2225_v36  ;;  %v380_v60 = vld.sshfl [vmem:[#allocation1 + $0x10] sm:$0xff pattern:$0x75316420]  ;;  %v381_v61 = vld.sshfl [vmem:[#allocation1 + $0x18] sm:$0xff pattern:$0x75316420]  ;;  %v2333_v11 = vor.u32 %v2977_v1, %v2330_v2  ;;  %v2197_v22 = vor.u32 %v2943_v7, %v2194_v8 }
  0x45   : > { %813 = vmatpush.bf16.msra.mxu2 %v2289_v37  ;;  %v3549_v63 = vpack.c.bf16 %v380_v60, %v380_v60  ;;  %v2993_v3 = vld [vmem:[#allocation2 + $0x1d4] sm:$0xf]  ;;  %v2394_v4 = vld [vmem:[#allocation2 + $0x1d8] sm:$0xf0]  ;;  %v3551_v5 = vpack.c.bf16 %v381_v61, %v381_v61  ;;  %v2959_v9 = vld [vmem:[#allocation2 + $0xc4] sm:$0xf] }
  0x46   : > { %826 = vmatpush.bf16.msra.mxu3 %v2353_v40  ;;  %v378_v12 = vld.sshfl [vmem:[#allocation1] sm:$0xff pattern:$0x75316420]  ;;  %v379_v13 = vld.sshfl [vmem:[#allocation1 + $0x8] sm:$0xff pattern:$0x75316420]  ;;  %v2397_v14 = vor.u32 %v2993_v3, %v2394_v4 }
  0x47   : > { %832 = vmatpush.bf16.msrb.mxu0 %v2221_v41  ;;  %v3554_v15 = vpack.c.bf16 %v378_v12, %v378_v12  ;;  %v3556_v16 = vpack.c.bf16 %v379_v13, %v379_v13  ;;  %v2258_v17 = vld [vmem:[#allocation2 + $0xc8] sm:$0xf0]  ;;  %v2975_v18 = vld [vmem:[#allocation2 + $0x144] sm:$0xf]  ;;  %v2941_v25 = vld [vmem:[#allocation2 + $0x34] sm:$0xf] }
  0x48   : > { %845 = vmatpush.bf16.msrb.mxu1 %v2285_v44  ;;  %814 = vmatmul.bf16.vlgmr.msra.gmra.mxu2 %v3549_v63  ;;  %v2322_v19 = vld [vmem:[#allocation2 + $0x148] sm:$0xf0]  ;;  %v2991_v20 = vld [vmem:[#allocation2 + $0x1c4] sm:$0xf]  ;;  %v2261_v23 = vor.u32 %v2959_v9, %v2258_v17  ;;  %v2186_v26 = vld [vmem:[#allocation2 + $0x38] sm:$0xf0] }
  0x49   : > { %858 = vmatpush.bf16.msrb.mxu2 %v2349_v45  ;;  %827 = vmatmul.bf16.vlgmr.msra.gmra.mxu3 %v3551_v5  ;;  %v2386_v21 = vld [vmem:[#allocation2 + $0x1c8] sm:$0xf0]  ;;  %v2325_v24 = vor.u32 %v2975_v18, %v2322_v19  ;;  %v2957_v27 = vld [vmem:[#allocation2 + $0xb4] sm:$0xf]  ;;  %v2250_v29 = vld [vmem:[#allocation2 + $0xb8] sm:$0xf0]  ;;  %v2189_v35 = vor.u32 %v2941_v25, %v2186_v26 }
  0x4a   : > { %871 = vmatpush.bf16.msrb.mxu3 %v2413_v49  ;;  %801 = vmatmul.bf16.vlgmr.msra.gmra.mxu1 %v3556_v16  ;;  %v2389_v28 = vor.u32 %v2991_v20, %v2386_v21  ;;  %v2973_v30 = vld [vmem:[#allocation2 + $0x134] sm:$0xf]  ;;  %v2314_v31 = vld [vmem:[#allocation2 + $0x138] sm:$0xf0]  ;;  %v2253_v36 = vor.u32 %v2957_v27, %v2250_v29  ;;  %v2939_v38 = vld [vmem:[#allocation2 + $0x24] sm:$0xf] }
  0x4b   : > { %833 = vmatpush.bf16.msrb.mxu0 %v2213_v54  ;;  %v2989_v33 = vld [vmem:[#allocation2 + $0x1b4] sm:$0xf]  ;;  %v2378_v34 = vld [vmem:[#allocation2 + $0x1b8] sm:$0xf0]  ;;  %v2317_v37 = vor.u32 %v2973_v30, %v2314_v31  ;;  %v2178_v39 = vld [vmem:[#allocation2 + $0x28] sm:$0xf0] }
  0x4c   : > { %846 = vmatpush.bf16.msrb.mxu1 %v2277_v58  ;;  %788 = vmatmul.bf16.vlgmr.msra.gmra.mxu0 %v3554_v15  ;;  %v2955_v40 = vld [vmem:[#allocation2 + $0xa4] sm:$0xf]  ;;  %v2381_v41 = vor.u32 %v2989_v33, %v2378_v34  ;;  %v2242_v42 = vld [vmem:[#allocation2 + $0xa8] sm:$0xf0]  ;;  %v2181_v47 = vor.u32 %v2939_v38, %v2178_v39  ;;  %v2937_v51 = vld [vmem:[#allocation2 + $0x14] sm:$0xf] }
  0x4d   : > { %859 = vmatpush.bf16.msrb.mxu2 %v2341_v59  ;;  %v2971_v43 = vld [vmem:[#allocation2 + $0x124] sm:$0xf]  ;;  %v2306_v44 = vld [vmem:[#allocation2 + $0x128] sm:$0xf0]  ;;  %v2245_v49 = vor.u32 %v2955_v40, %v2242_v42  ;;  %v2170_v52 = vld [vmem:[#allocation2 + $0x18] sm:$0xf0] }
  0x4e   : > { %872 = vmatpush.bf16.msrb.mxu3 %v2405_v62  ;;  %v2987_v45 = vld [vmem:[#allocation2 + $0x1a4] sm:$0xf]  ;;  %v2370_v46 = vld [vmem:[#allocation2 + $0x1a8] sm:$0xf0]  ;;  %v2309_v50 = vor.u32 %v2971_v43, %v2306_v44  ;;  %v2953_v53 = vld [vmem:[#allocation2 + $0x94] sm:$0xf]  ;;  %v2173_v60 = vor.u32 %v2937_v51, %v2170_v52 }
  0x4f   : > { %834 = vmatpush.bf16.msrb.mxu0 %v2205_v6  ;;  %v2373_v54 = vor.u32 %v2987_v45, %v2370_v46  ;;  %v2234_v55 = vld [vmem:[#allocation2 + $0x98] sm:$0xf0]  ;;  %v2969_v56 = vld [vmem:[#allocation2 + $0x114] sm:$0xf]  ;;  %v2935_v0 = vld [vmem:[#allocation2 + $0x4] sm:$0xf] }
  0x50   : > { %847 = vmatpush.bf16.msrb.mxu1 %v2269_v10  ;;  %v2298_v57 = vld [vmem:[#allocation2 + $0x118] sm:$0xf0]  ;;  %v2985_v58 = vld [vmem:[#allocation2 + $0x194] sm:$0xf]  ;;  %v2237_v61 = vor.u32 %v2953_v53, %v2234_v55  ;;  %v2162_v1 = vld [vmem:[#allocation2 + $0x8] sm:$0xf0] }
  0x51   : > { %860 = vmatpush.bf16.msrb.mxu2 %v2333_v11  ;;  %v2362_v59 = vld [vmem:[#allocation2 + $0x198] sm:$0xf0]  ;;  %v2301_v62 = vor.u32 %v2969_v56, %v2298_v57  ;;  %v2951_v2 = vld [vmem:[#allocation2 + $0x84] sm:$0xf]  ;;  %v2226_v4 = vld [vmem:[#allocation2 + $0x88] sm:$0xf0]  ;;  %v2165_v10 = vor.u32 %v2935_v0, %v2162_v1 }
  0x52   : > { %873 = vmatpush.bf16.msrb.mxu3 %v2397_v14  ;;  %v2365_v3 = vor.u32 %v2985_v58, %v2362_v59  ;;  %v2967_v6 = vld [vmem:[#allocation2 + $0x104] sm:$0xf]  ;;  %v2290_v7 = vld [vmem:[#allocation2 + $0x108] sm:$0xf0]  ;;  %v2229_v11 = vor.u32 %v2951_v2, %v2226_v4  ;;  %v3055_v21 = vld [vmem:[#allocation9 + $0x1c4] sm:$0xf] }
  0x53   : > { %835 = vmatpush.bf16.msrb.mxu0 %v2197_v22  ;;  %v2983_v8 = vld [vmem:[#allocation2 + $0x184] sm:$0xf]  ;;  %v2354_v9 = vld [vmem:[#allocation2 + $0x188] sm:$0xf0]  ;;  %v2293_v12 = vor.u32 %v2967_v6, %v2290_v7  ;;  %v2642_v22 = vld [vmem:[#allocation9 + $0x1e0] sm:$0xf0] }
  0x54   : > { %848 = vmatpush.bf16.msrb.mxu1 %v2261_v23  ;;  %v2357_v13 = vor.u32 %v2983_v8, %v2354_v9  ;;  %v2640_v14 = vld [vmem:[#allocation9 + $0x1c0] sm:$0xf]  ;;  %v3119_v25 = vld [vmem:[#allocation9 + $0x3c4] sm:$0xf]  ;;  %vm2017_vm4 = vcmask 1046534   ;;  %vm2019_vm5 = vcmask 1045508  }
  0x55   : > { %861 = vmatpush.bf16.msrb.mxu2 %v2325_v24  ;;  %v3059_v17 = vld [vmem:[#allocation9 + $0x1dc] sm:$0xf0]  ;;  %v2645_v24 = vor.u32 %v3055_v21, %v2642_v22  ;;  %v2898_v26 = vld [vmem:[#allocation9 + $0x3e0] sm:$0xf0]  ;;  %vm2021_vm6 = vcmask 1043456  }
  0x56   : > { %874 = vmatpush.bf16.msrb.mxu3 %v2389_v28  ;;  %v2896_v18 = vld [vmem:[#allocation9 + $0x3c0] sm:$0xf]  ;;  %v2641_v19 = vor.u32 %v3059_v17, %v2640_v14  ;;  %v3047_v29 = vld [vmem:[#allocation9 + $0x184] sm:$0xf] }
  0x57   : > { %836 = vmatpush.bf16.msrb.mxu0 %v2189_v35  ;;  %v3123_v20 = vld [vmem:[#allocation9 + $0x3dc] sm:$0xf0]  ;;  %v2610_v30 = vld [vmem:[#allocation9 + $0x1a0] sm:$0xf0] }
  0x58   : > { %849 = vmatpush.bf16.msrb.mxu1 %v2253_v36  ;;  %v2897_v23 = vor.u32 %v3123_v20, %v2896_v18  ;;  %v3051_v27 = vld [vmem:[#allocation9 + $0x19c] sm:$0xf0]  ;;  %v2613_v33 = vor.u32 %v3047_v29, %v2610_v30  ;;  %v3111_v34 = vld [vmem:[#allocation9 + $0x384] sm:$0xf] }
  0x59   : > { %862 = vmatpush.bf16.msrb.mxu2 %v2317_v37  ;;  %v2866_v35 = vld [vmem:[#allocation9 + $0x3a0] sm:$0xf0]  ;;  %v2576_v37 = vld [vmem:[#allocation9 + $0x140] sm:$0xf] }
  0x5a   : > { %875 = vmatpush.bf16.msrb.mxu3 %v2381_v41  ;;  %v2869_v36 = vor.u32 %v3111_v34, %v2866_v35  ;;  %v3043_v38 = vld [vmem:[#allocation9 + $0x15c] sm:$0xf0]  ;;  %v3039_v42 = vld [vmem:[#allocation9 + $0x144] sm:$0xf] }
  0x5b   : > { %837 = vmatpush.bf16.msrb.mxu0 %v2181_v47  ;;  %v2832_v39 = vld [vmem:[#allocation9 + $0x340] sm:$0xf]  ;;  %v2577_v40 = vor.u32 %v3043_v38, %v2576_v37  ;;  %v2578_v43 = vld [vmem:[#allocation9 + $0x160] sm:$0xf0] }
  0x5c   : > { %850 = vmatpush.bf16.msrb.mxu1 %v2245_v49  ;;  %v3107_v41 = vld [vmem:[#allocation9 + $0x35c] sm:$0xf0]  ;;  %v2581_v45 = vor.u32 %v3039_v42, %v2578_v43  ;;  %v3103_v46 = vld [vmem:[#allocation9 + $0x344] sm:$0xf] }
  0x5d   : > { %863 = vmatpush.bf16.msrb.mxu2 %v2309_v50  ;;  %v2833_v44 = vor.u32 %v3107_v41, %v2832_v39  ;;  %v2834_v47 = vld [vmem:[#allocation9 + $0x360] sm:$0xf0]  ;;  %v2544_v49 = vld [vmem:[#allocation9 + $0x100] sm:$0xf] }
  0x5e   : > { %876 = vmatpush.bf16.msrb.mxu3 %v2373_v54  ;;  %v2837_v50 = vor.u32 %v3103_v46, %v2834_v47  ;;  %v3035_v51 = vld [vmem:[#allocation9 + $0x11c] sm:$0xf0]  ;;  %v3031_v55 = vld [vmem:[#allocation9 + $0x104] sm:$0xf] }
  0x5f   : > { %838 = vmatpush.bf16.msrb.mxu0 %v2173_v60  ;;  %v2800_v52 = vld [vmem:[#allocation9 + $0x300] sm:$0xf]  ;;  %v2545_v54 = vor.u32 %v3035_v51, %v2544_v49  ;;  %v2546_v56 = vld [vmem:[#allocation9 + $0x120] sm:$0xf0] }
  0x60   : > { %851 = vmatpush.bf16.msrb.mxu1 %v2237_v61  ;;  %v3099_v53 = vld [vmem:[#allocation9 + $0x31c] sm:$0xf0]  ;;  %v3095_v57 = vld [vmem:[#allocation9 + $0x304] sm:$0xf]  ;;  %v2549_v59 = vor.u32 %v3031_v55, %v2546_v56 }
  0x61   : > { %864 = vmatpush.bf16.msrb.mxu2 %v2301_v62  ;;  %v2801_v58 = vor.u32 %v3099_v53, %v2800_v52  ;;  %v2802_v60 = vld [vmem:[#allocation9 + $0x320] sm:$0xf0]  ;;  %v3565_v62 = vld [vmem:[#allocation4] sm:$0x3]  ;;  %v2512_v0 = vld [vmem:[#allocation9 + $0xc0] sm:$0xf] }
  0x62   : > { %877 = vmatpush.bf16.msrb.mxu3 %v2365_v3  ;;  %v2805_v61 = vor.u32 %v3095_v57, %v2802_v60  ;;  %v3027_v1 = vld [vmem:[#allocation9 + $0xdc] sm:$0xf0]  ;;  %v3023_v6 = vld [vmem:[#allocation9 + $0xc4] sm:$0xf]  ;;  %v2648_v60 = vld [vmem:[#allocation9 + $0x1c8] sm:$0xf] }
  0x63   : > { %839 = vmatpush.bf16.msrb.mxu0 %v2165_v10  ;;  %v2768_v2 = vld [vmem:[#allocation9 + $0x2c0] sm:$0xf]  ;;  %v2513_v3 = vor.u32 %v3027_v1, %v2512_v0  ;;  %v2514_v7 = vld [vmem:[#allocation9 + $0xe0] sm:$0xf0] }
  0x64   : > { %852 = vmatpush.bf16.msrb.mxu1 %v2229_v11  ;;  %v3091_v4 = vld [vmem:[#allocation9 + $0x2dc] sm:$0xf0]  ;;  %v2517_v9 = vor.u32 %v3023_v6, %v2514_v7  ;;  %v3087_v10 = vld [vmem:[#allocation9 + $0x2c4] sm:$0xf]  ;;  %v3124_v6 = vld [vmem:[#allocation9 + $0x3e4] sm:$0xf0] }
  0x65   : > { %865 = vmatpush.bf16.msrb.mxu2 %v2293_v12  ;;  %v2769_v8 = vor.u32 %v3091_v4, %v2768_v2  ;;  %v2770_v11 = vld [vmem:[#allocation9 + $0x2e0] sm:$0xf0]  ;;  %v2480_v14 = vld [vmem:[#allocation9 + $0x80] sm:$0xf]  ;;  %v2904_v4 = vld [vmem:[#allocation9 + $0x3c8] sm:$0xf] }
  0x66   : > { %878 = vmatpush.bf16.msrb.mxu3 %v2357_v13  ;;  %840 = vmatmul.bf16.vlgmr.msrb.gmra.mxu0 %v3554_v15  ;;  %v2901_v15 = vor.u32 %v3119_v25, %v2898_v26  ;;  %v2773_v12 = vor.u32 %v3087_v10, %v2770_v11  ;;  %v456_v13 = vperm.slane %v3565_v62, 0  ;;  %v3019_v17 = vld [vmem:[#allocation9 + $0x9c] sm:$0xf0]  ;;  %v3015_v21 = vld [vmem:[#allocation9 + $0x84] sm:$0xf] }
  0x67   : > { %853 = vmatmul.bf16.vlgmr.msrb.gmra.mxu1 %v3556_v16  ;;  %1735 = vmatpush.bf16.msra.mxu0 %v2641_v19  ;;  %v2608_v16 = vld [vmem:[#allocation9 + $0x180] sm:$0xf]  ;;  %v2481_v19 = vor.u32 %v3019_v17, %v2480_v14  ;;  %v2482_v22 = vld [vmem:[#allocation9 + $0xa0] sm:$0xf0]  ;;  %v3056_v7 = vld [vmem:[#allocation9 + $0x1cc] sm:$0xf] }
  0x68   : > { %866 = vmatmul.bf16.vlgmr.msrb.gmra.mxu2 %v3549_v63  ;;  %1748 = vmatpush.bf16.msra.mxu1 %v2897_v23  ;;  %v2864_v63 = vld [vmem:[#allocation9 + $0x380] sm:$0xf]  ;;  %v2609_v28 = vor.u32 %v3051_v27, %v2608_v16  ;;  %v2485_v25 = vor.u32 %v3015_v21, %v2482_v22  ;;  %v3079_v26 = vld [vmem:[#allocation9 + $0x284] sm:$0xf]  ;;  %v2650_v10 = vld [vmem:[#allocation9 + $0x1e8] sm:$0xf0] }
  0x69   : > { %879 = vmatmul.bf16.vlgmr.msrb.gmra.mxu3 %v3551_v5  ;;  %1761 = vmatpush.bf16.msra.mxu2 %v2645_v24  ;;  %v3115_v5 = vld [vmem:[#allocation9 + $0x39c] sm:$0xf0]  ;;  %v3007_v38 = vld [vmem:[#allocation9 + $0x44] sm:$0xf]  ;;  %v3120_v11 = vld [vmem:[#allocation9 + $0x3cc] sm:$0xf] }
  0x6a   : > { %1774 = vmatpush.bf16.msra.mxu3 %v2901_v15  ;;  %v2865_v31 = vor.u32 %v3115_v5, %v2864_v63  ;;  %v2736_v18 = vld [vmem:[#allocation9 + $0x280] sm:$0xf]  ;;  %v2738_v15 = vld [vmem:[#allocation9 + $0x2a0] sm:$0xf0]  ;;  %v2616_v14 = vld [vmem:[#allocation9 + $0x188] sm:$0xf] }
  0x6b   : > { %1736 = vmatpush.bf16.msra.mxu0 %v2609_v28  ;;  %v3083_v20 = vld [vmem:[#allocation9 + $0x29c] sm:$0xf0]  ;;  %v2741_v16 = vor.u32 %v3079_v26, %v2738_v15  ;;  %v2450_v39 = vld [vmem:[#allocation9 + $0x60] sm:$0xf0]  ;;  %v3052_v17 = vld [vmem:[#allocation9 + $0x1a4] sm:$0xf0] }
  0x6c   : > { %1749 = vmatpush.bf16.msra.mxu1 %v2865_v31  ;;  %v2737_v24 = vor.u32 %v3083_v20, %v2736_v18  ;;  %v2448_v28 = vld [vmem:[#allocation9 + $0x40] sm:$0xf]  ;;  %v2453_v41 = vor.u32 %v3007_v38, %v2450_v39  ;;  %v2706_v42 = vld [vmem:[#allocation9 + $0x260] sm:$0xf0]  ;;  %v2872_v20 = vld [vmem:[#allocation9 + $0x388] sm:$0xf] }
  0x6d   : > { %1762 = vmatpush.bf16.msra.mxu2 %v2613_v33  ;;  %v3011_v5 = vld [vmem:[#allocation9 + $0x5c] sm:$0xf0]  ;;  %v2418_v55 = vld [vmem:[#allocation9 + $0x20] sm:$0xf0]  ;;  %v3116_v21 = vld [vmem:[#allocation9 + $0x3a4] sm:$0xf0] }
  0x6e   : > { %1775 = vmatpush.bf16.msra.mxu3 %v2869_v36  ;;  %v2704_v29 = vld [vmem:[#allocation9 + $0x240] sm:$0xf]  ;;  %v2449_v31 = vor.u32 %v3011_v5, %v2448_v28  ;;  %v3063_v56 = vld [vmem:[#allocation9 + $0x204] sm:$0xf]  ;;  %v3048_v22 = vld [vmem:[#allocation9 + $0x18c] sm:$0xf] }
  0x6f   : > { %1737 = vmatpush.bf16.msra.mxu0 %v2577_v40  ;;  %v3568_v33 = vld [vmem:[#allocation6] sm:$0xff]  ;;  %v2618_v26 = vld [vmem:[#allocation9 + $0x1a8] sm:$0xf0]  ;;  %v3044_v28 = vld [vmem:[#allocation9 + $0x164] sm:$0xf0]  ;;  %v457_v39 = vperm.slane %v3565_v62, 1 }
  0x70   : > { %1750 = vmatpush.bf16.msra.mxu1 %v2833_v44  ;;  %v3075_v34 = vld [vmem:[#allocation9 + $0x25c] sm:$0xf0]  ;;  %v3071_v40 = vld [vmem:[#allocation9 + $0x244] sm:$0xf]  ;;  %v893_v46 = vrot.slane %v3568_v33, 4 }
  0x71   : > { %1763 = vmatpush.bf16.msra.mxu2 %v2581_v45  ;;  %v2705_v37 = vor.u32 %v3075_v34, %v2704_v29  ;;  %v2416_v43 = vld [vmem:[#allocation9] sm:$0xf]  ;;  %v2709_v47 = vor.u32 %v3071_v40, %v2706_v42  ;;  %v3112_v15 = vld [vmem:[#allocation9 + $0x38c] sm:$0xf]  ;;  %v3036_v42 = vld [vmem:[#allocation9 + $0x124] sm:$0xf0] }
  0x72   : > { %1776 = vmatpush.bf16.msra.mxu3 %v2837_v50  ;;  %v3003_v44 = vld [vmem:[#allocation9 + $0x1c] sm:$0xf0]  ;;  %v3040_v34 = vld [vmem:[#allocation9 + $0x14c] sm:$0xf]  ;;  %v2520_v62 = vld [vmem:[#allocation9 + $0xc8] sm:$0xf] }
  0x73   : > { %1738 = vmatpush.bf16.msra.mxu0 %v2545_v54  ;;  %v2417_v49 = vor.u32 %v3003_v44, %v2416_v43  ;;  %v2672_v50 = vld [vmem:[#allocation9 + $0x200] sm:$0xf]  ;;  %v2999_v54 = vld [vmem:[#allocation9 + $0x4] sm:$0xf]  ;;  %v2842_v38 = vld [vmem:[#allocation9 + $0x368] sm:$0xf0] }
  0x74   : > { %1751 = vmatpush.bf16.msra.mxu1 %v2801_v58  ;;  %v3067_v51 = vld [vmem:[#allocation9 + $0x21c] sm:$0xf0]  ;;  %v2421_v58 = vor.u32 %v2999_v54, %v2418_v55  ;;  %v2808_v43 = vld [vmem:[#allocation9 + $0x308] sm:$0xf] }
  0x75   : > { %1764 = vmatpush.bf16.msra.mxu2 %v2549_v59  ;;  %v2673_v53 = vor.u32 %v3067_v51, %v2672_v50  ;;  %v2674_v59 = vld [vmem:[#allocation9 + $0x220] sm:$0xf0]  ;;  %v3096_v51 = vld [vmem:[#allocation9 + $0x30c] sm:$0xf]  ;;  %v3028_v55 = vld [vmem:[#allocation9 + $0xe4] sm:$0xf0] }
  0x76   : > { %1777 = vmatpush.bf16.msra.mxu3 %v2805_v61  ;;  %v3060_v61 = vld [vmem:[#allocation9 + $0x1e4] sm:$0xf0]  ;;  %v2677_v2 = vor.u32 %v3063_v56, %v2674_v59 }
  0x77   : > { %1739 = vmatpush.bf16.msra.mxu0 %v2513_v3  ;;  %v2649_v3 = vor.u32 %v3060_v61, %v2648_v60  ;;  %v2776_v56 = vld [vmem:[#allocation9 + $0x2c8] sm:$0xf]  ;;  %v2521_v60 = vor.u32 %v3028_v55, %v2520_v62  ;;  %v2682_v62 = vld [vmem:[#allocation9 + $0x228] sm:$0xf0] }
  0x78   : > { %1752 = vmatpush.bf16.msra.mxu1 %v2769_v8  ;;  %v3092_v61 = vld [vmem:[#allocation9 + $0x2e4] sm:$0xf0] }
  0x79   : > { %1765 = vmatpush.bf16.msra.mxu2 %v2517_v9  ;;  %v2905_v9 = vor.u32 %v3124_v6, %v2904_v4  ;;  %v2778_v4 = vld [vmem:[#allocation9 + $0x2e8] sm:$0xf0] }
  0x7a   : > { %1778 = vmatpush.bf16.msra.mxu3 %v2773_v12  ;;  %v2653_v12 = vor.u32 %v3056_v7, %v2650_v10  ;;  %v3020_v10 = vld [vmem:[#allocation9 + $0xa4] sm:$0xf0] }
  0x7b   : > { %1740 = vmatpush.bf16.msra.mxu0 %v2481_v19 }
  0x7c   : > { %1753 = vmatpush.bf16.msra.mxu1 %v2737_v24  ;;  %v2617_v24 = vor.u32 %v3052_v17, %v2616_v14  ;;  %v3084_v14 = vld [vmem:[#allocation9 + $0x2a4] sm:$0xf0]  ;;  %v3016_v17 = vld [vmem:[#allocation9 + $0x8c] sm:$0xf] }
  0x7d   : > { %1766 = vmatpush.bf16.msra.mxu2 %v2485_v25  ;;  %v2873_v25 = vor.u32 %v3116_v21, %v2872_v20  ;;  %v3080_v21 = vld [vmem:[#allocation9 + $0x28c] sm:$0xf] }
  0x7e   : > { %1779 = vmatpush.bf16.msra.mxu3 %v2741_v16  ;;  %v2874_v16 = vld [vmem:[#allocation9 + $0x3a8] sm:$0xf0] }
  0x7f   : > { %1741 = vmatpush.bf16.msra.mxu0 %v2449_v31  ;;  %v2877_v5 = vor.u32 %v3112_v15, %v2874_v16  ;;  %v3108_v31 = vld [vmem:[#allocation9 + $0x364] sm:$0xf0] }
  0x80   : > { %1754 = vmatpush.bf16.msra.mxu1 %v2705_v37  ;;  %v3104_v37 = vld [vmem:[#allocation9 + $0x34c] sm:$0xf] }
  0x81   : > { %1767 = vmatpush.bf16.msra.mxu2 %v2453_v41  ;;  %v2552_v41 = vld [vmem:[#allocation9 + $0x108] sm:$0xf]  ;;  %v2845_v44 = vor.u32 %v3104_v37, %v2842_v38 }
  0x82   : > { %1780 = vmatpush.bf16.msra.mxu3 %v2709_v47  ;;  %v3032_v47 = vld [vmem:[#allocation9 + $0x10c] sm:$0xf] }
  0x83   : > { %1742 = vmatpush.bf16.msra.mxu0 %v2417_v49  ;;  %v2554_v49 = vld [vmem:[#allocation9 + $0x128] sm:$0xf0] }
  0x84   : > { %1755 = vmatpush.bf16.msra.mxu1 %v2673_v53  ;;  %v2557_v53 = vor.u32 %v3032_v47, %v2554_v49  ;;  %v2680_v47 = vld [vmem:[#allocation9 + $0x208] sm:$0xf] }
  0x85   : > { %1768 = vmatpush.bf16.msra.mxu2 %v2421_v58  ;;  %v3068_v49 = vld [vmem:[#allocation9 + $0x224] sm:$0xf0] }
  0x86   : > { %1781 = vmatpush.bf16.msra.mxu3 %v2677_v2  ;;  %v2777_v2 = vor.u32 %v3092_v61, %v2776_v56 }
  0x87   : > { %1787 = vmatpush.bf16.msrb.mxu0 %v2649_v3  ;;  %v3088_v3 = vld [vmem:[#allocation9 + $0x2cc] sm:$0xf] }
  0x88   : > { %1800 = vmatpush.bf16.msrb.mxu1 %v2905_v9  ;;  %v2488_v9 = vld [vmem:[#allocation9 + $0x88] sm:$0xf] }
  0x89   : > { %1813 = vmatpush.bf16.msrb.mxu2 %v2653_v12  ;;  %v2781_v12 = vor.u32 %v3088_v3, %v2778_v4  ;;  %v889_v3 = vld [vmem:[#allocation6 + $0x18] sm:$0x1] }
  0x8b   : > { %1788 = vmatpush.bf16.msrb.mxu0 %v2617_v24  ;;  %v887_v24 = vld [vmem:[#allocation6 + $0x8] sm:$0xff] }
  0x8c   : > { %1801 = vmatpush.bf16.msrb.mxu1 %v2873_v25  ;;  %v894_v37 = vrot.slane %v887_v24, 4 }
  0xc7   : > { %v802_v23 = vpop.f32.mrf.mxu1 }
  0xc9   : > { %v789_v27 = vpop.f32.mrf.mxu0 }
  0xca   : > { %v790_v30 = vadd.f32 %v789_v27, %v456_v13  ;;  %v2906_v13 = vld [vmem:[#allocation9 + $0x3e8] sm:$0xf0]  ;;  %v2621_v27 = vor.u32 %v3048_v22, %v2618_v26 }
  0xcb   : > { %v815_v63 = vpop.f32.mrf.mxu2  ;;  %v2746_v22 = vld [vmem:[#allocation9 + $0x2a8] sm:$0xf0] }
  0xcc   : > { %v803_v35 = vadd.f32 %v802_v23, %v790_v30  ;;  %v828_v36 = vpop.f32.mrf.mxu3  ;;  %v2909_v23 = vor.u32 %v3120_v11, %v2906_v13  ;;  %v2840_v30 = vld [vmem:[#allocation9 + $0x348] sm:$0xf]  ;;  %1814 = vmatpush.bf16.msrb.mxu2 %v2621_v27  ;;  %v2489_v13 = vor.u32 %v3020_v10, %v2488_v9 }
  0xcd   : > { %v2744_v11 = vld [vmem:[#allocation9 + $0x288] sm:$0xf] }
  0xce   : > { %v816_v45 = vadd.f32 %v815_v63, %v803_v35  ;;  %v2584_v63 = vld [vmem:[#allocation9 + $0x148] sm:$0xf]  ;;  %1826 = vmatpush.bf16.msrb.mxu3 %v2909_v23  ;;  %v2841_v35 = vor.u32 %v3108_v31, %v2840_v30  ;;  %v2745_v20 = vor.u32 %v3084_v14, %v2744_v11  ;;  %v890_v11 = vld [vmem:[#allocation7] sm:$0x3] }
  0xcf   : > { %v804_v52 = vpop.f32.mrf.mxu1  ;;  %v2585_v29 = vor.u32 %v3044_v28, %v2584_v63  ;;  %v2456_v27 = vld [vmem:[#allocation9 + $0x48] sm:$0xf] }
  0xd0   : > { %v829_v57 = vadd.f32 %v828_v36, %v816_v45  ;;  %v2586_v36 = vld [vmem:[#allocation9 + $0x168] sm:$0xf0]  ;;  %v2553_v45 = vor.u32 %v3036_v42, %v2552_v41  ;;  %1802 = vmatpush.bf16.msrb.mxu1 %v2841_v35  ;;  %v3012_v63 = vld [vmem:[#allocation9 + $0x64] sm:$0xf0] }
  0xd1   : > { %v791_v0 = vpop.f32.mrf.mxu0  ;;  %v2589_v40 = vor.u32 %v3040_v34, %v2586_v36  ;;  %1789 = vmatpush.bf16.msrb.mxu0 %v2585_v29  ;;  %v2810_v52 = vld [vmem:[#allocation9 + $0x328] sm:$0xf0]  ;;  %v2712_v28 = vld [vmem:[#allocation9 + $0x248] sm:$0xf]  ;;  %v2749_v29 = vor.u32 %v3080_v21, %v2746_v22  ;;  %v2457_v30 = vor.u32 %v3012_v63, %v2456_v27  ;;  %v2656_v21 = vld [vmem:[#allocation9 + $0x1d0] sm:$0xf] }
  0xd2   : > { %v3571_v8 = vmax.f32 %v829_v57, 0.0  ;;  %1827 = vmatpush.bf16.msrb.mxu3 %v2877_v5  ;;  %v2813_v59 = vor.u32 %v3096_v51, %v2810_v52  ;;  %v3024_v0 = vld [vmem:[#allocation9 + $0xcc] sm:$0xf]  ;;  %v3076_v31 = vld [vmem:[#allocation9 + $0x264] sm:$0xf0]  ;;  %v2681_v52 = vor.u32 %v3068_v49, %v2680_v47 }
  0xd3   : > { %v817_v1 = vpop.f32.mrf.mxu2  ;;  %1815 = vmatpush.bf16.msrb.mxu2 %v2589_v40  ;;  %v3008_v34 = vld [vmem:[#allocation9 + $0x4c] sm:$0xf]  ;;  %v2713_v38 = vor.u32 %v3076_v31, %v2712_v28  ;;  %v3061_v22 = vld [vmem:[#allocation9 + $0x1ec] sm:$0xf0]  ;;  %v2914_v27 = vld [vmem:[#allocation9 + $0x3f0] sm:$0xf0] }
  0xd4   : > { %v3574_v18 = vmul.f32 %v893_v46, %v3571_v8  ;;  %v830_v19 = vpop.f32.mrf.mxu3  ;;  %v3100_v46 = vld [vmem:[#allocation9 + $0x324] sm:$0xf0]  ;;  %v2522_v1 = vld [vmem:[#allocation9 + $0xe8] sm:$0xf0]  ;;  %v2657_v28 = vor.u32 %v3061_v22, %v2656_v21  ;;  %v2848_v47 = vld [vmem:[#allocation9 + $0x350] sm:$0xf] }
  0xd5   : > { %v2809_v50 = vor.u32 %v3100_v46, %v2808_v43  ;;  %1790 = vmatpush.bf16.msrb.mxu0 %v2553_v45  ;;  %v2525_v6 = vor.u32 %v3024_v0, %v2522_v1  ;;  %v2490_v19 = vld [vmem:[#allocation9 + $0xa8] sm:$0xf0]  ;;  %v2424_v43 = vld [vmem:[#allocation9 + $0x8] sm:$0xf]  ;;  %v3109_v49 = vld [vmem:[#allocation9 + $0x36c] sm:$0xf0] }
  0xd6   : > { %906 = vst [vmem:[#allocation1] sm:$0xff] %v3574_v18  ;;  %1828 = vmatpush.bf16.msrb.mxu3 %v2845_v44  ;;  %v2493_v25 = vor.u32 %v3016_v17, %v2490_v19  ;;  %v2458_v35 = vld [vmem:[#allocation9 + $0x68] sm:$0xf0]  ;;  %v3004_v44 = vld [vmem:[#allocation9 + $0x24] sm:$0xf0] }
  0xd7   : > { %1803 = vmatpush.bf16.msrb.mxu1 %v2809_v50  ;;  %1816 = vmatpush.bf16.msrb.mxu2 %v2557_v53  ;;  %v2714_v40 = vld [vmem:[#allocation9 + $0x268] sm:$0xf0]  ;;  %v2461_v41 = vor.u32 %v3008_v34, %v2458_v35  ;;  %v2425_v46 = vor.u32 %v3004_v44, %v2424_v43  ;;  %v2880_v35 = vld [vmem:[#allocation9 + $0x390] sm:$0xf] }
  0xd8   : > { %v3000_v50 = vld [vmem:[#allocation9 + $0xc] sm:$0xf]  ;;  %v2592_v43 = vld [vmem:[#allocation9 + $0x150] sm:$0xf] }
  0xd9   : > { %1791 = vmatpush.bf16.msrb.mxu0 %v2521_v60  ;;  %v2426_v53 = vld [vmem:[#allocation9 + $0x28] sm:$0xf0]  ;;  %v913_v60 = vrot.slane %v887_v24, 5  ;;  %v3125_v24 = vld [vmem:[#allocation9 + $0x3ec] sm:$0xf0] }
  0xda   : > { %1829 = vmatpush.bf16.msrb.mxu3 %v2813_v59  ;;  %v2429_v56 = vor.u32 %v3000_v50, %v2426_v53  ;;  %v912_v59 = vrot.slane %v3568_v33, 5  ;;  %v3045_v44 = vld [vmem:[#allocation9 + $0x16c] sm:$0xf0]  ;;  %v3041_v50 = vld [vmem:[#allocation9 + $0x154] sm:$0xf] }
  0xdb   : > { %1804 = vmatpush.bf16.msrb.mxu1 %v2777_v2  ;;  %1817 = vmatpush.bf16.msrb.mxu2 %v2525_v6  ;;  %v888_v2 = vld [vmem:[#allocation6 + $0x10] sm:$0x1]  ;;  %v929_v6 = vrot.slane %v889_v3, 5  ;;  %v2850_v53 = vld [vmem:[#allocation9 + $0x370] sm:$0xf0] }
  0xdc   : > { %v916_v61 = vmul.f32 %v912_v59, %v3571_v8  ;;  %v928_v4 = vrot.slane %v888_v2, 5  ;;  %v2816_v59 = vld [vmem:[#allocation9 + $0x310] sm:$0xf]  ;;  %v2818_v2 = vld [vmem:[#allocation9 + $0x330] sm:$0xf0] }
  0xdd   : > { %1792 = vmatpush.bf16.msrb.mxu0 %v2489_v13  ;;  %v2496_v21 = vld [vmem:[#allocation9 + $0x90] sm:$0xf] }
  0xde   : > { %1830 = vmatpush.bf16.msrb.mxu3 %v2781_v12  ;;  %v932_v9 = vmul.f32 %v928_v4, %v3571_v8  ;;  %v3021_v22 = vld [vmem:[#allocation9 + $0xac] sm:$0xf0] }
  0xdf   : > { %1805 = vmatpush.bf16.msrb.mxu1 %v2745_v20  ;;  %1818 = vmatpush.bf16.msrb.mxu2 %v2493_v25  ;;  %v3057_v25 = vld [vmem:[#allocation9 + $0x1d4] sm:$0xf] }
  0xe1   : > { %1793 = vmatpush.bf16.msrb.mxu0 %v2457_v30  ;;  %v3053_v30 = vld [vmem:[#allocation9 + $0x1ac] sm:$0xf0] }
  0xe2   : > { %1831 = vmatpush.bf16.msrb.mxu3 %v2749_v29  ;;  %v2624_v29 = vld [vmem:[#allocation9 + $0x190] sm:$0xf] }
  0xe3   : > { %v841_v54 = vpop.f32.mrf.mxu0  ;;  %1806 = vmatpush.bf16.msrb.mxu1 %v2713_v38  ;;  %1819 = vmatpush.bf16.msrb.mxu2 %v2461_v41  ;;  %v2626_v38 = vld [vmem:[#allocation9 + $0x1b0] sm:$0xf0]  ;;  %v2625_v41 = vor.u32 %v3053_v30, %v2624_v29  ;;  %v2464_v29 = vld [vmem:[#allocation9 + $0x50] sm:$0xf] }
  0xe4   : > { %v842_v57 = vadd.f32 %v841_v54, %v457_v39  ;;  %v854_v58 = vpop.f32.mrf.mxu1  ;;  %v3072_v39 = vld [vmem:[#allocation9 + $0x24c] sm:$0xf]  ;;  %v3013_v30 = vld [vmem:[#allocation9 + $0x6c] sm:$0xf0] }
  0xe5   : > { %v2717_v45 = vor.u32 %v3072_v39, %v2714_v40  ;;  %v3064_v54 = vld [vmem:[#allocation9 + $0x20c] sm:$0xf]  ;;  %1794 = vmatpush.bf16.msrb.mxu0 %v2425_v46  ;;  %v3113_v39 = vld [vmem:[#allocation9 + $0x394] sm:$0xf] }
  0xe6   : > { %v855_v7 = vadd.f32 %v854_v58, %v842_v57  ;;  %v2685_v58 = vor.u32 %v3064_v54, %v2682_v62  ;;  %v2882_v40 = vld [vmem:[#allocation9 + $0x3b0] sm:$0xf0]  ;;  %v2593_v54 = vor.u32 %v3045_v44, %v2592_v43  ;;  %v2849_v62 = vor.u32 %v3109_v49, %v2848_v47  ;;  %v3005_v44 = vld [vmem:[#allocation9 + $0x2c] sm:$0xf0] }
  0xe7   : > { %1832 = vmatpush.bf16.msrb.mxu3 %v2717_v45  ;;  %1807 = vmatpush.bf16.msrb.mxu1 %v2681_v52  ;;  %v2885_v46 = vor.u32 %v3113_v39, %v2882_v40  ;;  %v3105_v52 = vld [vmem:[#allocation9 + $0x354] sm:$0xf] }
  0xe8   : > { %1820 = vmatpush.bf16.msrb.mxu2 %v2429_v56  ;;  %v3037_v56 = vld [vmem:[#allocation9 + $0x12c] sm:$0xf0]  ;;  %v3073_v39 = vld [vmem:[#allocation9 + $0x254] sm:$0xf] }
  0xe9   : > { %v2722_v40 = vld [vmem:[#allocation9 + $0x270] sm:$0xf0] }
  0xea   : > { %v2725_v49 = vor.u32 %v3073_v39, %v2722_v40  ;;  %v3098_v39 = vld [vmem:[#allocation9 + $0x31c] sm:$0xf] }
  0xeb   : > { %v867_v23 = vpop.f32.mrf.mxu2  ;;  %v843_v16 = vpop.f32.mrf.mxu0  ;;  %1833 = vmatpush.bf16.msrb.mxu3 %v2685_v58  ;;  %v2853_v58 = vor.u32 %v3105_v52, %v2850_v53  ;;  %v3065_v52 = vld [vmem:[#allocation9 + $0x214] sm:$0xf]  ;;  %v2826_v40 = vld [vmem:[#allocation9 + $0x338] sm:$0xf0] }
  0xec   : > { %v868_v26 = vadd.f32 %v867_v23, %v855_v7  ;;  %v880_v15 = vpop.f32.mrf.mxu3  ;;  %v856_v5 = vpop.f32.mrf.mxu1  ;;  %v2912_v23 = vld [vmem:[#allocation9 + $0x3d0] sm:$0xf]  ;;  %v3121_v16 = vld [vmem:[#allocation9 + $0x3d4] sm:$0xf] }
  0xed   : > { %v2913_v5 = vor.u32 %v3125_v24, %v2912_v23  ;;  %v2917_v34 = vor.u32 %v3121_v16, %v2914_v27  ;;  %v3081_v16 = vld [vmem:[#allocation9 + $0x294] sm:$0xf] }
  0xee   : > { %v881_v36 = vadd.f32 %v880_v15, %v868_v26  ;;  %v2658_v26 = vld [vmem:[#allocation9 + $0x1f0] sm:$0xf0] }
  0xef   : > { %v2661_v31 = vor.u32 %v3057_v25, %v2658_v26  ;;  %v2752_v25 = vld [vmem:[#allocation9 + $0x290] sm:$0xf]  ;;  %v2754_v27 = vld [vmem:[#allocation9 + $0x2b0] sm:$0xf0] }
  0xf0   : > { %v885_v42 = vmax.f32 %v881_v36, 0.0  ;;  %v3117_v36 = vld [vmem:[#allocation9 + $0x3ac] sm:$0xf0]  ;;  %v2690_v53 = vld [vmem:[#allocation9 + $0x230] sm:$0xf0] }
  0xf1   : > { %v3085_v26 = vld [vmem:[#allocation9 + $0x2ac] sm:$0xf0] }
  0xf2   : > { %v898_v51 = vmul.f32 %v894_v37, %v885_v42  ;;  %v917_v1 = vmul.f32 %v913_v60, %v885_v42  ;;  %v933_v33 = vmul.f32 %v929_v6, %v885_v42  ;;  %v3049_v37 = vld [vmem:[#allocation9 + $0x194] sm:$0xf]  ;;  %v2881_v42 = vor.u32 %v3117_v36, %v2880_v35  ;;  %v3101_v60 = vld [vmem:[#allocation9 + $0x32c] sm:$0xf0] }
  0xf3   : > { %v869_v55 = vpop.f32.mrf.mxu2  ;;  %v2629_v45 = vor.u32 %v3049_v37, %v2626_v38  ;;  %v2817_v4 = vor.u32 %v3101_v60, %v2816_v59  ;;  %v2528_v6 = vld [vmem:[#allocation9 + $0xd0] sm:$0xf]  ;;  %v3009_v37 = vld [vmem:[#allocation9 + $0x54] sm:$0xf]  ;;  %v2666_v60 = vld [vmem:[#allocation9 + $0x1f8] sm:$0xf0] }
  0xf4   : > { %907 = vst [vmem:[#allocation1 + $0x9] sm:$0xff] %v898_v51  ;;  %v882_v57 = vpop.f32.mrf.mxu3  ;;  %v901_v7 = vrot.slane %v898_v51, 7  ;;  %v2594_v51 = vld [vmem:[#allocation9 + $0x170] sm:$0xf0]  ;;  %v2560_v55 = vld [vmem:[#allocation9 + $0x110] sm:$0xf] }
  0xf5   : > { %v2597_v57 = vor.u32 %v3041_v50, %v2594_v51  ;;  %v2561_v3 = vor.u32 %v3037_v56, %v2560_v55  ;;  %v2720_v35 = vld [vmem:[#allocation9 + $0x250] sm:$0xf]  ;;  %v2466_v38 = vld [vmem:[#allocation9 + $0x70] sm:$0xf0]  ;;  %v2920_v55 = vld [vmem:[#allocation9 + $0x3d8] sm:$0xf] }
  0xf6   : > { %v903_v12 = vsel %vm902_vm0, %v3574_v18, %v901_v7  ;;  %v3029_v7 = vld [vmem:[#allocation9 + $0xec] sm:$0xf0]  ;;  %v2469_v47 = vor.u32 %v3009_v37, %v2466_v38  ;;  %v3001_v50 = vld [vmem:[#allocation9 + $0x14] sm:$0xf]  ;;  %v3126_v56 = vld [vmem:[#allocation9 + $0x3f4] sm:$0xf0] }
  0xf7   : > { %v905_v13 = vadd.f32 %v903_v12, %v890_v11  ;;  %v3093_v11 = vld [vmem:[#allocation9 + $0x2ec] sm:$0xf0]  ;;  %v3025_v12 = vld [vmem:[#allocation9 + $0xd4] sm:$0xf]  ;;  %v3034_v37 = vld [vmem:[#allocation9 + $0x11c] sm:$0xf] }
  0xf8   : > { %v3077_v36 = vld [vmem:[#allocation9 + $0x26c] sm:$0xf0]  ;;  %v2434_v51 = vld [vmem:[#allocation9 + $0x30] sm:$0xf0]  ;;  %v2570_v38 = vld [vmem:[#allocation9 + $0x138] sm:$0xf0] }
  0xf9   : > { %v2721_v43 = vor.u32 %v3077_v36, %v2720_v35  ;;  %v2824_v35 = vld [vmem:[#allocation9 + $0x318] sm:$0xf] }
  0xfa   : > { %v3102_v36 = vld [vmem:[#allocation9 + $0x334] sm:$0xf0] }
  0xfb   : > { %v909_v0 = vld [vmem:[#allocation1 + $0x1] ss:$9 sm:$0xff] }
  0xfc   : > { %920 = vst [vmem:[#allocation1] sm:$0xff] %v916_v61  ;;  %v911_v14 = vadd.f32 %v909_v0, %v905_v13  ;;  %v3033_v61 = vld [vmem:[#allocation9 + $0x114] sm:$0xf] }
  0xfd   : > { %921 = vst [vmem:[#allocation1 + $0x9] sm:$0xff] %v917_v1  ;;  %v2562_v0 = vld [vmem:[#allocation9 + $0x130] sm:$0xf0] }
  0xfe   : > { %v3097_v1 = vld [vmem:[#allocation9 + $0x314] sm:$0xf] }
  0xff   : > { %v2530_v13 = vld [vmem:[#allocation9 + $0xf0] sm:$0xf0] }
 0x100   : > { %v2533_v23 = vor.u32 %v3025_v12, %v2530_v13  ;;  %v3050_v12 = vld [vmem:[#allocation9 + $0x19c] sm:$0xf] }
 0x101   : > { %v2634_v13 = vld [vmem:[#allocation9 + $0x1b8] sm:$0xf0] }
 0x104   : > { %v923_v10 = vld [vmem:[#allocation1 + $0x2] ss:$9 sm:$0xff] }
 0x105   : > { %936 = vst [vmem:[#allocation1] sm:$0xff] %v932_v9  ;;  %v925_v17 = vadd.f32 %v923_v10, %v911_v14  ;;  %v2565_v9 = vor.u32 %v3033_v61, %v2562_v0  ;;  %v2821_v10 = vor.u32 %v3097_v1, %v2818_v2  ;;  %v3089_v14 = vld [vmem:[#allocation9 + $0x2d4] sm:$0xf]  ;;  %v3122_v61 = vld [vmem:[#allocation9 + $0x3dc] sm:$0xf]  ;;  %v2437_v1 = vor.u32 %v3001_v50, %v2434_v51 }
 0x106   : > { %937 = vst [vmem:[#allocation1 + $0x9] sm:$0xff] %v933_v33  ;;  %v2784_v33 = vld [vmem:[#allocation9 + $0x2d0] sm:$0xf]  ;;  %v2922_v0 = vld [vmem:[#allocation9 + $0x3f8] sm:$0xf0]  ;;  %v2693_v2 = vor.u32 %v3065_v52, %v2690_v53 }
 0x107   : > { %v3026_v50 = vld [vmem:[#allocation9 + $0xdc] sm:$0xf] }
 0x108   : > { %v2538_v51 = vld [vmem:[#allocation9 + $0xf8] sm:$0xf0] }
 0x109   : > { %v3090_v52 = vld [vmem:[#allocation9 + $0x2dc] sm:$0xf] }
 0x10a   : > { %v2794_v53 = vld [vmem:[#allocation9 + $0x2f8] sm:$0xf0] }
 0x10d   : > { %v939_v19 = vld [vmem:[#allocation1 + $0x3] ss:$9 sm:$0xff] }
 0x10e   : > { %v941_v20 = vadd.f32 %v939_v19, %v925_v17  ;;  %v2786_v17 = vld [vmem:[#allocation9 + $0x2f0] sm:$0xf0]  ;;  %v2529_v19 = vor.u32 %v3029_v7, %v2528_v6  ;;  %v2632_v6 = vld [vmem:[#allocation9 + $0x198] sm:$0xf] }
 0x10f   : > { %v2789_v24 = vor.u32 %v3089_v14, %v2786_v17  ;;  %v3054_v7 = vld [vmem:[#allocation9 + $0x1b4] sm:$0xf0]  ;;  %v3114_v14 = vld [vmem:[#allocation9 + $0x39c] sm:$0xf] }
 0x110   : > { %v943_v8 = vperm.slane %v941_v20, 0  ;;  %v944_v15 = vperm.slane %v941_v20, 1  ;;  %v2785_v20 = vor.u32 %v3093_v11, %v2784_v33  ;;  %v2888_v33 = vld [vmem:[#allocation9 + $0x398] sm:$0xf]  ;;  %v2890_v17 = vld [vmem:[#allocation9 + $0x3b8] sm:$0xf0] }
 0x111   : > { %v3118_v11 = vld [vmem:[#allocation9 + $0x3b4] sm:$0xf0] }
 0x112   : > { %v3583_v63 = vpack.c.bf16 %v943_v8, %v943_v8  ;;  %v3585_v18 = vpack.c.bf16 %v944_v15, %v944_v15  ;;  %v3017_v8 = vld [vmem:[#allocation9 + $0x94] sm:$0xf] }
 0x113   : > { %v2498_v15 = vld [vmem:[#allocation9 + $0xb0] sm:$0xf0] }
 0x114   : > { %1743 = vmatmul.bf16.vlgmr.msra.gmra.mxu0 %v3583_v63  ;;  %1756 = vmatmul.bf16.vlgmr.msra.gmra.mxu1 %v3585_v18 }
 0x115   : > { %1769 = vmatmul.bf16.vlgmr.msra.gmra.mxu2 %v3583_v63  ;;  %1782 = vmatmul.bf16.vlgmr.msra.gmra.mxu3 %v3585_v18 }
 0x116   : > { %1839 = vmatpush.bf16.msra.mxu0 %v2657_v28  ;;  %1852 = vmatpush.bf16.msra.mxu1 %v2913_v5  ;;  %v2497_v28 = vor.u32 %v3021_v22, %v2496_v21  ;;  %v2753_v5 = vor.u32 %v3085_v26, %v2752_v25  ;;  %v2600_v21 = vld [vmem:[#allocation9 + $0x158] sm:$0xf] }
 0x117   : > { %1865 = vmatpush.bf16.msra.mxu2 %v2661_v31  ;;  %1878 = vmatpush.bf16.msra.mxu3 %v2917_v34  ;;  %v2501_v31 = vor.u32 %v3017_v8, %v2498_v15  ;;  %v2757_v34 = vor.u32 %v3081_v16, %v2754_v27  ;;  %v3046_v22 = vld [vmem:[#allocation9 + $0x174] sm:$0xf0]  ;;  %v3042_v8 = vld [vmem:[#allocation9 + $0x15c] sm:$0xf] }
 0x118   : > { %v2856_v25 = vld [vmem:[#allocation9 + $0x358] sm:$0xf]  ;;  %v2602_v15 = vld [vmem:[#allocation9 + $0x178] sm:$0xf0] }
 0x119   : > { %v3110_v26 = vld [vmem:[#allocation9 + $0x374] sm:$0xf0]  ;;  %v3106_v16 = vld [vmem:[#allocation9 + $0x35c] sm:$0xf] }
 0x11a   : > { %1840 = vmatpush.bf16.msra.mxu0 %v2625_v41  ;;  %1853 = vmatpush.bf16.msra.mxu1 %v2881_v42  ;;  %v2432_v41 = vld [vmem:[#allocation9 + $0x10] sm:$0xf]  ;;  %v2465_v42 = vor.u32 %v3013_v30, %v2464_v29  ;;  %v2858_v27 = vld [vmem:[#allocation9 + $0x378] sm:$0xf0]  ;;  %v2568_v29 = vld [vmem:[#allocation9 + $0x118] sm:$0xf] }
 0x11b   : > { %1866 = vmatpush.bf16.msra.mxu2 %v2629_v45  ;;  %1879 = vmatpush.bf16.msra.mxu3 %v2885_v46  ;;  %v2688_v45 = vld [vmem:[#allocation9 + $0x210] sm:$0xf]  ;;  %v3038_v30 = vld [vmem:[#allocation9 + $0x134] sm:$0xf0] }
 0x11c   : > { %v3069_v46 = vld [vmem:[#allocation9 + $0x22c] sm:$0xf0] }
 0x11d   : > { %v2689_v59 = vor.u32 %v3069_v46, %v2688_v45  ;;  %v2573_v45 = vor.u32 %v3034_v37, %v2570_v38  ;;  %v2829_v46 = vor.u32 %v3098_v39, %v2826_v40 }
 0x11e   : > { %1841 = vmatpush.bf16.msra.mxu0 %v2593_v54  ;;  %1854 = vmatpush.bf16.msra.mxu1 %v2849_v62  ;;  %v2664_v54 = vld [vmem:[#allocation9 + $0x1d8] sm:$0xf] }
 0x11f   : > { %1867 = vmatpush.bf16.msra.mxu2 %v2597_v57  ;;  %1880 = vmatpush.bf16.msra.mxu3 %v2853_v58  ;;  %v3062_v62 = vld [vmem:[#allocation9 + $0x1f4] sm:$0xf0]  ;;  %v3058_v57 = vld [vmem:[#allocation9 + $0x1dc] sm:$0xf]  ;;  %v2433_v58 = vor.u32 %v3005_v44, %v2432_v41  ;;  %v2569_v41 = vor.u32 %v3038_v30, %v2568_v29 }
 0x120   : > { %v3030_v44 = vld [vmem:[#allocation9 + $0xf4] sm:$0xf0] }
 0x122   : > { %1842 = vmatpush.bf16.msra.mxu0 %v2561_v3  ;;  %1855 = vmatpush.bf16.msra.mxu1 %v2817_v4  ;;  %v2665_v3 = vor.u32 %v3062_v62, %v2664_v54  ;;  %v2921_v4 = vor.u32 %v3126_v56, %v2920_v55  ;;  %v2504_v55 = vld [vmem:[#allocation9 + $0x98] sm:$0xf] }
 0x123   : > { %1868 = vmatpush.bf16.msra.mxu2 %v2565_v9  ;;  %1881 = vmatpush.bf16.msra.mxu3 %v2821_v10  ;;  %v2669_v9 = vor.u32 %v3058_v57, %v2666_v60  ;;  %v2925_v10 = vor.u32 %v3122_v61, %v2922_v0  ;;  %v3022_v56 = vld [vmem:[#allocation9 + $0xb4] sm:$0xf0]  ;;  %v2541_v57 = vor.u32 %v3026_v50, %v2538_v51  ;;  %v3018_v61 = vld [vmem:[#allocation9 + $0x9c] sm:$0xf] }
 0x124   : > { %1795 = vmatmul.bf16.vlgmr.msrb.gmra.mxu0 %v3583_v63  ;;  %1808 = vmatmul.bf16.vlgmr.msrb.gmra.mxu1 %v3585_v18  ;;  %v3086_v60 = vld [vmem:[#allocation9 + $0x2b4] sm:$0xf0]  ;;  %v2506_v0 = vld [vmem:[#allocation9 + $0xb8] sm:$0xf0] }
 0x125   : > { %1821 = vmatmul.bf16.vlgmr.msrb.gmra.mxu2 %v3583_v63  ;;  %1834 = vmatmul.bf16.vlgmr.msrb.gmra.mxu3 %v3585_v18 }
 0x126   : > { %1843 = vmatpush.bf16.msra.mxu0 %v2529_v19  ;;  %1856 = vmatpush.bf16.msra.mxu1 %v2785_v20  ;;  %v2633_v19 = vor.u32 %v3054_v7, %v2632_v6  ;;  %v2889_v20 = vor.u32 %v3118_v11, %v2888_v33  ;;  %v2472_v6 = vld [vmem:[#allocation9 + $0x58] sm:$0xf] }
 0x127   : > { %1869 = vmatpush.bf16.msra.mxu2 %v2533_v23  ;;  %1882 = vmatpush.bf16.msra.mxu3 %v2789_v24  ;;  %v2637_v23 = vor.u32 %v3050_v12, %v2634_v13  ;;  %v2893_v24 = vor.u32 %v3114_v14, %v2890_v17  ;;  %v3014_v7 = vld [vmem:[#allocation9 + $0x74] sm:$0xf0]  ;;  %v3010_v12 = vld [vmem:[#allocation9 + $0x5c] sm:$0xf] }
 0x128   : > { %v2728_v33 = vld [vmem:[#allocation9 + $0x258] sm:$0xf]  ;;  %v2474_v13 = vld [vmem:[#allocation9 + $0x78] sm:$0xf0] }
 0x129   : > { %v3078_v11 = vld [vmem:[#allocation9 + $0x274] sm:$0xf0]  ;;  %v3074_v14 = vld [vmem:[#allocation9 + $0x25c] sm:$0xf] }
 0x12a   : > { %1844 = vmatpush.bf16.msra.mxu0 %v2497_v28  ;;  %1857 = vmatpush.bf16.msra.mxu1 %v2753_v5  ;;  %v2601_v28 = vor.u32 %v3046_v22, %v2600_v21  ;;  %v2857_v5 = vor.u32 %v3110_v26, %v2856_v25  ;;  %v2730_v17 = vld [vmem:[#allocation9 + $0x278] sm:$0xf0]  ;;  %v2440_v21 = vld [vmem:[#allocation9 + $0x18] sm:$0xf] }
 0x12b   : > { %1870 = vmatpush.bf16.msra.mxu2 %v2501_v31  ;;  %1883 = vmatpush.bf16.msra.mxu3 %v2757_v34  ;;  %v2605_v31 = vor.u32 %v3042_v8, %v2602_v15  ;;  %v2861_v34 = vor.u32 %v3106_v16, %v2858_v27  ;;  %v3006_v22 = vld [vmem:[#allocation9 + $0x34] sm:$0xf0]  ;;  %v3002_v8 = vld [vmem:[#allocation9 + $0x1c] sm:$0xf] }
 0x12c   : > { %v2696_v25 = vld [vmem:[#allocation9 + $0x218] sm:$0xf]  ;;  %v2442_v15 = vld [vmem:[#allocation9 + $0x38] sm:$0xf0] }
 0x12d   : > { %v3070_v26 = vld [vmem:[#allocation9 + $0x234] sm:$0xf0]  ;;  %v3066_v16 = vld [vmem:[#allocation9 + $0x21c] sm:$0xf]  ;;  %v2445_v29 = vor.u32 %v3002_v8, %v2442_v15 }
 0x12e   : > { %1845 = vmatpush.bf16.msra.mxu0 %v2465_v42  ;;  %1858 = vmatpush.bf16.msra.mxu1 %v2721_v43  ;;  %v2825_v42 = vor.u32 %v3102_v36, %v2824_v35  ;;  %v2536_v43 = vld [vmem:[#allocation9 + $0xd8] sm:$0xf]  ;;  %v2698_v27 = vld [vmem:[#allocation9 + $0x238] sm:$0xf0] }
 0x12f   : > { %1871 = vmatpush.bf16.msra.mxu2 %v2469_v47  ;;  %1884 = vmatpush.bf16.msra.mxu3 %v2725_v49  ;;  %v2792_v47 = vld [vmem:[#allocation9 + $0x2d8] sm:$0xf]  ;;  %v2537_v54 = vor.u32 %v3030_v44, %v2536_v43  ;;  %v2701_v30 = vor.u32 %v3066_v16, %v2698_v27 }
 0x130   : > { %v3094_v49 = vld [vmem:[#allocation9 + $0x2f4] sm:$0xf0] }
 0x131   : > { %v2793_v62 = vor.u32 %v3094_v49, %v2792_v47 }
 0x132   : > { %1846 = vmatpush.bf16.msra.mxu0 %v2433_v58  ;;  %1859 = vmatpush.bf16.msra.mxu1 %v2689_v59  ;;  %v2797_v58 = vor.u32 %v3090_v52, %v2794_v53  ;;  %v2760_v59 = vld [vmem:[#allocation9 + $0x298] sm:$0xf] }
 0x133   : > { %1872 = vmatpush.bf16.msra.mxu2 %v2437_v1  ;;  %1885 = vmatpush.bf16.msra.mxu3 %v2693_v2  ;;  %v3082_v1 = vld [vmem:[#allocation9 + $0x29c] sm:$0xf] }
 0x134   : > { %v2762_v2 = vld [vmem:[#allocation9 + $0x2b8] sm:$0xf0] }
 0x135   : > { %1847 = vmatmul.bf16.vlgmr.msra.gmra.mxu0 %v3583_v63  ;;  %1860 = vmatmul.bf16.vlgmr.msra.gmra.mxu1 %v3585_v18 }
 0x136   : > { %1891 = vmatpush.bf16.msrb.mxu0 %v2665_v3  ;;  %1904 = vmatpush.bf16.msrb.mxu1 %v2921_v4  ;;  %v2505_v3 = vor.u32 %v3022_v56, %v2504_v55  ;;  %v2761_v4 = vor.u32 %v3086_v60, %v2760_v59  ;;  %v2927_v55 = vrot.slane %v3542_v32, 9  ;;  %v2929_v60 = vrot.slane %v3542_v32, 10 }
 0x137   : > { %1917 = vmatpush.bf16.msrb.mxu2 %v2669_v9  ;;  %1930 = vmatpush.bf16.msrb.mxu3 %v2925_v10  ;;  %v2509_v9 = vor.u32 %v3018_v61, %v2506_v0  ;;  %v2765_v10 = vor.u32 %v3082_v1, %v2762_v2  ;;  %v2928_v0 = vrot.slane %v3546_v48, 10 }
 0x138   : > { %1873 = vmatmul.bf16.vlgmr.msra.gmra.mxu2 %v3583_v63  ;;  %1886 = vmatmul.bf16.vlgmr.msra.gmra.mxu3 %v3585_v18  ;;  %v1950_v59 = vadd.f32 %v2927_v55, %v3542_v32 }
 0x13a   : > { %1892 = vmatpush.bf16.msrb.mxu0 %v2633_v19  ;;  %1905 = vmatpush.bf16.msrb.mxu1 %v2889_v20  ;;  %v2473_v19 = vor.u32 %v3014_v7, %v2472_v6  ;;  %v2729_v20 = vor.u32 %v3078_v11, %v2728_v33 }
 0x13b   : > { %1918 = vmatpush.bf16.msrb.mxu2 %v2637_v23  ;;  %1931 = vmatpush.bf16.msrb.mxu3 %v2893_v24  ;;  %v2477_v23 = vor.u32 %v3010_v12, %v2474_v13  ;;  %v2733_v24 = vor.u32 %v3074_v14, %v2730_v17 }
 0x13e   : > { %1893 = vmatpush.bf16.msrb.mxu0 %v2601_v28  ;;  %1906 = vmatpush.bf16.msrb.mxu1 %v2857_v5  ;;  %v2441_v28 = vor.u32 %v3006_v22, %v2440_v21  ;;  %v2697_v5 = vor.u32 %v3070_v26, %v2696_v25 }
 0x13f   : > { %1919 = vmatpush.bf16.msrb.mxu2 %v2605_v31  ;;  %1932 = vmatpush.bf16.msrb.mxu3 %v2861_v34  ;;  %v3603_v31 = vld [vmem:[#allocation10] sm:$0xff] }
 0x140   : > { %v1719_v34 = vperm.slane %v3603_v31, 0  ;;  %v1722_v6 = vperm.slane %v3603_v31, 3  ;;  %v1720_v11 = vperm.slane %v3603_v31, 1 }
 0x142   : > { %1894 = vmatpush.bf16.msrb.mxu0 %v2569_v41  ;;  %1907 = vmatpush.bf16.msrb.mxu1 %v2825_v42 }
 0x143   : > { %1920 = vmatpush.bf16.msrb.mxu2 %v2573_v45  ;;  %1933 = vmatpush.bf16.msrb.mxu3 %v2829_v46 }
 0x146   : > { %1895 = vmatpush.bf16.msrb.mxu0 %v2537_v54  ;;  %1908 = vmatpush.bf16.msrb.mxu1 %v2793_v62 }
 0x147   : > { %1921 = vmatpush.bf16.msrb.mxu2 %v2541_v57  ;;  %1934 = vmatpush.bf16.msrb.mxu3 %v2797_v58  ;;  %v2926_v58 = vrot.slane %v3546_v48, 9 }
 0x149   : > { %v1949_v61 = vadd.f32 %v2926_v58, %v3546_v48 }
 0x14a   : > { %1896 = vmatpush.bf16.msrb.mxu0 %v2505_v3  ;;  %1909 = vmatpush.bf16.msrb.mxu1 %v2761_v4  ;;  %v1958_v3 = vadd.f32 %v2929_v60, %v1950_v59  ;;  %v2931_v4 = vrot.slane %v3542_v32, 11 }
 0x14b   : > { %1922 = vmatpush.bf16.msrb.mxu2 %v2509_v9  ;;  %1935 = vmatpush.bf16.msrb.mxu3 %v2765_v10  ;;  %v1957_v7 = vadd.f32 %v2928_v0, %v1949_v61  ;;  %v2930_v9 = vrot.slane %v3546_v48, 11  ;;  %v1721_v10 = vperm.slane %v3603_v31, 2 }
 0x14c   : > { %v1966_v33 = vadd.f32 %v2931_v4, %v1958_v3 }
 0x14d   : > { %v1965_v13 = vadd.f32 %v2930_v9, %v1957_v7 }
 0x14e   : > { %1897 = vmatpush.bf16.msrb.mxu0 %v2473_v19  ;;  %1910 = vmatpush.bf16.msrb.mxu1 %v2729_v20  ;;  %v1968_v17 = vmul.f32 0.11111111, %v1966_v33  ;;  %v1724_v20 = vperm.slane %v3603_v31, 5 }
 0x14f   : > { %1923 = vmatpush.bf16.msrb.mxu2 %v2477_v23  ;;  %1936 = vmatpush.bf16.msrb.mxu3 %v2733_v24  ;;  %v1967_v32 = vmul.f32 0.11111111, %v1965_v13  ;;  %v1723_v23 = vperm.slane %v3603_v31, 4  ;;  %v1725_v24 = vperm.slane %v3603_v31, 6 }
 0x150   : > { %v1974_v22 = vperm.slane %v1968_v17, 4  ;;  %v1973_v25 = vperm.slane %v1968_v17, 0 }
 0x151   : > { %v1972_v8 = vperm.slane %v1967_v32, 4 }
 0x152   : > { %1898 = vmatpush.bf16.msrb.mxu0 %v2441_v28  ;;  %1911 = vmatpush.bf16.msrb.mxu1 %v2697_v5 }
 0x153   : > { %1924 = vmatpush.bf16.msrb.mxu2 %v2445_v29  ;;  %1937 = vmatpush.bf16.msrb.mxu3 %v2701_v30 }
 0x155   : > { %1899 = vmatmul.bf16.vlgmr.msrb.gmra.mxu0 %v3583_v63  ;;  %1912 = vmatmul.bf16.vlgmr.msrb.gmra.mxu1 %v3585_v18 }
 0x156   : > { %1925 = vmatmul.bf16.vlgmr.msrb.gmra.mxu2 %v3583_v63  ;;  %1938 = vmatmul.bf16.vlgmr.msrb.gmra.mxu3 %v3585_v18 }
 0x191   : > { %v1744_v35 = vpop.f32.mrf.mxu0  ;;  %v1757_v36 = vpop.f32.mrf.mxu1 }
 0x192   : > { %v1745_v37 = vadd.f32 %v1744_v35, %v1719_v34 }
 0x194   : > { %v3606_v38 = vadd.f32 %v1757_v36, %v1745_v37  ;;  %v1726_v36 = vperm.slane %v3603_v31, 7  ;;  %v1971_v37 = vperm.slane %v1967_v32, 0 }
 0x198   : > { %v1770_v39 = vpop.f32.mrf.mxu2  ;;  %v1783_v40 = vpop.f32.mrf.mxu3 }
 0x199   : > { %v1746_v41 = vpop.f32.mrf.mxu0  ;;  %v1759_v42 = vpop.f32.mrf.mxu1  ;;  %v1771_v19 = vadd.f32 %v1770_v39, %v1720_v11 }
 0x19b   : > { %v1784_v26 = vadd.f32 %v1783_v40, %v1771_v19 }
 0x19d   : > { %v1980_v34 = vadd.f32 %v1972_v8, %v1784_v26 }
 0x19f   : > { %v1988_v40 = vmax.f32 %v1980_v34, 0.0 }
 0x1a0   : > { %v1772_v43 = vpop.f32.mrf.mxu2  ;;  %v1785_v44 = vpop.f32.mrf.mxu3 }
 0x1a1   : > { %v1796_v45 = vpop.f32.mrf.mxu0  ;;  %v1809_v46 = vpop.f32.mrf.mxu1 }
 0x1a2   : > { %v1797_v14 = vadd.f32 %v1796_v45, %v1721_v10 }
 0x1a4   : > { %v1810_v48 = vadd.f32 %v1809_v46, %v1797_v14 }
 0x1a6   : > { %v1981_v30 = vadd.f32 %v1973_v25, %v1810_v48 }
 0x1a8   : > { %v1822_v63 = vpop.f32.mrf.mxu2  ;;  %v1835_v47 = vpop.f32.mrf.mxu3  ;;  %v1989_v43 = vmax.f32 %v1981_v30, 0.0 }
 0x1a9   : > { %v1798_v18 = vpop.f32.mrf.mxu0  ;;  %v1811_v49 = vpop.f32.mrf.mxu1  ;;  %v1823_v12 = vadd.f32 %v1822_v63, %v1722_v6 }
 0x1aa   : > { %v1979_v49 = vadd.f32 %v1971_v37, %v3606_v38 }
 0x1ab   : > { %v1836_v21 = vadd.f32 %v1835_v47, %v1823_v12 }
 0x1ad   : > { %v1982_v28 = vadd.f32 %v1974_v22, %v1836_v21 }
 0x1af   : > { %v1990_v39 = vmax.f32 %v1982_v28, 0.0 }
 0x1b0   : > { %v1824_v50 = vpop.f32.mrf.mxu2  ;;  %v1837_v51 = vpop.f32.mrf.mxu3 }
 0x1b1   : > { %v2005_v50 = vrot.slane %v1990_v39, 5 }
 0x1b2   : > { %v1848_v52 = vpop.f32.mrf.mxu0  ;;  %v1861_v53 = vpop.f32.mrf.mxu1 }
 0x1b3   : > { %v1849_v5 = vadd.f32 %v1848_v52, %v1723_v23 }
 0x1b5   : > { %v1862_v41 = vadd.f32 %v1861_v53, %v1849_v5 }
 0x1b7   : > { %v1991_v51 = vmax.f32 %v1862_v41, 0.0 }
 0x1b9   : > { %v2006_v58 = vrot.slane %v1991_v51, 4 }
 0x1ba   : > { %v1850_v56 = vpop.f32.mrf.mxu0  ;;  %v1863_v57 = vpop.f32.mrf.mxu1 }
 0x1bb   : > { %v1874_v54 = vpop.f32.mrf.mxu2  ;;  %v1887_v62 = vpop.f32.mrf.mxu3  ;;  %v1987_v56 = vmax.f32 %v1979_v49, 0.0 }
 0x1bc   : > { %v1875_v15 = vadd.f32 %v1874_v54, %v1724_v20  ;;  %v2004_v54 = vrot.slane %v1989_v43, 6 }
 0x1be   : > { %v1888_v35 = vadd.f32 %v1887_v62, %v1875_v15  ;;  %v2003_v62 = vrot.slane %v1988_v40, 7  ;;  %v2012_v57 = vsel %vm2011_vm1, %v2004_v54, %v2005_v50 }
 0x1c0   : > { %v1992_v46 = vmax.f32 %v1888_v35, 0.0  ;;  %v2010_v0 = vsel %vm902_vm0, %v1987_v56, %v2003_v62 }
 0x1c1   : > { %v2014_v3 = vsel %vm2013_vm2, %v2010_v0, %v2012_v57 }
 0x1c2   : > { %v2007_v53 = vrot.slane %v1992_v46, 3 }
 0x1c3   : > { %v1876_v1 = vpop.f32.mrf.mxu2  ;;  %v1889_v2 = vpop.f32.mrf.mxu3 }
 0x1c4   : > { %v2016_v1 = vsel %vm2015_vm3, %v2006_v58, %v2007_v53 }
 0x1d2   : > { %v1900_v16 = vpop.f32.mrf.mxu0  ;;  %v1913_v27 = vpop.f32.mrf.mxu1 }
 0x1d3   : > { %v1901_v29 = vadd.f32 %v1900_v16, %v1725_v24 }
 0x1d5   : > { %v1914_v42 = vadd.f32 %v1913_v27, %v1901_v29 }
 0x1d7   : > { %v1993_v52 = vmax.f32 %v1914_v42, 0.0 }
 0x1d9   : > { %v1926_v44 = vpop.f32.mrf.mxu2  ;;  %v1939_v45 = vpop.f32.mrf.mxu3  ;;  %v2008_v59 = vrot.slane %v1993_v52, 2 }
 0x1da   : > { %v1927_v63 = vadd.f32 %v1926_v44, %v1726_v36  ;;  %v1902_v47 = vpop.f32.mrf.mxu0  ;;  %v1915_v18 = vpop.f32.mrf.mxu1 }
 0x1dc   : > { %v1940_v31 = vadd.f32 %v1939_v45, %v1927_v63 }
 0x1de   : > { %v1994_v55 = vmax.f32 %v1940_v31, 0.0 }
 0x1e0   : > { %v2009_v60 = vrot.slane %v1994_v55, 1 }
 0x1e1   : > { %v1928_v38 = vpop.f32.mrf.mxu2  ;;  %v1941_v61 = vpop.f32.mrf.mxu3 }
 0x1e2   : > { %v2018_v2 = vsel %vm2017_vm4, %v2008_v59, %v2009_v60 }
 0x1e3   : > { %v2020_v4 = vsel %vm2019_vm5, %v2016_v1, %v2018_v2 }
 0x1e4   : > { %v2022_v6 = vsel %vm2021_vm6, %v2014_v3, %v2020_v4 }
 0x1e5   : > { %2024 = vst [vmem:[%s370_s27] sm:$0xff] %v2022_v6 }
 0x1e6 PF: > { %s21_s24 = sadd.s32 1, %s3404_s24  }
 0x1e7   : > { %p18_p7 = scmp.ge.s32.totalorder %s21_s24, 4  }
 0x1e9   :  { %20 = sbr.rel (!%p18_p7) target bundleno = 4 (0x4), region = 107 }
 0x1ee   :  { %2044 = vsyncpa [#allocation3], 1 }
 0x1ef   :  { %2046 = vsyncpa [#allocation3 + $0x1], 1 }
 0x1f0   :  { %2047 = vsyncpa [#allocation5], 1 }
 0x1f1   :  { %2048 = vsyncpa [#allocation8], 1 }
 0x1f2   :  { %2049 = vsyncpa [#allocation11], 1 }

// kernel: _lambda_.13
= control target key start
LH: loop header
LB: loop body
LE: loop exit
PB: predicated region body
PF: predicated region fallthrough
CT: control target
= control target key end

     0   :  { %s5228_s0 = inlined_call_operand.vmem [shape: f32[2,1,1024], index: 0, kind: input, shape index: {}]   ;;  %s5229_s1 = inlined_call_operand.vmem [shape: bf16[3,1024,256], index: 1, kind: input, shape index: {}]   ;;  %s5230_s2 = inlined_call_operand.hbm [shape: f32[3,1,256], index: 2, kind: input, shape index: {}]   ;;  %s5231_s3 = inlined_call_operand.hbm [shape: f32[3,9,256], index: 3, kind: input, shape index: {}]   ;;  %s5232_s4 = inlined_call_operand.hbm [shape: f32[3,1,256], index: 4, kind: input, shape index: {}]   ;;  %s5233_s5 = inlined_call_operand.hbm [shape: bf16[3,256,1024], index: 5, kind: input, shape index: {}]   ;;  %s5234_s6 = inlined_call_operand.hbm [shape: f32[3,1,1024], index: 6, kind: input, shape index: {}]   ;;  %s5235_s7 = inlined_call_operand.vmem [shape: f32[2,1,1024], index: 7, kind: output, shape index: {}]  }
   0x1   :  { %5240 = sst [smem:[#allocation19_spill]] %s5230_s2 }
   0x2   :  { %5241 = sst [smem:[#allocation20_spill]] %s5231_s3 }
   0x3   :  { %5242 = sst [smem:[#allocation21_spill]] %s5233_s5 }
   0x4   :  { %5243 = sst [smem:[#allocation22_spill]] %s5235_s7 }
   0x5   :  { %12 = vsyncpa [#allocation4], 0 }
   0x6   :  { %14 = vsyncpa [#allocation4 + $0x1], 0 }
   0x7   :  { %15 = vsyncpa [#allocation6], 0 }
   0x8   :  { %17 = vsyncpa [#allocation6 + $0x1], 0 }
   0x9   :  { %18 = vsyncpa [#allocation9], 0 }
   0xa   :  { %20 = vsyncpa [#allocation9 + $0x1], 0  ;;  %s4433_s24 = smov 0   ;;  %s4435_s25 = smov 0  }
   0xb   :  { %s4437_s26 = smov 0   ;;  %s4439_s27 = smov 0  }
   0xc   :  { %s4441_s28 = smov 0   ;;  %s4443_s29 = smov 0  }
   0xd   :  { %s4445_s30 = smov 0   ;;  %s4447_s8 = smov 0  }
   0xe LB: > { %5244 = sst [smem:[#allocation14_spill]] %s4367_s26  ;;  %s5236_s9 = sadd.s32 4294967295, %s4387_s8   ;;  %s4387_s8 = sphi %s4447_s8, %s26_s8   ;;  %s4383_s30 = sphi %s4445_s30, %s5261_s30   ;;  %s4379_s29 = sphi %s4443_s29, %s5265_s29   ;;  %s4375_s28 = sphi %s4441_s28, %s5259_s28   ;;  %s4371_s27 = sphi %s4439_s27, %s5264_s27   ;;  %s4367_s26 = sphi %s4437_s26, %s5258_s26   ;;  %s4363_s25 = sphi %s4435_s25, %s5263_s25   ;;  %s4359_s24 = sphi %s4433_s24, %s5262_s24  }
   0xf   : > { %5245 = sst [smem:[#allocation15_spill]] %s4383_s30  ;;  %s35_s10 = sadd.s32 1, %s4379_s29 }
  0x10   : > { %p36_p0 = scmp.ge.s32.totalorder %s35_s10, 3  ;;  %s38_s11 = sadd.s32 1, %s4383_s30 }
  0x11   : > { %s97_s12 = sadd.s32 1, %s4367_s26  ;;  %p104_p1 = scmp.ne.s32.totalorder %s4367_s26, %s4363_s25 }
  0x12   : > { %s5267_s10 = smov (%p36_p0, %s35_s10), 0  ;;  %s5269_s11 = smov (!%p36_p0, %s38_s11), %s4383_s30 }
  0x13   : > { %5246 = sst [smem:[#allocation16_spill]] %s5267_s10  ;;  %s94_s13 = ssub.s32 %s4379_s29, %s5267_s10 }
  0x14   : > { %p105_p2 = scmp.eq.s32.totalorder %s4387_s8, 0  ;;  %p40_p3 = scmp.ge.s32.totalorder %s5269_s11, 2 }
  0x15   : > { %p95_p4 = scmp.eq.s32.totalorder %s94_s13, 0  ;;  %p110_p6 = scmp.ne.s32.totalorder %s4363_s25, %s4359_s24 }
  0x16   : > { %p106_p5 = por %p105_p2, %p104_p1  ;;  %s5271_s11 = smov (%p40_p3, %s5269_s11), 0 }
  0x17   : > { %5247 = sst [smem:[#allocation17_spill]] %s5271_s11  ;;  %p111_p7 = scmp.eq.s32.totalorder %s5236_s9, 0 }
  0x18   : > { %s4487_s14 = scalar_select %p95_p4, %s4367_s26, %s97_s12  }
  0x19   : > { %p4093_p8 = scmp.lt.s32.totalorder %s4387_s8, 6  ;;  %s4493_s15 = sand.u32 1, %s4367_s26  }
  0x1a   : > { %5248 = sst [smem:[#allocation18_spill]] %s4487_s14  ;;  %p4495_p9 = por %p111_p7, %p110_p6 }
  0x1b   : > { %s298_s17 = sand.u32 1, %s4387_s8   ;;  %p4500_p10 = pnand %p4093_p8, %p106_p5 }
  0x1c   : > { %s2761_s19 = sshll.u32 %s4493_s15, 5  ;;  %s3808_s20 = sshll.u32 %s4379_s29, 5 }
  0x1d   : > { %s5251_s3 = sld [smem:[#allocation20_spill]]  ;;  %s302_s24 = scalar_lea.vmem [#allocation5], %s2761_s19 }
  0x1e   : > { %s310_s12 = sshll.u32 %s302_s24, 4  ;;  %p2771_p11 = scmp.ge.s32.totalorder %s4387_s8, 1  ;;  %s311_s12 = int_to_ptr.vmem [resolvable:$true] %s310_s12 }
  0x1f   : > { %s4510_s9 = scalar_lea.sflag [#allocation6], %s298_s17  ;;  %s4389_s11 = smov 256  }
  0x20   : > { %s4390_s10 = smov 16   ;;  %p378_p12 = scmp.lt.s32.totalorder %s4387_s8, 7 }
  0x21   : > { %s2766_s30 = sshll.u32 %s4493_s15, 10  ;;  %s3809_s21 = sshll.u32 %s4379_s29, 10 }
  0x22   : > { %p4518_p13 = pnand %p2771_p11, %p378_p12  ;;  %s5253_s5 = sld [smem:[#allocation21_spill]] }
  0x23   : > { %s307_s23 = scalar_lea.hbm %s5251_s3, %s3808_s20  ;;  %s343_s24 = scalar_lea.vmem [#allocation8], %s2766_s30 }
  0x24   : > { %s308_s13 = sshll.u32 %s307_s23, 4  ;;  %s351_s3 = sshll.u32 %s343_s24, 4  ;;  %s309_s13 = int_to_ptr.hbm [resolvable:$true] %s308_s13  ;;  %s352_s3 = int_to_ptr.vmem [resolvable:$true] %s351_s3 }
  0x25   : > { %4083 = dma.hbm_to_vmem [thread:$0]  (!%p4500_p10), %s309_s13, 512, %s311_s12, %s4510_s9, %s4389_s11, %s4389_s11, %s4390_s10  }
  0x26   : > { %s4525_s10 = scalar_lea.sflag [#allocation9], %s298_s17  ;;  %s4391_s11 = smov 512  }
  0x27   : > { %s4392_s12 = smov 32   ;;  %s2759_s13 = sshll.u32 %s4493_s15, 1 }
  0x28   : > { %s348_s23 = scalar_lea.hbm %s5253_s5, %s3809_s21  ;;  %s2760_s26 = sshll.u32 %s4379_s29, 1 }
  0x29   : > { %s349_s14 = sshll.u32 %s348_s23, 4  ;;  %s5254_s2 = sld [smem:[#allocation19_spill]]  ;;  %s350_s14 = int_to_ptr.hbm [resolvable:$true] %s349_s14 }
  0x2a   : > { %4089 = dma.hbm_to_vmem [thread:$0]  (!%p4500_p10), %s350_s14, 16384, %s352_s3, %s4525_s10, %s4391_s11, %s4391_s11, %s4392_s12  }
  0x2b   : > { %s283_s23 = scalar_lea.vmem [#allocation3], %s2759_s13  ;;  %s280_s17 = scalar_lea.sflag [#allocation4], %s4493_s15 }
  0x2c   : > { %s291_s24 = sshll.u32 %s283_s23, 4  ;;  %s328_s14 = scalar_lea.hbm %s5232_s4, %s2760_s26  ;;  %s292_s24 = int_to_ptr.vmem [resolvable:$true] %s291_s24 }
  0x2d   : > { %s330_s11 = sshll.u32 %s328_s14, 4  ;;  %s324_s12 = scalar_lea.vmem [#allocation7], %s2759_s13  ;;  %s331_s11 = int_to_ptr.hbm [resolvable:$true] %s330_s11 }
  0x2e   : > { %s332_s20 = sshll.u32 %s324_s12, 4  ;;  %s2769_s21 = sshll.u32 %s4493_s15, 3  ;;  %s333_s20 = int_to_ptr.vmem [resolvable:$true] %s332_s20 }
  0x2f   : > { %s287_s30 = scalar_lea.hbm %s5254_s2, %s2760_s26  ;;  %s384_s5 = sand.u32 (!%p4518_p13), 1, %s4363_s25  }
  0x30   : > { %s289_s22 = sshll.u32 %s287_s30, 4  ;;  %s2770_s30 = sshll.u32 %s4379_s29, 3  ;;  %s290_s22 = int_to_ptr.hbm [resolvable:$true] %s289_s22 }
  0x31   : > { %4080 = dma.hbm_to_vmem [thread:$0]  (!%p4500_p10), %s290_s22, 32, %s292_s24, %s280_s17  }
  0x32   : > { %4086 = dma.hbm_to_vmem [thread:$0]  (!%p4500_p10), %s331_s11, 32, %s333_s20, %s4510_s9  }
  0x33   : > { %s369_s7 = scalar_lea.hbm %s5234_s6, %s2770_s30  ;;  %s365_s24 = scalar_lea.vmem [#allocation10], %s2769_s21 }
  0x34   : > { %s371_s22 = sshll.u32 %s369_s7, 4  ;;  %s373_s17 = sshll.u32 %s365_s24, 4  ;;  %s372_s22 = int_to_ptr.hbm [resolvable:$true] %s371_s22  ;;  %s374_s17 = int_to_ptr.vmem [resolvable:$true] %s373_s17 }
  0x35   : > { %4092 = dma.hbm_to_vmem [thread:$0]  (!%p4500_p10), %s372_s22, 128, %s374_s17, %s4525_s10  }
  0x36   : > { %382 = sbr.rel (%p4518_p13) target bundleno = 574 (0x23e), region = 48  ;;  %s2772_s26 = sshll.u32 (!%p4518_p13), %s384_s5, 1 }
  0x37   : > { %s385_s9 = scalar_lea.sflag (!%p4518_p13), [#allocation4], %s384_s5  ;;  %s4555_s15 = scalar_lea.vmem (!%p4518_p13), [#allocation3], %s2772_s26 }
  0x3b   : > { %4346 = dma.done.wait (%p4495_p9), %s385_s9, 32  }
  0x3c   : > { %4348 = vsyncadd (%p4495_p9), %s385_s9, 4294967264  ;;  %s5255_s2 = sadd.s32 4294967295, %s4387_s8   ;;  %s2773_s18 = sshll.u32 %s384_s5, 5 }
  0x3d   : > { %s394_s7 = sand.u32 1, %s5255_s2   ;;  %s4563_s19 = scalar_lea.vmem [#allocation5], %s2773_s18 }
  0x3e   : > { %s395_s10 = scalar_lea.sflag [#allocation6], %s394_s7 }
  0x3f   : > { %4350 = dma.done.wait (%p4495_p9), %s395_s10, 544  }
  0x40   : > { %4352 = vsyncadd (%p4495_p9), %s395_s10, 4294966752  ;;  %s2775_s13 = sshll.u32 %s384_s5, 10  ;;  %s4569_s3 = scalar_lea.vmem [#allocation7], %s2772_s26 }
  0x41   : > { %s415_s14 = scalar_lea.sflag [#allocation9], %s394_s7  ;;  %s4571_s11 = scalar_lea.vmem [#allocation8], %s2775_s13 }
  0x42   : > { %4354 = dma.done.wait (%p4495_p9), %s415_s14, 16512  }
  0x43   : > { %4356 = vsyncadd (%p4495_p9), %s415_s14, 4294950784  ;;  %s2776_s12 = sshll.u32 %s384_s5, 3  ;;  %p488_p0 = scmp.lt.s32.totalorder %s4375_s28, 1 }
  0x44   : > { %p492_p1 = scmp.lt.s32.totalorder %s4371_s27, 2  ;;  %s5256_s7 = sld [smem:[#allocation22_spill]] }
  0x45   : > { %s5273_s28 = smov (!%p488_p0, %s4375_s28), 1  ;;  %s4594_s5 = scalar_lea.vmem [#allocation10], %s2776_s12 }
  0x46   : > { %s493_s20 = scalar_select %p492_p1, %s4371_s27, 2 }
  0x47   : > { %s2777_s21 = sshll.u32 %s5273_s28, 3  ;;  %p2781_p2 = scmp.ne.s32.totalorder %s4371_s27, 0 }
  0x48   : > { %s491_s22 = scalar_lea.vmem %s5228_s0, %s2777_s21  ;;  %s3810_s24 = sshll.u32 %s493_s20, 10 }
  0x49   : > { %s4587_s16 = scalar_lea.vmem %s5229_s1, %s3810_s24  ;;  %504 = sbr.rel (%p2781_p2) target bundleno = 80 (0x50), region = 72 }
  0x4a   : > { %s4592_s18 = scalar_lea.vmem %s5256_s7, %s2777_s21 }
  0x4e   : > { %v505_v0 = vld [vmem:[%s491_s22] sm:$0xff] }
  0x4f   : > { %506 = vst [vmem:[#allocation2] sm:$0xff] %v505_v0 }
  0x50 PF: > { %v2840_v1 = vld [vmem:[%s4587_s16 + $0x70] sm:$0xf]  ;;  %v3826_v2 = vld [vmem:[%s4587_s16 + $0x74] sm:$0xf0]  ;;  %v2832_v12 = vld [vmem:[%s4587_s16 + $0x60] sm:$0xf] }
  0x51   : > { %v2904_v3 = vld [vmem:[%s4587_s16 + $0xf0] sm:$0xf]  ;;  %v2841_v4 = vor.u32 %v3826_v2, %v2840_v1  ;;  %v3842_v5 = vld [vmem:[%s4587_s16 + $0xf4] sm:$0xf0]  ;;  %v3824_v14 = vld [vmem:[%s4587_s16 + $0x64] sm:$0xf0] }
  0x52   : > { %v2968_v6 = vld [vmem:[%s4587_s16 + $0x170] sm:$0xf]  ;;  %v3858_v7 = vld [vmem:[%s4587_s16 + $0x174] sm:$0xf0]  ;;  %v2905_v8 = vor.u32 %v3842_v5, %v2904_v3  ;;  %v2896_v15 = vld [vmem:[%s4587_s16 + $0xe0] sm:$0xf]  ;;  %v2833_v17 = vor.u32 %v3824_v14, %v2832_v12 }
  0x53   : > { %v2969_v9 = vor.u32 %v3858_v7, %v2968_v6  ;;  %v3032_v10 = vld [vmem:[%s4587_s16 + $0x1f0] sm:$0xf]  ;;  %v3874_v11 = vld [vmem:[%s4587_s16 + $0x1f4] sm:$0xf0]  ;;  %1307 = vmatpush.bf16.msra.mxu0 %v2841_v4  ;;  %v3840_v16 = vld [vmem:[%s4587_s16 + $0xe4] sm:$0xf0] }
  0x54   : > { %v3033_v13 = vor.u32 %v3874_v11, %v3032_v10  ;;  %1320 = vmatpush.bf16.msra.mxu1 %v2905_v8  ;;  %v2897_v18 = vor.u32 %v3840_v16, %v2896_v15  ;;  %v2960_v19 = vld [vmem:[%s4587_s16 + $0x160] sm:$0xf]  ;;  %v3856_v20 = vld [vmem:[%s4587_s16 + $0x164] sm:$0xf0]  ;;  %v2824_v24 = vld [vmem:[%s4587_s16 + $0x50] sm:$0xf] }
  0x55   : > { %1333 = vmatpush.bf16.msra.mxu2 %v2969_v9  ;;  %v3024_v21 = vld [vmem:[%s4587_s16 + $0x1e0] sm:$0xf]  ;;  %v2961_v22 = vor.u32 %v3856_v20, %v2960_v19  ;;  %v3872_v23 = vld [vmem:[%s4587_s16 + $0x1e4] sm:$0xf0]  ;;  %v3822_v25 = vld [vmem:[%s4587_s16 + $0x54] sm:$0xf0] }
  0x56   : > { %1346 = vmatpush.bf16.msra.mxu3 %v3033_v13  ;;  %v3025_v26 = vor.u32 %v3872_v23, %v3024_v21  ;;  %v2888_v27 = vld [vmem:[%s4587_s16 + $0xd0] sm:$0xf]  ;;  %v3838_v28 = vld [vmem:[%s4587_s16 + $0xd4] sm:$0xf0]  ;;  %v2825_v30 = vor.u32 %v3822_v25, %v2824_v24  ;;  %v2816_v36 = vld [vmem:[%s4587_s16 + $0x40] sm:$0xf] }
  0x57   : > { %v2952_v29 = vld [vmem:[%s4587_s16 + $0x150] sm:$0xf]  ;;  %1308 = vmatpush.bf16.msra.mxu0 %v2833_v17  ;;  %v3854_v31 = vld [vmem:[%s4587_s16 + $0x154] sm:$0xf0]  ;;  %v2889_v34 = vor.u32 %v3838_v28, %v2888_v27  ;;  %v3820_v37 = vld [vmem:[%s4587_s16 + $0x44] sm:$0xf0] }
  0x58   : > { %v3016_v32 = vld [vmem:[%s4587_s16 + $0x1d0] sm:$0xf]  ;;  %v3870_v33 = vld [vmem:[%s4587_s16 + $0x1d4] sm:$0xf0]  ;;  %1321 = vmatpush.bf16.msra.mxu1 %v2897_v18  ;;  %v2953_v35 = vor.u32 %v3854_v31, %v2952_v29  ;;  %v2880_v38 = vld [vmem:[%s4587_s16 + $0xc0] sm:$0xf]  ;;  %v2817_v45 = vor.u32 %v3820_v37, %v2816_v36 }
  0x59   : > { %1334 = vmatpush.bf16.msra.mxu2 %v2961_v22  ;;  %v3017_v39 = vor.u32 %v3870_v33, %v3016_v32  ;;  %v3836_v40 = vld [vmem:[%s4587_s16 + $0xc4] sm:$0xf0]  ;;  %v2944_v41 = vld [vmem:[%s4587_s16 + $0x140] sm:$0xf]  ;;  %v2808_v48 = vld [vmem:[%s4587_s16 + $0x30] sm:$0xf] }
  0x5a   : > { %1347 = vmatpush.bf16.msra.mxu3 %v3025_v26  ;;  %v3852_v42 = vld [vmem:[%s4587_s16 + $0x144] sm:$0xf0]  ;;  %v3008_v43 = vld [vmem:[%s4587_s16 + $0x1c0] sm:$0xf]  ;;  %v2881_v46 = vor.u32 %v3836_v40, %v2880_v38  ;;  %v3818_v49 = vld [vmem:[%s4587_s16 + $0x34] sm:$0xf0] }
  0x5b   : > { %v3868_v44 = vld [vmem:[%s4587_s16 + $0x1c4] sm:$0xf0]  ;;  %1309 = vmatpush.bf16.msra.mxu0 %v2825_v30  ;;  %v2945_v47 = vor.u32 %v3852_v42, %v2944_v41  ;;  %v2872_v50 = vld [vmem:[%s4587_s16 + $0xb0] sm:$0xf]  ;;  %v3834_v52 = vld [vmem:[%s4587_s16 + $0xb4] sm:$0xf0]  ;;  %v2809_v57 = vor.u32 %v3818_v49, %v2808_v48 }
  0x5c   : > { %1322 = vmatpush.bf16.msra.mxu1 %v2889_v34  ;;  %v3009_v51 = vor.u32 %v3868_v44, %v3008_v43  ;;  %v2936_v53 = vld [vmem:[%s4587_s16 + $0x130] sm:$0xf]  ;;  %v3850_v54 = vld [vmem:[%s4587_s16 + $0x134] sm:$0xf0]  ;;  %v2873_v58 = vor.u32 %v3834_v52, %v2872_v50  ;;  %v2800_v60 = vld [vmem:[%s4587_s16 + $0x20] sm:$0xf] }
  0x5d   : > { %1335 = vmatpush.bf16.msra.mxu2 %v2953_v35  ;;  %v3000_v55 = vld [vmem:[%s4587_s16 + $0x1b0] sm:$0xf]  ;;  %v3866_v56 = vld [vmem:[%s4587_s16 + $0x1b4] sm:$0xf0]  ;;  %v2937_v59 = vor.u32 %v3850_v54, %v2936_v53  ;;  %v3816_v61 = vld [vmem:[%s4587_s16 + $0x24] sm:$0xf0] }
  0x5e   : > { %1348 = vmatpush.bf16.msra.mxu3 %v3017_v39  ;;  %v2864_v62 = vld [vmem:[%s4587_s16 + $0xa0] sm:$0xf]  ;;  %v3001_v63 = vor.u32 %v3866_v56, %v3000_v55  ;;  %v3832_v0 = vld [vmem:[%s4587_s16 + $0xa4] sm:$0xf0]  ;;  %v2801_v5 = vor.u32 %v3816_v61, %v2800_v60  ;;  %v2792_v8 = vld [vmem:[%s4587_s16 + $0x10] sm:$0xf] }
  0x5f   : > { %1310 = vmatpush.bf16.msra.mxu0 %v2817_v45  ;;  %v2928_v1 = vld [vmem:[%s4587_s16 + $0x120] sm:$0xf]  ;;  %v3848_v2 = vld [vmem:[%s4587_s16 + $0x124] sm:$0xf0]  ;;  %v2865_v6 = vor.u32 %v3832_v0, %v2864_v62  ;;  %v3814_v9 = vld [vmem:[%s4587_s16 + $0x14] sm:$0xf0] }
  0x60   : > { %1323 = vmatpush.bf16.msra.mxu1 %v2881_v46  ;;  %v2992_v3 = vld [vmem:[%s4587_s16 + $0x1a0] sm:$0xf]  ;;  %v3864_v4 = vld [vmem:[%s4587_s16 + $0x1a4] sm:$0xf0]  ;;  %v2929_v7 = vor.u32 %v3848_v2, %v2928_v1  ;;  %v2856_v10 = vld [vmem:[%s4587_s16 + $0x90] sm:$0xf]  ;;  %v2793_v17 = vor.u32 %v3814_v9, %v2792_v8 }
  0x61   : > { %1336 = vmatpush.bf16.msra.mxu2 %v2945_v47  ;;  %v2993_v11 = vor.u32 %v3864_v4, %v2992_v3  ;;  %v3830_v12 = vld [vmem:[%s4587_s16 + $0x94] sm:$0xf0]  ;;  %v2920_v13 = vld [vmem:[%s4587_s16 + $0x110] sm:$0xf]  ;;  %v2784_v18 = vld [vmem:[%s4587_s16] sm:$0xf] }
  0x62   : > { %1349 = vmatpush.bf16.msra.mxu3 %v3009_v51  ;;  %v3846_v14 = vld [vmem:[%s4587_s16 + $0x114] sm:$0xf0]  ;;  %v2984_v15 = vld [vmem:[%s4587_s16 + $0x190] sm:$0xf]  ;;  %v3812_v19 = vld [vmem:[%s4587_s16 + $0x4] sm:$0xf0]  ;;  %v2857_v20 = vor.u32 %v3830_v12, %v2856_v10 }
  0x63   : > { %1311 = vmatpush.bf16.msra.mxu0 %v2809_v57  ;;  %v3862_v16 = vld [vmem:[%s4587_s16 + $0x194] sm:$0xf0]  ;;  %v2921_v21 = vor.u32 %v3846_v14, %v2920_v13  ;;  %v2848_v22 = vld [vmem:[%s4587_s16 + $0x80] sm:$0xf]  ;;  %v3828_v23 = vld [vmem:[%s4587_s16 + $0x84] sm:$0xf0]  ;;  %v2785_v32 = vor.u32 %v3812_v19, %v2784_v18 }
  0x64   : > { %1324 = vmatpush.bf16.msra.mxu1 %v2873_v58  ;;  %v2912_v24 = vld [vmem:[%s4587_s16 + $0x100] sm:$0xf]  ;;  %v2985_v25 = vor.u32 %v3862_v16, %v2984_v15  ;;  %v3844_v26 = vld [vmem:[%s4587_s16 + $0x104] sm:$0xf0]  ;;  %v3096_v29 = vld [vmem:[%s4587_s16 + $0x270] sm:$0xf]  ;;  %v2849_v36 = vor.u32 %v3828_v23, %v2848_v22 }
  0x65   : > { %1337 = vmatpush.bf16.msra.mxu2 %v2937_v59  ;;  %v2976_v27 = vld [vmem:[%s4587_s16 + $0x180] sm:$0xf]  ;;  %v3860_v28 = vld [vmem:[%s4587_s16 + $0x184] sm:$0xf0]  ;;  %v3890_v30 = vld [vmem:[%s4587_s16 + $0x274] sm:$0xf0]  ;;  %v2913_v37 = vor.u32 %v3844_v26, %v2912_v24 }
  0x66   : > { %1350 = vmatpush.bf16.msra.mxu3 %v3001_v63  ;;  %v3160_v31 = vld [vmem:[%s4587_s16 + $0x2f0] sm:$0xf]  ;;  %v3906_v33 = vld [vmem:[%s4587_s16 + $0x2f4] sm:$0xf0]  ;;  %v2977_v40 = vor.u32 %v3860_v28, %v2976_v27  ;;  %v3097_v41 = vor.u32 %v3890_v30, %v3096_v29  ;;  %v3088_v44 = vld [vmem:[%s4587_s16 + $0x260] sm:$0xf] }
  0x67   : > { %1312 = vmatpush.bf16.msra.mxu0 %v2801_v5  ;;  %v3224_v34 = vld [vmem:[%s4587_s16 + $0x370] sm:$0xf]  ;;  %v3922_v35 = vld [vmem:[%s4587_s16 + $0x374] sm:$0xf0]  ;;  %v3161_v42 = vor.u32 %v3906_v33, %v3160_v31  ;;  %v3888_v45 = vld [vmem:[%s4587_s16 + $0x264] sm:$0xf0] }
  0x68   : > { %1325 = vmatpush.bf16.msra.mxu1 %v2865_v6  ;;  %v3288_v38 = vld [vmem:[%s4587_s16 + $0x3f0] sm:$0xf]  ;;  %v3938_v39 = vld [vmem:[%s4587_s16 + $0x3f4] sm:$0xf0]  ;;  %v3225_v43 = vor.u32 %v3922_v35, %v3224_v34  ;;  %v3152_v46 = vld [vmem:[%s4587_s16 + $0x2e0] sm:$0xf]  ;;  %v3089_v53 = vor.u32 %v3888_v45, %v3088_v44 }
  0x69   : > { %1338 = vmatpush.bf16.msra.mxu2 %v2929_v7  ;;  %v3289_v47 = vor.u32 %v3938_v39, %v3288_v38  ;;  %v3904_v48 = vld [vmem:[%s4587_s16 + $0x2e4] sm:$0xf0]  ;;  %v3216_v49 = vld [vmem:[%s4587_s16 + $0x360] sm:$0xf]  ;;  %v3080_v54 = vld [vmem:[%s4587_s16 + $0x250] sm:$0xf] }
  0x6a   : > { %1351 = vmatpush.bf16.msra.mxu3 %v2993_v11  ;;  %v3920_v50 = vld [vmem:[%s4587_s16 + $0x364] sm:$0xf0]  ;;  %v3280_v51 = vld [vmem:[%s4587_s16 + $0x3e0] sm:$0xf]  ;;  %v3153_v55 = vor.u32 %v3904_v48, %v3152_v46  ;;  %v3886_v57 = vld [vmem:[%s4587_s16 + $0x254] sm:$0xf0] }
  0x6b   : > { %1313 = vmatpush.bf16.msra.mxu0 %v2793_v17  ;;  %v3936_v52 = vld [vmem:[%s4587_s16 + $0x3e4] sm:$0xf0]  ;;  %v3217_v56 = vor.u32 %v3920_v50, %v3216_v49  ;;  %v3144_v58 = vld [vmem:[%s4587_s16 + $0x2d0] sm:$0xf]  ;;  %v3902_v59 = vld [vmem:[%s4587_s16 + $0x2d4] sm:$0xf0]  ;;  %v3081_v1 = vor.u32 %v3886_v57, %v3080_v54 }
  0x6c   : > { %1326 = vmatpush.bf16.msra.mxu1 %v2857_v20  ;;  %v3281_v60 = vor.u32 %v3936_v52, %v3280_v51  ;;  %v3208_v61 = vld [vmem:[%s4587_s16 + $0x350] sm:$0xf]  ;;  %v3918_v62 = vld [vmem:[%s4587_s16 + $0x354] sm:$0xf0]  ;;  %v3145_v2 = vor.u32 %v3902_v59, %v3144_v58  ;;  %v3072_v3 = vld [vmem:[%s4587_s16 + $0x240] sm:$0xf] }
  0x6d   : > { %1339 = vmatpush.bf16.msra.mxu2 %v2921_v21  ;;  %v3272_v63 = vld [vmem:[%s4587_s16 + $0x3d0] sm:$0xf]  ;;  %v3934_v0 = vld [vmem:[%s4587_s16 + $0x3d4] sm:$0xf0]  ;;  %v3884_v4 = vld [vmem:[%s4587_s16 + $0x244] sm:$0xf0]  ;;  %v3209_v6 = vor.u32 %v3918_v62, %v3208_v61 }
  0x6e   : > { %1352 = vmatpush.bf16.msra.mxu3 %v2985_v25  ;;  %v4687_v5 = vld [vmem:[#allocation2] sm:$0xff]  ;;  %v3273_v11 = vor.u32 %v3934_v0, %v3272_v63  ;;  %v3900_v12 = vld [vmem:[%s4587_s16 + $0x2c4] sm:$0xf0]  ;;  %v3073_v20 = vor.u32 %v3884_v4, %v3072_v3  ;;  %v3064_v24 = vld [vmem:[%s4587_s16 + $0x230] sm:$0xf]  ;;  %vm1531_vm0 = vcmask 1040384  }
  0x6f   : > { %1314 = vmatpush.bf16.msra.mxu0 %v2785_v32  ;;  %v3136_v7 = vld [vmem:[%s4587_s16 + $0x2c0] sm:$0xf]  ;;  %v511_v8 = vperm.slane %v4687_v5, 2  ;;  %v509_v9 = vperm.slane %v4687_v5, 0  ;;  %v512_v10 = vperm.slane %v4687_v5, 3  ;;  %v510_v21 = vperm.slane %v4687_v5, 1 }
  0x70   : > { %1327 = vmatpush.bf16.msra.mxu1 %v2849_v36  ;;  %v3200_v13 = vld [vmem:[%s4587_s16 + $0x340] sm:$0xf]  ;;  %v3916_v14 = vld [vmem:[%s4587_s16 + $0x344] sm:$0xf0]  ;;  %v3137_v22 = vor.u32 %v3900_v12, %v3136_v7  ;;  %v3882_v25 = vld [vmem:[%s4587_s16 + $0x234] sm:$0xf0] }
  0x71   : > { %1340 = vmatpush.bf16.msra.mxu2 %v2913_v37  ;;  %v3264_v15 = vld [vmem:[%s4587_s16 + $0x3c0] sm:$0xf]  ;;  %v3932_v16 = vld [vmem:[%s4587_s16 + $0x3c4] sm:$0xf0]  ;;  %v4698_v17 = vpack.c.bf16 %v511_v8, %v511_v8  ;;  %v4700_v18 = vpack.c.bf16 %v509_v9, %v509_v9  ;;  %v4702_v19 = vpack.c.bf16 %v512_v10, %v512_v10  ;;  %v3201_v23 = vor.u32 %v3916_v14, %v3200_v13  ;;  %v3128_v26 = vld [vmem:[%s4587_s16 + $0x2b0] sm:$0xf] }
  0x72   : > { %1353 = vmatpush.bf16.msra.mxu3 %v2977_v40  ;;  %v3265_v27 = vor.u32 %v3932_v16, %v3264_v15  ;;  %v3898_v28 = vld [vmem:[%s4587_s16 + $0x2b4] sm:$0xf0]  ;;  %v3192_v29 = vld [vmem:[%s4587_s16 + $0x330] sm:$0xf]  ;;  %v4712_v31 = vpack.c.bf16 %v510_v21, %v510_v21  ;;  %v3065_v34 = vor.u32 %v3882_v25, %v3064_v24  ;;  %v3056_v37 = vld [vmem:[%s4587_s16 + $0x220] sm:$0xf] }
  0x73   : > { %1359 = vmatpush.bf16.msrb.mxu0 %v3097_v41  ;;  %v3914_v30 = vld [vmem:[%s4587_s16 + $0x334] sm:$0xf0]  ;;  %v3256_v32 = vld [vmem:[%s4587_s16 + $0x3b0] sm:$0xf]  ;;  %v3129_v35 = vor.u32 %v3898_v28, %v3128_v26  ;;  %v3880_v38 = vld [vmem:[%s4587_s16 + $0x224] sm:$0xf0] }
  0x74   : > { %1372 = vmatpush.bf16.msrb.mxu1 %v3161_v42  ;;  %1341 = vmatmul.bf16.vlgmr.msra.gmra.mxu2 %v4698_v17  ;;  %v3930_v33 = vld [vmem:[%s4587_s16 + $0x3b4] sm:$0xf0]  ;;  %v3193_v36 = vor.u32 %v3914_v30, %v3192_v29  ;;  %v3120_v39 = vld [vmem:[%s4587_s16 + $0x2a0] sm:$0xf]  ;;  %v3896_v41 = vld [vmem:[%s4587_s16 + $0x2a4] sm:$0xf0]  ;;  %v3057_v46 = vor.u32 %v3880_v38, %v3056_v37 }
  0x75   : > { %1385 = vmatpush.bf16.msrb.mxu2 %v3225_v43  ;;  %1315 = vmatmul.bf16.vlgmr.msra.gmra.mxu0 %v4700_v18  ;;  %v3257_v40 = vor.u32 %v3930_v33, %v3256_v32  ;;  %v3184_v42 = vld [vmem:[%s4587_s16 + $0x320] sm:$0xf]  ;;  %v3912_v43 = vld [vmem:[%s4587_s16 + $0x324] sm:$0xf0]  ;;  %v3048_v49 = vld [vmem:[%s4587_s16 + $0x210] sm:$0xf] }
  0x76   : > { %1398 = vmatpush.bf16.msrb.mxu3 %v3289_v47  ;;  %1328 = vmatmul.bf16.vlgmr.msra.gmra.mxu1 %v4712_v31  ;;  %v3248_v44 = vld [vmem:[%s4587_s16 + $0x3a0] sm:$0xf]  ;;  %v3928_v45 = vld [vmem:[%s4587_s16 + $0x3a4] sm:$0xf0]  ;;  %v3121_v47 = vor.u32 %v3896_v41, %v3120_v39  ;;  %v3185_v48 = vor.u32 %v3912_v43, %v3184_v42  ;;  %v3878_v50 = vld [vmem:[%s4587_s16 + $0x214] sm:$0xf0] }
  0x77   : > { %1360 = vmatpush.bf16.msrb.mxu0 %v3089_v53  ;;  %1354 = vmatmul.bf16.vlgmr.msra.gmra.mxu3 %v4702_v19  ;;  %v3112_v51 = vld [vmem:[%s4587_s16 + $0x290] sm:$0xf]  ;;  %v3249_v52 = vor.u32 %v3928_v45, %v3248_v44  ;;  %v3894_v53 = vld [vmem:[%s4587_s16 + $0x294] sm:$0xf0]  ;;  %v3049_v58 = vor.u32 %v3878_v50, %v3048_v49  ;;  %v3040_v59 = vld [vmem:[%s4587_s16 + $0x200] sm:$0xf] }
  0x78   : > { %1373 = vmatpush.bf16.msrb.mxu1 %v3153_v55  ;;  %v3176_v54 = vld [vmem:[%s4587_s16 + $0x310] sm:$0xf]  ;;  %v3910_v55 = vld [vmem:[%s4587_s16 + $0x314] sm:$0xf0]  ;;  %v515_v61 = vperm.slane %v4687_v5, 6  ;;  %v3113_v62 = vor.u32 %v3894_v53, %v3112_v51  ;;  %v514_v26 = vperm.slane %v4687_v5, 5 }
  0x79   : > { %1386 = vmatpush.bf16.msrb.mxu2 %v3217_v56  ;;  %v3240_v56 = vld [vmem:[%s4587_s16 + $0x390] sm:$0xf]  ;;  %v3926_v57 = vld [vmem:[%s4587_s16 + $0x394] sm:$0xf0]  ;;  %v3177_v63 = vor.u32 %v3910_v55, %v3176_v54  ;;  %v3104_v0 = vld [vmem:[%s4587_s16 + $0x280] sm:$0xf] }
  0x7a   : > { %1399 = vmatpush.bf16.msrb.mxu3 %v3281_v60  ;;  %v3876_v60 = vld [vmem:[%s4587_s16 + $0x204] sm:$0xf0]  ;;  %v3241_v3 = vor.u32 %v3926_v57, %v3240_v56  ;;  %v3825_v8 = vld [vmem:[%s4587_s16 + $0x74] sm:$0xf]  ;;  %v2842_v9 = vld [vmem:[%s4587_s16 + $0x78] sm:$0xf0]  ;;  %v4761_v37 = vpack.c.bf16 %v515_v61, %v515_v61  ;;  %v4769_v42 = vpack.c.bf16 %v514_v26, %v514_v26 }
  0x7b   : > { %1361 = vmatpush.bf16.msrb.mxu0 %v3081_v1  ;;  %v3892_v1 = vld [vmem:[%s4587_s16 + $0x284] sm:$0xf0]  ;;  %v3841_v10 = vld [vmem:[%s4587_s16 + $0xf4] sm:$0xf]  ;;  %v2906_v12 = vld [vmem:[%s4587_s16 + $0xf8] sm:$0xf0]  ;;  %v2845_v25 = vor.u32 %v3825_v8, %v2842_v9 }
  0x7c   : > { %1374 = vmatpush.bf16.msrb.mxu1 %v3145_v2  ;;  %v3168_v2 = vld [vmem:[%s4587_s16 + $0x300] sm:$0xf]  ;;  %v3908_v4 = vld [vmem:[%s4587_s16 + $0x304] sm:$0xf0]  ;;  %v3857_v13 = vld [vmem:[%s4587_s16 + $0x174] sm:$0xf]  ;;  %v3105_v15 = vor.u32 %v3892_v1, %v3104_v0 }
  0x7d   : > { %1387 = vmatpush.bf16.msrb.mxu2 %v3209_v6  ;;  %v3232_v6 = vld [vmem:[%s4587_s16 + $0x380] sm:$0xf]  ;;  %v3924_v7 = vld [vmem:[%s4587_s16 + $0x384] sm:$0xf0]  ;;  %v2970_v14 = vld [vmem:[%s4587_s16 + $0x178] sm:$0xf0]  ;;  %v3169_v16 = vor.u32 %v3908_v4, %v3168_v2 }
  0x7e   : > { %1400 = vmatpush.bf16.msrb.mxu3 %v3273_v11  ;;  %v3041_v11 = vor.u32 %v3876_v60, %v3040_v59  ;;  %v3034_v21 = vld [vmem:[%s4587_s16 + $0x1f8] sm:$0xf0]  ;;  %v3233_v24 = vor.u32 %v3924_v7, %v3232_v6  ;;  %v2973_v28 = vor.u32 %v3857_v13, %v2970_v14  ;;  %v3823_v29 = vld [vmem:[%s4587_s16 + $0x64] sm:$0xf]  ;;  %v2834_v30 = vld [vmem:[%s4587_s16 + $0x68] sm:$0xf0] }
  0x7f   : > { %1362 = vmatpush.bf16.msrb.mxu0 %v3073_v20  ;;  %v3873_v20 = vld [vmem:[%s4587_s16 + $0x1f4] sm:$0xf]  ;;  %v3839_v32 = vld [vmem:[%s4587_s16 + $0xe4] sm:$0xf]  ;;  %v3026_v39 = vld [vmem:[%s4587_s16 + $0x1e8] sm:$0xf0]  ;;  %v2837_v41 = vor.u32 %v3823_v29, %v2834_v30 }
  0x80   : > { %1375 = vmatpush.bf16.msrb.mxu1 %v3137_v22  ;;  %v513_v22 = vperm.slane %v4687_v5, 4  ;;  %v3037_v33 = vor.u32 %v3873_v20, %v3034_v21  ;;  %v3871_v38 = vld [vmem:[%s4587_s16 + $0x1e4] sm:$0xf]  ;;  %v3821_v45 = vld [vmem:[%s4587_s16 + $0x54] sm:$0xf]  ;;  %vm2552_vm1 = vcmask 1042434  }
  0x81   : > { %1388 = vmatpush.bf16.msrb.mxu2 %v3201_v23  ;;  %v516_v23 = vperm.slane %v4687_v5, 7  ;;  %v2890_v49 = vld [vmem:[%s4587_s16 + $0xd8] sm:$0xf0]  ;;  %v3853_v50 = vld [vmem:[%s4587_s16 + $0x154] sm:$0xf]  ;;  %vm2554_vm2 = vcmask 1041408  }
  0x82   : > { %1401 = vmatpush.bf16.msrb.mxu3 %v3265_v27  ;;  %v2909_v27 = vor.u32 %v3841_v10, %v2906_v12  ;;  %v4765_v5 = vpack.c.bf16 %v513_v22, %v513_v22  ;;  %v2954_v51 = vld [vmem:[%s4587_s16 + $0x158] sm:$0xf0]  ;;  %v3819_v57 = vld [vmem:[%s4587_s16 + $0x44] sm:$0xf]  ;;  %v2882_v61 = vld [vmem:[%s4587_s16 + $0xc8] sm:$0xf0] }
  0x83   : > { %1363 = vmatpush.bf16.msrb.mxu0 %v3065_v34  ;;  %v2898_v34 = vld [vmem:[%s4587_s16 + $0xe8] sm:$0xf0]  ;;  %v3018_v53 = vld [vmem:[%s4587_s16 + $0x1d8] sm:$0xf0]  ;;  %v2957_v56 = vor.u32 %v3853_v50, %v2954_v51  ;;  %v3835_v59 = vld [vmem:[%s4587_s16 + $0xc4] sm:$0xf] }
  0x84   : > { %1376 = vmatpush.bf16.msrb.mxu1 %v3129_v35  ;;  %v3855_v35 = vld [vmem:[%s4587_s16 + $0x164] sm:$0xf]  ;;  %v2901_v43 = vor.u32 %v3839_v32, %v2898_v34  ;;  %v3010_v1 = vld [vmem:[%s4587_s16 + $0x1c8] sm:$0xf0]  ;;  %v3817_v6 = vld [vmem:[%s4587_s16 + $0x34] sm:$0xf] }
  0x85   : > { %1389 = vmatpush.bf16.msrb.mxu2 %v3193_v36  ;;  %v2962_v36 = vld [vmem:[%s4587_s16 + $0x168] sm:$0xf0]  ;;  %v3867_v0 = vld [vmem:[%s4587_s16 + $0x1c4] sm:$0xf]  ;;  %v2810_v7 = vld [vmem:[%s4587_s16 + $0x38] sm:$0xf0] }
  0x86   : > { %1402 = vmatpush.bf16.msrb.mxu3 %v3257_v40  ;;  %v4767_v40 = vpack.c.bf16 %v516_v23, %v516_v23  ;;  %v2965_v44 = vor.u32 %v3855_v35, %v2962_v36  ;;  %v3833_v8 = vld [vmem:[%s4587_s16 + $0xb4] sm:$0xf]  ;;  %v3013_v9 = vor.u32 %v3867_v0, %v3010_v1  ;;  %v2874_v10 = vld [vmem:[%s4587_s16 + $0xb8] sm:$0xf0]  ;;  %v3815_v21 = vld [vmem:[%s4587_s16 + $0x24] sm:$0xf] }
  0x87   : > { %1364 = vmatpush.bf16.msrb.mxu0 %v3057_v46  ;;  %v2826_v46 = vld [vmem:[%s4587_s16 + $0x58] sm:$0xf0]  ;;  %v3865_v13 = vld [vmem:[%s4587_s16 + $0x1b4] sm:$0xf]  ;;  %v2802_v22 = vld [vmem:[%s4587_s16 + $0x28] sm:$0xf0] }
  0x88   : > { %1377 = vmatpush.bf16.msrb.mxu1 %v3121_v47  ;;  %v3837_v47 = vld [vmem:[%s4587_s16 + $0xd4] sm:$0xf]  ;;  %v2829_v54 = vor.u32 %v3821_v45, %v2826_v46  ;;  %v2938_v12 = vld [vmem:[%s4587_s16 + $0x138] sm:$0xf0]  ;;  %v3831_v23 = vld [vmem:[%s4587_s16 + $0xa4] sm:$0xf]  ;;  %v2805_v30 = vor.u32 %v3815_v21, %v2802_v22 }
  0x89   : > { %1390 = vmatpush.bf16.msrb.mxu2 %v3185_v48  ;;  %v3029_v48 = vor.u32 %v3871_v38, %v3026_v39  ;;  %v2893_v55 = vor.u32 %v3837_v47, %v2890_v49  ;;  %v3002_v14 = vld [vmem:[%s4587_s16 + $0x1b8] sm:$0xf0]  ;;  %v3847_v26 = vld [vmem:[%s4587_s16 + $0x124] sm:$0xf]  ;;  %v2994_v29 = vld [vmem:[%s4587_s16 + $0x1a8] sm:$0xf0] }
  0x8a   : > { %1403 = vmatpush.bf16.msrb.mxu3 %v3249_v52  ;;  %v3869_v52 = vld [vmem:[%s4587_s16 + $0x1d4] sm:$0xf]  ;;  %v2794_v35 = vld [vmem:[%s4587_s16 + $0x18] sm:$0xf0]  ;;  %v3811_v47 = vld [vmem:[%s4587_s16 + $0x4] sm:$0xf] }
  0x8b   : > { %1365 = vmatpush.bf16.msrb.mxu0 %v3049_v58  ;;  %v2818_v58 = vld [vmem:[%s4587_s16 + $0x48] sm:$0xf0]  ;;  %v3021_v60 = vor.u32 %v3869_v52, %v3018_v53  ;;  %v3813_v34 = vld [vmem:[%s4587_s16 + $0x14] sm:$0xf]  ;;  %v2858_v39 = vld [vmem:[%s4587_s16 + $0x98] sm:$0xf0] }
  0x8c   : > { %1378 = vmatpush.bf16.msrb.mxu1 %v3113_v62  ;;  %v3851_v62 = vld [vmem:[%s4587_s16 + $0x144] sm:$0xf]  ;;  %v2821_v2 = vor.u32 %v3819_v57, %v2818_v58  ;;  %v3829_v36 = vld [vmem:[%s4587_s16 + $0x94] sm:$0xf]  ;;  %v2986_v45 = vld [vmem:[%s4587_s16 + $0x198] sm:$0xf0]  ;;  %v2797_v46 = vor.u32 %v3813_v34, %v2794_v35 }
  0x8d   : > { %1391 = vmatpush.bf16.msrb.mxu2 %v3177_v63  ;;  %v2946_v63 = vld [vmem:[%s4587_s16 + $0x148] sm:$0xf0]  ;;  %v2861_v49 = vor.u32 %v3829_v36, %v2858_v39  ;;  %v3827_v51 = vld [vmem:[%s4587_s16 + $0x84] sm:$0xf]  ;;  %v3889_v58 = vld [vmem:[%s4587_s16 + $0x274] sm:$0xf] }
  0x8e   : > { %1404 = vmatpush.bf16.msrb.mxu3 %v3241_v3  ;;  %v2885_v3 = vor.u32 %v3835_v59, %v2882_v61  ;;  %v2949_v4 = vor.u32 %v3851_v62, %v2946_v63  ;;  %v2850_v52 = vld [vmem:[%s4587_s16 + $0x88] sm:$0xf0]  ;;  %v3843_v53 = vld [vmem:[%s4587_s16 + $0x104] sm:$0xf]  ;;  %v3098_v59 = vld [vmem:[%s4587_s16 + $0x278] sm:$0xf0] }
  0x8f   : > { %1366 = vmatpush.bf16.msrb.mxu0 %v3041_v11  ;;  %v3849_v11 = vld [vmem:[%s4587_s16 + $0x134] sm:$0xf]  ;;  %v2978_v57 = vld [vmem:[%s4587_s16 + $0x188] sm:$0xf0]  ;;  %v3162_v62 = vld [vmem:[%s4587_s16 + $0x2f8] sm:$0xf0]  ;;  %v2853_v1 = vor.u32 %v3827_v51, %v2850_v52 }
  0x90   : > { %1379 = vmatpush.bf16.msrb.mxu1 %v3105_v15  ;;  %v2813_v15 = vor.u32 %v3817_v6, %v2810_v7  ;;  %v2941_v20 = vor.u32 %v3849_v11, %v2938_v12  ;;  %v3921_v63 = vld [vmem:[%s4587_s16 + $0x374] sm:$0xf]  ;;  %v3226_v0 = vld [vmem:[%s4587_s16 + $0x378] sm:$0xf0]  ;;  %v3101_v7 = vor.u32 %v3889_v58, %v3098_v59  ;;  %v3090_v11 = vld [vmem:[%s4587_s16 + $0x268] sm:$0xf0] }
  0x91   : > { %1392 = vmatpush.bf16.msrb.mxu2 %v3169_v16  ;;  %v2877_v16 = vor.u32 %v3833_v8, %v2874_v10  ;;  %v3887_v10 = vld [vmem:[%s4587_s16 + $0x264] sm:$0xf]  ;;  %v3282_v21 = vld [vmem:[%s4587_s16 + $0x3e8] sm:$0xf0]  ;;  %v3274_v34 = vld [vmem:[%s4587_s16 + $0x3d8] sm:$0xf0] }
  0x92   : > { %1405 = vmatpush.bf16.msrb.mxu3 %v3233_v24  ;;  %1367 = vmatmul.bf16.vlgmr.msrb.gmra.mxu0 %v4765_v5  ;;  %v3005_v24 = vor.u32 %v3865_v13, %v3002_v14  ;;  %v3903_v12 = vld [vmem:[%s4587_s16 + $0x2e4] sm:$0xf]  ;;  %v3154_v14 = vld [vmem:[%s4587_s16 + $0x2e8] sm:$0xf0]  ;;  %v3093_v22 = vor.u32 %v3887_v10, %v3090_v11  ;;  %v3897_v51 = vld [vmem:[%s4587_s16 + $0x2b4] sm:$0xf] }
  0x93   : > { %1411 = vmatpush.bf16.msra.mxu0 %v2845_v25  ;;  %1380 = vmatmul.bf16.vlgmr.msrb.gmra.mxu1 %v4769_v42  ;;  %v2866_v25 = vld [vmem:[%s4587_s16 + $0xa8] sm:$0xf0]  ;;  %v3877_v10 = vld [vmem:[%s4587_s16 + $0x214] sm:$0xf]  ;;  %v3050_v11 = vld [vmem:[%s4587_s16 + $0x218] sm:$0xf0] }
  0x94   : > { %1424 = vmatpush.bf16.msra.mxu1 %v2909_v27  ;;  %1393 = vmatmul.bf16.vlgmr.msrb.gmra.mxu2 %v4761_v37  ;;  %v2930_v27 = vld [vmem:[%s4587_s16 + $0x128] sm:$0xf0]  ;;  %v2869_v32 = vor.u32 %v3831_v23, %v2866_v25  ;;  %v3157_v23 = vor.u32 %v3903_v12, %v3154_v14  ;;  %v3885_v25 = vld [vmem:[%s4587_s16 + $0x254] sm:$0xf]  ;;  %v3114_v14 = vld [vmem:[%s4587_s16 + $0x298] sm:$0xf0] }
  0x95   : > { %1437 = vmatpush.bf16.msra.mxu2 %v2973_v28  ;;  %1406 = vmatmul.bf16.vlgmr.msrb.gmra.mxu3 %v4767_v40  ;;  %v3863_v28 = vld [vmem:[%s4587_s16 + $0x1a4] sm:$0xf]  ;;  %v3074_v39 = vld [vmem:[%s4587_s16 + $0x248] sm:$0xf0]  ;;  %v3893_v12 = vld [vmem:[%s4587_s16 + $0x294] sm:$0xf] }
  0x96   : > { %1450 = vmatpush.bf16.msra.mxu3 %v3037_v33  ;;  %v2933_v33 = vor.u32 %v3847_v26, %v2930_v27  ;;  %v2997_v38 = vor.u32 %v3863_v28, %v2994_v29  ;;  %v3082_v26 = vld [vmem:[%s4587_s16 + $0x258] sm:$0xf0]  ;;  %v3901_v27 = vld [vmem:[%s4587_s16 + $0x2d4] sm:$0xf]  ;;  %vm2556_vm3 = vcmask 1044484   ;;  %vm2558_vm4 = vcmask 1046534  }
  0x97   : > { %1412 = vmatpush.bf16.msra.mxu0 %v2837_v41  ;;  %v3845_v41 = vld [vmem:[%s4587_s16 + $0x114] sm:$0xf]  ;;  %v3146_v29 = vld [vmem:[%s4587_s16 + $0x2d8] sm:$0xf0]  ;;  %v3085_v35 = vor.u32 %v3885_v25, %v3082_v26  ;;  %v3875_v25 = vld [vmem:[%s4587_s16 + $0x204] sm:$0xf] }
  0x98   : > { %1425 = vmatpush.bf16.msra.mxu1 %v2901_v43  ;;  %v2922_v43 = vld [vmem:[%s4587_s16 + $0x118] sm:$0xf0]  ;;  %v3042_v26 = vld [vmem:[%s4587_s16 + $0x208] sm:$0xf0]  ;;  %vm2560_vm5 = vcmask 1045508   ;;  %vm2562_vm6 = vcmask 1043456  }
  0x99   : > { %1438 = vmatpush.bf16.msra.mxu2 %v2965_v44  ;;  %v3861_v44 = vld [vmem:[%s4587_s16 + $0x194] sm:$0xf]  ;;  %v2925_v50 = vor.u32 %v3845_v41, %v2922_v43  ;;  %v3899_v41 = vld [vmem:[%s4587_s16 + $0x2c4] sm:$0xf]  ;;  %v3138_v43 = vld [vmem:[%s4587_s16 + $0x2c8] sm:$0xf0] }
  0x9a   : > { %1451 = vmatpush.bf16.msra.mxu3 %v3029_v48  ;;  %v2786_v48 = vld [vmem:[%s4587_s16 + $0x8] sm:$0xf0] }
  0x9b   : > { %1413 = vmatpush.bf16.msra.mxu0 %v2829_v54  ;;  %v2989_v54 = vor.u32 %v3861_v44, %v2986_v45  ;;  %v2789_v61 = vor.u32 %v3811_v47, %v2786_v48  ;;  %v3202_v44 = vld [vmem:[%s4587_s16 + $0x348] sm:$0xf0]  ;;  %v3931_v45 = vld [vmem:[%s4587_s16 + $0x3c4] sm:$0xf]  ;;  %v3141_v47 = vor.u32 %v3899_v41, %v3138_v43 }
  0x9c   : > { %1426 = vmatpush.bf16.msra.mxu1 %v2893_v55  ;;  %v2914_v55 = vld [vmem:[%s4587_s16 + $0x108] sm:$0xf0] }
  0x9d   : > { %1439 = vmatpush.bf16.msra.mxu2 %v2957_v56  ;;  %v3859_v56 = vld [vmem:[%s4587_s16 + $0x184] sm:$0xf] }
  0x9e   : > { %1452 = vmatpush.bf16.msra.mxu3 %v3021_v60  ;;  %v3905_v60 = vld [vmem:[%s4587_s16 + $0x2f4] sm:$0xf]  ;;  %v2981_v6 = vor.u32 %v3859_v56, %v2978_v57  ;;  %v3258_v57 = vld [vmem:[%s4587_s16 + $0x3b8] sm:$0xf0] }
  0x9f   : > { %1414 = vmatpush.bf16.msra.mxu0 %v2821_v2  ;;  %v2917_v2 = vor.u32 %v3843_v53, %v2914_v55  ;;  %v3165_v8 = vor.u32 %v3905_v60, %v3162_v62  ;;  %v3130_v53 = vld [vmem:[%s4587_s16 + $0x2b8] sm:$0xf0]  ;;  %v3929_v56 = vld [vmem:[%s4587_s16 + $0x3b4] sm:$0xf]  ;;  %v3058_v62 = vld [vmem:[%s4587_s16 + $0x228] sm:$0xf0] }
  0xa0   : > { %1427 = vmatpush.bf16.msra.mxu1 %v2885_v3  ;;  %v3937_v3 = vld [vmem:[%s4587_s16 + $0x3f4] sm:$0xf]  ;;  %v3194_v55 = vld [vmem:[%s4587_s16 + $0x338] sm:$0xf0]  ;;  %v3133_v59 = vor.u32 %v3897_v51, %v3130_v53  ;;  %v3488_v51 = vld [vmem:[%s4571_s11 + $0x180] sm:$0xf] }
  0xa1   : > { %1440 = vmatpush.bf16.msra.mxu2 %v2949_v4  ;;  %v3290_v4 = vld [vmem:[%s4587_s16 + $0x3f8] sm:$0xf0] }
  0xa2   : > { %1453 = vmatpush.bf16.msra.mxu3 %v3013_v9  ;;  %v3229_v9 = vor.u32 %v3921_v63, %v3226_v0  ;;  %v3293_v13 = vor.u32 %v3937_v3, %v3290_v4  ;;  %v3895_v63 = vld [vmem:[%s4587_s16 + $0x2a4] sm:$0xf]  ;;  %v3261_v0 = vor.u32 %v3929_v56, %v3258_v57  ;;  %v3186_v3 = vld [vmem:[%s4587_s16 + $0x328] sm:$0xf0]  ;;  %v4055_v56 = vld [vmem:[%s4571_s11 + $0x39c] sm:$0xf0] }
  0xa3   : > { %1415 = vmatpush.bf16.msra.mxu0 %v2813_v15  ;;  %v3919_v15 = vld [vmem:[%s4587_s16 + $0x364] sm:$0xf] }
  0xa4   : > { %1428 = vmatpush.bf16.msra.mxu1 %v2877_v16  ;;  %v3218_v16 = vld [vmem:[%s4587_s16 + $0x368] sm:$0xf0]  ;;  %v3927_v4 = vld [vmem:[%s4587_s16 + $0x3a4] sm:$0xf] }
  0xa5   : > { %1441 = vmatpush.bf16.msra.mxu2 %v2941_v20  ;;  %v3935_v20 = vld [vmem:[%s4587_s16 + $0x3e4] sm:$0xf] }
  0xa6   : > { %1454 = vmatpush.bf16.msra.mxu3 %v3005_v24  ;;  %v3221_v24 = vor.u32 %v3919_v15, %v3218_v16  ;;  %v3285_v28 = vor.u32 %v3935_v20, %v3282_v21  ;;  %v3909_v15 = vld [vmem:[%s4587_s16 + $0x314] sm:$0xf]  ;;  %v3178_v16 = vld [vmem:[%s4587_s16 + $0x318] sm:$0xf0] }
  0xa7   : > { %1416 = vmatpush.bf16.msra.mxu0 %v2805_v30  ;;  %v3917_v30 = vld [vmem:[%s4587_s16 + $0x354] sm:$0xf]  ;;  %v3242_v21 = vld [vmem:[%s4587_s16 + $0x398] sm:$0xf0] }
  0xa8   : > { %1429 = vmatpush.bf16.msra.mxu1 %v2869_v32  ;;  %v3210_v32 = vld [vmem:[%s4587_s16 + $0x358] sm:$0xf0]  ;;  %v3925_v20 = vld [vmem:[%s4587_s16 + $0x394] sm:$0xf] }
  0xa9   : > { %1442 = vmatpush.bf16.msra.mxu2 %v2933_v33  ;;  %v3933_v33 = vld [vmem:[%s4587_s16 + $0x3d4] sm:$0xf]  ;;  %v3213_v36 = vor.u32 %v3917_v30, %v3210_v32  ;;  %v3907_v30 = vld [vmem:[%s4587_s16 + $0x304] sm:$0xf]  ;;  %v3170_v32 = vld [vmem:[%s4587_s16 + $0x308] sm:$0xf0] }
  0xaa   : > { %1455 = vmatpush.bf16.msra.mxu3 %v2997_v38  ;;  %v3883_v38 = vld [vmem:[%s4587_s16 + $0x244] sm:$0xf] }
  0xab   : > { %1417 = vmatpush.bf16.msra.mxu0 %v2797_v46  ;;  %v3077_v46 = vor.u32 %v3883_v38, %v3074_v39  ;;  %v4896_v39 = vld [vmem:[%s4555_s15] sm:$0x3] }
  0xac   : > { %1430 = vmatpush.bf16.msra.mxu1 %v2861_v49  ;;  %v3881_v49 = vld [vmem:[%s4587_s16 + $0x234] sm:$0xf]  ;;  %v1303_v41 = vperm.slane %v4896_v39, 0 }
  0xad   : > { %1443 = vmatpush.bf16.msra.mxu2 %v2925_v50  ;;  %v3066_v50 = vld [vmem:[%s4587_s16 + $0x238] sm:$0xf0] }
  0xae   : > { %1456 = vmatpush.bf16.msra.mxu3 %v2989_v54  ;;  %v3913_v54 = vld [vmem:[%s4587_s16 + $0x334] sm:$0xf]  ;;  %v3069_v58 = vor.u32 %v3881_v49, %v3066_v50 }
  0xaf   : > { %1418 = vmatpush.bf16.msra.mxu0 %v2789_v61  ;;  %v3197_v60 = vor.u32 %v3913_v54, %v3194_v55  ;;  %v3879_v61 = vld [vmem:[%s4587_s16 + $0x224] sm:$0xf]  ;;  %v4059_v49 = vld [vmem:[%s4571_s11 + $0x3c4] sm:$0xf]  ;;  %v3991_v54 = vld [vmem:[%s4571_s11 + $0x19c] sm:$0xf0] }
  0xb0   : > { %1431 = vmatpush.bf16.msra.mxu1 %v2853_v1  ;;  %v3122_v1 = vld [vmem:[%s4587_s16 + $0x2a8] sm:$0xf0]  ;;  %v3778_v50 = vld [vmem:[%s4571_s11 + $0x3e0] sm:$0xf0]  ;;  %v3744_v55 = vld [vmem:[%s4571_s11 + $0x380] sm:$0xf] }
  0xb1   : > { %1444 = vmatpush.bf16.msra.mxu2 %v2917_v2  ;;  %v3911_v2 = vld [vmem:[%s4587_s16 + $0x324] sm:$0xf]  ;;  %v3781_v53 = vor.u32 %v4059_v49, %v3778_v50  ;;  %v3650_v49 = vld [vmem:[%s4571_s11 + $0x2e0] sm:$0xf0]  ;;  %v3360_v50 = vld [vmem:[%s4571_s11 + $0x80] sm:$0xf] }
  0xb2   : > { %1457 = vmatpush.bf16.msra.mxu3 %v2981_v6  ;;  %1419 = vmatmul.bf16.vlgmr.msra.gmra.mxu0 %v4700_v18  ;;  %v3277_v18 = vor.u32 %v3933_v33, %v3274_v34  ;;  %v3250_v6 = vld [vmem:[%s4587_s16 + $0x3a8] sm:$0xf0]  ;;  %v3923_v33 = vld [vmem:[%s4587_s16 + $0x384] sm:$0xf] }
  0xb3   : > { %1463 = vmatpush.bf16.msrb.mxu0 %v3101_v7  ;;  %1432 = vmatmul.bf16.vlgmr.msra.gmra.mxu1 %v4712_v31  ;;  %v3266_v31 = vld [vmem:[%s4587_s16 + $0x3c8] sm:$0xf0]  ;;  %v3061_v7 = vor.u32 %v3879_v61, %v3058_v62  ;;  %v3987_v61 = vld [vmem:[%s4571_s11 + $0x184] sm:$0xf] }
  0xb4   : > { %1476 = vmatpush.bf16.msrb.mxu1 %v3165_v8  ;;  %1445 = vmatmul.bf16.vlgmr.msra.gmra.mxu2 %v4698_v17  ;;  %v3149_v17 = vor.u32 %v3901_v27, %v3146_v29  ;;  %v3269_v52 = vor.u32 %v3931_v45, %v3266_v31  ;;  %v3125_v8 = vor.u32 %v3895_v63, %v3122_v1  ;;  %v3891_v27 = vld [vmem:[%s4587_s16 + $0x284] sm:$0xf]  ;;  %v3106_v29 = vld [vmem:[%s4587_s16 + $0x288] sm:$0xf0]  ;;  %v3776_v45 = vld [vmem:[%s4571_s11 + $0x3c0] sm:$0xf] }
  0xb5   : > { %1489 = vmatpush.bf16.msrb.mxu2 %v3229_v9  ;;  %1458 = vmatmul.bf16.vlgmr.msra.gmra.mxu3 %v4702_v19  ;;  %v3915_v19 = vld [vmem:[%s4587_s16 + $0x344] sm:$0xf]  ;;  %v3189_v9 = vor.u32 %v3911_v2, %v3186_v3  ;;  %v3234_v34 = vld [vmem:[%s4587_s16 + $0x388] sm:$0xf0]  ;;  %v4063_v31 = vld [vmem:[%s4571_s11 + $0x3dc] sm:$0xf0] }
  0xb6   : > { %1502 = vmatpush.bf16.msrb.mxu3 %v3293_v13  ;;  %v3205_v48 = vor.u32 %v3915_v19, %v3202_v44  ;;  %v3253_v13 = vor.u32 %v3927_v4, %v3250_v6  ;;  %v3237_v38 = vor.u32 %v3923_v33, %v3234_v34  ;;  %v3520_v44 = vld [vmem:[%s4571_s11 + $0x1c0] sm:$0xf]  ;;  %v3490_v62 = vld [vmem:[%s4571_s11 + $0x1a0] sm:$0xf0] }
  0xb7   : > { %1464 = vmatpush.bf16.msrb.mxu0 %v3093_v22  ;;  %v3053_v22 = vor.u32 %v3877_v10, %v3050_v11  ;;  %v4051_v63 = vld [vmem:[%s4571_s11 + $0x384] sm:$0xf]  ;;  %v3456_v2 = vld [vmem:[%s4571_s11 + $0x140] sm:$0xf] }
  0xb8   : > { %1477 = vmatpush.bf16.msrb.mxu1 %v3157_v23  ;;  %v3117_v23 = vor.u32 %v3893_v12, %v3114_v14  ;;  %v3746_v1 = vld [vmem:[%s4571_s11 + $0x3a0] sm:$0xf0]  ;;  %v3983_v3 = vld [vmem:[%s4571_s11 + $0x15c] sm:$0xf0] }
  0xb9   : > { %1490 = vmatpush.bf16.msrb.mxu2 %v3221_v24  ;;  %v3181_v24 = vor.u32 %v3909_v15, %v3178_v16  ;;  %v3979_v10 = vld [vmem:[%s4571_s11 + $0x144] sm:$0xf]  ;;  %v3457_v12 = vor.u32 %v3983_v3, %v3456_v2  ;;  %v3951_v2 = vld [vmem:[%s4571_s11 + $0x5c] sm:$0xf0] }
  0xba   : > { %1503 = vmatpush.bf16.msrb.mxu3 %v3285_v28  ;;  %v3245_v28 = vor.u32 %v3925_v20, %v3242_v21  ;;  %v4043_v14 = vld [vmem:[%s4571_s11 + $0x344] sm:$0xf]  ;;  %v3584_v3 = vld [vmem:[%s4571_s11 + $0x240] sm:$0xf] }
  0xbb   : > { %1465 = vmatpush.bf16.msrb.mxu0 %v3085_v35  ;;  %v3045_v35 = vor.u32 %v3875_v25, %v3042_v26  ;;  %v3714_v15 = vld [vmem:[%s4571_s11 + $0x360] sm:$0xf0]  ;;  %v3975_v25 = vld [vmem:[%s4571_s11 + $0x11c] sm:$0xf0] }
  0xbc   : > { %1478 = vmatpush.bf16.msrb.mxu1 %v3149_v17  ;;  %v3109_v17 = vor.u32 %v3891_v27, %v3106_v29  ;;  %v3717_v21 = vor.u32 %v4043_v14, %v3714_v15  ;;  %v3680_v26 = vld [vmem:[%s4571_s11 + $0x300] sm:$0xf] }
  0xbd   : > { %1491 = vmatpush.bf16.msrb.mxu2 %v3213_v36  ;;  %v3173_v36 = vor.u32 %v3907_v30, %v3170_v32  ;;  %v4039_v29 = vld [vmem:[%s4571_s11 + $0x31c] sm:$0xf0]  ;;  %v3971_v30 = vld [vmem:[%s4571_s11 + $0x104] sm:$0xf] }
  0xbe   : > { %1504 = vmatpush.bf16.msrb.mxu3 %v3277_v18  ;;  %v3426_v32 = vld [vmem:[%s4571_s11 + $0x120] sm:$0xf0]  ;;  %v3296_v14 = vld [vmem:[%s4571_s11] sm:$0xf] }
  0xbf   : > { %1466 = vmatpush.bf16.msrb.mxu0 %v3077_v46  ;;  %v3522_v46 = vld [vmem:[%s4571_s11 + $0x1e0] sm:$0xf0] }
  0xc0   : > { %1479 = vmatpush.bf16.msrb.mxu1 %v3141_v47  ;;  %v3777_v47 = vor.u32 %v4063_v31, %v3776_v45  ;;  %v3394_v31 = vld [vmem:[%s4571_s11 + $0xe0] sm:$0xf0] }
  0xc1   : > { %1492 = vmatpush.bf16.msrb.mxu2 %v3205_v48 }
  0xc2   : > { %1505 = vmatpush.bf16.msrb.mxu3 %v3269_v52 }
  0xc3   : > { %1467 = vmatpush.bf16.msrb.mxu0 %v3069_v58 }
  0xc4   : > { %1480 = vmatpush.bf16.msrb.mxu1 %v3133_v59  ;;  %v3489_v59 = vor.u32 %v3991_v54, %v3488_v51  ;;  %v4023_v54 = vld [vmem:[%s4571_s11 + $0x29c] sm:$0xf0] }
  0xc5   : > { %1493 = vmatpush.bf16.msrb.mxu2 %v3197_v60  ;;  %v3745_v60 = vor.u32 %v4055_v56, %v3744_v55 }
  0xc6   : > { %1506 = vmatpush.bf16.msrb.mxu3 %v3261_v0  ;;  %v3493_v0 = vor.u32 %v3987_v61, %v3490_v62 }
  0xc7   : > { %1468 = vmatpush.bf16.msrb.mxu0 %v3061_v7  ;;  %v3749_v7 = vor.u32 %v4051_v63, %v3746_v1  ;;  %v3618_v63 = vld [vmem:[%s4571_s11 + $0x2a0] sm:$0xf0]  ;;  %v3328_v1 = vld [vmem:[%s4571_s11 + $0x40] sm:$0xf] }
  0xc8   : > { %1481 = vmatpush.bf16.msrb.mxu1 %v3125_v8  ;;  %v3712_v8 = vld [vmem:[%s4571_s11 + $0x340] sm:$0xf] }
  0xc9   : > { %1494 = vmatpush.bf16.msrb.mxu2 %v3189_v9  ;;  %v4047_v9 = vld [vmem:[%s4571_s11 + $0x35c] sm:$0xf0] }
  0xca   : > { %1507 = vmatpush.bf16.msrb.mxu3 %v3253_v13  ;;  %v3458_v13 = vld [vmem:[%s4571_s11 + $0x160] sm:$0xf0]  ;;  %v3713_v16 = vor.u32 %v4047_v9, %v3712_v8 }
  0xcb   : > { %1469 = vmatpush.bf16.msrb.mxu0 %v3053_v22  ;;  %v3461_v20 = vor.u32 %v3979_v10, %v3458_v13  ;;  %v3330_v8 = vld [vmem:[%s4571_s11 + $0x60] sm:$0xf0] }
  0xcc   : > { %1482 = vmatpush.bf16.msrb.mxu1 %v3117_v23  ;;  %v3586_v13 = vld [vmem:[%s4571_s11 + $0x260] sm:$0xf0] }
  0xcd   : > { %1495 = vmatpush.bf16.msrb.mxu2 %v3181_v24  ;;  %v3424_v24 = vld [vmem:[%s4571_s11 + $0x100] sm:$0xf] }
  0xce   : > { %1508 = vmatpush.bf16.msrb.mxu3 %v3245_v28  ;;  %v3425_v28 = vor.u32 %v3975_v25, %v3424_v24  ;;  %v3939_v24 = vld [vmem:[%s4571_s11 + $0x4] sm:$0xf] }
  0xcf   : > { %1470 = vmatpush.bf16.msrb.mxu0 %v3045_v35  ;;  %v3681_v35 = vor.u32 %v4039_v29, %v3680_v26  ;;  %v3298_v25 = vld [vmem:[%s4571_s11 + $0x20] sm:$0xf0] }
  0xd0   : > { %1483 = vmatpush.bf16.msrb.mxu1 %v3109_v17  ;;  %v3429_v17 = vor.u32 %v3971_v30, %v3426_v32  ;;  %v4003_v26 = vld [vmem:[%s4571_s11 + $0x204] sm:$0xf]  ;;  %v3528_v30 = vld [vmem:[%s4571_s11 + $0x1c8] sm:$0xf] }
  0xd1   : > { %1496 = vmatpush.bf16.msrb.mxu2 %v3173_v36  ;;  %v4035_v36 = vld [vmem:[%s4571_s11 + $0x304] sm:$0xf]  ;;  %v4000_v32 = vld [vmem:[%s4571_s11 + $0x1e4] sm:$0xf0] }
  0xd2   : > { %1509 = vmatpush.bf16.msrb.mxu3 %v3237_v38  ;;  %1471 = vmatmul.bf16.vlgmr.msrb.gmra.mxu0 %v4765_v5  ;;  %v3999_v5 = vld [vmem:[%s4571_s11 + $0x1dc] sm:$0xf0]  ;;  %v3682_v38 = vld [vmem:[%s4571_s11 + $0x320] sm:$0xf0] }
  0xd3   : > { %1484 = vmatmul.bf16.vlgmr.msrb.gmra.mxu1 %v4769_v42  ;;  %v3554_v29 = vld [vmem:[%s4571_s11 + $0x220] sm:$0xf0] }
  0xd4   : > { %1497 = vmatmul.bf16.vlgmr.msrb.gmra.mxu2 %v4761_v37  ;;  %v3521_v37 = vor.u32 %v3999_v5, %v3520_v44  ;;  %2341 = vmatpush.bf16.msra.mxu1 %v3777_v47  ;;  %v3648_v44 = vld [vmem:[%s4571_s11 + $0x2c0] sm:$0xf] }
  0xd5   : > { %1510 = vmatmul.bf16.vlgmr.msrb.gmra.mxu3 %v4767_v40  ;;  %v3995_v40 = vld [vmem:[%s4571_s11 + $0x1c4] sm:$0xf] }
  0xd6   : > { %v3525_v48 = vor.u32 %v3995_v40, %v3522_v46  ;;  %2328 = vmatpush.bf16.msra.mxu0 %v3521_v37  ;;  %2367 = vmatpush.bf16.msra.mxu3 %v3781_v53  ;;  %v3963_v37 = vld [vmem:[%s4571_s11 + $0xc4] sm:$0xf]  ;;  %v3616_v53 = vld [vmem:[%s4571_s11 + $0x280] sm:$0xf] }
  0xd7   : > { %v3397_v47 = vor.u32 %v3963_v37, %v3394_v31  ;;  %v3992_v37 = vld [vmem:[%s4571_s11 + $0x1a4] sm:$0xf0] }
  0xd8   : > { %2354 = vmatpush.bf16.msra.mxu2 %v3525_v48  ;;  %2342 = vmatpush.bf16.msra.mxu1 %v3745_v60  ;;  %v4027_v48 = vld [vmem:[%s4571_s11 + $0x2c4] sm:$0xf]  ;;  %v3752_v31 = vld [vmem:[%s4571_s11 + $0x388] sm:$0xf] }
  0xd9   : > { %v3653_v51 = vor.u32 %v4027_v48, %v3650_v49  ;;  %v4019_v60 = vld [vmem:[%s4571_s11 + $0x284] sm:$0xf]  ;;  %v3498_v48 = vld [vmem:[%s4571_s11 + $0x1a8] sm:$0xf0] }
  0xda   : > { %2329 = vmatpush.bf16.msra.mxu0 %v3489_v59  ;;  %2368 = vmatpush.bf16.msra.mxu3 %v3749_v7  ;;  %v3362_v59 = vld [vmem:[%s4571_s11 + $0xa0] sm:$0xf0] }
  0xdb   : > { %v3947_v7 = vld [vmem:[%s4571_s11 + $0x44] sm:$0xf] }
  0xdc   : > { %2355 = vmatpush.bf16.msra.mxu2 %v3493_v0  ;;  %2343 = vmatpush.bf16.msra.mxu1 %v3713_v16  ;;  %v3621_v0 = vor.u32 %v4019_v60, %v3618_v63  ;;  %v3980_v60 = vld [vmem:[%s4571_s11 + $0x14c] sm:$0xf] }
  0xde   : > { %2330 = vmatpush.bf16.msra.mxu0 %v3457_v12  ;;  %2369 = vmatpush.bf16.msra.mxu3 %v3717_v21  ;;  %v4011_v12 = vld [vmem:[%s4571_s11 + $0x244] sm:$0xf]  ;;  %v3552_v21 = vld [vmem:[%s4571_s11 + $0x200] sm:$0xf] }
  0xdf   : > { %v3589_v16 = vor.u32 %v4011_v12, %v3586_v13  ;;  %v3434_v12 = vld [vmem:[%s4571_s11 + $0x128] sm:$0xf0] }
  0xe0   : > { %2356 = vmatpush.bf16.msra.mxu2 %v3461_v20  ;;  %2344 = vmatpush.bf16.msra.mxu1 %v3681_v35  ;;  %v3943_v20 = vld [vmem:[%s4571_s11 + $0x1c] sm:$0xf0]  ;;  %v3784_v35 = vld [vmem:[%s4571_s11 + $0x3c8] sm:$0xf] }
  0xe2   : > { %2331 = vmatpush.bf16.msra.mxu0 %v3425_v28  ;;  %v3301_v28 = vor.u32 %v3939_v24, %v3298_v25  ;;  %v3968_v24 = vld [vmem:[%s4571_s11 + $0xe4] sm:$0xf0] }
  0xe3   : > { %v3656_v25 = vld [vmem:[%s4571_s11 + $0x2c8] sm:$0xf] }
  0xe4   : > { %2357 = vmatpush.bf16.msra.mxu2 %v3429_v17  ;;  %v4064_v17 = vld [vmem:[%s4571_s11 + $0x3e4] sm:$0xf0] }
  0xe8   : > { %2358 = vmatpush.bf16.msra.mxu2 %v3397_v47  ;;  %v3988_v47 = vld [vmem:[%s4571_s11 + $0x18c] sm:$0xf] }
  0xf2   : > { %v1316_v18 = vpop.f32.mrf.mxu0 }
  0xf3   : > { %v1317_v43 = vadd.f32 %v1316_v18, %v1303_v41  ;;  %v1329_v19 = vpop.f32.mrf.mxu1  ;;  %v3685_v41 = vor.u32 %v4035_v36, %v3682_v38  ;;  %v3996_v36 = vld [vmem:[%s4571_s11 + $0x1cc] sm:$0xf]  ;;  %v3785_v38 = vor.u32 %v4064_v17, %v3784_v35 }
  0xf4   : > { %v3658_v17 = vld [vmem:[%s4571_s11 + $0x2e8] sm:$0xf0] }
  0xf5   : > { %v1330_v42 = vadd.f32 %v1329_v19, %v1317_v43  ;;  %2370 = vmatpush.bf16.msra.mxu3 %v3685_v41  ;;  %v3392_v43 = vld [vmem:[%s4571_s11 + $0xc0] sm:$0xf]  ;;  %v3530_v41 = vld [vmem:[%s4571_s11 + $0x1e8] sm:$0xf0] }
  0xf6   : > { %v3967_v19 = vld [vmem:[%s4571_s11 + $0xdc] sm:$0xf0] }
  0xf7   : > { %v1342_v52 = vpop.f32.mrf.mxu2  ;;  %v3393_v45 = vor.u32 %v3967_v19, %v3392_v43  ;;  %v4060_v43 = vld [vmem:[%s4571_s11 + $0x3cc] sm:$0xf] }
  0xf8   : > { %v1343_v57 = vadd.f32 %v1342_v52, %v1330_v42  ;;  %v4031_v42 = vld [vmem:[%s4571_s11 + $0x2dc] sm:$0xf0]  ;;  %v3786_v19 = vld [vmem:[%s4571_s11 + $0x3e8] sm:$0xf0] }
  0xf9   : > { %v3649_v46 = vor.u32 %v4031_v42, %v3648_v44  ;;  %2332 = vmatpush.bf16.msra.mxu0 %v3393_v45  ;;  %v3959_v52 = vld [vmem:[%s4571_s11 + $0x9c] sm:$0xf0]  ;;  %2371 = vmatpush.bf16.msra.mxu3 %v3653_v51  ;;  %v3533_v44 = vor.u32 %v3996_v36, %v3530_v41  ;;  %v3789_v45 = vor.u32 %v4060_v43, %v3786_v19  ;;  %v3496_v42 = vld [vmem:[%s4571_s11 + $0x188] sm:$0xf]  ;;  %v3754_v51 = vld [vmem:[%s4571_s11 + $0x3a8] sm:$0xf0] }
  0xfa   : > { %v1355_v58 = vpop.f32.mrf.mxu3  ;;  %v1318_v6 = vpop.f32.mrf.mxu0  ;;  %v3361_v56 = vor.u32 %v3959_v52, %v3360_v50  ;;  %v3497_v49 = vor.u32 %v3992_v37, %v3496_v42  ;;  %v4052_v50 = vld [vmem:[%s4571_s11 + $0x38c] sm:$0xf]  ;;  %v3960_v41 = vld [vmem:[%s4571_s11 + $0xa4] sm:$0xf0]  ;;  %v1304_v37 = vperm.slane %v4896_v39, 1 }
  0xfb   : > { %v1356_v4 = vadd.f32 %v1355_v58, %v1343_v57  ;;  %v1331_v11 = vpop.f32.mrf.mxu1  ;;  %2345 = vmatpush.bf16.msra.mxu1 %v3649_v46  ;;  %v3617_v57 = vor.u32 %v4023_v54, %v3616_v53  ;;  %v3955_v58 = vld [vmem:[%s4571_s11 + $0x84] sm:$0xf]  ;;  %v4015_v6 = vld [vmem:[%s4571_s11 + $0x25c] sm:$0xf0]  ;;  %v4056_v46 = vld [vmem:[%s4571_s11 + $0x3a4] sm:$0xf0]  ;;  %v3501_v53 = vor.u32 %v3988_v47, %v3498_v48  ;;  %v3757_v54 = vor.u32 %v4052_v50, %v3754_v51 }
  0xfc   : > { %v3365_v62 = vor.u32 %v3955_v58, %v3362_v59  ;;  %v3585_v10 = vor.u32 %v4015_v6, %v3584_v3  ;;  %v3333_v11 = vor.u32 %v3947_v7, %v3330_v8  ;;  %v3753_v52 = vor.u32 %v4056_v46, %v3752_v31  ;;  %v4048_v59 = vld [vmem:[%s4571_s11 + $0x364] sm:$0xf0]  ;;  %v3370_v42 = vld [vmem:[%s4571_s11 + $0xa8] sm:$0xf0] }
  0xfd   : > { %2333 = vmatpush.bf16.msra.mxu0 %v3361_v56  ;;  %2372 = vmatpush.bf16.msra.mxu3 %v3621_v0  ;;  %v3984_v56 = vld [vmem:[%s4571_s11 + $0x164] sm:$0xf0]  ;;  %v4020_v47 = vld [vmem:[%s4571_s11 + $0x28c] sm:$0xf] }
  0xfe   : > { %2359 = vmatpush.bf16.msra.mxu2 %v3365_v62  ;;  %v3432_v6 = vld [vmem:[%s4571_s11 + $0x108] sm:$0xf]  ;;  %v3626_v48 = vld [vmem:[%s4571_s11 + $0x2a8] sm:$0xf0] }
  0xff   : > { %v1344_v22 = vpop.f32.mrf.mxu2  ;;  %2346 = vmatpush.bf16.msra.mxu1 %v3617_v57  ;;  %v3720_v57 = vld [vmem:[%s4571_s11 + $0x348] sm:$0xf]  ;;  %v3629_v50 = vor.u32 %v4020_v47, %v3626_v48  ;;  %v3538_v47 = vld [vmem:[%s4571_s11 + $0x1f0] sm:$0xf0] }
 0x100   : > { %v4007_v22 = vld [vmem:[%s4571_s11 + $0x21c] sm:$0xf0]  ;;  %v3721_v63 = vor.u32 %v4048_v59, %v3720_v57  ;;  %v3976_v7 = vld [vmem:[%s4571_s11 + $0x124] sm:$0xf0]  ;;  %v3338_v57 = vld [vmem:[%s4571_s11 + $0x68] sm:$0xf0] }
 0x101   : > { %2373 = vmatpush.bf16.msra.mxu3 %v3589_v16  ;;  %v3688_v8 = vld [vmem:[%s4571_s11 + $0x308] sm:$0xf]  ;;  %v3690_v16 = vld [vmem:[%s4571_s11 + $0x328] sm:$0xf0] }
 0x102   : > { %v1357_v23 = vpop.f32.mrf.mxu3  ;;  %2360 = vmatpush.bf16.msra.mxu2 %v3333_v11  ;;  %v3972_v11 = vld [vmem:[%s4571_s11 + $0x10c] sm:$0xf]  ;;  %v3624_v43 = vld [vmem:[%s4571_s11 + $0x288] sm:$0xf] }
 0x103   : > { %v3297_v23 = vor.u32 %v3943_v20, %v3296_v14  ;;  %2347 = vmatpush.bf16.msra.mxu1 %v3585_v10  ;;  %v4040_v10 = vld [vmem:[%s4571_s11 + $0x324] sm:$0xf0]  ;;  %v3437_v14 = vor.u32 %v3972_v11, %v3434_v12  ;;  %v4004_v12 = vld [vmem:[%s4571_s11 + $0x20c] sm:$0xf] }
 0x104   : > { %v3689_v13 = vor.u32 %v4040_v10, %v3688_v8  ;;  %v3592_v39 = vld [vmem:[%s4571_s11 + $0x248] sm:$0xf]  ;;  %v3940_v8 = vld [vmem:[%s4571_s11 + $0xc] sm:$0xf] }
 0x106   : > { %2361 = vmatpush.bf16.msra.mxu2 %v3301_v28  ;;  %v3964_v28 = vld [vmem:[%s4571_s11 + $0xcc] sm:$0xf] }
 0x10a   : > { %2406 = vmatpush.bf16.msrb.mxu2 %v3533_v44  ;;  %v4024_v44 = vld [vmem:[%s4571_s11 + $0x2a4] sm:$0xf0] }
 0x10b   : > { %v3625_v31 = vor.u32 %v4024_v44, %v3624_v43 }
 0x10e   : > { %2407 = vmatpush.bf16.msrb.mxu2 %v3501_v53  ;;  %v3952_v53 = vld [vmem:[%s4571_s11 + $0x64] sm:$0xf0] }
 0x10f   : > { %v1368_v27 = vpop.f32.mrf.mxu0 }
 0x110   : > { %v1369_v33 = vadd.f32 %v1368_v27, %v1356_v4  ;;  %v1381_v34 = vpop.f32.mrf.mxu1  ;;  %v3329_v4 = vor.u32 %v3951_v2, %v3328_v1  ;;  %v3553_v27 = vor.u32 %v4007_v22, %v3552_v21  ;;  %v4044_v1 = vld [vmem:[%s4571_s11 + $0x34c] sm:$0xf] }
 0x111   : > { %v3722_v2 = vld [vmem:[%s4571_s11 + $0x368] sm:$0xf0] }
 0x112   : > { %v4931_v18 = vadd.f32 %v1381_v34, %v1369_v33  ;;  %2334 = vmatpush.bf16.msra.mxu0 %v3329_v4  ;;  %v3557_v33 = vor.u32 %v4003_v26, %v3554_v29  ;;  %v3529_v34 = vor.u32 %v4000_v32, %v3528_v30  ;;  %2348 = vmatpush.bf16.msra.mxu1 %v3553_v27  ;;  %v4032_v27 = vld [vmem:[%s4571_s11 + $0x2e4] sm:$0xf0]  ;;  %v3402_v29 = vld [vmem:[%s4571_s11 + $0xe8] sm:$0xf0] }
 0x113   : > { %v3725_v4 = vor.u32 %v4044_v1, %v3722_v2  ;;  %v3657_v32 = vor.u32 %v4032_v27, %v3656_v25  ;;  %v3304_v1 = vld [vmem:[%s4571_s11 + $0x8] sm:$0xf] }
 0x114   : > { %2374 = vmatpush.bf16.msra.mxu3 %v3557_v33  ;;  %v3405_v33 = vor.u32 %v3964_v28, %v3402_v29  ;;  %v3944_v2 = vld [vmem:[%s4571_s11 + $0x24] sm:$0xf0] }
 0x115   : > { %v1518_v27 = vld [vmem:[%s4563_s19 + $0x8] sm:$0xff] }
 0x116   : > { %2335 = vmatpush.bf16.msra.mxu0 %v3297_v23  ;;  %2393 = vmatpush.bf16.msrb.mxu1 %v3785_v38  ;;  %v3400_v23 = vld [vmem:[%s4571_s11 + $0xc8] sm:$0xf] }
 0x117   : > { %v4936_v5 = vpop.f32.mrf.mxu2  ;;  %v1370_v55 = vpop.f32.mrf.mxu0  ;;  %v3401_v26 = vor.u32 %v3968_v24, %v3400_v23  ;;  %v3368_v38 = vld [vmem:[%s4571_s11 + $0x88] sm:$0xf] }
 0x118   : > { %v4941_v40 = vpop.f32.mrf.mxu3  ;;  %v1383_v61 = vpop.f32.mrf.mxu1  ;;  %2419 = vmatpush.bf16.msrb.mxu3 %v3789_v45  ;;  %v3464_v55 = vld [vmem:[%s4571_s11 + $0x148] sm:$0xf]  ;;  %v3369_v19 = vor.u32 %v3960_v41, %v3368_v38  ;;  %v3956_v45 = vld [vmem:[%s4571_s11 + $0x8c] sm:$0xf]  ;;  %v1519_v38 = vld [vmem:[%s4569_s3] sm:$0x3] }
 0x119   : > { %v3465_v58 = vor.u32 %v3984_v56, %v3464_v55  ;;  %v3466_v61 = vld [vmem:[%s4571_s11 + $0x168] sm:$0xf0]  ;;  %v3373_v46 = vor.u32 %v3956_v45, %v3370_v42  ;;  %v4016_v55 = vld [vmem:[%s4571_s11 + $0x264] sm:$0xf0]  ;;  %v3536_v45 = vld [vmem:[%s4571_s11 + $0x1d0] sm:$0xf] }
 0x11a   : > { %2380 = vmatpush.bf16.msrb.mxu0 %v3529_v34  ;;  %2394 = vmatpush.bf16.msrb.mxu1 %v3753_v52  ;;  %v3469_v0 = vor.u32 %v3980_v60, %v3466_v61  ;;  %v4028_v34 = vld [vmem:[%s4571_s11 + $0x2cc] sm:$0xf]  ;;  %v3336_v52 = vld [vmem:[%s4571_s11 + $0x48] sm:$0xf]  ;;  %v3593_v59 = vor.u32 %v4016_v55, %v3592_v39  ;;  %v4001_v42 = vld [vmem:[%s4571_s11 + $0x1ec] sm:$0xf0] }
 0x11b   : > { %v3661_v36 = vor.u32 %v4028_v34, %v3658_v17  ;;  %v3948_v56 = vld [vmem:[%s4571_s11 + $0x4c] sm:$0xf]  ;;  %v1523_v34 = vrot.slane %v1518_v27, 4  ;;  %v3537_v39 = vor.u32 %v4001_v42, %v3536_v45  ;;  %v3504_v55 = vld [vmem:[%s4571_s11 + $0x190] sm:$0xf] }
 0x11c   : > { %2420 = vmatpush.bf16.msrb.mxu3 %v3757_v54  ;;  %2408 = vmatpush.bf16.msrb.mxu2 %v3469_v0  ;;  %v3337_v54 = vor.u32 %v3952_v53, %v3336_v52  ;;  %v3341_v60 = vor.u32 %v3948_v56, %v3338_v57  ;;  %v4012_v61 = vld [vmem:[%s4571_s11 + $0x24c] sm:$0xf]  ;;  %v3993_v56 = vld [vmem:[%s4571_s11 + $0x1ac] sm:$0xf0]  ;;  %v3973_v27 = vld [vmem:[%s4571_s11 + $0x114] sm:$0xf] }
 0x11e   : > { %2381 = vmatpush.bf16.msrb.mxu0 %v3497_v49  ;;  %2395 = vmatpush.bf16.msrb.mxu1 %v3721_v63  ;;  %v3594_v63 = vld [vmem:[%s4571_s11 + $0x268] sm:$0xf0] }
 0x11f   : > { %v1396_v9 = vpop.f32.mrf.mxu2  ;;  %v3597_v0 = vor.u32 %v4012_v61, %v3594_v63  ;;  %v3989_v61 = vld [vmem:[%s4571_s11 + $0x194] sm:$0xf] }
 0x120   : > { %v1409_v15 = vpop.f32.mrf.mxu3  ;;  %2421 = vmatpush.bf16.msrb.mxu3 %v3725_v4  ;;  %v3433_v9 = vor.u32 %v3976_v7, %v3432_v6  ;;  %2409 = vmatpush.bf16.msrb.mxu2 %v3437_v14  ;;  %v3560_v4 = vld [vmem:[%s4571_s11 + $0x208] sm:$0xf]  ;;  %v3305_v6 = vor.u32 %v3944_v2, %v3304_v1  ;;  %v3506_v63 = vld [vmem:[%s4571_s11 + $0x1b0] sm:$0xf0]  ;;  %v3505_v2 = vor.u32 %v3993_v56, %v3504_v55 }
 0x121   : > { %v4036_v15 = vld [vmem:[%s4571_s11 + $0x30c] sm:$0xf]  ;;  %v4008_v7 = vld [vmem:[%s4571_s11 + $0x224] sm:$0xf0]  ;;  %v3762_v1 = vld [vmem:[%s4571_s11 + $0x3b0] sm:$0xf0] }
 0x122   : > { %2382 = vmatpush.bf16.msrb.mxu0 %v3465_v58  ;;  %v3693_v21 = vor.u32 %v4036_v15, %v3690_v16  ;;  %2396 = vmatpush.bf16.msrb.mxu1 %v3689_v13  ;;  %v3561_v10 = vor.u32 %v4008_v7, %v3560_v4  ;;  %v3562_v13 = vld [vmem:[%s4571_s11 + $0x228] sm:$0xf0]  ;;  %v3985_v7 = vld [vmem:[%s4571_s11 + $0x16c] sm:$0xf0] }
 0x123   : > { %v3565_v14 = vor.u32 %v4004_v12, %v3562_v13  ;;  %v3474_v12 = vld [vmem:[%s4571_s11 + $0x170] sm:$0xf0] }
 0x124   : > { %2422 = vmatpush.bf16.msrb.mxu3 %v3693_v21  ;;  %2410 = vmatpush.bf16.msrb.mxu2 %v3405_v33  ;;  %v1517_v33 = vld [vmem:[%s4563_s19] sm:$0xff]  ;;  %v4045_v13 = vld [vmem:[%s4571_s11 + $0x354] sm:$0xf] }
 0x126   : > { %2383 = vmatpush.bf16.msrb.mxu0 %v3433_v9  ;;  %2397 = vmatpush.bf16.msrb.mxu1 %v3657_v32  ;;  %v3306_v9 = vld [vmem:[%s4571_s11 + $0x28] sm:$0xf0] }
 0x127   : > { %v3309_v11 = vor.u32 %v3940_v8, %v3306_v9  ;;  %v3509_v8 = vor.u32 %v3989_v61, %v3506_v63  ;;  %v4013_v61 = vld [vmem:[%s4571_s11 + $0x254] sm:$0xf] }
 0x128   : > { %2423 = vmatpush.bf16.msrb.mxu3 %v3661_v36  ;;  %2411 = vmatpush.bf16.msrb.mxu2 %v3373_v46  ;;  %v3997_v46 = vld [vmem:[%s4571_s11 + $0x1d4] sm:$0xf] }
 0x129   : > { %v3541_v57 = vor.u32 %v3997_v46, %v3538_v47  ;;  %v3957_v46 = vld [vmem:[%s4571_s11 + $0x94] sm:$0xf] }
 0x12a   : > { %2384 = vmatpush.bf16.msrb.mxu0 %v3401_v26  ;;  %2398 = vmatpush.bf16.msrb.mxu1 %v3625_v31  ;;  %v4065_v31 = vld [vmem:[%s4571_s11 + $0x3ec] sm:$0xf0]  ;;  %v3378_v47 = vld [vmem:[%s4571_s11 + $0xb0] sm:$0xf0] }
 0x12b   : > { %v3381_v55 = vor.u32 %v3957_v46, %v3378_v47  ;;  %v3602_v63 = vld [vmem:[%s4571_s11 + $0x270] sm:$0xf0]  ;;  %v4046_v46 = vld [vmem:[%s4571_s11 + $0x35c] sm:$0xf] }
 0x12c   : > { %2424 = vmatpush.bf16.msrb.mxu3 %v3629_v50  ;;  %2412 = vmatpush.bf16.msrb.mxu2 %v3341_v60  ;;  %v4061_v50 = vld [vmem:[%s4571_s11 + $0x3d4] sm:$0xf]  ;;  %v4057_v60 = vld [vmem:[%s4571_s11 + $0x3ac] sm:$0xf0]  ;;  %v3738_v47 = vld [vmem:[%s4571_s11 + $0x378] sm:$0xf0] }
 0x12e   : > { %2385 = vmatpush.bf16.msrb.mxu0 %v3369_v19  ;;  %2399 = vmatpush.bf16.msrb.mxu1 %v3593_v59  ;;  %v3760_v59 = vld [vmem:[%s4571_s11 + $0x390] sm:$0xf] }
 0x12f   : > { %v4991_v62 = vpop.f32.mrf.mxu0  ;;  %v3761_v4 = vor.u32 %v4057_v60, %v3760_v59  ;;  %v3949_v59 = vld [vmem:[%s4571_s11 + $0x54] sm:$0xf] }
 0x130   : > { %v4995_v3 = vpop.f32.mrf.mxu1  ;;  %v1421_v58 = vadd.f32 %v4991_v62, %v1304_v37  ;;  %2425 = vmatpush.bf16.msrb.mxu3 %v3597_v0  ;;  %2413 = vmatpush.bf16.msrb.mxu2 %v3309_v11  ;;  %v3792_v37 = vld [vmem:[%s4571_s11 + $0x3d0] sm:$0xf]  ;;  %v4053_v0 = vld [vmem:[%s4571_s11 + $0x394] sm:$0xf] }
 0x131   : > { %v3765_v9 = vor.u32 %v4053_v0, %v3762_v1  ;;  %v3981_v11 = vld [vmem:[%s4571_s11 + $0x154] sm:$0xf]  ;;  %v3312_v0 = vld [vmem:[%s4571_s11 + $0x10] sm:$0xf] }
 0x132   : > { %2386 = vmatpush.bf16.msrb.mxu0 %v3337_v54  ;;  %v1434_v62 = vadd.f32 %v4995_v3, %v1421_v58  ;;  %2400 = vmatpush.bf16.msrb.mxu1 %v3561_v10  ;;  %v1395_v3 = vadd.f32 %v4936_v5, %v4931_v18  ;;  %v1522_v18 = vrot.slane %v1517_v33, 4  ;;  %v3793_v54 = vor.u32 %v4065_v31, %v3792_v37  ;;  %v4049_v10 = vld [vmem:[%s4571_s11 + $0x36c] sm:$0xf0]  ;;  %v3346_v60 = vld [vmem:[%s4571_s11 + $0x70] sm:$0xf0] }
 0x133   : > { %v3632_v37 = vld [vmem:[%s4571_s11 + $0x290] sm:$0xf] }
 0x134   : > { %2426 = vmatpush.bf16.msrb.mxu3 %v3565_v14  ;;  %v1408_v28 = vadd.f32 %v4941_v40, %v1395_v3  ;;  %v3730_v14 = vld [vmem:[%s4571_s11 + $0x370] sm:$0xf0]  ;;  %v4025_v31 = vld [vmem:[%s4571_s11 + $0x2ac] sm:$0xf0] }
 0x135   : > { %v3733_v3 = vor.u32 %v4045_v13, %v3730_v14  ;;  %v3544_v13 = vld [vmem:[%s4571_s11 + $0x1d8] sm:$0xf] }
 0x136   : > { %2387 = vmatpush.bf16.msrb.mxu0 %v3305_v6  ;;  %v3472_v6 = vld [vmem:[%s4571_s11 + $0x150] sm:$0xf]  ;;  %v4002_v14 = vld [vmem:[%s4571_s11 + $0x1f4] sm:$0xf0] }
 0x137   : > { %v5005_v20 = vpop.f32.mrf.mxu2  ;;  %v1422_v30 = vpop.f32.mrf.mxu0 }
 0x138   : > { %v5007_v22 = vpop.f32.mrf.mxu3  ;;  %v1435_v35 = vpop.f32.mrf.mxu1  ;;  %v1447_v15 = vadd.f32 %v5005_v20, %v1434_v62  ;;  %v3728_v62 = vld [vmem:[%s4571_s11 + $0x350] sm:$0xf] }
 0x139   : > { %v1515_v35 = vmax.f32 %v1408_v28, 0.0  ;;  %v3442_v28 = vld [vmem:[%s4571_s11 + $0x130] sm:$0xf0] }
 0x13a   : > { %v1460_v16 = vadd.f32 %v5007_v22, %v1447_v15  ;;  %v3473_v15 = vor.u32 %v3985_v7, %v3472_v6  ;;  %v3568_v6 = vld [vmem:[%s4571_s11 + $0x210] sm:$0xf] }
 0x13b   : > { %v1526_v36 = vmul.f32 %v1522_v18, %v1515_v35  ;;  %v3664_v18 = vld [vmem:[%s4571_s11 + $0x2d0] sm:$0xf] }
 0x13c   : > { %v4009_v7 = vld [vmem:[%s4571_s11 + $0x22c] sm:$0xf0] }
 0x13f   : > { %v1448_v49 = vpop.f32.mrf.mxu2 }
 0x140   : > { %v1461_v51 = vpop.f32.mrf.mxu3 }
 0x141   : > { %v3794_v51 = vld [vmem:[%s4571_s11 + $0x3f0] sm:$0xf0] }
 0x142   : > { %v3797_v58 = vor.u32 %v4061_v50, %v3794_v51  ;;  %v3633_v51 = vor.u32 %v4025_v31, %v3632_v37  ;;  %v3982_v37 = vld [vmem:[%s4571_s11 + $0x15c] sm:$0xf] }
 0x143   : > { %v3482_v31 = vld [vmem:[%s4571_s11 + $0x178] sm:$0xf0] }
 0x14f   : > { %v1472_v21 = vpop.f32.mrf.mxu0 }
 0x150   : > { %v1485_v23 = vpop.f32.mrf.mxu1  ;;  %v1473_v24 = vadd.f32 %v1472_v21, %v1460_v16  ;;  %v3729_v16 = vor.u32 %v4049_v10, %v3728_v62  ;;  %v3440_v21 = vld [vmem:[%s4571_s11 + $0x110] sm:$0xf]  ;;  %v3941_v62 = vld [vmem:[%s4571_s11 + $0x14] sm:$0xf] }
 0x151   : > { %v3314_v10 = vld [vmem:[%s4571_s11 + $0x30] sm:$0xf0] }
 0x152   : > { %v1486_v25 = vadd.f32 %v1485_v23, %v1473_v24  ;;  %v3977_v23 = vld [vmem:[%s4571_s11 + $0x12c] sm:$0xf0]  ;;  %v3477_v24 = vor.u32 %v3981_v11, %v3474_v12  ;;  %v4005_v11 = vld [vmem:[%s4571_s11 + $0x214] sm:$0xf] }
 0x153   : > { %v3570_v12 = vld [vmem:[%s4571_s11 + $0x230] sm:$0xf0] }
 0x157   : > { %v1498_v26 = vpop.f32.mrf.mxu2  ;;  %v1474_v32 = vpop.f32.mrf.mxu0 }
 0x158   : > { %v1499_v29 = vadd.f32 %v1498_v26, %v1486_v25  ;;  %v1511_v30 = vpop.f32.mrf.mxu3  ;;  %v1487_v20 = vpop.f32.mrf.mxu1  ;;  %v3696_v25 = vld [vmem:[%s4571_s11 + $0x310] sm:$0xf]  ;;  %v3441_v32 = vor.u32 %v3977_v23, %v3440_v21  ;;  %v3998_v21 = vld [vmem:[%s4571_s11 + $0x1dc] sm:$0xf] }
 0x159   : > { %v4041_v26 = vld [vmem:[%s4571_s11 + $0x32c] sm:$0xf0] }
 0x15a   : > { %v1512_v22 = vadd.f32 %v1511_v30, %v1499_v29  ;;  %v4037_v29 = vld [vmem:[%s4571_s11 + $0x314] sm:$0xf]  ;;  %v3697_v33 = vor.u32 %v4041_v26, %v3696_v25  ;;  %v3408_v20 = vld [vmem:[%s4571_s11 + $0xd0] sm:$0xf]  ;;  %v4062_v25 = vld [vmem:[%s4571_s11 + $0x3dc] sm:$0xf] }
 0x15b   : > { %v3698_v30 = vld [vmem:[%s4571_s11 + $0x330] sm:$0xf0]  ;;  %v3802_v26 = vld [vmem:[%s4571_s11 + $0x3f8] sm:$0xf0] }
 0x15c   : > { %v1516_v5 = vmax.f32 %v1512_v22, 0.0  ;;  %v3969_v22 = vld [vmem:[%s4571_s11 + $0xec] sm:$0xf0]  ;;  %v3701_v35 = vor.u32 %v4037_v29, %v3698_v30  ;;  %v3545_v29 = vor.u32 %v4002_v14, %v3544_v13  ;;  %v3384_v13 = vld [vmem:[%s4571_s11 + $0x98] sm:$0xf] }
 0x15d   : > { %v3962_v14 = vld [vmem:[%s4571_s11 + $0xb4] sm:$0xf0] }
 0x15e   : > { %v1527_v17 = vmul.f32 %v1523_v34, %v1516_v5  ;;  %v3445_v34 = vor.u32 %v3973_v27, %v3442_v28  ;;  %v4033_v5 = vld [vmem:[%s4571_s11 + $0x2ec] sm:$0xf0]  ;;  %v3317_v27 = vor.u32 %v3941_v62, %v3314_v10  ;;  %v3573_v28 = vor.u32 %v4005_v11, %v3570_v12  ;;  %v4030_v62 = vld [vmem:[%s4571_s11 + $0x2dc] sm:$0xf] }
 0x15f   : > { %v1500_v40 = vpop.f32.mrf.mxu2  ;;  %v3674_v10 = vld [vmem:[%s4571_s11 + $0x2f8] sm:$0xf0] }
 0x160   : > { %v1530_v41 = vrot.slane %v1527_v17, 7  ;;  %v1513_v43 = vpop.f32.mrf.mxu3  ;;  %v3965_v17 = vld [vmem:[%s4571_s11 + $0xd4] sm:$0xf] }
 0x161   : > { %v3410_v40 = vld [vmem:[%s4571_s11 + $0xf0] sm:$0xf0]  ;;  %v3665_v43 = vor.u32 %v4033_v5, %v3664_v18  ;;  %v3990_v18 = vld [vmem:[%s4571_s11 + $0x19c] sm:$0xf] }
 0x162   : > { %v1532_v19 = vsel %vm1531_vm0, %v1526_v36, %v1530_v41  ;;  %v4029_v36 = vld [vmem:[%s4571_s11 + $0x2d4] sm:$0xf]  ;;  %v3409_v41 = vor.u32 %v3969_v22, %v3408_v20  ;;  %v3413_v45 = vor.u32 %v3965_v17, %v3410_v40  ;;  %v3805_v22 = vor.u32 %v4062_v25, %v3802_v26  ;;  %v3514_v5 = vld [vmem:[%s4571_s11 + $0x1b8] sm:$0xf0] }
 0x163   : > { %v1534_v44 = vadd.f32 %v1532_v19, %v1519_v38  ;;  %v3666_v38 = vld [vmem:[%s4571_s11 + $0x2f0] sm:$0xf0]  ;;  %v3376_v19 = vld [vmem:[%s4571_s11 + $0x90] sm:$0xf]  ;;  %v4054_v17 = vld [vmem:[%s4571_s11 + $0x39c] sm:$0xf] }
 0x164   : > { %v3669_v42 = vor.u32 %v4029_v36, %v3666_v38  ;;  %v3770_v40 = vld [vmem:[%s4571_s11 + $0x3b8] sm:$0xf0] }
 0x165   : > { %v1536_v48 = vperm.slane %v1534_v44, 0  ;;  %v1537_v49 = vperm.slane %v1534_v44, 1  ;;  %v3961_v44 = vld [vmem:[%s4571_s11 + $0xac] sm:$0xf0]  ;;  %v4022_v25 = vld [vmem:[%s4571_s11 + $0x29c] sm:$0xf] }
 0x166   : > { %v3377_v50 = vor.u32 %v3961_v44, %v3376_v19  ;;  %v3517_v19 = vor.u32 %v3990_v18, %v3514_v5  ;;  %v3773_v44 = vor.u32 %v4054_v17, %v3770_v40  ;;  %v3642_v26 = vld [vmem:[%s4571_s11 + $0x2b8] sm:$0xf0] }
 0x167   : > { %v5061_v52 = vpack.c.bf16 %v1536_v48, %v1536_v48  ;;  %v5063_v53 = vpack.c.bf16 %v1537_v49, %v1537_v49  ;;  %v4021_v48 = vld [vmem:[%s4571_s11 + $0x294] sm:$0xf]  ;;  %v4014_v18 = vld [vmem:[%s4571_s11 + $0x25c] sm:$0xf] }
 0x168   : > { %v3634_v49 = vld [vmem:[%s4571_s11 + $0x2b0] sm:$0xf0]  ;;  %v3610_v5 = vld [vmem:[%s4571_s11 + $0x278] sm:$0xf0] }
 0x169   : > { %2336 = vmatmul.bf16.vlgmr.msra.gmra.mxu0 %v5061_v52  ;;  %2349 = vmatmul.bf16.vlgmr.msra.gmra.mxu1 %v5063_v53  ;;  %v3637_v56 = vor.u32 %v4021_v48, %v3634_v49 }
 0x16a   : > { %2362 = vmatmul.bf16.vlgmr.msra.gmra.mxu2 %v5061_v52  ;;  %2375 = vmatmul.bf16.vlgmr.msra.gmra.mxu3 %v5063_v53 }
 0x16b   : > { %2432 = vmatpush.bf16.msra.mxu0 %v3537_v39  ;;  %2445 = vmatpush.bf16.msra.mxu1 %v3793_v54  ;;  %v3344_v39 = vld [vmem:[%s4571_s11 + $0x50] sm:$0xf] }
 0x16c   : > { %2458 = vmatpush.bf16.msra.mxu2 %v3541_v57  ;;  %2471 = vmatpush.bf16.msra.mxu3 %v3797_v58  ;;  %v3953_v54 = vld [vmem:[%s4571_s11 + $0x6c] sm:$0xf0] }
 0x16d   : > { %v3600_v57 = vld [vmem:[%s4571_s11 + $0x250] sm:$0xf]  ;;  %v3345_v1 = vor.u32 %v3953_v54, %v3344_v39  ;;  %v3485_v39 = vor.u32 %v3982_v37, %v3482_v31  ;;  %v3741_v54 = vor.u32 %v4046_v46, %v3738_v47  ;;  %v4006_v37 = vld [vmem:[%s4571_s11 + $0x21c] sm:$0xf] }
 0x16e   : > { %v4017_v58 = vld [vmem:[%s4571_s11 + $0x26c] sm:$0xf0]  ;;  %v3578_v31 = vld [vmem:[%s4571_s11 + $0x238] sm:$0xf0] }
 0x16f   : > { %2433 = vmatpush.bf16.msra.mxu0 %v3505_v2  ;;  %2446 = vmatpush.bf16.msra.mxu1 %v3761_v4  ;;  %v3601_v2 = vor.u32 %v4017_v58, %v3600_v57  ;;  %v3945_v4 = vld [vmem:[%s4571_s11 + $0x2c] sm:$0xf0]  ;;  %v3974_v57 = vld [vmem:[%s4571_s11 + $0x11c] sm:$0xf] }
 0x170   : > { %2459 = vmatpush.bf16.msra.mxu2 %v3509_v8  ;;  %2472 = vmatpush.bf16.msra.mxu3 %v3765_v9  ;;  %v3349_v8 = vor.u32 %v3949_v59, %v3346_v60  ;;  %v3605_v9 = vor.u32 %v4013_v61, %v3602_v63  ;;  %v3313_v23 = vor.u32 %v3945_v4, %v3312_v0  ;;  %v3450_v58 = vld [vmem:[%s4571_s11 + $0x138] sm:$0xf0]  ;;  %v3416_v0 = vld [vmem:[%s4571_s11 + $0xd8] sm:$0xf] }
 0x171   : > { %v4038_v59 = vld [vmem:[%s4571_s11 + $0x31c] sm:$0xf] }
 0x172   : > { %v3706_v60 = vld [vmem:[%s4571_s11 + $0x338] sm:$0xf0] }
 0x173   : > { %2434 = vmatpush.bf16.msra.mxu0 %v3473_v15  ;;  %2447 = vmatpush.bf16.msra.mxu1 %v3729_v16  ;;  %v3800_v15 = vld [vmem:[%s4571_s11 + $0x3d8] sm:$0xf]  ;;  %v3709_v4 = vor.u32 %v4038_v59, %v3706_v60 }
 0x174   : > { %2460 = vmatpush.bf16.msra.mxu2 %v3477_v24  ;;  %2473 = vmatpush.bf16.msra.mxu3 %v3733_v3  ;;  %v4066_v16 = vld [vmem:[%s4571_s11 + $0x3f4] sm:$0xf0]  ;;  %v3569_v24 = vor.u32 %v4009_v7, %v3568_v6  ;;  %v3546_v3 = vld [vmem:[%s4571_s11 + $0x1f8] sm:$0xf0] }
 0x175   : > { %v3801_v30 = vor.u32 %v4066_v16, %v3800_v15  ;;  %v3549_v20 = vor.u32 %v3998_v21, %v3546_v3  ;;  %v3672_v6 = vld [vmem:[%s4571_s11 + $0x2d8] sm:$0xf]  ;;  %v3677_v16 = vor.u32 %v4030_v62, %v3674_v10  ;;  %v3386_v3 = vld [vmem:[%s4571_s11 + $0xb8] sm:$0xf0] }
 0x176   : > { %v4034_v7 = vld [vmem:[%s4571_s11 + $0x2f4] sm:$0xf0] }
 0x177   : > { %2435 = vmatpush.bf16.msra.mxu0 %v3441_v32  ;;  %2448 = vmatpush.bf16.msra.mxu1 %v3697_v33  ;;  %v3512_v32 = vld [vmem:[%s4571_s11 + $0x198] sm:$0xf]  ;;  %v3673_v12 = vor.u32 %v4034_v7, %v3672_v6 }
 0x178   : > { %2461 = vmatpush.bf16.msra.mxu2 %v3445_v34  ;;  %2474 = vmatpush.bf16.msra.mxu3 %v3701_v35  ;;  %v3994_v33 = vld [vmem:[%s4571_s11 + $0x1b4] sm:$0xf0] }
 0x179   : > { %2388 = vmatmul.bf16.vlgmr.msrb.gmra.mxu0 %v5061_v52  ;;  %2401 = vmatmul.bf16.vlgmr.msrb.gmra.mxu1 %v5063_v53  ;;  %v3768_v34 = vld [vmem:[%s4571_s11 + $0x398] sm:$0xf]  ;;  %v3513_v36 = vor.u32 %v3994_v33, %v3512_v32  ;;  %v3645_v33 = vor.u32 %v4022_v25, %v3642_v26 }
 0x17a   : > { %2414 = vmatmul.bf16.vlgmr.msrb.gmra.mxu2 %v5061_v52  ;;  %2427 = vmatmul.bf16.vlgmr.msrb.gmra.mxu3 %v5063_v53  ;;  %v4058_v35 = vld [vmem:[%s4571_s11 + $0x3b4] sm:$0xf0] }
 0x17b   : > { %2436 = vmatpush.bf16.msra.mxu0 %v3409_v41  ;;  %2449 = vmatpush.bf16.msra.mxu1 %v3665_v43  ;;  %v3769_v38 = vor.u32 %v4058_v35, %v3768_v34  ;;  %v3480_v41 = vld [vmem:[%s4571_s11 + $0x158] sm:$0xf]  ;;  %v3950_v34 = vld [vmem:[%s4571_s11 + $0x5c] sm:$0xf] }
 0x17c   : > { %2462 = vmatpush.bf16.msra.mxu2 %v3413_v45  ;;  %2475 = vmatpush.bf16.msra.mxu3 %v3669_v42  ;;  %v3986_v43 = vld [vmem:[%s4571_s11 + $0x174] sm:$0xf0]  ;;  %v3354_v35 = vld [vmem:[%s4571_s11 + $0x78] sm:$0xf0] }
 0x17d   : > { %v3736_v45 = vld [vmem:[%s4571_s11 + $0x358] sm:$0xf]  ;;  %v3481_v48 = vor.u32 %v3986_v43, %v3480_v41  ;;  %v3357_v41 = vor.u32 %v3950_v34, %v3354_v35  ;;  %v3613_v43 = vor.u32 %v4014_v18, %v3610_v5 }
 0x17e   : > { %v4050_v42 = vld [vmem:[%s4571_s11 + $0x374] sm:$0xf0] }
 0x17f   : > { %2437 = vmatpush.bf16.msra.mxu0 %v3377_v50  ;;  %2450 = vmatpush.bf16.msra.mxu1 %v3633_v51  ;;  %v3737_v49 = vor.u32 %v4050_v42, %v3736_v45  ;;  %v3448_v50 = vld [vmem:[%s4571_s11 + $0x118] sm:$0xf]  ;;  %v3942_v45 = vld [vmem:[%s4571_s11 + $0x1c] sm:$0xf] }
 0x180   : > { %2463 = vmatpush.bf16.msra.mxu2 %v3381_v55  ;;  %2476 = vmatpush.bf16.msra.mxu3 %v3637_v56  ;;  %v3978_v51 = vld [vmem:[%s4571_s11 + $0x134] sm:$0xf0]  ;;  %v3322_v42 = vld [vmem:[%s4571_s11 + $0x38] sm:$0xf0] }
 0x181   : > { %v3704_v55 = vld [vmem:[%s4571_s11 + $0x318] sm:$0xf]  ;;  %v3449_v61 = vor.u32 %v3978_v51, %v3448_v50  ;;  %v1670_v50 = vld [vmem:[%s4594_s5] sm:$0xff] }
 0x182   : > { %v4042_v56 = vld [vmem:[%s4571_s11 + $0x334] sm:$0xf0]  ;;  %v2312_v51 = vperm.slane %v1670_v50, 0  ;;  %v2314_v25 = vperm.slane %v1670_v50, 2  ;;  %v2317_v26 = vperm.slane %v1670_v50, 5  ;;  %v2319_v18 = vperm.slane %v1670_v50, 7 }
 0x183   : > { %2438 = vmatpush.bf16.msra.mxu0 %v3345_v1  ;;  %2451 = vmatpush.bf16.msra.mxu1 %v3601_v2  ;;  %v3705_v63 = vor.u32 %v4042_v56, %v3704_v55  ;;  %v3970_v1 = vld [vmem:[%s4571_s11 + $0xf4] sm:$0xf0]  ;;  %v3453_v2 = vor.u32 %v3974_v57, %v3450_v58  ;;  %v2313_v57 = vperm.slane %v1670_v50, 1 }
 0x184   : > { %2464 = vmatpush.bf16.msra.mxu2 %v3349_v8  ;;  %2477 = vmatpush.bf16.msra.mxu3 %v3605_v9  ;;  %v3966_v8 = vld [vmem:[%s4571_s11 + $0xdc] sm:$0xf]  ;;  %v3417_v11 = vor.u32 %v3970_v1, %v3416_v0  ;;  %v3640_v21 = vld [vmem:[%s4571_s11 + $0x298] sm:$0xf] }
 0x185   : > { %v3418_v9 = vld [vmem:[%s4571_s11 + $0xf8] sm:$0xf0] }
 0x186   : > { %v3421_v15 = vor.u32 %v3966_v8, %v3418_v9 }
 0x187   : > { %2439 = vmatpush.bf16.msra.mxu0 %v3313_v23  ;;  %2452 = vmatpush.bf16.msra.mxu1 %v3569_v24  ;;  %v4026_v23 = vld [vmem:[%s4571_s11 + $0x2b4] sm:$0xf0]  ;;  %v3958_v24 = vld [vmem:[%s4571_s11 + $0x9c] sm:$0xf] }
 0x188   : > { %2465 = vmatpush.bf16.msra.mxu2 %v3317_v27  ;;  %2478 = vmatpush.bf16.msra.mxu3 %v3573_v28  ;;  %v3385_v27 = vor.u32 %v3962_v14, %v3384_v13  ;;  %v3641_v28 = vor.u32 %v4026_v23, %v3640_v21  ;;  %v3389_v32 = vor.u32 %v3958_v24, %v3386_v3  ;;  %v2315_v3 = vperm.slane %v1670_v50, 3 }
 0x18a   : > { %2440 = vmatmul.bf16.vlgmr.msra.gmra.mxu0 %v5061_v52  ;;  %2453 = vmatmul.bf16.vlgmr.msra.gmra.mxu1 %v5063_v53 }
 0x18b   : > { %2484 = vmatpush.bf16.msrb.mxu0 %v3545_v29  ;;  %2497 = vmatpush.bf16.msrb.mxu1 %v3801_v30  ;;  %v3352_v29 = vld [vmem:[%s4571_s11 + $0x58] sm:$0xf] }
 0x18c   : > { %2510 = vmatpush.bf16.msrb.mxu2 %v3549_v20  ;;  %2523 = vmatpush.bf16.msrb.mxu3 %v3805_v22  ;;  %v3954_v30 = vld [vmem:[%s4571_s11 + $0x74] sm:$0xf0] }
 0x18d   : > { %2466 = vmatmul.bf16.vlgmr.msra.gmra.mxu2 %v5061_v52  ;;  %2479 = vmatmul.bf16.vlgmr.msra.gmra.mxu3 %v5063_v53  ;;  %v3608_v20 = vld [vmem:[%s4571_s11 + $0x258] sm:$0xf]  ;;  %v3353_v17 = vor.u32 %v3954_v30, %v3352_v29  ;;  %v2318_v29 = vperm.slane %v1670_v50, 6 }
 0x18e   : > { %v4018_v22 = vld [vmem:[%s4571_s11 + $0x274] sm:$0xf0] }
 0x18f   : > { %2485 = vmatpush.bf16.msrb.mxu0 %v3513_v36  ;;  %2498 = vmatpush.bf16.msrb.mxu1 %v3769_v38  ;;  %v3609_v40 = vor.u32 %v4018_v22, %v3608_v20  ;;  %v3320_v36 = vld [vmem:[%s4571_s11 + $0x18] sm:$0xf] }
 0x190   : > { %2511 = vmatpush.bf16.msrb.mxu2 %v3517_v19  ;;  %2524 = vmatpush.bf16.msrb.mxu3 %v3773_v44  ;;  %v3946_v38 = vld [vmem:[%s4571_s11 + $0x34] sm:$0xf0] }
 0x191   : > { %v3576_v19 = vld [vmem:[%s4571_s11 + $0x218] sm:$0xf]  ;;  %v3321_v46 = vor.u32 %v3946_v38, %v3320_v36 }
 0x192   : > { %v4010_v44 = vld [vmem:[%s4571_s11 + $0x234] sm:$0xf0] }
 0x193   : > { %2486 = vmatpush.bf16.msrb.mxu0 %v3481_v48  ;;  %2499 = vmatpush.bf16.msrb.mxu1 %v3737_v49  ;;  %v3577_v47 = vor.u32 %v4010_v44, %v3576_v19  ;;  %v3325_v48 = vor.u32 %v3942_v45, %v3322_v42  ;;  %v3581_v49 = vor.u32 %v4006_v37, %v3578_v31 }
 0x194   : > { %2512 = vmatpush.bf16.msrb.mxu2 %v3485_v39  ;;  %2525 = vmatpush.bf16.msrb.mxu3 %v3741_v54 }
 0x197   : > { %2487 = vmatpush.bf16.msrb.mxu0 %v3449_v61  ;;  %2500 = vmatpush.bf16.msrb.mxu1 %v3705_v63 }
 0x198   : > { %2513 = vmatpush.bf16.msrb.mxu2 %v3453_v2  ;;  %2526 = vmatpush.bf16.msrb.mxu3 %v3709_v4 }
 0x19b   : > { %2488 = vmatpush.bf16.msrb.mxu0 %v3417_v11  ;;  %2501 = vmatpush.bf16.msrb.mxu1 %v3673_v12 }
 0x19c   : > { %2514 = vmatpush.bf16.msrb.mxu2 %v3421_v15  ;;  %2527 = vmatpush.bf16.msrb.mxu3 %v3677_v16 }
 0x19f   : > { %2489 = vmatpush.bf16.msrb.mxu0 %v3385_v27  ;;  %2502 = vmatpush.bf16.msrb.mxu1 %v3641_v28  ;;  %v2316_v28 = vperm.slane %v1670_v50, 4 }
 0x1a0   : > { %2515 = vmatpush.bf16.msrb.mxu2 %v3389_v32  ;;  %2528 = vmatpush.bf16.msrb.mxu3 %v3645_v33 }
 0x1a3   : > { %2490 = vmatpush.bf16.msrb.mxu0 %v3353_v17  ;;  %2503 = vmatpush.bf16.msrb.mxu1 %v3609_v40 }
 0x1a4   : > { %2516 = vmatpush.bf16.msrb.mxu2 %v3357_v41  ;;  %2529 = vmatpush.bf16.msrb.mxu3 %v3613_v43 }
 0x1a7   : > { %2491 = vmatpush.bf16.msrb.mxu0 %v3321_v46  ;;  %2504 = vmatpush.bf16.msrb.mxu1 %v3577_v47 }
 0x1a8   : > { %2517 = vmatpush.bf16.msrb.mxu2 %v3325_v48  ;;  %2530 = vmatpush.bf16.msrb.mxu3 %v3581_v49 }
 0x1aa   : > { %2492 = vmatmul.bf16.vlgmr.msrb.gmra.mxu0 %v5061_v52  ;;  %2505 = vmatmul.bf16.vlgmr.msrb.gmra.mxu1 %v5063_v53 }
 0x1ab   : > { %2518 = vmatmul.bf16.vlgmr.msrb.gmra.mxu2 %v5061_v52  ;;  %2531 = vmatmul.bf16.vlgmr.msrb.gmra.mxu3 %v5063_v53 }
 0x1e6   : > { %v2337_v39 = vpop.f32.mrf.mxu0  ;;  %v2350_v54 = vpop.f32.mrf.mxu1 }
 0x1e7   : > { %v2338_v55 = vadd.f32 %v2337_v39, %v2312_v51 }
 0x1e9   : > { %v2351_v56 = vadd.f32 %v2350_v54, %v2338_v55 }
 0x1ed   : > { %v2363_v58 = vpop.f32.mrf.mxu2  ;;  %v2376_v59 = vpop.f32.mrf.mxu3 }
 0x1ee   : > { %v2364_v60 = vadd.f32 %v2363_v58, %v2313_v57  ;;  %v2339_v61 = vpop.f32.mrf.mxu0  ;;  %v2352_v63 = vpop.f32.mrf.mxu1  ;;  %v4162_v58 = vld [vmem:[#allocation2] sm:$0xff] }
 0x1f0   : > { %v2377_v0 = vadd.f32 %v2376_v59, %v2364_v60 }
 0x1f2   : > { %v2544_v1 = vrot.slane %v2377_v0, 7 }
 0x1f4   : > { %v2551_v2 = vsel %vm1531_vm0, %v2351_v56, %v2544_v1 }
 0x1f5   : > { %v2365_v4 = vpop.f32.mrf.mxu2  ;;  %v2378_v52 = vpop.f32.mrf.mxu3 }
 0x1f6   : > { %v2389_v6 = vpop.f32.mrf.mxu0  ;;  %v2402_v53 = vpop.f32.mrf.mxu1 }
 0x1f7   : > { %v2390_v33 = vadd.f32 %v2389_v6, %v2314_v25 }
 0x1f9   : > { %v2403_v5 = vadd.f32 %v2402_v53, %v2390_v33 }
 0x1fb   : > { %v2545_v42 = vrot.slane %v2403_v5, 6 }
 0x1fd   : > { %v2415_v7 = vpop.f32.mrf.mxu2  ;;  %v2428_v8 = vpop.f32.mrf.mxu3 }
 0x1fe   : > { %v2391_v9 = vpop.f32.mrf.mxu0  ;;  %v2404_v62 = vpop.f32.mrf.mxu1  ;;  %v2416_v27 = vadd.f32 %v2415_v7, %v2315_v3 }
 0x200   : > { %v2429_v22 = vadd.f32 %v2428_v8, %v2416_v27 }
 0x202   : > { %v2546_v40 = vrot.slane %v2429_v22, 5 }
 0x204   : > { %v2553_v46 = vsel %vm2552_vm1, %v2545_v42, %v2546_v40 }
 0x205   : > { %v2417_v10 = vpop.f32.mrf.mxu2  ;;  %v2430_v11 = vpop.f32.mrf.mxu3  ;;  %v2555_v39 = vsel %vm2554_vm2, %v2551_v2, %v2553_v46 }
 0x207   : > { %v2441_v12 = vpop.f32.mrf.mxu0  ;;  %v2454_v13 = vpop.f32.mrf.mxu1 }
 0x208   : > { %v2442_v34 = vadd.f32 %v2441_v12, %v2316_v28 }
 0x20a   : > { %v2455_v41 = vadd.f32 %v2454_v13, %v2442_v34 }
 0x20c   : > { %v2547_v47 = vrot.slane %v2455_v41, 4 }
 0x20f   : > { %v2443_v16 = vpop.f32.mrf.mxu0  ;;  %v2456_v21 = vpop.f32.mrf.mxu1 }
 0x210   : > { %v2467_v14 = vpop.f32.mrf.mxu2  ;;  %v2480_v15 = vpop.f32.mrf.mxu3 }
 0x211   : > { %v2468_v20 = vadd.f32 %v2467_v14, %v2317_v26 }
 0x213   : > { %v2481_v17 = vadd.f32 %v2480_v15, %v2468_v20 }
 0x215   : > { %v2548_v37 = vrot.slane %v2481_v17, 3 }
 0x217   : > { %v2557_v50 = vsel %vm2556_vm3, %v2547_v47, %v2548_v37 }
 0x218   : > { %v2469_v23 = vpop.f32.mrf.mxu2  ;;  %v2482_v24 = vpop.f32.mrf.mxu3 }
 0x227   : > { %v2493_v30 = vpop.f32.mrf.mxu0  ;;  %v2506_v32 = vpop.f32.mrf.mxu1 }
 0x228   : > { %v2494_v35 = vadd.f32 %v2493_v30, %v2318_v29 }
 0x22a   : > { %v2507_v43 = vadd.f32 %v2506_v32, %v2494_v35 }
 0x22c   : > { %v2549_v48 = vrot.slane %v2507_v43, 2 }
 0x22e   : > { %v2519_v36 = vpop.f32.mrf.mxu2  ;;  %v2532_v38 = vpop.f32.mrf.mxu3 }
 0x22f   : > { %v2520_v19 = vadd.f32 %v2519_v36, %v2319_v18  ;;  %v2495_v44 = vpop.f32.mrf.mxu0  ;;  %v2508_v45 = vpop.f32.mrf.mxu1 }
 0x231   : > { %v2533_v31 = vadd.f32 %v2532_v38, %v2520_v19 }
 0x233   : > { %v2550_v49 = vrot.slane %v2533_v31, 1 }
 0x235   : > { %v2559_v51 = vsel %vm2558_vm4, %v2549_v48, %v2550_v49 }
 0x236   : > { %v2561_v54 = vsel %vm2560_vm5, %v2557_v50, %v2559_v51  ;;  %v2521_v55 = vpop.f32.mrf.mxu2  ;;  %v2534_v56 = vpop.f32.mrf.mxu3 }
 0x237   : > { %v2563_v57 = vsel %vm2562_vm6, %v2555_v39, %v2561_v54 }
 0x238   : > { %v2565_v59 = vadd.f32 %v4162_v58, %v2563_v57 }
 0x23a   : > { %v2566_v60 = vmax.f32 %v2565_v59, 0.0 }
 0x23c   : > { %2567 = vst [vmem:[#allocation2] sm:$0xff] %v2566_v60 }
 0x23d   : > { %2568 = vst [vmem:[%s4592_s18] sm:$0xff] %v2566_v60 }
 0x23e PF: > { %s26_s8 = sadd.s32 1, %s4387_s8   ;;  %s5257_s27 = sld [smem:[#allocation14_spill]] }
 0x23f   : > { %p23_p3 = scmp.ge.s32.totalorder %s26_s8, 8   ;;  %s5258_s26 = sld [smem:[#allocation18_spill]] }
 0x240   : > { %s5259_s28 = sld [smem:[#allocation15_spill]]  ;;  %s5262_s24 = smov %s4363_s25 }
 0x241   : > { %s5260_s15 = sld [smem:[#allocation16_spill]] }
 0x242   : > { %s5261_s30 = sld [smem:[#allocation17_spill]] }
 0x243   :  { %25 = sbr.rel (!%p23_p3) target bundleno = 14 (0xe), region = 146 }
 0x244   : > { %s5263_s25 = smov %s5257_s27  ;;  %s5264_s27 = smov %s4379_s29 }
 0x247   : > { %s5265_s29 = smov %s5260_s15 }
 0x248   :  { %2588 = vsyncpa [#allocation4], 1 }
 0x249   :  { %2590 = vsyncpa [#allocation4 + $0x1], 1 }
 0x24a   :  { %2591 = vsyncpa [#allocation6], 1 }
 0x24b   :  { %2593 = vsyncpa [#allocation6 + $0x1], 1 }
 0x24c   :  { %2594 = vsyncpa [#allocation9], 1 }
 0x24d   :  { %2596 = vsyncpa [#allocation9 + $0x1], 1 }

</bundles_post_ra>
